<compile_context>
chip_gen: v6e
topology: v6e:2x2x1
jax: 0.10.0
libtpu: 0.0.40
codegen_flags: <defaults>
</compile_context>

<pallas_src>
import numpy as np

import jax
import jax.numpy as jnp
from jax.experimental import pallas as pl
from jax.experimental.pallas import tpu as pltpu

# Network constants from the PyTorch module.
C_IN, C1, C2, C_OUT = 3, 64, 32, 3
K1, PAD1 = 9, 4          # conv1: 9x9, pad 4
K3, PAD3 = 5, 2          # conv3: 5x5, pad 2
C8 = 8                   # channel padding for sublane alignment


def _geometry(H, W):
    """Flat-geometry constants for an HxW image."""
    S = W + 2 * PAD1                 # row stride (lanes per padded row)
    R0 = C0 = PAD1 + PAD3            # image origin inside the padded buffer
    L3 = H * S                       # conv3 output window (lane-dense, H*S)
    L1 = (H + 2 * PAD3 + 1) * S      # conv1/conv2 output window
    LP1 = (H + 2 * (PAD1 + PAD3) + 2) * S   # conv1 padded-input buffer length
    return S, R0, C0, L1, L3, LP1


def _make_fused_kernel(H, W, B):
    S, _, _, L1, L3, _ = _geometry(H, W)

    def kernel(xp_ref, mask_ref, w1_ref, b1_ref, w2_ref, b2_ref, w3_ref, b3_ref,
               o_ref, p1_ref, y1_ref, y2_ref):
        for b in range(B):                       # unrolled: B images per step
            # ---- conv1 im2col: 81 8-sublane-aligned bf16 copies (lane-shifted
            #      slices of the pre-padded input).
            for kh in range(K1):
                for kw in range(K1):
                    t = kh * K1 + kw
                    off = kh * S + kw
                    p1_ref[C8 * t:C8 * t + C8, :] = xp_ref[b, :, off:off + L1]

            # ---- conv1 (9x9): one bf16 MXU matmul [64,648]x[648,L1], f32 acc.
            y1 = jnp.dot(w1_ref[...], p1_ref[...],
                         preferred_element_type=jnp.float32)
            y1_ref[...] = jnp.maximum(y1 + b1_ref[...], 0.0).astype(jnp.bfloat16)

            # ---- conv2 (1x1): [32,64]x[64,L1]; relu; static mask zeroes
            #      everything outside the valid HxW block (this is both the
            #      row-wrap-garbage fix and conv3's zero padding).
            y2 = jnp.dot(w2_ref[...], y1_ref[...],
                         preferred_element_type=jnp.float32)
            y2 = jnp.maximum(y2 + b2_ref[...], 0.0) * mask_ref[...]
            y2_ref[...] = y2.astype(jnp.bfloat16)

            # ---- conv3 (5x5): no patch materialization; 25 accumulated
            #      [8,32]x[32,L3] dots reading the masked conv2 output in place.
            acc = jnp.dot(w3_ref[0], y2_ref[:, 0:L3],
                          preferred_element_type=jnp.float32)
            for t in range(1, K3 * K3):
                kh, kw = divmod(t, K3)
                off = kh * S + kw
                acc = acc + jnp.dot(w3_ref[t], y2_ref[:, off:off + L3],
                                    preferred_element_type=jnp.float32)
            o_ref[b] = acc + b3_ref[...]

    return kernel


def _pick_b_tile(n):
    """Images per grid step: divisor of n, <=4, keeping >=2 grid steps."""
    if n < 2:
        return 1
    cap = min(4, n // 2)
    for b in range(cap, 0, -1):
        if n % b == 0:
            return b
    return 1


@jax.jit
def super_res_model(x_nchw, params):
    (w1, b1), (w2, b2), (w3, b3) = params
    N, _, H, W = x_nchw.shape
    S, R0, C0, L1, L3, LP1 = _geometry(H, W)
    B = _pick_b_tile(N)
    rows_pad = LP1 // S

    # ---- wrapper-side layout plumbing (tiny HBM data) -----------------------
    # conv1 halo padding + channel pad 3->8, flattened to (N, 8, LP1), bf16.
    xp = jnp.pad(x_nchw.astype(jnp.float32),
                 ((0, 0), (0, C8 - C_IN),
                  (R0, rows_pad - H - R0), (C0, S - W - C0)))
    xp = xp.reshape(N, C8, LP1).astype(jnp.bfloat16)

    # Static conv3 validity mask over the flat conv1/conv2 output window.
    pos = np.arange(L1)
    row, col = pos // S, pos % S
    valid = ((row >= PAD3) & (row < PAD3 + H) &
             (col >= PAD3) & (col < PAD3 + W))
    mask = jnp.asarray(valid.astype(np.float32)[None, :])

    # Weights: HWIO -> flat bf16; conv1 cin padded to 8, conv3 cout padded to 8.
    w1f = jnp.transpose(jnp.pad(w1, ((0, 0), (0, 0), (0, C8 - C_IN), (0, 0))),
                        (3, 0, 1, 2)).reshape(C1, K1 * K1 * C8).astype(jnp.bfloat16)
    w2f = jnp.transpose(w2, (3, 0, 1, 2)).reshape(C2, C1).astype(jnp.bfloat16)
    w3f = jnp.pad(jnp.transpose(w3, (0, 1, 3, 2)).reshape(K3 * K3, C_OUT, C2),
                  ((0, 0), (0, C8 - C_OUT), (0, 0))).astype(jnp.bfloat16)
    b1r = b1.reshape(C1, 1).astype(jnp.float32)
    b2r = b2.reshape(C2, 1).astype(jnp.float32)
    b3r = jnp.pad(b3, (0, C8 - C_OUT)).reshape(C8, 1).astype(jnp.float32)

    out = pl.pallas_call(
        _make_fused_kernel(H, W, B),
        out_shape=jax.ShapeDtypeStruct((N, C8, L3), jnp.float32),
        grid=(N // B,),
        in_specs=[
            pl.BlockSpec((B, C8, LP1), lambda g: (g, 0, 0)),        # padded x
            pl.BlockSpec((1, L1), lambda g: (0, 0)),                # static mask
            pl.BlockSpec((C1, K1 * K1 * C8), lambda g: (0, 0)),     # w1 (64,648)
            pl.BlockSpec((C1, 1), lambda g: (0, 0)),                # b1
            pl.BlockSpec((C2, C1), lambda g: (0, 0)),               # w2 (32,64)
            pl.BlockSpec((C2, 1), lambda g: (0, 0)),                # b2
            pl.BlockSpec((K3 * K3, C8, C2), lambda g: (0, 0, 0)),   # w3 (25,8,32)
            pl.BlockSpec((C8, 1), lambda g: (0, 0)),                # b3 (padded)
        ],
        out_specs=pl.BlockSpec((B, C8, L3), lambda g: (g, 0, 0)),
        scratch_shapes=[
            pltpu.VMEM((K1 * K1 * C8, L1), jnp.bfloat16),   # conv1 im2col patches
            pltpu.VMEM((C1, L1), jnp.bfloat16),             # conv1 output (relu'd)
            pltpu.VMEM((C2, L1), jnp.bfloat16),             # masked conv2 output
        ],
        compiler_params=pltpu.CompilerParams(
            dimension_semantics=("parallel",)),
    )(xp, mask, w1f, b1r, w2f, b2r, w3f, b3r)

    # Lane-dense (N, 8, H*S) -> NCHW (N, 3, H, W): pure layout plumbing.
    return out[:, :C_OUT, :].reshape(N, C_OUT, H, S)[:, :, :, :W]


def init_params(key):
    """Deterministic init; weights stored HWIO (matches nn.Conv2d fan-in)."""
    ks = jax.random.split(key, 6)

    def conv_init(kw_key, kb_key, kh, kwid, cin, cout):
        fan_in = cin * kh * kwid
        scale = 1.0 / jnp.sqrt(jnp.float32(fan_in))
        w = jax.random.uniform(kw_key, (kh, kwid, cin, cout),
                               jnp.float32, -scale, scale)
        b = jax.random.uniform(kb_key, (cout,), jnp.float32, -scale, scale)
        return w, b

    w1, b1 = conv_init(ks[0], ks[1], K1, K1, C_IN, C1)
    w2, b2 = conv_init(ks[2], ks[3], 1, 1, C1, C2)
    w3, b3 = conv_init(ks[4], ks[5], K3, K3, C2, C_OUT)
    return (w1, b1), (w2, b2), (w3, b3)


def _reference(x_nchw, params):
    """Pure-JAX reference (lax conv, HIGHEST precision) for the check."""
    (w1, b1), (w2, b2), (w3, b3) = params
    x = jnp.transpose(x_nchw, (0, 2, 3, 1)).astype(jnp.float32)

    def conv(x, w, b, pad, relu):
        y = jax.lax.conv_general_dilated(
            x, w, window_strides=(1, 1),
            padding=[(pad, pad), (pad, pad)],
            dimension_numbers=("NHWC", "HWIO", "NHWC"),
            precision=jax.lax.Precision.HIGHEST) + b
        return jnp.maximum(y, 0.0) if relu else y

    x = conv(x, w1, b1, PAD1, True)
    x = conv(x, w2, b2, 0, True)
    x = conv(x, w3, b3, PAD3, False)
    return jnp.transpose(x, (0, 3, 1, 2))


if __name__ == "__main__":
    key = jax.random.PRNGKey(0)
    k_x, k_p = jax.random.split(key)

    # Small shapes consistent with the module: batch=2, 3 channels, 16x16.
    x = jax.random.normal(k_x, (2, 3, 16, 16), jnp.float32)
    params = init_params(k_p)

    out = jax.block_until_ready(super_res_model(x, params))
    assert out.shape == (2, 3, 16, 16), out.shape

    ref = _reference(x, params)
    err = float(jnp.max(jnp.abs(out - ref)))
    assert err < 1e-2, f"max abs error {err}"

    print("KERNEL_OK")
</pallas_src>

<mosaic_0001>
module attributes {stable_mosaic.version = 11 : i64} {
  func.func @kernel(%arg0: i32, %arg1: memref<1x8x720xbf16, #tpu.memory_space<vmem>>, %arg2: memref<1x504xf32, #tpu.memory_space<vmem>>, %arg3: memref<64x648xbf16, #tpu.memory_space<vmem>>, %arg4: memref<64x1xf32, #tpu.memory_space<vmem>>, %arg5: memref<32x64xbf16, #tpu.memory_space<vmem>>, %arg6: memref<32x1xf32, #tpu.memory_space<vmem>>, %arg7: memref<25x8x32xbf16, #tpu.memory_space<vmem>>, %arg8: memref<8x1xf32, #tpu.memory_space<vmem>>, %arg9: memref<1x8x384xf32, #tpu.memory_space<vmem>>, %arg10: memref<648x504xbf16, #tpu.memory_space<vmem>>, %arg11: memref<64x504xbf16, #tpu.memory_space<vmem>>, %arg12: memref<32x504xbf16, #tpu.memory_space<vmem>>) attributes {dimension_semantics = [#tpu.dimension_semantics<parallel>], iteration_bounds = array<i64: 2>, scalar_prefetch = 0 : i64, scratch_operands = 3 : i64, tpu.core_type = #tpu.core_type<tc>, window_params = [{transform_indices = @transform_0, window_bounds = array<i64: 1, 8, 720>}, {pipeline_mode = #tpu.pipeline_mode<synchronous>, transform_indices = @transform_1, window_bounds = array<i64: 1, 504>}, {pipeline_mode = #tpu.pipeline_mode<synchronous>, transform_indices = @transform_2, window_bounds = array<i64: 64, 648>}, {pipeline_mode = #tpu.pipeline_mode<synchronous>, transform_indices = @transform_3, window_bounds = array<i64: 64, 1>}, {pipeline_mode = #tpu.pipeline_mode<synchronous>, transform_indices = @transform_4, window_bounds = array<i64: 32, 64>}, {pipeline_mode = #tpu.pipeline_mode<synchronous>, transform_indices = @transform_5, window_bounds = array<i64: 32, 1>}, {pipeline_mode = #tpu.pipeline_mode<synchronous>, transform_indices = @transform_6, window_bounds = array<i64: 25, 8, 32>}, {pipeline_mode = #tpu.pipeline_mode<synchronous>, transform_indices = @transform_7, window_bounds = array<i64: 8, 1>}, {transform_indices = @transform_8, window_bounds = array<i64: 1, 8, 384>}]} {
    %c0 = arith.constant 0 : index
    %c0_0 = arith.constant 0 : index
    %c0_1 = arith.constant 0 : index
    %0 = vector.load %arg1[%c0, %c0_0, %c0_1] : memref<1x8x720xbf16, #tpu.memory_space<vmem>>, vector<1x8x504xbf16>
    %1 = vector.shape_cast %0 : vector<1x8x504xbf16> to vector<8x504xbf16>
    %c0_2 = arith.constant 0 : index
    %c0_3 = arith.constant 0 : index
    %2 = vector.load %arg10[%c0_2, %c0_3] : memref<648x504xbf16, #tpu.memory_space<vmem>>, vector<8x504xbf16>
    tpu.vector_store %arg10[%c0_2, %c0_3], %1 {strides = array<i32>} : memref<648x504xbf16, #tpu.memory_space<vmem>>, vector<8x504xbf16>,
    %c0_4 = arith.constant 0 : index
    %c0_5 = arith.constant 0 : index
    %c1 = arith.constant 1 : index
    %3 = vector.load %arg1[%c0_4, %c0_5, %c1] : memref<1x8x720xbf16, #tpu.memory_space<vmem>>, vector<1x8x504xbf16>
    %4 = vector.shape_cast %3 : vector<1x8x504xbf16> to vector<8x504xbf16>
    %c8 = arith.constant 8 : index
    %c0_6 = arith.constant 0 : index
    %5 = vector.load %arg10[%c8, %c0_6] : memref<648x504xbf16, #tpu.memory_space<vmem>>, vector<8x504xbf16>
    tpu.vector_store %arg10[%c8, %c0_6], %4 {strides = array<i32>} : memref<648x504xbf16, #tpu.memory_space<vmem>>, vector<8x504xbf16>,
    %c0_7 = arith.constant 0 : index
    %c0_8 = arith.constant 0 : index
    %c2 = arith.constant 2 : index
    %6 = vector.load %arg1[%c0_7, %c0_8, %c2] : memref<1x8x720xbf16, #tpu.memory_space<vmem>>, vector<1x8x504xbf16>
    %7 = vector.shape_cast %6 : vector<1x8x504xbf16> to vector<8x504xbf16>
    %c16 = arith.constant 16 : index
    %c0_9 = arith.constant 0 : index
    %8 = vector.load %arg10[%c16, %c0_9] : memref<648x504xbf16, #tpu.memory_space<vmem>>, vector<8x504xbf16>
    tpu.vector_store %arg10[%c16, %c0_9], %7 {strides = array<i32>} : memref<648x504xbf16, #tpu.memory_space<vmem>>, vector<8x504xbf16>,
    %c0_10 = arith.constant 0 : index
    %c0_11 = arith.constant 0 : index
    %c3 = arith.constant 3 : index
    %9 = vector.load %arg1[%c0_10, %c0_11, %c3] : memref<1x8x720xbf16, #tpu.memory_space<vmem>>, vector<1x8x504xbf16>
    %10 = vector.shape_cast %9 : vector<1x8x504xbf16> to vector<8x504xbf16>
    %c24 = arith.constant 24 : index
    %c0_12 = arith.constant 0 : index
    %11 = vector.load %arg10[%c24, %c0_12] : memref<648x504xbf16, #tpu.memory_space<vmem>>, vector<8x504xbf16>
    tpu.vector_store %arg10[%c24, %c0_12], %10 {strides = array<i32>} : memref<648x504xbf16, #tpu.memory_space<vmem>>, vector<8x504xbf16>,
    %c0_13 = arith.constant 0 : index
    %c0_14 = arith.constant 0 : index
    %c4 = arith.constant 4 : index
    %12 = vector.load %arg1[%c0_13, %c0_14, %c4] : memref<1x8x720xbf16, #tpu.memory_space<vmem>>, vector<1x8x504xbf16>
    %13 = vector.shape_cast %12 : vector<1x8x504xbf16> to vector<8x504xbf16>
    %c32 = arith.constant 32 : index
    %c0_15 = arith.constant 0 : index
    %14 = vector.load %arg10[%c32, %c0_15] : memref<648x504xbf16, #tpu.memory_space<vmem>>, vector<8x504xbf16>
    tpu.vector_store %arg10[%c32, %c0_15], %13 {strides = array<i32>} : memref<648x504xbf16, #tpu.memory_space<vmem>>, vector<8x504xbf16>,
    %c0_16 = arith.constant 0 : index
    %c0_17 = arith.constant 0 : index
    %c5 = arith.constant 5 : index
    %15 = vector.load %arg1[%c0_16, %c0_17, %c5] : memref<1x8x720xbf16, #tpu.memory_space<vmem>>, vector<1x8x504xbf16>
    %16 = vector.shape_cast %15 : vector<1x8x504xbf16> to vector<8x504xbf16>
    %c40 = arith.constant 40 : index
    %c0_18 = arith.constant 0 : index
    %17 = vector.load %arg10[%c40, %c0_18] : memref<648x504xbf16, #tpu.memory_space<vmem>>, vector<8x504xbf16>
    tpu.vector_store %arg10[%c40, %c0_18], %16 {strides = array<i32>} : memref<648x504xbf16, #tpu.memory_space<vmem>>, vector<8x504xbf16>,
    %c0_19 = arith.constant 0 : index
    %c0_20 = arith.constant 0 : index
    %c6 = arith.constant 6 : index
    %18 = vector.load %arg1[%c0_19, %c0_20, %c6] : memref<1x8x720xbf16, #tpu.memory_space<vmem>>, vector<1x8x504xbf16>
    %19 = vector.shape_cast %18 : vector<1x8x504xbf16> to vector<8x504xbf16>
    %c48 = arith.constant 48 : index
    %c0_21 = arith.constant 0 : index
    %20 = vector.load %arg10[%c48, %c0_21] : memref<648x504xbf16, #tpu.memory_space<vmem>>, vector<8x504xbf16>
    tpu.vector_store %arg10[%c48, %c0_21], %19 {strides = array<i32>} : memref<648x504xbf16, #tpu.memory_space<vmem>>, vector<8x504xbf16>,
    %c0_22 = arith.constant 0 : index
    %c0_23 = arith.constant 0 : index
    %c7 = arith.constant 7 : index
    %21 = vector.load %arg1[%c0_22, %c0_23, %c7] : memref<1x8x720xbf16, #tpu.memory_space<vmem>>, vector<1x8x504xbf16>
    %22 = vector.shape_cast %21 : vector<1x8x504xbf16> to vector<8x504xbf16>
    %c56 = arith.constant 56 : index
    %c0_24 = arith.constant 0 : index
    %23 = vector.load %arg10[%c56, %c0_24] : memref<648x504xbf16, #tpu.memory_space<vmem>>, vector<8x504xbf16>
    tpu.vector_store %arg10[%c56, %c0_24], %22 {strides = array<i32>} : memref<648x504xbf16, #tpu.memory_space<vmem>>, vector<8x504xbf16>,
    %c0_25 = arith.constant 0 : index
    %c0_26 = arith.constant 0 : index
    %c8_27 = arith.constant 8 : index
    %24 = vector.load %arg1[%c0_25, %c0_26, %c8_27] : memref<1x8x720xbf16, #tpu.memory_space<vmem>>, vector<1x8x504xbf16>
    %25 = vector.shape_cast %24 : vector<1x8x504xbf16> to vector<8x504xbf16>
    %c64 = arith.constant 64 : index
    %c0_28 = arith.constant 0 : index
    %26 = vector.load %arg10[%c64, %c0_28] : memref<648x504xbf16, #tpu.memory_space<vmem>>, vector<8x504xbf16>
    tpu.vector_store %arg10[%c64, %c0_28], %25 {strides = array<i32>} : memref<648x504xbf16, #tpu.memory_space<vmem>>, vector<8x504xbf16>,
    %c0_29 = arith.constant 0 : index
    %c0_30 = arith.constant 0 : index
    %c24_31 = arith.constant 24 : index
    %27 = vector.load %arg1[%c0_29, %c0_30, %c24_31] : memref<1x8x720xbf16, #tpu.memory_space<vmem>>, vector<1x8x504xbf16>
    %28 = vector.shape_cast %27 : vector<1x8x504xbf16> to vector<8x504xbf16>
    %c72 = arith.constant 72 : index
    %c0_32 = arith.constant 0 : index
    %29 = vector.load %arg10[%c72, %c0_32] : memref<648x504xbf16, #tpu.memory_space<vmem>>, vector<8x504xbf16>
    tpu.vector_store %arg10[%c72, %c0_32], %28 {strides = array<i32>} : memref<648x504xbf16, #tpu.memory_space<vmem>>, vector<8x504xbf16>,
    %c0_33 = arith.constant 0 : index
    %c0_34 = arith.constant 0 : index
    %c25 = arith.constant 25 : index
    %30 = vector.load %arg1[%c0_33, %c0_34, %c25] : memref<1x8x720xbf16, #tpu.memory_space<vmem>>, vector<1x8x504xbf16>
    %31 = vector.shape_cast %30 : vector<1x8x504xbf16> to vector<8x504xbf16>
    %c80 = arith.constant 80 : index
    %c0_35 = arith.constant 0 : index
    %32 = vector.load %arg10[%c80, %c0_35] : memref<648x504xbf16, #tpu.memory_space<vmem>>, vector<8x504xbf16>
    tpu.vector_store %arg10[%c80, %c0_35], %31 {strides = array<i32>} : memref<648x504xbf16, #tpu.memory_space<vmem>>, vector<8x504xbf16>,
    %c0_36 = arith.constant 0 : index
    %c0_37 = arith.constant 0 : index
    %c26 = arith.constant 26 : index
    %33 = vector.load %arg1[%c0_36, %c0_37, %c26] : memref<1x8x720xbf16, #tpu.memory_space<vmem>>, vector<1x8x504xbf16>
    %34 = vector.shape_cast %33 : vector<1x8x504xbf16> to vector<8x504xbf16>
    %c88 = arith.constant 88 : index
    %c0_38 = arith.constant 0 : index
    %35 = vector.load %arg10[%c88, %c0_38] : memref<648x504xbf16, #tpu.memory_space<vmem>>, vector<8x504xbf16>
    tpu.vector_store %arg10[%c88, %c0_38], %34 {strides = array<i32>} : memref<648x504xbf16, #tpu.memory_space<vmem>>, vector<8x504xbf16>,
    %c0_39 = arith.constant 0 : index
    %c0_40 = arith.constant 0 : index
    %c27 = arith.constant 27 : index
    %36 = vector.load %arg1[%c0_39, %c0_40, %c27] : memref<1x8x720xbf16, #tpu.memory_space<vmem>>, vector<1x8x504xbf16>
    %37 = vector.shape_cast %36 : vector<1x8x504xbf16> to vector<8x504xbf16>
    %c96 = arith.constant 96 : index
    %c0_41 = arith.constant 0 : index
    %38 = vector.load %arg10[%c96, %c0_41] : memref<648x504xbf16, #tpu.memory_space<vmem>>, vector<8x504xbf16>
    tpu.vector_store %arg10[%c96, %c0_41], %37 {strides = array<i32>} : memref<648x504xbf16, #tpu.memory_space<vmem>>, vector<8x504xbf16>,
    %c0_42 = arith.constant 0 : index
    %c0_43 = arith.constant 0 : index
    %c28 = arith.constant 28 : index
    %39 = vector.load %arg1[%c0_42, %c0_43, %c28] : memref<1x8x720xbf16, #tpu.memory_space<vmem>>, vector<1x8x504xbf16>
    %40 = vector.shape_cast %39 : vector<1x8x504xbf16> to vector<8x504xbf16>
    %c104 = arith.constant 104 : index
    %c0_44 = arith.constant 0 : index
    %41 = vector.load %arg10[%c104, %c0_44] : memref<648x504xbf16, #tpu.memory_space<vmem>>, vector<8x504xbf16>
    tpu.vector_store %arg10[%c104, %c0_44], %40 {strides = array<i32>} : memref<648x504xbf16, #tpu.memory_space<vmem>>, vector<8x504xbf16>,
    %c0_45 = arith.constant 0 : index
    %c0_46 = arith.constant 0 : index
    %c29 = arith.constant 29 : index
    %42 = vector.load %arg1[%c0_45, %c0_46, %c29] : memref<1x8x720xbf16, #tpu.memory_space<vmem>>, vector<1x8x504xbf16>
    %43 = vector.shape_cast %42 : vector<1x8x504xbf16> to vector<8x504xbf16>
    %c112 = arith.constant 112 : index
    %c0_47 = arith.constant 0 : index
    %44 = vector.load %arg10[%c112, %c0_47] : memref<648x504xbf16, #tpu.memory_space<vmem>>, vector<8x504xbf16>
    tpu.vector_store %arg10[%c112, %c0_47], %43 {strides = array<i32>} : memref<648x504xbf16, #tpu.memory_space<vmem>>, vector<8x504xbf16>,
    %c0_48 = arith.constant 0 : index
    %c0_49 = arith.constant 0 : index
    %c30 = arith.constant 30 : index
    %45 = vector.load %arg1[%c0_48, %c0_49, %c30] : memref<1x8x720xbf16, #tpu.memory_space<vmem>>, vector<1x8x504xbf16>
    %46 = vector.shape_cast %45 : vector<1x8x504xbf16> to vector<8x504xbf16>
    %c120 = arith.constant 120 : index
    %c0_50 = arith.constant 0 : index
    %47 = vector.load %arg10[%c120, %c0_50] : memref<648x504xbf16, #tpu.memory_space<vmem>>, vector<8x504xbf16>
    tpu.vector_store %arg10[%c120, %c0_50], %46 {strides = array<i32>} : memref<648x504xbf16, #tpu.memory_space<vmem>>, vector<8x504xbf16>,
    %c0_51 = arith.constant 0 : index
    %c0_52 = arith.constant 0 : index
    %c31 = arith.constant 31 : index
    %48 = vector.load %arg1[%c0_51, %c0_52, %c31] : memref<1x8x720xbf16, #tpu.memory_space<vmem>>, vector<1x8x504xbf16>
    %49 = vector.shape_cast %48 : vector<1x8x504xbf16> to vector<8x504xbf16>
    %c128 = arith.constant 128 : index
    %c0_53 = arith.constant 0 : index
    %50 = vector.load %arg10[%c128, %c0_53] : memref<648x504xbf16, #tpu.memory_space<vmem>>, vector<8x504xbf16>
    tpu.vector_store %arg10[%c128, %c0_53], %49 {strides = array<i32>} : memref<648x504xbf16, #tpu.memory_space<vmem>>, vector<8x504xbf16>,
    %c0_54 = arith.constant 0 : index
    %c0_55 = arith.constant 0 : index
    %c32_56 = arith.constant 32 : index
    %51 = vector.load %arg1[%c0_54, %c0_55, %c32_56] : memref<1x8x720xbf16, #tpu.memory_space<vmem>>, vector<1x8x504xbf16>
    %52 = vector.shape_cast %51 : vector<1x8x504xbf16> to vector<8x504xbf16>
    %c136 = arith.constant 136 : index
    %c0_57 = arith.constant 0 : index
    %53 = vector.load %arg10[%c136, %c0_57] : memref<648x504xbf16, #tpu.memory_space<vmem>>, vector<8x504xbf16>
    tpu.vector_store %arg10[%c136, %c0_57], %52 {strides = array<i32>} : memref<648x504xbf16, #tpu.memory_space<vmem>>, vector<8x504xbf16>,
    %c0_58 = arith.constant 0 : index
    %c0_59 = arith.constant 0 : index
    %c48_60 = arith.constant 48 : index
    %54 = vector.load %arg1[%c0_58, %c0_59, %c48_60] : memref<1x8x720xbf16, #tpu.memory_space<vmem>>, vector<1x8x504xbf16>
    %55 = vector.shape_cast %54 : vector<1x8x504xbf16> to vector<8x504xbf16>
    %c144 = arith.constant 144 : index
    %c0_61 = arith.constant 0 : index
    %56 = vector.load %arg10[%c144, %c0_61] : memref<648x504xbf16, #tpu.memory_space<vmem>>, vector<8x504xbf16>
    tpu.vector_store %arg10[%c144, %c0_61], %55 {strides = array<i32>} : memref<648x504xbf16, #tpu.memory_space<vmem>>, vector<8x504xbf16>,
    %c0_62 = arith.constant 0 : index
    %c0_63 = arith.constant 0 : index
    %c49 = arith.constant 49 : index
    %57 = vector.load %arg1[%c0_62, %c0_63, %c49] : memref<1x8x720xbf16, #tpu.memory_space<vmem>>, vector<1x8x504xbf16>
    %58 = vector.shape_cast %57 : vector<1x8x504xbf16> to vector<8x504xbf16>
    %c152 = arith.constant 152 : index
    %c0_64 = arith.constant 0 : index
    %59 = vector.load %arg10[%c152, %c0_64] : memref<648x504xbf16, #tpu.memory_space<vmem>>, vector<8x504xbf16>
    tpu.vector_store %arg10[%c152, %c0_64], %58 {strides = array<i32>} : memref<648x504xbf16, #tpu.memory_space<vmem>>, vector<8x504xbf16>,
    %c0_65 = arith.constant 0 : index
    %c0_66 = arith.constant 0 : index
    %c50 = arith.constant 50 : index
    %60 = vector.load %arg1[%c0_65, %c0_66, %c50] : memref<1x8x720xbf16, #tpu.memory_space<vmem>>, vector<1x8x504xbf16>
    %61 = vector.shape_cast %60 : vector<1x8x504xbf16> to vector<8x504xbf16>
    %c160 = arith.constant 160 : index
    %c0_67 = arith.constant 0 : index
    %62 = vector.load %arg10[%c160, %c0_67] : memref<648x504xbf16, #tpu.memory_space<vmem>>, vector<8x504xbf16>
    tpu.vector_store %arg10[%c160, %c0_67], %61 {strides = array<i32>} : memref<648x504xbf16, #tpu.memory_space<vmem>>, vector<8x504xbf16>,
    %c0_68 = arith.constant 0 : index
    %c0_69 = arith.constant 0 : index
    %c51 = arith.constant 51 : index
    %63 = vector.load %arg1[%c0_68, %c0_69, %c51] : memref<1x8x720xbf16, #tpu.memory_space<vmem>>, vector<1x8x504xbf16>
    %64 = vector.shape_cast %63 : vector<1x8x504xbf16> to vector<8x504xbf16>
    %c168 = arith.constant 168 : index
    %c0_70 = arith.constant 0 : index
    %65 = vector.load %arg10[%c168, %c0_70] : memref<648x504xbf16, #tpu.memory_space<vmem>>, vector<8x504xbf16>
    tpu.vector_store %arg10[%c168, %c0_70], %64 {strides = array<i32>} : memref<648x504xbf16, #tpu.memory_space<vmem>>, vector<8x504xbf16>,
    %c0_71 = arith.constant 0 : index
    %c0_72 = arith.constant 0 : index
    %c52 = arith.constant 52 : index
    %66 = vector.load %arg1[%c0_71, %c0_72, %c52] : memref<1x8x720xbf16, #tpu.memory_space<vmem>>, vector<1x8x504xbf16>
    %67 = vector.shape_cast %66 : vector<1x8x504xbf16> to vector<8x504xbf16>
    %c176 = arith.constant 176 : index
    %c0_73 = arith.constant 0 : index
    %68 = vector.load %arg10[%c176, %c0_73] : memref<648x504xbf16, #tpu.memory_space<vmem>>, vector<8x504xbf16>
    tpu.vector_store %arg10[%c176, %c0_73], %67 {strides = array<i32>} : memref<648x504xbf16, #tpu.memory_space<vmem>>, vector<8x504xbf16>,
    %c0_74 = arith.constant 0 : index
    %c0_75 = arith.constant 0 : index
    %c53 = arith.constant 53 : index
    %69 = vector.load %arg1[%c0_74, %c0_75, %c53] : memref<1x8x720xbf16, #tpu.memory_space<vmem>>, vector<1x8x504xbf16>
    %70 = vector.shape_cast %69 : vector<1x8x504xbf16> to vector<8x504xbf16>
    %c184 = arith.constant 184 : index
    %c0_76 = arith.constant 0 : index
    %71 = vector.load %arg10[%c184, %c0_76] : memref<648x504xbf16, #tpu.memory_space<vmem>>, vector<8x504xbf16>
    tpu.vector_store %arg10[%c184, %c0_76], %70 {strides = array<i32>} : memref<648x504xbf16, #tpu.memory_space<vmem>>, vector<8x504xbf16>,
    %c0_77 = arith.constant 0 : index
    %c0_78 = arith.constant 0 : index
    %c54 = arith.constant 54 : index
    %72 = vector.load %arg1[%c0_77, %c0_78, %c54] : memref<1x8x720xbf16, #tpu.memory_space<vmem>>, vector<1x8x504xbf16>
    %73 = vector.shape_cast %72 : vector<1x8x504xbf16> to vector<8x504xbf16>
    %c192 = arith.constant 192 : index
    %c0_79 = arith.constant 0 : index
    %74 = vector.load %arg10[%c192, %c0_79] : memref<648x504xbf16, #tpu.memory_space<vmem>>, vector<8x504xbf16>
    tpu.vector_store %arg10[%c192, %c0_79], %73 {strides = array<i32>} : memref<648x504xbf16, #tpu.memory_space<vmem>>, vector<8x504xbf16>,
    %c0_80 = arith.constant 0 : index
    %c0_81 = arith.constant 0 : index
    %c55 = arith.constant 55 : index
    %75 = vector.load %arg1[%c0_80, %c0_81, %c55] : memref<1x8x720xbf16, #tpu.memory_space<vmem>>, vector<1x8x504xbf16>
    %76 = vector.shape_cast %75 : vector<1x8x504xbf16> to vector<8x504xbf16>
    %c200 = arith.constant 200 : index
    %c0_82 = arith.constant 0 : index
    %77 = vector.load %arg10[%c200, %c0_82] : memref<648x504xbf16, #tpu.memory_space<vmem>>, vector<8x504xbf16>
    tpu.vector_store %arg10[%c200, %c0_82], %76 {strides = array<i32>} : memref<648x504xbf16, #tpu.memory_space<vmem>>, vector<8x504xbf16>,
    %c0_83 = arith.constant 0 : index
    %c0_84 = arith.constant 0 : index
    %c56_85 = arith.constant 56 : index
    %78 = vector.load %arg1[%c0_83, %c0_84, %c56_85] : memref<1x8x720xbf16, #tpu.memory_space<vmem>>, vector<1x8x504xbf16>
    %79 = vector.shape_cast %78 : vector<1x8x504xbf16> to vector<8x504xbf16>
    %c208 = arith.constant 208 : index
    %c0_86 = arith.constant 0 : index
    %80 = vector.load %arg10[%c208, %c0_86] : memref<648x504xbf16, #tpu.memory_space<vmem>>, vector<8x504xbf16>
    tpu.vector_store %arg10[%c208, %c0_86], %79 {strides = array<i32>} : memref<648x504xbf16, #tpu.memory_space<vmem>>, vector<8x504xbf16>,
    %c0_87 = arith.constant 0 : index
    %c0_88 = arith.constant 0 : index
    %c72_89 = arith.constant 72 : index
    %81 = vector.load %arg1[%c0_87, %c0_88, %c72_89] : memref<1x8x720xbf16, #tpu.memory_space<vmem>>, vector<1x8x504xbf16>
    %82 = vector.shape_cast %81 : vector<1x8x504xbf16> to vector<8x504xbf16>
    %c216 = arith.constant 216 : index
    %c0_90 = arith.constant 0 : index
    %83 = vector.load %arg10[%c216, %c0_90] : memref<648x504xbf16, #tpu.memory_space<vmem>>, vector<8x504xbf16>
    tpu.vector_store %arg10[%c216, %c0_90], %82 {strides = array<i32>} : memref<648x504xbf16, #tpu.memory_space<vmem>>, vector<8x504xbf16>,
    %c0_91 = arith.constant 0 : index
    %c0_92 = arith.constant 0 : index
    %c73 = arith.constant 73 : index
    %84 = vector.load %arg1[%c0_91, %c0_92, %c73] : memref<1x8x720xbf16, #tpu.memory_space<vmem>>, vector<1x8x504xbf16>
    %85 = vector.shape_cast %84 : vector<1x8x504xbf16> to vector<8x504xbf16>
    %c224 = arith.constant 224 : index
    %c0_93 = arith.constant 0 : index
    %86 = vector.load %arg10[%c224, %c0_93] : memref<648x504xbf16, #tpu.memory_space<vmem>>, vector<8x504xbf16>
    tpu.vector_store %arg10[%c224, %c0_93], %85 {strides = array<i32>} : memref<648x504xbf16, #tpu.memory_space<vmem>>, vector<8x504xbf16>,
    %c0_94 = arith.constant 0 : index
    %c0_95 = arith.constant 0 : index
    %c74 = arith.constant 74 : index
    %87 = vector.load %arg1[%c0_94, %c0_95, %c74] : memref<1x8x720xbf16, #tpu.memory_space<vmem>>, vector<1x8x504xbf16>
    %88 = vector.shape_cast %87 : vector<1x8x504xbf16> to vector<8x504xbf16>
    %c232 = arith.constant 232 : index
    %c0_96 = arith.constant 0 : index
    %89 = vector.load %arg10[%c232, %c0_96] : memref<648x504xbf16, #tpu.memory_space<vmem>>, vector<8x504xbf16>
    tpu.vector_store %arg10[%c232, %c0_96], %88 {strides = array<i32>} : memref<648x504xbf16, #tpu.memory_space<vmem>>, vector<8x504xbf16>,
    %c0_97 = arith.constant 0 : index
    %c0_98 = arith.constant 0 : index
    %c75 = arith.constant 75 : index
    %90 = vector.load %arg1[%c0_97, %c0_98, %c75] : memref<1x8x720xbf16, #tpu.memory_space<vmem>>, vector<1x8x504xbf16>
    %91 = vector.shape_cast %90 : vector<1x8x504xbf16> to vector<8x504xbf16>
    %c240 = arith.constant 240 : index
    %c0_99 = arith.constant 0 : index
    %92 = vector.load %arg10[%c240, %c0_99] : memref<648x504xbf16, #tpu.memory_space<vmem>>, vector<8x504xbf16>
    tpu.vector_store %arg10[%c240, %c0_99], %91 {strides = array<i32>} : memref<648x504xbf16, #tpu.memory_space<vmem>>, vector<8x504xbf16>,
    %c0_100 = arith.constant 0 : index
    %c0_101 = arith.constant 0 : index
    %c76 = arith.constant 76 : index
    %93 = vector.load %arg1[%c0_100, %c0_101, %c76] : memref<1x8x720xbf16, #tpu.memory_space<vmem>>, vector<1x8x504xbf16>
    %94 = vector.shape_cast %93 : vector<1x8x504xbf16> to vector<8x504xbf16>
    %c248 = arith.constant 248 : index
    %c0_102 = arith.constant 0 : index
    %95 = vector.load %arg10[%c248, %c0_102] : memref<648x504xbf16, #tpu.memory_space<vmem>>, vector<8x504xbf16>
    tpu.vector_store %arg10[%c248, %c0_102], %94 {strides = array<i32>} : memref<648x504xbf16, #tpu.memory_space<vmem>>, vector<8x504xbf16>,
    %c0_103 = arith.constant 0 : index
    %c0_104 = arith.constant 0 : index
    %c77 = arith.constant 77 : index
    %96 = vector.load %arg1[%c0_103, %c0_104, %c77] : memref<1x8x720xbf16, #tpu.memory_space<vmem>>, vector<1x8x504xbf16>
    %97 = vector.shape_cast %96 : vector<1x8x504xbf16> to vector<8x504xbf16>
    %c256 = arith.constant 256 : index
    %c0_105 = arith.constant 0 : index
    %98 = vector.load %arg10[%c256, %c0_105] : memref<648x504xbf16, #tpu.memory_space<vmem>>, vector<8x504xbf16>
    tpu.vector_store %arg10[%c256, %c0_105], %97 {strides = array<i32>} : memref<648x504xbf16, #tpu.memory_space<vmem>>, vector<8x504xbf16>,
    %c0_106 = arith.constant 0 : index
    %c0_107 = arith.constant 0 : index
    %c78 = arith.constant 78 : index
    %99 = vector.load %arg1[%c0_106, %c0_107, %c78] : memref<1x8x720xbf16, #tpu.memory_space<vmem>>, vector<1x8x504xbf16>
    %100 = vector.shape_cast %99 : vector<1x8x504xbf16> to vector<8x504xbf16>
    %c264 = arith.constant 264 : index
    %c0_108 = arith.constant 0 : index
    %101 = vector.load %arg10[%c264, %c0_108] : memref<648x504xbf16, #tpu.memory_space<vmem>>, vector<8x504xbf16>
    tpu.vector_store %arg10[%c264, %c0_108], %100 {strides = array<i32>} : memref<648x504xbf16, #tpu.memory_space<vmem>>, vector<8x504xbf16>,
    %c0_109 = arith.constant 0 : index
    %c0_110 = arith.constant 0 : index
    %c79 = arith.constant 79 : index
    %102 = vector.load %arg1[%c0_109, %c0_110, %c79] : memref<1x8x720xbf16, #tpu.memory_space<vmem>>, vector<1x8x504xbf16>
    %103 = vector.shape_cast %102 : vector<1x8x504xbf16> to vector<8x504xbf16>
    %c272 = arith.constant 272 : index
    %c0_111 = arith.constant 0 : index
    %104 = vector.load %arg10[%c272, %c0_111] : memref<648x504xbf16, #tpu.memory_space<vmem>>, vector<8x504xbf16>
    tpu.vector_store %arg10[%c272, %c0_111], %103 {strides = array<i32>} : memref<648x504xbf16, #tpu.memory_space<vmem>>, vector<8x504xbf16>,
    %c0_112 = arith.constant 0 : index
    %c0_113 = arith.constant 0 : index
    %c80_114 = arith.constant 80 : index
    %105 = vector.load %arg1[%c0_112, %c0_113, %c80_114] : memref<1x8x720xbf16, #tpu.memory_space<vmem>>, vector<1x8x504xbf16>
    %106 = vector.shape_cast %105 : vector<1x8x504xbf16> to vector<8x504xbf16>
    %c280 = arith.constant 280 : index
    %c0_115 = arith.constant 0 : index
    %107 = vector.load %arg10[%c280, %c0_115] : memref<648x504xbf16, #tpu.memory_space<vmem>>, vector<8x504xbf16>
    tpu.vector_store %arg10[%c280, %c0_115], %106 {strides = array<i32>} : memref<648x504xbf16, #tpu.memory_space<vmem>>, vector<8x504xbf16>,
    %c0_116 = arith.constant 0 : index
    %c0_117 = arith.constant 0 : index
    %c96_118 = arith.constant 96 : index
    %108 = vector.load %arg1[%c0_116, %c0_117, %c96_118] : memref<1x8x720xbf16, #tpu.memory_space<vmem>>, vector<1x8x504xbf16>
    %109 = vector.shape_cast %108 : vector<1x8x504xbf16> to vector<8x504xbf16>
    %c288 = arith.constant 288 : index
    %c0_119 = arith.constant 0 : index
    %110 = vector.load %arg10[%c288, %c0_119] : memref<648x504xbf16, #tpu.memory_space<vmem>>, vector<8x504xbf16>
    tpu.vector_store %arg10[%c288, %c0_119], %109 {strides = array<i32>} : memref<648x504xbf16, #tpu.memory_space<vmem>>, vector<8x504xbf16>,
    %c0_120 = arith.constant 0 : index
    %c0_121 = arith.constant 0 : index
    %c97 = arith.constant 97 : index
    %111 = vector.load %arg1[%c0_120, %c0_121, %c97] : memref<1x8x720xbf16, #tpu.memory_space<vmem>>, vector<1x8x504xbf16>
    %112 = vector.shape_cast %111 : vector<1x8x504xbf16> to vector<8x504xbf16>
    %c296 = arith.constant 296 : index
    %c0_122 = arith.constant 0 : index
    %113 = vector.load %arg10[%c296, %c0_122] : memref<648x504xbf16, #tpu.memory_space<vmem>>, vector<8x504xbf16>
    tpu.vector_store %arg10[%c296, %c0_122], %112 {strides = array<i32>} : memref<648x504xbf16, #tpu.memory_space<vmem>>, vector<8x504xbf16>,
    %c0_123 = arith.constant 0 : index
    %c0_124 = arith.constant 0 : index
    %c98 = arith.constant 98 : index
    %114 = vector.load %arg1[%c0_123, %c0_124, %c98] : memref<1x8x720xbf16, #tpu.memory_space<vmem>>, vector<1x8x504xbf16>
    %115 = vector.shape_cast %114 : vector<1x8x504xbf16> to vector<8x504xbf16>
    %c304 = arith.constant 304 : index
    %c0_125 = arith.constant 0 : index
    %116 = vector.load %arg10[%c304, %c0_125] : memref<648x504xbf16, #tpu.memory_space<vmem>>, vector<8x504xbf16>
    tpu.vector_store %arg10[%c304, %c0_125], %115 {strides = array<i32>} : memref<648x504xbf16, #tpu.memory_space<vmem>>, vector<8x504xbf16>,
    %c0_126 = arith.constant 0 : index
    %c0_127 = arith.constant 0 : index
    %c99 = arith.constant 99 : index
    %117 = vector.load %arg1[%c0_126, %c0_127, %c99] : memref<1x8x720xbf16, #tpu.memory_space<vmem>>, vector<1x8x504xbf16>
    %118 = vector.shape_cast %117 : vector<1x8x504xbf16> to vector<8x504xbf16>
    %c312 = arith.constant 312 : index
    %c0_128 = arith.constant 0 : index
    %119 = vector.load %arg10[%c312, %c0_128] : memref<648x504xbf16, #tpu.memory_space<vmem>>, vector<8x504xbf16>
    tpu.vector_store %arg10[%c312, %c0_128], %118 {strides = array<i32>} : memref<648x504xbf16, #tpu.memory_space<vmem>>, vector<8x504xbf16>,
    %c0_129 = arith.constant 0 : index
    %c0_130 = arith.constant 0 : index
    %c100 = arith.constant 100 : index
    %120 = vector.load %arg1[%c0_129, %c0_130, %c100] : memref<1x8x720xbf16, #tpu.memory_space<vmem>>, vector<1x8x504xbf16>
    %121 = vector.shape_cast %120 : vector<1x8x504xbf16> to vector<8x504xbf16>
    %c320 = arith.constant 320 : index
    %c0_131 = arith.constant 0 : index
    %122 = vector.load %arg10[%c320, %c0_131] : memref<648x504xbf16, #tpu.memory_space<vmem>>, vector<8x504xbf16>
    tpu.vector_store %arg10[%c320, %c0_131], %121 {strides = array<i32>} : memref<648x504xbf16, #tpu.memory_space<vmem>>, vector<8x504xbf16>,
    %c0_132 = arith.constant 0 : index
    %c0_133 = arith.constant 0 : index
    %c101 = arith.constant 101 : index
    %123 = vector.load %arg1[%c0_132, %c0_133, %c101] : memref<1x8x720xbf16, #tpu.memory_space<vmem>>, vector<1x8x504xbf16>
    %124 = vector.shape_cast %123 : vector<1x8x504xbf16> to vector<8x504xbf16>
    %c328 = arith.constant 328 : index
    %c0_134 = arith.constant 0 : index
    %125 = vector.load %arg10[%c328, %c0_134] : memref<648x504xbf16, #tpu.memory_space<vmem>>, vector<8x504xbf16>
    tpu.vector_store %arg10[%c328, %c0_134], %124 {strides = array<i32>} : memref<648x504xbf16, #tpu.memory_space<vmem>>, vector<8x504xbf16>,
    %c0_135 = arith.constant 0 : index
    %c0_136 = arith.constant 0 : index
    %c102 = arith.constant 102 : index
    %126 = vector.load %arg1[%c0_135, %c0_136, %c102] : memref<1x8x720xbf16, #tpu.memory_space<vmem>>, vector<1x8x504xbf16>
    %127 = vector.shape_cast %126 : vector<1x8x504xbf16> to vector<8x504xbf16>
    %c336 = arith.constant 336 : index
    %c0_137 = arith.constant 0 : index
    %128 = vector.load %arg10[%c336, %c0_137] : memref<648x504xbf16, #tpu.memory_space<vmem>>, vector<8x504xbf16>
    tpu.vector_store %arg10[%c336, %c0_137], %127 {strides = array<i32>} : memref<648x504xbf16, #tpu.memory_space<vmem>>, vector<8x504xbf16>,
    %c0_138 = arith.constant 0 : index
    %c0_139 = arith.constant 0 : index
    %c103 = arith.constant 103 : index
    %129 = vector.load %arg1[%c0_138, %c0_139, %c103] : memref<1x8x720xbf16, #tpu.memory_space<vmem>>, vector<1x8x504xbf16>
    %130 = vector.shape_cast %129 : vector<1x8x504xbf16> to vector<8x504xbf16>
    %c344 = arith.constant 344 : index
    %c0_140 = arith.constant 0 : index
    %131 = vector.load %arg10[%c344, %c0_140] : memref<648x504xbf16, #tpu.memory_space<vmem>>, vector<8x504xbf16>
    tpu.vector_store %arg10[%c344, %c0_140], %130 {strides = array<i32>} : memref<648x504xbf16, #tpu.memory_space<vmem>>, vector<8x504xbf16>,
    %c0_141 = arith.constant 0 : index
    %c0_142 = arith.constant 0 : index
    %c104_143 = arith.constant 104 : index
    %132 = vector.load %arg1[%c0_141, %c0_142, %c104_143] : memref<1x8x720xbf16, #tpu.memory_space<vmem>>, vector<1x8x504xbf16>
    %133 = vector.shape_cast %132 : vector<1x8x504xbf16> to vector<8x504xbf16>
    %c352 = arith.constant 352 : index
    %c0_144 = arith.constant 0 : index
    %134 = vector.load %arg10[%c352, %c0_144] : memref<648x504xbf16, #tpu.memory_space<vmem>>, vector<8x504xbf16>
    tpu.vector_store %arg10[%c352, %c0_144], %133 {strides = array<i32>} : memref<648x504xbf16, #tpu.memory_space<vmem>>, vector<8x504xbf16>,
    %c0_145 = arith.constant 0 : index
    %c0_146 = arith.constant 0 : index
    %c120_147 = arith.constant 120 : index
    %135 = vector.load %arg1[%c0_145, %c0_146, %c120_147] : memref<1x8x720xbf16, #tpu.memory_space<vmem>>, vector<1x8x504xbf16>
    %136 = vector.shape_cast %135 : vector<1x8x504xbf16> to vector<8x504xbf16>
    %c360 = arith.constant 360 : index
    %c0_148 = arith.constant 0 : index
    %137 = vector.load %arg10[%c360, %c0_148] : memref<648x504xbf16, #tpu.memory_space<vmem>>, vector<8x504xbf16>
    tpu.vector_store %arg10[%c360, %c0_148], %136 {strides = array<i32>} : memref<648x504xbf16, #tpu.memory_space<vmem>>, vector<8x504xbf16>,
    %c0_149 = arith.constant 0 : index
    %c0_150 = arith.constant 0 : index
    %c121 = arith.constant 121 : index
    %138 = vector.load %arg1[%c0_149, %c0_150, %c121] : memref<1x8x720xbf16, #tpu.memory_space<vmem>>, vector<1x8x504xbf16>
    %139 = vector.shape_cast %138 : vector<1x8x504xbf16> to vector<8x504xbf16>
    %c368 = arith.constant 368 : index
    %c0_151 = arith.constant 0 : index
    %140 = vector.load %arg10[%c368, %c0_151] : memref<648x504xbf16, #tpu.memory_space<vmem>>, vector<8x504xbf16>
    tpu.vector_store %arg10[%c368, %c0_151], %139 {strides = array<i32>} : memref<648x504xbf16, #tpu.memory_space<vmem>>, vector<8x504xbf16>,
    %c0_152 = arith.constant 0 : index
    %c0_153 = arith.constant 0 : index
    %c122 = arith.constant 122 : index
    %141 = vector.load %arg1[%c0_152, %c0_153, %c122] : memref<1x8x720xbf16, #tpu.memory_space<vmem>>, vector<1x8x504xbf16>
    %142 = vector.shape_cast %141 : vector<1x8x504xbf16> to vector<8x504xbf16>
    %c376 = arith.constant 376 : index
    %c0_154 = arith.constant 0 : index
    %143 = vector.load %arg10[%c376, %c0_154] : memref<648x504xbf16, #tpu.memory_space<vmem>>, vector<8x504xbf16>
    tpu.vector_store %arg10[%c376, %c0_154], %142 {strides = array<i32>} : memref<648x504xbf16, #tpu.memory_space<vmem>>, vector<8x504xbf16>,
    %c0_155 = arith.constant 0 : index
    %c0_156 = arith.constant 0 : index
    %c123 = arith.constant 123 : index
    %144 = vector.load %arg1[%c0_155, %c0_156, %c123] : memref<1x8x720xbf16, #tpu.memory_space<vmem>>, vector<1x8x504xbf16>
    %145 = vector.shape_cast %144 : vector<1x8x504xbf16> to vector<8x504xbf16>
    %c384 = arith.constant 384 : index
    %c0_157 = arith.constant 0 : index
    %146 = vector.load %arg10[%c384, %c0_157] : memref<648x504xbf16, #tpu.memory_space<vmem>>, vector<8x504xbf16>
    tpu.vector_store %arg10[%c384, %c0_157], %145 {strides = array<i32>} : memref<648x504xbf16, #tpu.memory_space<vmem>>, vector<8x504xbf16>,
    %c0_158 = arith.constant 0 : index
    %c0_159 = arith.constant 0 : index
    %c124 = arith.constant 124 : index
    %147 = vector.load %arg1[%c0_158, %c0_159, %c124] : memref<1x8x720xbf16, #tpu.memory_space<vmem>>, vector<1x8x504xbf16>
    %148 = vector.shape_cast %147 : vector<1x8x504xbf16> to vector<8x504xbf16>
    %c392 = arith.constant 392 : index
    %c0_160 = arith.constant 0 : index
    %149 = vector.load %arg10[%c392, %c0_160] : memref<648x504xbf16, #tpu.memory_space<vmem>>, vector<8x504xbf16>
    tpu.vector_store %arg10[%c392, %c0_160], %148 {strides = array<i32>} : memref<648x504xbf16, #tpu.memory_space<vmem>>, vector<8x504xbf16>,
    %c0_161 = arith.constant 0 : index
    %c0_162 = arith.constant 0 : index
    %c125 = arith.constant 125 : index
    %150 = vector.load %arg1[%c0_161, %c0_162, %c125] : memref<1x8x720xbf16, #tpu.memory_space<vmem>>, vector<1x8x504xbf16>
    %151 = vector.shape_cast %150 : vector<1x8x504xbf16> to vector<8x504xbf16>
    %c400 = arith.constant 400 : index
    %c0_163 = arith.constant 0 : index
    %152 = vector.load %arg10[%c400, %c0_163] : memref<648x504xbf16, #tpu.memory_space<vmem>>, vector<8x504xbf16>
    tpu.vector_store %arg10[%c400, %c0_163], %151 {strides = array<i32>} : memref<648x504xbf16, #tpu.memory_space<vmem>>, vector<8x504xbf16>,
    %c0_164 = arith.constant 0 : index
    %c0_165 = arith.constant 0 : index
    %c126 = arith.constant 126 : index
    %153 = vector.load %arg1[%c0_164, %c0_165, %c126] : memref<1x8x720xbf16, #tpu.memory_space<vmem>>, vector<1x8x504xbf16>
    %154 = vector.shape_cast %153 : vector<1x8x504xbf16> to vector<8x504xbf16>
    %c408 = arith.constant 408 : index
    %c0_166 = arith.constant 0 : index
    %155 = vector.load %arg10[%c408, %c0_166] : memref<648x504xbf16, #tpu.memory_space<vmem>>, vector<8x504xbf16>
    tpu.vector_store %arg10[%c408, %c0_166], %154 {strides = array<i32>} : memref<648x504xbf16, #tpu.memory_space<vmem>>, vector<8x504xbf16>,
    %c0_167 = arith.constant 0 : index
    %c0_168 = arith.constant 0 : index
    %c127 = arith.constant 127 : index
    %156 = vector.load %arg1[%c0_167, %c0_168, %c127] : memref<1x8x720xbf16, #tpu.memory_space<vmem>>, vector<1x8x504xbf16>
    %157 = vector.shape_cast %156 : vector<1x8x504xbf16> to vector<8x504xbf16>
    %c416 = arith.constant 416 : index
    %c0_169 = arith.constant 0 : index
    %158 = vector.load %arg10[%c416, %c0_169] : memref<648x504xbf16, #tpu.memory_space<vmem>>, vector<8x504xbf16>
    tpu.vector_store %arg10[%c416, %c0_169], %157 {strides = array<i32>} : memref<648x504xbf16, #tpu.memory_space<vmem>>, vector<8x504xbf16>,
    %c0_170 = arith.constant 0 : index
    %c0_171 = arith.constant 0 : index
    %c128_172 = arith.constant 128 : index
    %159 = vector.load %arg1[%c0_170, %c0_171, %c128_172] : memref<1x8x720xbf16, #tpu.memory_space<vmem>>, vector<1x8x504xbf16>
    %160 = vector.shape_cast %159 : vector<1x8x504xbf16> to vector<8x504xbf16>
    %c424 = arith.constant 424 : index
    %c0_173 = arith.constant 0 : index
    %161 = vector.load %arg10[%c424, %c0_173] : memref<648x504xbf16, #tpu.memory_space<vmem>>, vector<8x504xbf16>
    tpu.vector_store %arg10[%c424, %c0_173], %160 {strides = array<i32>} : memref<648x504xbf16, #tpu.memory_space<vmem>>, vector<8x504xbf16>,
    %c0_174 = arith.constant 0 : index
    %c0_175 = arith.constant 0 : index
    %c144_176 = arith.constant 144 : index
    %162 = vector.load %arg1[%c0_174, %c0_175, %c144_176] : memref<1x8x720xbf16, #tpu.memory_space<vmem>>, vector<1x8x504xbf16>
    %163 = vector.shape_cast %162 : vector<1x8x504xbf16> to vector<8x504xbf16>
    %c432 = arith.constant 432 : index
    %c0_177 = arith.constant 0 : index
    %164 = vector.load %arg10[%c432, %c0_177] : memref<648x504xbf16, #tpu.memory_space<vmem>>, vector<8x504xbf16>
    tpu.vector_store %arg10[%c432, %c0_177], %163 {strides = array<i32>} : memref<648x504xbf16, #tpu.memory_space<vmem>>, vector<8x504xbf16>,
    %c0_178 = arith.constant 0 : index
    %c0_179 = arith.constant 0 : index
    %c145 = arith.constant 145 : index
    %165 = vector.load %arg1[%c0_178, %c0_179, %c145] : memref<1x8x720xbf16, #tpu.memory_space<vmem>>, vector<1x8x504xbf16>
    %166 = vector.shape_cast %165 : vector<1x8x504xbf16> to vector<8x504xbf16>
    %c440 = arith.constant 440 : index
    %c0_180 = arith.constant 0 : index
    %167 = vector.load %arg10[%c440, %c0_180] : memref<648x504xbf16, #tpu.memory_space<vmem>>, vector<8x504xbf16>
    tpu.vector_store %arg10[%c440, %c0_180], %166 {strides = array<i32>} : memref<648x504xbf16, #tpu.memory_space<vmem>>, vector<8x504xbf16>,
    %c0_181 = arith.constant 0 : index
    %c0_182 = arith.constant 0 : index
    %c146 = arith.constant 146 : index
    %168 = vector.load %arg1[%c0_181, %c0_182, %c146] : memref<1x8x720xbf16, #tpu.memory_space<vmem>>, vector<1x8x504xbf16>
    %169 = vector.shape_cast %168 : vector<1x8x504xbf16> to vector<8x504xbf16>
    %c448 = arith.constant 448 : index
    %c0_183 = arith.constant 0 : index
    %170 = vector.load %arg10[%c448, %c0_183] : memref<648x504xbf16, #tpu.memory_space<vmem>>, vector<8x504xbf16>
    tpu.vector_store %arg10[%c448, %c0_183], %169 {strides = array<i32>} : memref<648x504xbf16, #tpu.memory_space<vmem>>, vector<8x504xbf16>,
    %c0_184 = arith.constant 0 : index
    %c0_185 = arith.constant 0 : index
    %c147 = arith.constant 147 : index
    %171 = vector.load %arg1[%c0_184, %c0_185, %c147] : memref<1x8x720xbf16, #tpu.memory_space<vmem>>, vector<1x8x504xbf16>
    %172 = vector.shape_cast %171 : vector<1x8x504xbf16> to vector<8x504xbf16>
    %c456 = arith.constant 456 : index
    %c0_186 = arith.constant 0 : index
    %173 = vector.load %arg10[%c456, %c0_186] : memref<648x504xbf16, #tpu.memory_space<vmem>>, vector<8x504xbf16>
    tpu.vector_store %arg10[%c456, %c0_186], %172 {strides = array<i32>} : memref<648x504xbf16, #tpu.memory_space<vmem>>, vector<8x504xbf16>,
    %c0_187 = arith.constant 0 : index
    %c0_188 = arith.constant 0 : index
    %c148 = arith.constant 148 : index
    %174 = vector.load %arg1[%c0_187, %c0_188, %c148] : memref<1x8x720xbf16, #tpu.memory_space<vmem>>, vector<1x8x504xbf16>
    %175 = vector.shape_cast %174 : vector<1x8x504xbf16> to vector<8x504xbf16>
    %c464 = arith.constant 464 : index
    %c0_189 = arith.constant 0 : index
    %176 = vector.load %arg10[%c464, %c0_189] : memref<648x504xbf16, #tpu.memory_space<vmem>>, vector<8x504xbf16>
    tpu.vector_store %arg10[%c464, %c0_189], %175 {strides = array<i32>} : memref<648x504xbf16, #tpu.memory_space<vmem>>, vector<8x504xbf16>,
    %c0_190 = arith.constant 0 : index
    %c0_191 = arith.constant 0 : index
    %c149 = arith.constant 149 : index
    %177 = vector.load %arg1[%c0_190, %c0_191, %c149] : memref<1x8x720xbf16, #tpu.memory_space<vmem>>, vector<1x8x504xbf16>
    %178 = vector.shape_cast %177 : vector<1x8x504xbf16> to vector<8x504xbf16>
    %c472 = arith.constant 472 : index
    %c0_192 = arith.constant 0 : index
    %179 = vector.load %arg10[%c472, %c0_192] : memref<648x504xbf16, #tpu.memory_space<vmem>>, vector<8x504xbf16>
    tpu.vector_store %arg10[%c472, %c0_192], %178 {strides = array<i32>} : memref<648x504xbf16, #tpu.memory_space<vmem>>, vector<8x504xbf16>,
    %c0_193 = arith.constant 0 : index
    %c0_194 = arith.constant 0 : index
    %c150 = arith.constant 150 : index
    %180 = vector.load %arg1[%c0_193, %c0_194, %c150] : memref<1x8x720xbf16, #tpu.memory_space<vmem>>, vector<1x8x504xbf16>
    %181 = vector.shape_cast %180 : vector<1x8x504xbf16> to vector<8x504xbf16>
    %c480 = arith.constant 480 : index
    %c0_195 = arith.constant 0 : index
    %182 = vector.load %arg10[%c480, %c0_195] : memref<648x504xbf16, #tpu.memory_space<vmem>>, vector<8x504xbf16>
    tpu.vector_store %arg10[%c480, %c0_195], %181 {strides = array<i32>} : memref<648x504xbf16, #tpu.memory_space<vmem>>, vector<8x504xbf16>,
    %c0_196 = arith.constant 0 : index
    %c0_197 = arith.constant 0 : index
    %c151 = arith.constant 151 : index
    %183 = vector.load %arg1[%c0_196, %c0_197, %c151] : memref<1x8x720xbf16, #tpu.memory_space<vmem>>, vector<1x8x504xbf16>
    %184 = vector.shape_cast %183 : vector<1x8x504xbf16> to vector<8x504xbf16>
    %c488 = arith.constant 488 : index
    %c0_198 = arith.constant 0 : index
    %185 = vector.load %arg10[%c488, %c0_198] : memref<648x504xbf16, #tpu.memory_space<vmem>>, vector<8x504xbf16>
    tpu.vector_store %arg10[%c488, %c0_198], %184 {strides = array<i32>} : memref<648x504xbf16, #tpu.memory_space<vmem>>, vector<8x504xbf16>,
    %c0_199 = arith.constant 0 : index
    %c0_200 = arith.constant 0 : index
    %c152_201 = arith.constant 152 : index
    %186 = vector.load %arg1[%c0_199, %c0_200, %c152_201] : memref<1x8x720xbf16, #tpu.memory_space<vmem>>, vector<1x8x504xbf16>
    %187 = vector.shape_cast %186 : vector<1x8x504xbf16> to vector<8x504xbf16>
    %c496 = arith.constant 496 : index
    %c0_202 = arith.constant 0 : index
    %188 = vector.load %arg10[%c496, %c0_202] : memref<648x504xbf16, #tpu.memory_space<vmem>>, vector<8x504xbf16>
    tpu.vector_store %arg10[%c496, %c0_202], %187 {strides = array<i32>} : memref<648x504xbf16, #tpu.memory_space<vmem>>, vector<8x504xbf16>,
    %c0_203 = arith.constant 0 : index
    %c0_204 = arith.constant 0 : index
    %c168_205 = arith.constant 168 : index
    %189 = vector.load %arg1[%c0_203, %c0_204, %c168_205] : memref<1x8x720xbf16, #tpu.memory_space<vmem>>, vector<1x8x504xbf16>
    %190 = vector.shape_cast %189 : vector<1x8x504xbf16> to vector<8x504xbf16>
    %c504 = arith.constant 504 : index
    %c0_206 = arith.constant 0 : index
    %191 = vector.load %arg10[%c504, %c0_206] : memref<648x504xbf16, #tpu.memory_space<vmem>>, vector<8x504xbf16>
    tpu.vector_store %arg10[%c504, %c0_206], %190 {strides = array<i32>} : memref<648x504xbf16, #tpu.memory_space<vmem>>, vector<8x504xbf16>,
    %c0_207 = arith.constant 0 : index
    %c0_208 = arith.constant 0 : index
    %c169 = arith.constant 169 : index
    %192 = vector.load %arg1[%c0_207, %c0_208, %c169] : memref<1x8x720xbf16, #tpu.memory_space<vmem>>, vector<1x8x504xbf16>
    %193 = vector.shape_cast %192 : vector<1x8x504xbf16> to vector<8x504xbf16>
    %c512 = arith.constant 512 : index
    %c0_209 = arith.constant 0 : index
    %194 = vector.load %arg10[%c512, %c0_209] : memref<648x504xbf16, #tpu.memory_space<vmem>>, vector<8x504xbf16>
    tpu.vector_store %arg10[%c512, %c0_209], %193 {strides = array<i32>} : memref<648x504xbf16, #tpu.memory_space<vmem>>, vector<8x504xbf16>,
    %c0_210 = arith.constant 0 : index
    %c0_211 = arith.constant 0 : index
    %c170 = arith.constant 170 : index
    %195 = vector.load %arg1[%c0_210, %c0_211, %c170] : memref<1x8x720xbf16, #tpu.memory_space<vmem>>, vector<1x8x504xbf16>
    %196 = vector.shape_cast %195 : vector<1x8x504xbf16> to vector<8x504xbf16>
    %c520 = arith.constant 520 : index
    %c0_212 = arith.constant 0 : index
    %197 = vector.load %arg10[%c520, %c0_212] : memref<648x504xbf16, #tpu.memory_space<vmem>>, vector<8x504xbf16>
    tpu.vector_store %arg10[%c520, %c0_212], %196 {strides = array<i32>} : memref<648x504xbf16, #tpu.memory_space<vmem>>, vector<8x504xbf16>,
    %c0_213 = arith.constant 0 : index
    %c0_214 = arith.constant 0 : index
    %c171 = arith.constant 171 : index
    %198 = vector.load %arg1[%c0_213, %c0_214, %c171] : memref<1x8x720xbf16, #tpu.memory_space<vmem>>, vector<1x8x504xbf16>
    %199 = vector.shape_cast %198 : vector<1x8x504xbf16> to vector<8x504xbf16>
    %c528 = arith.constant 528 : index
    %c0_215 = arith.constant 0 : index
    %200 = vector.load %arg10[%c528, %c0_215] : memref<648x504xbf16, #tpu.memory_space<vmem>>, vector<8x504xbf16>
    tpu.vector_store %arg10[%c528, %c0_215], %199 {strides = array<i32>} : memref<648x504xbf16, #tpu.memory_space<vmem>>, vector<8x504xbf16>,
    %c0_216 = arith.constant 0 : index
    %c0_217 = arith.constant 0 : index
    %c172 = arith.constant 172 : index
    %201 = vector.load %arg1[%c0_216, %c0_217, %c172] : memref<1x8x720xbf16, #tpu.memory_space<vmem>>, vector<1x8x504xbf16>
    %202 = vector.shape_cast %201 : vector<1x8x504xbf16> to vector<8x504xbf16>
    %c536 = arith.constant 536 : index
    %c0_218 = arith.constant 0 : index
    %203 = vector.load %arg10[%c536, %c0_218] : memref<648x504xbf16, #tpu.memory_space<vmem>>, vector<8x504xbf16>
    tpu.vector_store %arg10[%c536, %c0_218], %202 {strides = array<i32>} : memref<648x504xbf16, #tpu.memory_space<vmem>>, vector<8x504xbf16>,
    %c0_219 = arith.constant 0 : index
    %c0_220 = arith.constant 0 : index
    %c173 = arith.constant 173 : index
    %204 = vector.load %arg1[%c0_219, %c0_220, %c173] : memref<1x8x720xbf16, #tpu.memory_space<vmem>>, vector<1x8x504xbf16>
    %205 = vector.shape_cast %204 : vector<1x8x504xbf16> to vector<8x504xbf16>
    %c544 = arith.constant 544 : index
    %c0_221 = arith.constant 0 : index
    %206 = vector.load %arg10[%c544, %c0_221] : memref<648x504xbf16, #tpu.memory_space<vmem>>, vector<8x504xbf16>
    tpu.vector_store %arg10[%c544, %c0_221], %205 {strides = array<i32>} : memref<648x504xbf16, #tpu.memory_space<vmem>>, vector<8x504xbf16>,
    %c0_222 = arith.constant 0 : index
    %c0_223 = arith.constant 0 : index
    %c174 = arith.constant 174 : index
    %207 = vector.load %arg1[%c0_222, %c0_223, %c174] : memref<1x8x720xbf16, #tpu.memory_space<vmem>>, vector<1x8x504xbf16>
    %208 = vector.shape_cast %207 : vector<1x8x504xbf16> to vector<8x504xbf16>
    %c552 = arith.constant 552 : index
    %c0_224 = arith.constant 0 : index
    %209 = vector.load %arg10[%c552, %c0_224] : memref<648x504xbf16, #tpu.memory_space<vmem>>, vector<8x504xbf16>
    tpu.vector_store %arg10[%c552, %c0_224], %208 {strides = array<i32>} : memref<648x504xbf16, #tpu.memory_space<vmem>>, vector<8x504xbf16>,
    %c0_225 = arith.constant 0 : index
    %c0_226 = arith.constant 0 : index
    %c175 = arith.constant 175 : index
    %210 = vector.load %arg1[%c0_225, %c0_226, %c175] : memref<1x8x720xbf16, #tpu.memory_space<vmem>>, vector<1x8x504xbf16>
    %211 = vector.shape_cast %210 : vector<1x8x504xbf16> to vector<8x504xbf16>
    %c560 = arith.constant 560 : index
    %c0_227 = arith.constant 0 : index
    %212 = vector.load %arg10[%c560, %c0_227] : memref<648x504xbf16, #tpu.memory_space<vmem>>, vector<8x504xbf16>
    tpu.vector_store %arg10[%c560, %c0_227], %211 {strides = array<i32>} : memref<648x504xbf16, #tpu.memory_space<vmem>>, vector<8x504xbf16>,
    %c0_228 = arith.constant 0 : index
    %c0_229 = arith.constant 0 : index
    %c176_230 = arith.constant 176 : index
    %213 = vector.load %arg1[%c0_228, %c0_229, %c176_230] : memref<1x8x720xbf16, #tpu.memory_space<vmem>>, vector<1x8x504xbf16>
    %214 = vector.shape_cast %213 : vector<1x8x504xbf16> to vector<8x504xbf16>
    %c568 = arith.constant 568 : index
    %c0_231 = arith.constant 0 : index
    %215 = vector.load %arg10[%c568, %c0_231] : memref<648x504xbf16, #tpu.memory_space<vmem>>, vector<8x504xbf16>
    tpu.vector_store %arg10[%c568, %c0_231], %214 {strides = array<i32>} : memref<648x504xbf16, #tpu.memory_space<vmem>>, vector<8x504xbf16>,
    %c0_232 = arith.constant 0 : index
    %c0_233 = arith.constant 0 : index
    %c192_234 = arith.constant 192 : index
    %216 = vector.load %arg1[%c0_232, %c0_233, %c192_234] : memref<1x8x720xbf16, #tpu.memory_space<vmem>>, vector<1x8x504xbf16>
    %217 = vector.shape_cast %216 : vector<1x8x504xbf16> to vector<8x504xbf16>
    %c576 = arith.constant 576 : index
    %c0_235 = arith.constant 0 : index
    %218 = vector.load %arg10[%c576, %c0_235] : memref<648x504xbf16, #tpu.memory_space<vmem>>, vector<8x504xbf16>
    tpu.vector_store %arg10[%c576, %c0_235], %217 {strides = array<i32>} : memref<648x504xbf16, #tpu.memory_space<vmem>>, vector<8x504xbf16>,
    %c0_236 = arith.constant 0 : index
    %c0_237 = arith.constant 0 : index
    %c193 = arith.constant 193 : index
    %219 = vector.load %arg1[%c0_236, %c0_237, %c193] : memref<1x8x720xbf16, #tpu.memory_space<vmem>>, vector<1x8x504xbf16>
    %220 = vector.shape_cast %219 : vector<1x8x504xbf16> to vector<8x504xbf16>
    %c584 = arith.constant 584 : index
    %c0_238 = arith.constant 0 : index
    %221 = vector.load %arg10[%c584, %c0_238] : memref<648x504xbf16, #tpu.memory_space<vmem>>, vector<8x504xbf16>
    tpu.vector_store %arg10[%c584, %c0_238], %220 {strides = array<i32>} : memref<648x504xbf16, #tpu.memory_space<vmem>>, vector<8x504xbf16>,
    %c0_239 = arith.constant 0 : index
    %c0_240 = arith.constant 0 : index
    %c194 = arith.constant 194 : index
    %222 = vector.load %arg1[%c0_239, %c0_240, %c194] : memref<1x8x720xbf16, #tpu.memory_space<vmem>>, vector<1x8x504xbf16>
    %223 = vector.shape_cast %222 : vector<1x8x504xbf16> to vector<8x504xbf16>
    %c592 = arith.constant 592 : index
    %c0_241 = arith.constant 0 : index
    %224 = vector.load %arg10[%c592, %c0_241] : memref<648x504xbf16, #tpu.memory_space<vmem>>, vector<8x504xbf16>
    tpu.vector_store %arg10[%c592, %c0_241], %223 {strides = array<i32>} : memref<648x504xbf16, #tpu.memory_space<vmem>>, vector<8x504xbf16>,
    %c0_242 = arith.constant 0 : index
    %c0_243 = arith.constant 0 : index
    %c195 = arith.constant 195 : index
    %225 = vector.load %arg1[%c0_242, %c0_243, %c195] : memref<1x8x720xbf16, #tpu.memory_space<vmem>>, vector<1x8x504xbf16>
    %226 = vector.shape_cast %225 : vector<1x8x504xbf16> to vector<8x504xbf16>
    %c600 = arith.constant 600 : index
    %c0_244 = arith.constant 0 : index
    %227 = vector.load %arg10[%c600, %c0_244] : memref<648x504xbf16, #tpu.memory_space<vmem>>, vector<8x504xbf16>
    tpu.vector_store %arg10[%c600, %c0_244], %226 {strides = array<i32>} : memref<648x504xbf16, #tpu.memory_space<vmem>>, vector<8x504xbf16>,
    %c0_245 = arith.constant 0 : index
    %c0_246 = arith.constant 0 : index
    %c196 = arith.constant 196 : index
    %228 = vector.load %arg1[%c0_245, %c0_246, %c196] : memref<1x8x720xbf16, #tpu.memory_space<vmem>>, vector<1x8x504xbf16>
    %229 = vector.shape_cast %228 : vector<1x8x504xbf16> to vector<8x504xbf16>
    %c608 = arith.constant 608 : index
    %c0_247 = arith.constant 0 : index
    %230 = vector.load %arg10[%c608, %c0_247] : memref<648x504xbf16, #tpu.memory_space<vmem>>, vector<8x504xbf16>
    tpu.vector_store %arg10[%c608, %c0_247], %229 {strides = array<i32>} : memref<648x504xbf16, #tpu.memory_space<vmem>>, vector<8x504xbf16>,
    %c0_248 = arith.constant 0 : index
    %c0_249 = arith.constant 0 : index
    %c197 = arith.constant 197 : index
    %231 = vector.load %arg1[%c0_248, %c0_249, %c197] : memref<1x8x720xbf16, #tpu.memory_space<vmem>>, vector<1x8x504xbf16>
    %232 = vector.shape_cast %231 : vector<1x8x504xbf16> to vector<8x504xbf16>
    %c616 = arith.constant 616 : index
    %c0_250 = arith.constant 0 : index
    %233 = vector.load %arg10[%c616, %c0_250] : memref<648x504xbf16, #tpu.memory_space<vmem>>, vector<8x504xbf16>
    tpu.vector_store %arg10[%c616, %c0_250], %232 {strides = array<i32>} : memref<648x504xbf16, #tpu.memory_space<vmem>>, vector<8x504xbf16>,
    %c0_251 = arith.constant 0 : index
    %c0_252 = arith.constant 0 : index
    %c198 = arith.constant 198 : index
    %234 = vector.load %arg1[%c0_251, %c0_252, %c198] : memref<1x8x720xbf16, #tpu.memory_space<vmem>>, vector<1x8x504xbf16>
    %235 = vector.shape_cast %234 : vector<1x8x504xbf16> to vector<8x504xbf16>
    %c624 = arith.constant 624 : index
    %c0_253 = arith.constant 0 : index
    %236 = vector.load %arg10[%c624, %c0_253] : memref<648x504xbf16, #tpu.memory_space<vmem>>, vector<8x504xbf16>
    tpu.vector_store %arg10[%c624, %c0_253], %235 {strides = array<i32>} : memref<648x504xbf16, #tpu.memory_space<vmem>>, vector<8x504xbf16>,
    %c0_254 = arith.constant 0 : index
    %c0_255 = arith.constant 0 : index
    %c199 = arith.constant 199 : index
    %237 = vector.load %arg1[%c0_254, %c0_255, %c199] : memref<1x8x720xbf16, #tpu.memory_space<vmem>>, vector<1x8x504xbf16>
    %238 = vector.shape_cast %237 : vector<1x8x504xbf16> to vector<8x504xbf16>
    %c632 = arith.constant 632 : index
    %c0_256 = arith.constant 0 : index
    %239 = vector.load %arg10[%c632, %c0_256] : memref<648x504xbf16, #tpu.memory_space<vmem>>, vector<8x504xbf16>
    tpu.vector_store %arg10[%c632, %c0_256], %238 {strides = array<i32>} : memref<648x504xbf16, #tpu.memory_space<vmem>>, vector<8x504xbf16>,
    %c0_257 = arith.constant 0 : index
    %c0_258 = arith.constant 0 : index
    %c200_259 = arith.constant 200 : index
    %240 = vector.load %arg1[%c0_257, %c0_258, %c200_259] : memref<1x8x720xbf16, #tpu.memory_space<vmem>>, vector<1x8x504xbf16>
    %241 = vector.shape_cast %240 : vector<1x8x504xbf16> to vector<8x504xbf16>
    %c640 = arith.constant 640 : index
    %c0_260 = arith.constant 0 : index
    %242 = vector.load %arg10[%c640, %c0_260] : memref<648x504xbf16, #tpu.memory_space<vmem>>, vector<8x504xbf16>
    tpu.vector_store %arg10[%c640, %c0_260], %241 {strides = array<i32>} : memref<648x504xbf16, #tpu.memory_space<vmem>>, vector<8x504xbf16>,
    %c0_261 = arith.constant 0 : index
    %c0_262 = arith.constant 0 : index
    %243 = vector.load %arg3[%c0_261, %c0_262] : memref<64x648xbf16, #tpu.memory_space<vmem>>, vector<64x648xbf16>
    %c0_263 = arith.constant 0 : index
    %c0_264 = arith.constant 0 : index
    %244 = vector.load %arg10[%c0_263, %c0_264] : memref<648x504xbf16, #tpu.memory_space<vmem>>, vector<648x504xbf16>
    %cst = arith.constant dense<0.000000e+00> : vector<64x504xf32>
    %245 = tpu.matmul %243, %244, %cst {dimension_numbers = #tpu.dot_dimension_numbers<[1], [0], [0], [1], [0, 0, 1, 1], [], []>} : vector<64x648xbf16>, vector<648x504xbf16>, vector<64x504xf32> -> vector<64x504xf32>
    %c0_265 = arith.constant 0 : index
    %c0_266 = arith.constant 0 : index
    %246 = vector.load %arg4[%c0_265, %c0_266] : memref<64x1xf32, #tpu.memory_space<vmem>>, vector<64x1xf32>
    %247 = vector.broadcast %246 : vector<64x1xf32> to vector<64x504xf32>
    %248 = arith.addf %245, %247 : vector<64x504xf32>
    %cst_267 = arith.constant 0.000000e+00 : f32
    %249 = vector.broadcast %cst_267 : f32 to vector<64x504xf32>
    %250 = arith.maximumf %248, %249 : vector<64x504xf32>
    %251 = arith.truncf %250 : vector<64x504xf32> to vector<64x504xbf16>
    %c0_268 = arith.constant 0 : index
    %c0_269 = arith.constant 0 : index
    %252 = vector.load %arg11[%c0_268, %c0_269] : memref<64x504xbf16, #tpu.memory_space<vmem>>, vector<64x504xbf16>
    tpu.vector_store %arg11[%c0_268, %c0_269], %251 {strides = array<i32>} : memref<64x504xbf16, #tpu.memory_space<vmem>>, vector<64x504xbf16>,
    %c0_270 = arith.constant 0 : index
    %c0_271 = arith.constant 0 : index
    %253 = vector.load %arg5[%c0_270, %c0_271] : memref<32x64xbf16, #tpu.memory_space<vmem>>, vector<32x64xbf16>
    %c0_272 = arith.constant 0 : index
    %c0_273 = arith.constant 0 : index
    %254 = vector.load %arg11[%c0_272, %c0_273] : memref<64x504xbf16, #tpu.memory_space<vmem>>, vector<64x504xbf16>
    %cst_274 = arith.constant dense<0.000000e+00> : vector<32x504xf32>
    %255 = tpu.matmul %253, %254, %cst_274 {dimension_numbers = #tpu.dot_dimension_numbers<[1], [0], [0], [1], [0, 0, 1, 1], [], []>} : vector<32x64xbf16>, vector<64x504xbf16>, vector<32x504xf32> -> vector<32x504xf32>
    %c0_275 = arith.constant 0 : index
    %c0_276 = arith.constant 0 : index
    %256 = vector.load %arg6[%c0_275, %c0_276] : memref<32x1xf32, #tpu.memory_space<vmem>>, vector<32x1xf32>
    %257 = vector.broadcast %256 : vector<32x1xf32> to vector<32x504xf32>
    %258 = arith.addf %255, %257 : vector<32x504xf32>
    %cst_277 = arith.constant 0.000000e+00 : f32
    %259 = vector.broadcast %cst_277 : f32 to vector<32x504xf32>
    %260 = arith.maximumf %258, %259 : vector<32x504xf32>
    %c0_278 = arith.constant 0 : index
    %c0_279 = arith.constant 0 : index
    %261 = vector.load %arg2[%c0_278, %c0_279] : memref<1x504xf32, #tpu.memory_space<vmem>>, vector<1x504xf32>
    %262 = vector.broadcast %261 : vector<1x504xf32> to vector<32x504xf32>
    %263 = arith.mulf %260, %262 : vector<32x504xf32>
    %264 = arith.truncf %263 : vector<32x504xf32> to vector<32x504xbf16>
    %c0_280 = arith.constant 0 : index
    %c0_281 = arith.constant 0 : index
    %265 = vector.load %arg12[%c0_280, %c0_281] : memref<32x504xbf16, #tpu.memory_space<vmem>>, vector<32x504xbf16>
    tpu.vector_store %arg12[%c0_280, %c0_281], %264 {strides = array<i32>} : memref<32x504xbf16, #tpu.memory_space<vmem>>, vector<32x504xbf16>,
    %c0_282 = arith.constant 0 : index
    %c0_283 = arith.constant 0 : index
    %c0_284 = arith.constant 0 : index
    %266 = vector.load %arg7[%c0_282, %c0_283, %c0_284] : memref<25x8x32xbf16, #tpu.memory_space<vmem>>, vector<1x8x32xbf16>
    %267 = vector.shape_cast %266 : vector<1x8x32xbf16> to vector<8x32xbf16>
    %c0_285 = arith.constant 0 : index
    %c0_286 = arith.constant 0 : index
    %268 = vector.load %arg12[%c0_285, %c0_286] : memref<32x504xbf16, #tpu.memory_space<vmem>>, vector<32x384xbf16>
    %cst_287 = arith.constant dense<0.000000e+00> : vector<8x384xf32>
    %269 = tpu.matmul %267, %268, %cst_287 {dimension_numbers = #tpu.dot_dimension_numbers<[1], [0], [0], [1], [0, 0, 1, 1], [], []>} : vector<8x32xbf16>, vector<32x384xbf16>, vector<8x384xf32> -> vector<8x384xf32>
    %c1_288 = arith.constant 1 : index
    %c0_289 = arith.constant 0 : index
    %c0_290 = arith.constant 0 : index
    %270 = vector.load %arg7[%c1_288, %c0_289, %c0_290] : memref<25x8x32xbf16, #tpu.memory_space<vmem>>, vector<1x8x32xbf16>
    %271 = vector.shape_cast %270 : vector<1x8x32xbf16> to vector<8x32xbf16>
    %c0_291 = arith.constant 0 : index
    %c1_292 = arith.constant 1 : index
    %272 = vector.load %arg12[%c0_291, %c1_292] : memref<32x504xbf16, #tpu.memory_space<vmem>>, vector<32x384xbf16>
    %cst_293 = arith.constant dense<0.000000e+00> : vector<8x384xf32>
    %273 = tpu.matmul %271, %272, %cst_293 {dimension_numbers = #tpu.dot_dimension_numbers<[1], [0], [0], [1], [0, 0, 1, 1], [], []>} : vector<8x32xbf16>, vector<32x384xbf16>, vector<8x384xf32> -> vector<8x384xf32>
    %274 = arith.addf %269, %273 : vector<8x384xf32>
    %c2_294 = arith.constant 2 : index
    %c0_295 = arith.constant 0 : index
    %c0_296 = arith.constant 0 : index
    %275 = vector.load %arg7[%c2_294, %c0_295, %c0_296] : memref<25x8x32xbf16, #tpu.memory_space<vmem>>, vector<1x8x32xbf16>
    %276 = vector.shape_cast %275 : vector<1x8x32xbf16> to vector<8x32xbf16>
    %c0_297 = arith.constant 0 : index
    %c2_298 = arith.constant 2 : index
    %277 = vector.load %arg12[%c0_297, %c2_298] : memref<32x504xbf16, #tpu.memory_space<vmem>>, vector<32x384xbf16>
    %cst_299 = arith.constant dense<0.000000e+00> : vector<8x384xf32>
    %278 = tpu.matmul %276, %277, %cst_299 {dimension_numbers = #tpu.dot_dimension_numbers<[1], [0], [0], [1], [0, 0, 1, 1], [], []>} : vector<8x32xbf16>, vector<32x384xbf16>, vector<8x384xf32> -> vector<8x384xf32>
    %279 = arith.addf %274, %278 : vector<8x384xf32>
    %c3_300 = arith.constant 3 : index
    %c0_301 = arith.constant 0 : index
    %c0_302 = arith.constant 0 : index
    %280 = vector.load %arg7[%c3_300, %c0_301, %c0_302] : memref<25x8x32xbf16, #tpu.memory_space<vmem>>, vector<1x8x32xbf16>
    %281 = vector.shape_cast %280 : vector<1x8x32xbf16> to vector<8x32xbf16>
    %c0_303 = arith.constant 0 : index
    %c3_304 = arith.constant 3 : index
    %282 = vector.load %arg12[%c0_303, %c3_304] : memref<32x504xbf16, #tpu.memory_space<vmem>>, vector<32x384xbf16>
    %cst_305 = arith.constant dense<0.000000e+00> : vector<8x384xf32>
    %283 = tpu.matmul %281, %282, %cst_305 {dimension_numbers = #tpu.dot_dimension_numbers<[1], [0], [0], [1], [0, 0, 1, 1], [], []>} : vector<8x32xbf16>, vector<32x384xbf16>, vector<8x384xf32> -> vector<8x384xf32>
    %284 = arith.addf %279, %283 : vector<8x384xf32>
    %c4_306 = arith.constant 4 : index
    %c0_307 = arith.constant 0 : index
    %c0_308 = arith.constant 0 : index
    %285 = vector.load %arg7[%c4_306, %c0_307, %c0_308] : memref<25x8x32xbf16, #tpu.memory_space<vmem>>, vector<1x8x32xbf16>
    %286 = vector.shape_cast %285 : vector<1x8x32xbf16> to vector<8x32xbf16>
    %c0_309 = arith.constant 0 : index
    %c4_310 = arith.constant 4 : index
    %287 = vector.load %arg12[%c0_309, %c4_310] : memref<32x504xbf16, #tpu.memory_space<vmem>>, vector<32x384xbf16>
    %cst_311 = arith.constant dense<0.000000e+00> : vector<8x384xf32>
    %288 = tpu.matmul %286, %287, %cst_311 {dimension_numbers = #tpu.dot_dimension_numbers<[1], [0], [0], [1], [0, 0, 1, 1], [], []>} : vector<8x32xbf16>, vector<32x384xbf16>, vector<8x384xf32> -> vector<8x384xf32>
    %289 = arith.addf %284, %288 : vector<8x384xf32>
    %c5_312 = arith.constant 5 : index
    %c0_313 = arith.constant 0 : index
    %c0_314 = arith.constant 0 : index
    %290 = vector.load %arg7[%c5_312, %c0_313, %c0_314] : memref<25x8x32xbf16, #tpu.memory_space<vmem>>, vector<1x8x32xbf16>
    %291 = vector.shape_cast %290 : vector<1x8x32xbf16> to vector<8x32xbf16>
    %c0_315 = arith.constant 0 : index
    %c24_316 = arith.constant 24 : index
    %292 = vector.load %arg12[%c0_315, %c24_316] : memref<32x504xbf16, #tpu.memory_space<vmem>>, vector<32x384xbf16>
    %cst_317 = arith.constant dense<0.000000e+00> : vector<8x384xf32>
    %293 = tpu.matmul %291, %292, %cst_317 {dimension_numbers = #tpu.dot_dimension_numbers<[1], [0], [0], [1], [0, 0, 1, 1], [], []>} : vector<8x32xbf16>, vector<32x384xbf16>, vector<8x384xf32> -> vector<8x384xf32>
    %294 = arith.addf %289, %293 : vector<8x384xf32>
    %c6_318 = arith.constant 6 : index
    %c0_319 = arith.constant 0 : index
    %c0_320 = arith.constant 0 : index
    %295 = vector.load %arg7[%c6_318, %c0_319, %c0_320] : memref<25x8x32xbf16, #tpu.memory_space<vmem>>, vector<1x8x32xbf16>
    %296 = vector.shape_cast %295 : vector<1x8x32xbf16> to vector<8x32xbf16>
    %c0_321 = arith.constant 0 : index
    %c25_322 = arith.constant 25 : index
    %297 = vector.load %arg12[%c0_321, %c25_322] : memref<32x504xbf16, #tpu.memory_space<vmem>>, vector<32x384xbf16>
    %cst_323 = arith.constant dense<0.000000e+00> : vector<8x384xf32>
    %298 = tpu.matmul %296, %297, %cst_323 {dimension_numbers = #tpu.dot_dimension_numbers<[1], [0], [0], [1], [0, 0, 1, 1], [], []>} : vector<8x32xbf16>, vector<32x384xbf16>, vector<8x384xf32> -> vector<8x384xf32>
    %299 = arith.addf %294, %298 : vector<8x384xf32>
    %c7_324 = arith.constant 7 : index
    %c0_325 = arith.constant 0 : index
    %c0_326 = arith.constant 0 : index
    %300 = vector.load %arg7[%c7_324, %c0_325, %c0_326] : memref<25x8x32xbf16, #tpu.memory_space<vmem>>, vector<1x8x32xbf16>
    %301 = vector.shape_cast %300 : vector<1x8x32xbf16> to vector<8x32xbf16>
    %c0_327 = arith.constant 0 : index
    %c26_328 = arith.constant 26 : index
    %302 = vector.load %arg12[%c0_327, %c26_328] : memref<32x504xbf16, #tpu.memory_space<vmem>>, vector<32x384xbf16>
    %cst_329 = arith.constant dense<0.000000e+00> : vector<8x384xf32>
    %303 = tpu.matmul %301, %302, %cst_329 {dimension_numbers = #tpu.dot_dimension_numbers<[1], [0], [0], [1], [0, 0, 1, 1], [], []>} : vector<8x32xbf16>, vector<32x384xbf16>, vector<8x384xf32> -> vector<8x384xf32>
    %304 = arith.addf %299, %303 : vector<8x384xf32>
    %c8_330 = arith.constant 8 : index
    %c0_331 = arith.constant 0 : index
    %c0_332 = arith.constant 0 : index
    %305 = vector.load %arg7[%c8_330, %c0_331, %c0_332] : memref<25x8x32xbf16, #tpu.memory_space<vmem>>, vector<1x8x32xbf16>
    %306 = vector.shape_cast %305 : vector<1x8x32xbf16> to vector<8x32xbf16>
    %c0_333 = arith.constant 0 : index
    %c27_334 = arith.constant 27 : index
    %307 = vector.load %arg12[%c0_333, %c27_334] : memref<32x504xbf16, #tpu.memory_space<vmem>>, vector<32x384xbf16>
    %cst_335 = arith.constant dense<0.000000e+00> : vector<8x384xf32>
    %308 = tpu.matmul %306, %307, %cst_335 {dimension_numbers = #tpu.dot_dimension_numbers<[1], [0], [0], [1], [0, 0, 1, 1], [], []>} : vector<8x32xbf16>, vector<32x384xbf16>, vector<8x384xf32> -> vector<8x384xf32>
    %309 = arith.addf %304, %308 : vector<8x384xf32>
    %c9 = arith.constant 9 : index
    %c0_336 = arith.constant 0 : index
    %c0_337 = arith.constant 0 : index
    %310 = vector.load %arg7[%c9, %c0_336, %c0_337] : memref<25x8x32xbf16, #tpu.memory_space<vmem>>, vector<1x8x32xbf16>
    %311 = vector.shape_cast %310 : vector<1x8x32xbf16> to vector<8x32xbf16>
    %c0_338 = arith.constant 0 : index
    %c28_339 = arith.constant 28 : index
    %312 = vector.load %arg12[%c0_338, %c28_339] : memref<32x504xbf16, #tpu.memory_space<vmem>>, vector<32x384xbf16>
    %cst_340 = arith.constant dense<0.000000e+00> : vector<8x384xf32>
    %313 = tpu.matmul %311, %312, %cst_340 {dimension_numbers = #tpu.dot_dimension_numbers<[1], [0], [0], [1], [0, 0, 1, 1], [], []>} : vector<8x32xbf16>, vector<32x384xbf16>, vector<8x384xf32> -> vector<8x384xf32>
    %314 = arith.addf %309, %313 : vector<8x384xf32>
    %c10 = arith.constant 10 : index
    %c0_341 = arith.constant 0 : index
    %c0_342 = arith.constant 0 : index
    %315 = vector.load %arg7[%c10, %c0_341, %c0_342] : memref<25x8x32xbf16, #tpu.memory_space<vmem>>, vector<1x8x32xbf16>
    %316 = vector.shape_cast %315 : vector<1x8x32xbf16> to vector<8x32xbf16>
    %c0_343 = arith.constant 0 : index
    %c48_344 = arith.constant 48 : index
    %317 = vector.load %arg12[%c0_343, %c48_344] : memref<32x504xbf16, #tpu.memory_space<vmem>>, vector<32x384xbf16>
    %cst_345 = arith.constant dense<0.000000e+00> : vector<8x384xf32>
    %318 = tpu.matmul %316, %317, %cst_345 {dimension_numbers = #tpu.dot_dimension_numbers<[1], [0], [0], [1], [0, 0, 1, 1], [], []>} : vector<8x32xbf16>, vector<32x384xbf16>, vector<8x384xf32> -> vector<8x384xf32>
    %319 = arith.addf %314, %318 : vector<8x384xf32>
    %c11 = arith.constant 11 : index
    %c0_346 = arith.constant 0 : index
    %c0_347 = arith.constant 0 : index
    %320 = vector.load %arg7[%c11, %c0_346, %c0_347] : memref<25x8x32xbf16, #tpu.memory_space<vmem>>, vector<1x8x32xbf16>
    %321 = vector.shape_cast %320 : vector<1x8x32xbf16> to vector<8x32xbf16>
    %c0_348 = arith.constant 0 : index
    %c49_349 = arith.constant 49 : index
    %322 = vector.load %arg12[%c0_348, %c49_349] : memref<32x504xbf16, #tpu.memory_space<vmem>>, vector<32x384xbf16>
    %cst_350 = arith.constant dense<0.000000e+00> : vector<8x384xf32>
    %323 = tpu.matmul %321, %322, %cst_350 {dimension_numbers = #tpu.dot_dimension_numbers<[1], [0], [0], [1], [0, 0, 1, 1], [], []>} : vector<8x32xbf16>, vector<32x384xbf16>, vector<8x384xf32> -> vector<8x384xf32>
    %324 = arith.addf %319, %323 : vector<8x384xf32>
    %c12 = arith.constant 12 : index
    %c0_351 = arith.constant 0 : index
    %c0_352 = arith.constant 0 : index
    %325 = vector.load %arg7[%c12, %c0_351, %c0_352] : memref<25x8x32xbf16, #tpu.memory_space<vmem>>, vector<1x8x32xbf16>
    %326 = vector.shape_cast %325 : vector<1x8x32xbf16> to vector<8x32xbf16>
    %c0_353 = arith.constant 0 : index
    %c50_354 = arith.constant 50 : index
    %327 = vector.load %arg12[%c0_353, %c50_354] : memref<32x504xbf16, #tpu.memory_space<vmem>>, vector<32x384xbf16>
    %cst_355 = arith.constant dense<0.000000e+00> : vector<8x384xf32>
    %328 = tpu.matmul %326, %327, %cst_355 {dimension_numbers = #tpu.dot_dimension_numbers<[1], [0], [0], [1], [0, 0, 1, 1], [], []>} : vector<8x32xbf16>, vector<32x384xbf16>, vector<8x384xf32> -> vector<8x384xf32>
    %329 = arith.addf %324, %328 : vector<8x384xf32>
    %c13 = arith.constant 13 : index
    %c0_356 = arith.constant 0 : index
    %c0_357 = arith.constant 0 : index
    %330 = vector.load %arg7[%c13, %c0_356, %c0_357] : memref<25x8x32xbf16, #tpu.memory_space<vmem>>, vector<1x8x32xbf16>
    %331 = vector.shape_cast %330 : vector<1x8x32xbf16> to vector<8x32xbf16>
    %c0_358 = arith.constant 0 : index
    %c51_359 = arith.constant 51 : index
    %332 = vector.load %arg12[%c0_358, %c51_359] : memref<32x504xbf16, #tpu.memory_space<vmem>>, vector<32x384xbf16>
    %cst_360 = arith.constant dense<0.000000e+00> : vector<8x384xf32>
    %333 = tpu.matmul %331, %332, %cst_360 {dimension_numbers = #tpu.dot_dimension_numbers<[1], [0], [0], [1], [0, 0, 1, 1], [], []>} : vector<8x32xbf16>, vector<32x384xbf16>, vector<8x384xf32> -> vector<8x384xf32>
    %334 = arith.addf %329, %333 : vector<8x384xf32>
    %c14 = arith.constant 14 : index
    %c0_361 = arith.constant 0 : index
    %c0_362 = arith.constant 0 : index
    %335 = vector.load %arg7[%c14, %c0_361, %c0_362] : memref<25x8x32xbf16, #tpu.memory_space<vmem>>, vector<1x8x32xbf16>
    %336 = vector.shape_cast %335 : vector<1x8x32xbf16> to vector<8x32xbf16>
    %c0_363 = arith.constant 0 : index
    %c52_364 = arith.constant 52 : index
    %337 = vector.load %arg12[%c0_363, %c52_364] : memref<32x504xbf16, #tpu.memory_space<vmem>>, vector<32x384xbf16>
    %cst_365 = arith.constant dense<0.000000e+00> : vector<8x384xf32>
    %338 = tpu.matmul %336, %337, %cst_365 {dimension_numbers = #tpu.dot_dimension_numbers<[1], [0], [0], [1], [0, 0, 1, 1], [], []>} : vector<8x32xbf16>, vector<32x384xbf16>, vector<8x384xf32> -> vector<8x384xf32>
    %339 = arith.addf %334, %338 : vector<8x384xf32>
    %c15 = arith.constant 15 : index
    %c0_366 = arith.constant 0 : index
    %c0_367 = arith.constant 0 : index
    %340 = vector.load %arg7[%c15, %c0_366, %c0_367] : memref<25x8x32xbf16, #tpu.memory_space<vmem>>, vector<1x8x32xbf16>
    %341 = vector.shape_cast %340 : vector<1x8x32xbf16> to vector<8x32xbf16>
    %c0_368 = arith.constant 0 : index
    %c72_369 = arith.constant 72 : index
    %342 = vector.load %arg12[%c0_368, %c72_369] : memref<32x504xbf16, #tpu.memory_space<vmem>>, vector<32x384xbf16>
    %cst_370 = arith.constant dense<0.000000e+00> : vector<8x384xf32>
    %343 = tpu.matmul %341, %342, %cst_370 {dimension_numbers = #tpu.dot_dimension_numbers<[1], [0], [0], [1], [0, 0, 1, 1], [], []>} : vector<8x32xbf16>, vector<32x384xbf16>, vector<8x384xf32> -> vector<8x384xf32>
    %344 = arith.addf %339, %343 : vector<8x384xf32>
    %c16_371 = arith.constant 16 : index
    %c0_372 = arith.constant 0 : index
    %c0_373 = arith.constant 0 : index
    %345 = vector.load %arg7[%c16_371, %c0_372, %c0_373] : memref<25x8x32xbf16, #tpu.memory_space<vmem>>, vector<1x8x32xbf16>
    %346 = vector.shape_cast %345 : vector<1x8x32xbf16> to vector<8x32xbf16>
    %c0_374 = arith.constant 0 : index
    %c73_375 = arith.constant 73 : index
    %347 = vector.load %arg12[%c0_374, %c73_375] : memref<32x504xbf16, #tpu.memory_space<vmem>>, vector<32x384xbf16>
    %cst_376 = arith.constant dense<0.000000e+00> : vector<8x384xf32>
    %348 = tpu.matmul %346, %347, %cst_376 {dimension_numbers = #tpu.dot_dimension_numbers<[1], [0], [0], [1], [0, 0, 1, 1], [], []>} : vector<8x32xbf16>, vector<32x384xbf16>, vector<8x384xf32> -> vector<8x384xf32>
    %349 = arith.addf %344, %348 : vector<8x384xf32>
    %c17 = arith.constant 17 : index
    %c0_377 = arith.constant 0 : index
    %c0_378 = arith.constant 0 : index
    %350 = vector.load %arg7[%c17, %c0_377, %c0_378] : memref<25x8x32xbf16, #tpu.memory_space<vmem>>, vector<1x8x32xbf16>
    %351 = vector.shape_cast %350 : vector<1x8x32xbf16> to vector<8x32xbf16>
    %c0_379 = arith.constant 0 : index
    %c74_380 = arith.constant 74 : index
    %352 = vector.load %arg12[%c0_379, %c74_380] : memref<32x504xbf16, #tpu.memory_space<vmem>>, vector<32x384xbf16>
    %cst_381 = arith.constant dense<0.000000e+00> : vector<8x384xf32>
    %353 = tpu.matmul %351, %352, %cst_381 {dimension_numbers = #tpu.dot_dimension_numbers<[1], [0], [0], [1], [0, 0, 1, 1], [], []>} : vector<8x32xbf16>, vector<32x384xbf16>, vector<8x384xf32> -> vector<8x384xf32>
    %354 = arith.addf %349, %353 : vector<8x384xf32>
    %c18 = arith.constant 18 : index
    %c0_382 = arith.constant 0 : index
    %c0_383 = arith.constant 0 : index
    %355 = vector.load %arg7[%c18, %c0_382, %c0_383] : memref<25x8x32xbf16, #tpu.memory_space<vmem>>, vector<1x8x32xbf16>
    %356 = vector.shape_cast %355 : vector<1x8x32xbf16> to vector<8x32xbf16>
    %c0_384 = arith.constant 0 : index
    %c75_385 = arith.constant 75 : index
    %357 = vector.load %arg12[%c0_384, %c75_385] : memref<32x504xbf16, #tpu.memory_space<vmem>>, vector<32x384xbf16>
    %cst_386 = arith.constant dense<0.000000e+00> : vector<8x384xf32>
    %358 = tpu.matmul %356, %357, %cst_386 {dimension_numbers = #tpu.dot_dimension_numbers<[1], [0], [0], [1], [0, 0, 1, 1], [], []>} : vector<8x32xbf16>, vector<32x384xbf16>, vector<8x384xf32> -> vector<8x384xf32>
    %359 = arith.addf %354, %358 : vector<8x384xf32>
    %c19 = arith.constant 19 : index
    %c0_387 = arith.constant 0 : index
    %c0_388 = arith.constant 0 : index
    %360 = vector.load %arg7[%c19, %c0_387, %c0_388] : memref<25x8x32xbf16, #tpu.memory_space<vmem>>, vector<1x8x32xbf16>
    %361 = vector.shape_cast %360 : vector<1x8x32xbf16> to vector<8x32xbf16>
    %c0_389 = arith.constant 0 : index
    %c76_390 = arith.constant 76 : index
    %362 = vector.load %arg12[%c0_389, %c76_390] : memref<32x504xbf16, #tpu.memory_space<vmem>>, vector<32x384xbf16>
    %cst_391 = arith.constant dense<0.000000e+00> : vector<8x384xf32>
    %363 = tpu.matmul %361, %362, %cst_391 {dimension_numbers = #tpu.dot_dimension_numbers<[1], [0], [0], [1], [0, 0, 1, 1], [], []>} : vector<8x32xbf16>, vector<32x384xbf16>, vector<8x384xf32> -> vector<8x384xf32>
    %364 = arith.addf %359, %363 : vector<8x384xf32>
    %c20 = arith.constant 20 : index
    %c0_392 = arith.constant 0 : index
    %c0_393 = arith.constant 0 : index
    %365 = vector.load %arg7[%c20, %c0_392, %c0_393] : memref<25x8x32xbf16, #tpu.memory_space<vmem>>, vector<1x8x32xbf16>
    %366 = vector.shape_cast %365 : vector<1x8x32xbf16> to vector<8x32xbf16>
    %c0_394 = arith.constant 0 : index
    %c96_395 = arith.constant 96 : index
    %367 = vector.load %arg12[%c0_394, %c96_395] : memref<32x504xbf16, #tpu.memory_space<vmem>>, vector<32x384xbf16>
    %cst_396 = arith.constant dense<0.000000e+00> : vector<8x384xf32>
    %368 = tpu.matmul %366, %367, %cst_396 {dimension_numbers = #tpu.dot_dimension_numbers<[1], [0], [0], [1], [0, 0, 1, 1], [], []>} : vector<8x32xbf16>, vector<32x384xbf16>, vector<8x384xf32> -> vector<8x384xf32>
    %369 = arith.addf %364, %368 : vector<8x384xf32>
    %c21 = arith.constant 21 : index
    %c0_397 = arith.constant 0 : index
    %c0_398 = arith.constant 0 : index
    %370 = vector.load %arg7[%c21, %c0_397, %c0_398] : memref<25x8x32xbf16, #tpu.memory_space<vmem>>, vector<1x8x32xbf16>
    %371 = vector.shape_cast %370 : vector<1x8x32xbf16> to vector<8x32xbf16>
    %c0_399 = arith.constant 0 : index
    %c97_400 = arith.constant 97 : index
    %372 = vector.load %arg12[%c0_399, %c97_400] : memref<32x504xbf16, #tpu.memory_space<vmem>>, vector<32x384xbf16>
    %cst_401 = arith.constant dense<0.000000e+00> : vector<8x384xf32>
    %373 = tpu.matmul %371, %372, %cst_401 {dimension_numbers = #tpu.dot_dimension_numbers<[1], [0], [0], [1], [0, 0, 1, 1], [], []>} : vector<8x32xbf16>, vector<32x384xbf16>, vector<8x384xf32> -> vector<8x384xf32>
    %374 = arith.addf %369, %373 : vector<8x384xf32>
    %c22 = arith.constant 22 : index
    %c0_402 = arith.constant 0 : index
    %c0_403 = arith.constant 0 : index
    %375 = vector.load %arg7[%c22, %c0_402, %c0_403] : memref<25x8x32xbf16, #tpu.memory_space<vmem>>, vector<1x8x32xbf16>
    %376 = vector.shape_cast %375 : vector<1x8x32xbf16> to vector<8x32xbf16>
    %c0_404 = arith.constant 0 : index
    %c98_405 = arith.constant 98 : index
    %377 = vector.load %arg12[%c0_404, %c98_405] : memref<32x504xbf16, #tpu.memory_space<vmem>>, vector<32x384xbf16>
    %cst_406 = arith.constant dense<0.000000e+00> : vector<8x384xf32>
    %378 = tpu.matmul %376, %377, %cst_406 {dimension_numbers = #tpu.dot_dimension_numbers<[1], [0], [0], [1], [0, 0, 1, 1], [], []>} : vector<8x32xbf16>, vector<32x384xbf16>, vector<8x384xf32> -> vector<8x384xf32>
    %379 = arith.addf %374, %378 : vector<8x384xf32>
    %c23 = arith.constant 23 : index
    %c0_407 = arith.constant 0 : index
    %c0_408 = arith.constant 0 : index
    %380 = vector.load %arg7[%c23, %c0_407, %c0_408] : memref<25x8x32xbf16, #tpu.memory_space<vmem>>, vector<1x8x32xbf16>
    %381 = vector.shape_cast %380 : vector<1x8x32xbf16> to vector<8x32xbf16>
    %c0_409 = arith.constant 0 : index
    %c99_410 = arith.constant 99 : index
    %382 = vector.load %arg12[%c0_409, %c99_410] : memref<32x504xbf16, #tpu.memory_space<vmem>>, vector<32x384xbf16>
    %cst_411 = arith.constant dense<0.000000e+00> : vector<8x384xf32>
    %383 = tpu.matmul %381, %382, %cst_411 {dimension_numbers = #tpu.dot_dimension_numbers<[1], [0], [0], [1], [0, 0, 1, 1], [], []>} : vector<8x32xbf16>, vector<32x384xbf16>, vector<8x384xf32> -> vector<8x384xf32>
    %384 = arith.addf %379, %383 : vector<8x384xf32>
    %c24_412 = arith.constant 24 : index
    %c0_413 = arith.constant 0 : index
    %c0_414 = arith.constant 0 : index
    %385 = vector.load %arg7[%c24_412, %c0_413, %c0_414] : memref<25x8x32xbf16, #tpu.memory_space<vmem>>, vector<1x8x32xbf16>
    %386 = vector.shape_cast %385 : vector<1x8x32xbf16> to vector<8x32xbf16>
    %c0_415 = arith.constant 0 : index
    %c100_416 = arith.constant 100 : index
    %387 = vector.load %arg12[%c0_415, %c100_416] : memref<32x504xbf16, #tpu.memory_space<vmem>>, vector<32x384xbf16>
    %cst_417 = arith.constant dense<0.000000e+00> : vector<8x384xf32>
    %388 = tpu.matmul %386, %387, %cst_417 {dimension_numbers = #tpu.dot_dimension_numbers<[1], [0], [0], [1], [0, 0, 1, 1], [], []>} : vector<8x32xbf16>, vector<32x384xbf16>, vector<8x384xf32> -> vector<8x384xf32>
    %389 = arith.addf %384, %388 : vector<8x384xf32>
    %c0_418 = arith.constant 0 : index
    %c0_419 = arith.constant 0 : index
    %390 = vector.load %arg8[%c0_418, %c0_419] : memref<8x1xf32, #tpu.memory_space<vmem>>, vector<8x1xf32>
    %391 = vector.broadcast %390 : vector<8x1xf32> to vector<8x384xf32>
    %392 = arith.addf %389, %391 : vector<8x384xf32>
    %c0_420 = arith.constant 0 : index
    %c0_421 = arith.constant 0 : index
    %c0_422 = arith.constant 0 : index
    %393 = vector.load %arg9[%c0_420, %c0_421, %c0_422] : memref<1x8x384xf32, #tpu.memory_space<vmem>>, vector<1x8x384xf32>
    %394 = vector.shape_cast %393 : vector<1x8x384xf32> to vector<8x384xf32>
    %395 = vector.shape_cast %392 : vector<8x384xf32> to vector<1x8x384xf32>
    tpu.vector_store %arg9[%c0_420, %c0_421, %c0_422], %395 {strides = array<i32>} : memref<1x8x384xf32, #tpu.memory_space<vmem>>, vector<1x8x384xf32>,
    return
  }
  func.func @transform_0(%arg0: i32) -> (i32, i32, i32) {
    %c0_i32 = arith.constant 0 : i32
    %c0_i32_0 = arith.constant 0 : i32
    %c0_i32_1 = arith.constant 0 : i32
    return %arg0, %c0_i32, %c0_i32_0 : i32, i32, i32
  }
  func.func @transform_1(%arg0: i32) -> (i32, i32) {
    %c0_i32 = arith.constant 0 : i32
    %c0_i32_0 = arith.constant 0 : i32
    %c0_i32_1 = arith.constant 0 : i32
    return %c0_i32, %c0_i32_0 : i32, i32
  }
  func.func @transform_2(%arg0: i32) -> (i32, i32) {
    %c0_i32 = arith.constant 0 : i32
    %c0_i32_0 = arith.constant 0 : i32
    %c0_i32_1 = arith.constant 0 : i32
    return %c0_i32, %c0_i32_0 : i32, i32
  }
  func.func @transform_3(%arg0: i32) -> (i32, i32) {
    %c0_i32 = arith.constant 0 : i32
    %c0_i32_0 = arith.constant 0 : i32
    %c0_i32_1 = arith.constant 0 : i32
    return %c0_i32, %c0_i32_0 : i32, i32
  }
  func.func @transform_4(%arg0: i32) -> (i32, i32) {
    %c0_i32 = arith.constant 0 : i32
    %c0_i32_0 = arith.constant 0 : i32
    %c0_i32_1 = arith.constant 0 : i32
    return %c0_i32, %c0_i32_0 : i32, i32
  }
  func.func @transform_5(%arg0: i32) -> (i32, i32) {
    %c0_i32 = arith.constant 0 : i32
    %c0_i32_0 = arith.constant 0 : i32
    %c0_i32_1 = arith.constant 0 : i32
    return %c0_i32, %c0_i32_0 : i32, i32
  }
  func.func @transform_6(%arg0: i32) -> (i32, i32, i32) {
    %c0_i32 = arith.constant 0 : i32
    %c0_i32_0 = arith.constant 0 : i32
    %c0_i32_1 = arith.constant 0 : i32
    %c0_i32_2 = arith.constant 0 : i32
    return %c0_i32, %c0_i32_0, %c0_i32_1 : i32, i32, i32
  }
  func.func @transform_7(%arg0: i32) -> (i32, i32) {
    %c0_i32 = arith.constant 0 : i32
    %c0_i32_0 = arith.constant 0 : i32
    %c0_i32_1 = arith.constant 0 : i32
    return %c0_i32, %c0_i32_0 : i32, i32
  }
  func.func @transform_8(%arg0: i32) -> (i32, i32, i32) {
    %c0_i32 = arith.constant 0 : i32
    %c0_i32_0 = arith.constant 0 : i32
    %c0_i32_1 = arith.constant 0 : i32
    return %arg0, %c0_i32, %c0_i32_0 : i32, i32, i32
  }
}

</mosaic_0001>

<bundles_post_ra>
// kernel: super_res_model.1
= control target key start
LH: loop header
LB: loop body
LE: loop exit
PB: predicated region body
PF: predicated region fallthrough
CT: control target
= control target key end

     0   :  { %s8366_s27 = smov 0   ;;  %s11524_s0 = inlined_call_operand.vmem [shape: bf16[2,8,720], index: 0, kind: input, shape index: {}]   ;;  %s11525_s1 = inlined_call_operand.vmem [shape: f32[1,504], index: 1, kind: input, shape index: {}]   ;;  %s11526_s2 = inlined_call_operand.vmem [shape: bf16[64,648], index: 2, kind: input, shape index: {}]   ;;  %s11527_s3 = inlined_call_operand.vmem [shape: f32[64,1], index: 3, kind: input, shape index: {}]   ;;  %s11528_s4 = inlined_call_operand.vmem [shape: bf16[32,64], index: 4, kind: input, shape index: {}]   ;;  %s11529_s5 = inlined_call_operand.vmem [shape: f32[32,1], index: 5, kind: input, shape index: {}]   ;;  %s11530_s6 = inlined_call_operand.vmem [shape: bf16[25,8,32], index: 6, kind: input, shape index: {}]   ;;  %s11531_s7 = inlined_call_operand.vmem [shape: f32[8,1], index: 7, kind: input, shape index: {}]   ;;  %s11532_s8 = inlined_call_operand.vmem [shape: f32[2,8,384], index: 8, kind: output, shape index: {}]  }
   0x1   :  { %11816 = sst [smem:[#allocation53_spill]] %s11524_s0 }
   0x2   :  { %11817 = sst [smem:[#allocation54_spill]] %s11525_s1 }
   0x3   :  { %11818 = sst [smem:[#allocation55_spill]] %s11526_s2 }
   0x4 LB: > { %s7306_s28 = sadd.s32 4294967295, %s8240_s27   ;;  %p7310_p0 = scmp.ge.s32.totalorder %s8240_s27, 1  ;;  %s8240_s27 = sphi %s8366_s27, %s18_s27  }
   0x5   : > { %p262_p1 = scmp.lt.s32.totalorder %s8240_s27, 3 }
   0x7   : > { %p263_p2 = pnand %p7310_p0, %p262_p1 }
   0x9   : > { %266 = sbr.rel (%p263_p2) target bundleno = 1779 (0x6f3), region = 52 }
   0xe   : > { %p296_p3 = scmp.lt.s32.totalorder %s7306_s28, 1  ;;  %s11819_s0 = sld [smem:[#allocation53_spill]]  ;;  %vm311_vm0 = vcmask 982020   ;;  %vm310_vm1 = vcmask 1043456   ;;  %vm619_vm3 = vcmask 801792   ;;  %vm595_vm4 = vcmask 809984  }
   0xf   : > { %s8242_s11 = smov 98   ;;  %s8243_s12 = smov 99   ;;  %vm8490_vm2 = vmor %vm311_vm0, %vm310_vm1  ;;  %vm1363_vm5 = vcmask 56320   ;;  %vm11615_vm6 = vcmask 48128   ;;  %vm11751_vm7 = vcmask 826368   ;;  %vm11749_vm8 = vcmask 818176  }
  0x10   : > { %s12320_s28 = smov (!%p296_p3, %s7306_s28), 1  ;;  %s8244_s13 = smov 7   ;;  %vm11607_vm9 = vcmask 195584   ;;  %vm1339_vm10 = vcmask 64512   ;;  %vm11756_vm11 = vcmask 842752   ;;  %vm11752_vm12 = vcmask 834560  }
  0x11   : > { %s11533_s29 = smul.u32 24, %s12320_s28  ;;  %s8245_s14 = smov 6   ;;  %vm11606_vm13 = vcmask 211968   ;;  %vm11563_vm14 = vcmask 203776   ;;  %vm452_vm15 = vcmask 982016   ;;  %vm475_vm0 = vcmask 850944  }
  0x12   : > { %s11636_s15 = smov 101   ;;  %s11633_s16 = smov 100  }
  0x13   : > { %s8248_s17 = smov 24   ;;  %s11588_s18 = smov 8  }
  0x14   : > { %s8382_s10 = scalar_lea.vmem %s11819_s0, %s11533_s29  ;;  %s11649_s19 = smov 103  }
  0x15   : > { %v8385_v0 = vld [vmem:[%s8382_s10] sm:$0xff]  ;;  %v8392_v1 = vld [vmem:[%s8382_s10 + $0x8] sm:$0xff]  ;;  %s11641_s20 = smov 102   ;;  %s11561_s21 = smov 26  }
  0x16   : > { %609 = vrot.lane.b32.xlu1 %v8385_v0, %s8242_s11  ;;  %585 = vrot.lane.b32.xlu0 %v8385_v0, %s8243_s12  ;;  %s11560_s22 = smov 25   ;;  %s8254_s23 = smov 120   ;;  %v8465_v2 = vld [vmem:[%s8382_s10] sm:$0xff]  ;;  %v308_v4 = vld [vmem:[%s8382_s10 + $0x8] sm:$0xff] }
  0x17   : > { %s11787_s24 = smov 104   ;;  %s11556_s25 = smov 28   ;;  %313 = vst.msk [vmem:[#allocation2 + $0x8] sm:$0xff] %vm8490_vm2, %v308_v4  ;;  %v8553_v30 = vld [vmem:[%s8382_s10 + $0xc] sm:$0xff]  ;;  %v8556_v31 = vld [vmem:[%s8382_s10 + $0x4] sm:$0xff] }
  0x18   : > { %s11555_s26 = smov 27   ;;  %s8258_s30 = smov 122   ;;  %v8563_v39 = vld [vmem:[%s8382_s10 + $0x4] sm:$0xff] }
  0x19   : > { %s8259_s9 = smov 121   ;;  %s11536_s29 = smov 29   ;;  %1517 = vst [vmem:[#allocation2 + $0x350] sm:$0xff] %v8563_v39 }
  0x1a   : > { %611 = vrot.lane.b32.xlu1 %v8392_v1, %s8242_s11  ;;  %587 = vrot.lane.b32.xlu0 %v8392_v1, %s8243_s12  ;;  %s11822_s2 = sld [smem:[#allocation55_spill]]  ;;  %s12057_s0 = smov 54  }
  0x1b   : > { %s12034_s1 = sld [smem:[#allocation54_spill]] }
  0x1e   : > { %1355 = vrot.lane.b32.xlu1 %v8392_v1, %s8244_s13  ;;  %1353 = vrot.lane.b32.xlu0 %v8385_v0, %s8244_s13 }
  0x22   : > { %1379 = vrot.lane.b32.xlu1 %v8392_v1, %s8245_s14  ;;  %1377 = vrot.lane.b32.xlu0 %v8385_v0, %s8245_s14 }
  0x26   : > { %539 = vrot.lane.b32.xlu1 %v8392_v1, %s11636_s15  ;;  %537 = vrot.lane.b32.xlu0 %v8385_v0, %s11636_s15 }
  0x2a   : > { %563 = vrot.lane.b32.xlu1 %v8392_v1, %s11633_s16  ;;  %561 = vrot.lane.b32.xlu0 %v8385_v0, %s11633_s16 }
  0x2e   : > { %1307 = vrot.lane.b32.xlu1 %v8392_v1, %s8248_s17  ;;  %1305 = vrot.lane.b32.xlu0 %v8385_v0, %s8248_s17 }
  0x32   : > { %1331 = vrot.lane.b32.xlu1 %v8392_v1, %s11588_s18  ;;  %1329 = vrot.lane.b32.xlu0 %v8385_v0, %s11588_s18  ;;  %s11593_s18 = smov 3  }
  0x36   : > { %491 = vrot.lane.b32.xlu1 %v8392_v1, %s11649_s19  ;;  %489 = vrot.lane.b32.xlu0 %v8385_v0, %s11649_s19 }
  0x3a   : > { %515 = vrot.lane.b32.xlu1 %v8392_v1, %s11641_s20  ;;  %513 = vrot.lane.b32.xlu0 %v8385_v0, %s11641_s20 }
  0x3e   : > { %1259 = vrot.lane.b32.xlu1 %v8392_v1, %s11561_s21  ;;  %1257 = vrot.lane.b32.xlu0 %v8385_v0, %s11561_s21  ;;  %s11564_s21 = smov 107  }
  0x42   : > { %1283 = vrot.lane.b32.xlu1 %v8392_v1, %s11560_s22  ;;  %1281 = vrot.lane.b32.xlu0 %v8385_v0, %s11560_s22  ;;  %s11562_s22 = smov 108  }
  0x46   : > { %447 = vrot.lane.b32.xlu1 %v8392_v1, %s8254_s23  ;;  %445 = vrot.lane.b32.xlu0 %v8385_v0, %s8254_s23  ;;  %s11534_s23 = smov 30  }
  0x4a   : > { %467 = vrot.lane.b32.xlu1 %v8392_v1, %s11787_s24  ;;  %465 = vrot.lane.b32.xlu0 %v8385_v0, %s11787_s24 }
  0x4e   : > { %1211 = vrot.lane.b32.xlu1 %v8392_v1, %s11556_s25  ;;  %1209 = vrot.lane.b32.xlu0 %v8385_v0, %s11556_s25  ;;  %s11559_s25 = smov 105  }
  0x52   : > { %1235 = vrot.lane.b32.xlu1 %v8392_v1, %s11555_s26  ;;  %1233 = vrot.lane.b32.xlu0 %v8385_v0, %s11555_s26  ;;  %s11558_s26 = smov 106  }
  0x56   : > { %411 = vrot.lane.b32.xlu1 %v8392_v1, %s8258_s30  ;;  %409 = vrot.lane.b32.xlu0 %v8385_v0, %s8258_s30  ;;  %s11538_s30 = smov 124  }
  0x5a   : > { %429 = vrot.lane.b32.xlu1 %v8392_v1, %s8259_s9  ;;  %427 = vrot.lane.b32.xlu0 %v8385_v0, %s8259_s9  ;;  %s8263_s9 = smov 123  }
  0x5e   : > { %1163 = vrot.lane.b32.xlu1 %v8392_v1, %s11534_s23  ;;  %1161 = vrot.lane.b32.xlu0 %v8385_v0, %s11534_s23  ;;  %s11552_s23 = smov 32  }
  0x62   : > { %1187 = vrot.lane.b32.xlu1 %v8392_v1, %s11536_s29  ;;  %1185 = vrot.lane.b32.xlu0 %v8385_v0, %s11536_s29  ;;  %s11540_s29 = smov 31  }
  0x66   : > { %375 = vrot.lane.b32.xlu1 %v8392_v1, %s11538_s30  ;;  %373 = vrot.lane.b32.xlu0 %v8385_v0, %s11538_s30  ;;  %s11542_s30 = smov 126  }
  0x6a   : > { %393 = vrot.lane.b32.xlu1 %v8392_v1, %s8263_s9  ;;  %391 = vrot.lane.b32.xlu0 %v8385_v0, %s8263_s9  ;;  %s11544_s9 = smov 125  }
  0x6e   : > { %1115 = vrot.lane.b32.xlu1 %v8392_v1, %s11552_s23  ;;  %1113 = vrot.lane.b32.xlu0 %v8385_v0, %s11552_s23  ;;  %s11711_s23 = smov 55  }
  0x72   : > { %1139 = vrot.lane.b32.xlu1 %v8392_v1, %s11540_s29  ;;  %1137 = vrot.lane.b32.xlu0 %v8385_v0, %s11540_s29  ;;  %s11546_s29 = smov 49  }
  0x76   : > { %339 = vrot.lane.b32.xlu1 %v8392_v1, %s11542_s30  ;;  %337 = vrot.lane.b32.xlu0 %v8385_v0, %s11542_s30  ;;  %s11551_s30 = smov 48  }
  0x7a   : > { %357 = vrot.lane.b32.xlu1 %v8392_v1, %s11544_s9  ;;  %355 = vrot.lane.b32.xlu0 %v8385_v0, %s11544_s9  ;;  %s11547_s9 = smov 127  }
  0x7e   : > { %1067 = vrot.lane.b32.xlu1 %v8392_v1, %s11546_s29  ;;  %1065 = vrot.lane.b32.xlu0 %v8385_v0, %s11546_s29  ;;  %s11550_s29 = smov 51  }
  0x82   : > { %1091 = vrot.lane.b32.xlu1 %v8392_v1, %s11551_s30  ;;  %1089 = vrot.lane.b32.xlu0 %v8385_v0, %s11551_s30  ;;  %s11554_s30 = smov 88  }
  0x86   : > { %320 = vrot.lane.b32.xlu1 %v8392_v1, %s11547_s9  ;;  %318 = vrot.lane.b32.xlu0 %v8385_v0, %s11547_s9  ;;  %s11549_s9 = smov 50  }
  0x88   : > { %v610_v5 = vpop.permute.xlu1 %609  ;;  %v586_v6 = vpop.permute.xlu0 %585 }
  0x89   : > { %v615_v7 = vrot.slane %v610_v5, 4  ;;  %v591_v10 = vrot.slane %v586_v6, 4 }
  0x8a   : > { %1019 = vrot.lane.b32.xlu1 %v8392_v1, %s11550_s29  ;;  %1017 = vrot.lane.b32.xlu0 %v8385_v0, %s11550_s29  ;;  %s11703_s29 = smov 52  }
  0x8c   : > { %v8513_v8 = vpop.permute.xlu1 %611  ;;  %v8515_v9 = vpop.permute.xlu0 %587 }
  0x8d   : > { %v11686_v11 = vrot.slane %v8513_v8, 4  ;;  %v11681_v12 = vrot.slane %v8515_v9, 4 }
  0x8e   : > { %1043 = vrot.lane.b32.xlu1 %v8392_v1, %s11549_s9  ;;  %1041 = vrot.lane.b32.xlu0 %v8385_v0, %s11549_s9  ;;  %s11706_s9 = smov 53  }
  0x8f   : > { %v618_v13 = vsel %vm310_vm1, %v615_v7, %v11686_v11  ;;  %v594_v14 = vsel %vm310_vm1, %v591_v10, %v11681_v12 }
  0x90   : > { %v620_v15 = vsel %vm619_vm3, %v610_v5, %v618_v13  ;;  %v596_v16 = vsel %vm595_vm4, %v586_v6, %v594_v14  ;;  %v8531_v17 = vpop.permute.xlu1 %1355  ;;  %v1354_v18 = vpop.permute.xlu0 %1353 }
  0x91   : > { %v11661_v19 = vrot.slane %v8531_v17, 4  ;;  %v1359_v20 = vrot.slane %v1354_v18, 4  ;;  %v7366_v21 = vcombine.high %v596_v16, %v620_v15  ;;  %v7365_v22 = vcombine.low %v596_v16, %v620_v15 }
  0x92   : > { %971 = vrot.lane.b32.xlu1 %v8392_v1, %s11706_s9  ;;  %969 = vrot.lane.b32.xlu0 %v8385_v0, %s11706_s9 }
  0x93   : > { %v1362_v23 = vsel %vm310_vm1, %v1359_v20, %v11661_v19  ;;  %3349 = vmatprep.subr.bf16.mxu0 %v7366_v21 }
  0x94   : > { %v1364_v24 = vsel %vm1363_vm5, %v1354_v18, %v1362_v23  ;;  %v8542_v25 = vpop.permute.xlu1 %1379  ;;  %v1378_v26 = vpop.permute.xlu0 %1377  ;;  %3350 = vmatpush1.bf16.msra.mxu0 %v7365_v22 }
  0x95   : > { %v11646_v27 = vrot.slane %v8542_v25, 4  ;;  %v1383_v28 = vrot.slane %v1378_v26, 4 }
  0x96   : > { %995 = vrot.lane.b32.xlu1 %v8392_v1, %s11703_s29  ;;  %993 = vrot.lane.b32.xlu0 %v8385_v0, %s11703_s29 }
  0x97   : > { %v1386_v29 = vsel %vm310_vm1, %v1383_v28, %v11646_v27 }
  0x98   : > { %v1388_v32 = vsel %vm11615_vm6, %v1378_v26, %v1386_v29  ;;  %v8559_v33 = vpop.permute.xlu1 %539  ;;  %v538_v34 = vpop.permute.xlu0 %537  ;;  %vm11621_vm6 = vcmask 867328  }
  0x99   : > { %v11677_v35 = vrot.slane %v8559_v33, 4  ;;  %v543_v36 = vrot.slane %v538_v34, 4  ;;  %v7430_v37 = vcombine.high %v1364_v24, %v1388_v32  ;;  %v7429_v38 = vcombine.low %v1364_v24, %v1388_v32 }
  0x9a   : > { %1719 = vrot.lane.b32.xlu1 %v8553_v30, %s11787_s24  ;;  %1717 = vrot.lane.b32.xlu0 %v8556_v31, %s11787_s24 }
  0x9b   : > { %v546_v40 = vsel %vm310_vm1, %v543_v36, %v11677_v35  ;;  %3422 = vmatprep.subr.bf16.mxu1 %v7430_v37 }
  0x9c   : > { %v548_v41 = vsel %vm11751_vm7, %v538_v34, %v546_v40  ;;  %v8574_v42 = vpop.permute.xlu1 %563  ;;  %v562_v43 = vpop.permute.xlu0 %561  ;;  %3423 = vmatpush1.bf16.msra.mxu1 %v7429_v38 }
  0x9d   : > { %v11679_v44 = vrot.slane %v8574_v42, 4  ;;  %v567_v45 = vrot.slane %v562_v43, 4 }
  0x9e   : > { %1742 = vrot.lane.b32.xlu1 %v8553_v30, %s11554_s30  ;;  %1740 = vrot.lane.b32.xlu0 %v8556_v31, %s11554_s30  ;;  %s11709_s30 = smov 54  }
  0x9f   : > { %v570_v46 = vsel %vm310_vm1, %v567_v45, %v11679_v44 }
  0xa0   : > { %v572_v47 = vsel %vm11749_vm8, %v562_v43, %v570_v46  ;;  %v8585_v48 = vpop.permute.xlu1 %1307  ;;  %v1306_v49 = vpop.permute.xlu0 %1305 }
  0xa1   : > { %v11645_v50 = vrot.slane %v8585_v48, 4  ;;  %v1311_v51 = vrot.slane %v1306_v49, 4  ;;  %v7362_v52 = vcombine.high %v548_v41, %v572_v47  ;;  %v7361_v53 = vcombine.low %v548_v41, %v572_v47 }
  0xa2   : > { %923 = vrot.lane.b32.xlu1 %v8392_v1, %s11711_s23  ;;  %921 = vrot.lane.b32.xlu0 %v8385_v0, %s11711_s23 }
  0xa3   : > { %v1314_v54 = vsel %vm310_vm1, %v1311_v51, %v11645_v50  ;;  %3351 = vmatprep.subr.bf16.mxu0 %v7362_v52 }
  0xa4   : > { %v1316_v55 = vsel %vm11607_vm9, %v1306_v49, %v1314_v54  ;;  %v8596_v56 = vpop.permute.xlu1 %1331  ;;  %v1330_v57 = vpop.permute.xlu0 %1329  ;;  %3352 = vmatpush1.bf16.msra.mxu0 %v7361_v53  ;;  %vm11631_vm9 = vcmask 449536  }
  0xa5   : > { %v11628_v58 = vrot.slane %v8596_v56, 4  ;;  %v1335_v59 = vrot.slane %v1330_v57, 4 }
  0xa6   : > { %947 = vrot.lane.b32.xlu1 %v8392_v1, %s11709_s30  ;;  %945 = vrot.lane.b32.xlu0 %v8385_v0, %s11709_s30 }
  0xa7   : > { %v1338_v60 = vsel %vm310_vm1, %v1335_v59, %v11628_v58 }
  0xa8   : > { %v1340_v61 = vsel %vm1339_vm10, %v1330_v57, %v1338_v60  ;;  %v8607_v62 = vpop.permute.xlu1 %491  ;;  %v490_v63 = vpop.permute.xlu0 %489 }
  0xa9   : > { %v11675_v4 = vrot.slane %v8607_v62, 4  ;;  %v495_v5 = vrot.slane %v490_v63, 4  ;;  %v7426_v6 = vcombine.high %v1316_v55, %v1340_v61  ;;  %v7425_v7 = vcombine.low %v1316_v55, %v1340_v61 }
  0xaa   : > { %1671 = vrot.lane.b32.xlu1 %v8553_v30, %s11558_s26  ;;  %1669 = vrot.lane.b32.xlu0 %v8556_v31, %s11558_s26  ;;  %s11601_s26 = smov 72  }
  0xab   : > { %v498_v10 = vsel %vm310_vm1, %v495_v5, %v11675_v4  ;;  %3424 = vmatprep.subr.bf16.mxu1 %v7426_v6 }
  0xac   : > { %v500_v13 = vsel %vm11756_vm11, %v490_v63, %v498_v10  ;;  %v8618_v14 = vpop.permute.xlu1 %515  ;;  %v514_v15 = vpop.permute.xlu0 %513  ;;  %3425 = vmatpush1.bf16.msra.mxu1 %v7425_v7 }
  0xad   : > { %v11676_v16 = vrot.slane %v8618_v14, 4  ;;  %v519_v18 = vrot.slane %v514_v15, 4 }
  0xae   : > { %1695 = vrot.lane.b32.xlu1 %v8553_v30, %s11559_s25  ;;  %1693 = vrot.lane.b32.xlu0 %v8556_v31, %s11559_s25  ;;  %s11721_s25 = smov 56  }
  0xaf   : > { %v522_v20 = vsel %vm310_vm1, %v519_v18, %v11676_v16 }
  0xb0   : > { %v524_v21 = vsel %vm11752_vm12, %v514_v15, %v522_v20  ;;  %v8629_v22 = vpop.permute.xlu1 %1259  ;;  %v1258_v23 = vpop.permute.xlu0 %1257 }
  0xb1   : > { %v11627_v24 = vrot.slane %v8629_v22, 4  ;;  %v1263_v26 = vrot.slane %v1258_v23, 4  ;;  %v7358_v28 = vcombine.high %v500_v13, %v524_v21  ;;  %v7357_v29 = vcombine.low %v500_v13, %v524_v21 }
  0xb2   : > { %875 = vrot.lane.b32.xlu1 %v8392_v1, %s11601_s26  ;;  %873 = vrot.lane.b32.xlu0 %v8385_v0, %s11601_s26  ;;  %s11743_s26 = smov 61  }
  0xb3   : > { %v1266_v32 = vsel %vm310_vm1, %v1263_v26, %v11627_v24  ;;  %3353 = vmatprep.subr.bf16.mxu0 %v7358_v28 }
  0xb4   : > { %v1268_v34 = vsel %vm11606_vm13, %v1258_v23, %v1266_v32  ;;  %v8640_v36 = vpop.permute.xlu1 %1283  ;;  %v1282_v37 = vpop.permute.xlu0 %1281  ;;  %3354 = vmatpush1.bf16.msra.mxu0 %v7357_v29  ;;  %vm11614_vm13 = vcmask 719872  }
  0xb5   : > { %v11623_v38 = vrot.slane %v8640_v36, 4  ;;  %v1287_v40 = vrot.slane %v1282_v37, 4 }
  0xb6   : > { %899 = vrot.lane.b32.xlu1 %v8392_v1, %s11721_s25  ;;  %897 = vrot.lane.b32.xlu0 %v8385_v0, %s11721_s25 }
  0xb7   : > { %v1290_v41 = vsel %vm310_vm1, %v1287_v40, %v11623_v38 }
  0xb8   : > { %v1292_v43 = vsel %vm11563_vm14, %v1282_v37, %v1290_v41  ;;  %v448_v45 = vpop.permute.xlu1 %447  ;;  %v446_v46 = vpop.permute.xlu0 %445  ;;  %vm11567_vm14 = vcmask 220160  }
  0xb9   : > { %v450_v47 = vrot.slane %v448_v45, 4  ;;  %v449_v49 = vrot.slane %v446_v46, 4  ;;  %v7422_v51 = vcombine.high %v1268_v34, %v1292_v43  ;;  %v7421_v52 = vcombine.low %v1268_v34, %v1292_v43 }
  0xba   : > { %1623 = vrot.lane.b32.xlu1 %v8553_v30, %s11562_s22  ;;  %1621 = vrot.lane.b32.xlu0 %v8556_v31, %s11562_s22  ;;  %s11566_s22 = smov 74  }
  0xbb   : > { %v454_v53 = vsel %vm452_vm15, %v448_v45, %v450_v47  ;;  %v451_v54 = vsel %vm310_vm1, %v449_v49, %v450_v47  ;;  %3426 = vmatprep.subr.bf16.mxu1 %v7422_v51 }
  0xbc   : > { %458 = vst.msk [vmem:[#allocation2 + $0x88] sm:$0xff] %vm8490_vm2, %v454_v53  ;;  %v453_v55 = vsel %vm452_vm15, %v446_v46, %v451_v54  ;;  %v8658_v57 = vpop.permute.xlu1 %467  ;;  %v466_v59 = vpop.permute.xlu0 %465  ;;  %3427 = vmatpush1.bf16.msra.mxu1 %v7421_v52  ;;  %vm11565_vm15 = vcmask 228352  }
  0xbd   : > { %v11669_v60 = vrot.slane %v8658_v57, 4  ;;  %v471_v61 = vrot.slane %v466_v59, 4 }
  0xbe   : > { %1647 = vrot.lane.b32.xlu1 %v8553_v30, %s11564_s21  ;;  %1645 = vrot.lane.b32.xlu0 %v8556_v31, %s11564_s21  ;;  %s11568_s21 = smov 73  }
  0xbf   : > { %v474_v63 = vsel %vm310_vm1, %v471_v61, %v11669_v60 }
  0xc0   : > { %v476_v5 = vsel %vm475_vm0, %v466_v59, %v474_v63  ;;  %v8669_v6 = vpop.permute.xlu1 %1211  ;;  %v1210_v7 = vpop.permute.xlu0 %1209 }
  0xc1   : > { %v11622_v10 = vrot.slane %v8669_v6, 4  ;;  %v1215_v13 = vrot.slane %v1210_v7, 4  ;;  %v7354_v15 = vcombine.high %v453_v55, %v476_v5  ;;  %v7353_v18 = vcombine.low %v453_v55, %v476_v5 }
  0xc2   : > { %827 = vrot.lane.b32.xlu1 %v8392_v1, %s11566_s22  ;;  %825 = vrot.lane.b32.xlu0 %v8385_v0, %s11566_s22  ;;  %s11569_s22 = smov 110  }
  0xc3   : > { %v1218_v20 = vsel %vm310_vm1, %v1215_v13, %v11622_v10  ;;  %3355 = vmatprep.subr.bf16.mxu0 %v7354_v15 }
  0xc4   : > { %v1220_v21 = vsel %vm11565_vm15, %v1210_v7, %v1218_v20  ;;  %v8680_v23 = vpop.permute.xlu1 %1235  ;;  %v1234_v26 = vpop.permute.xlu0 %1233  ;;  %3356 = vmatpush1.bf16.msra.mxu0 %v7353_v18  ;;  %vm416_vm15 = vcmask 998400  }
  0xc5   : > { %v11618_v28 = vrot.slane %v8680_v23, 4  ;;  %v1239_v29 = vrot.slane %v1234_v26, 4 }
  0xc6   : > { %851 = vrot.lane.b32.xlu1 %v8392_v1, %s11568_s21  ;;  %849 = vrot.lane.b32.xlu0 %v8385_v0, %s11568_s21  ;;  %s11570_s21 = smov 109  }
  0xc7   : > { %v1242_v32 = vsel %vm310_vm1, %v1239_v29, %v11618_v28 }
  0xc8   : > { %v1244_v34 = vsel %vm11567_vm14, %v1234_v26, %v1242_v32  ;;  %v412_v37 = vpop.permute.xlu1 %411  ;;  %v410_v40 = vpop.permute.xlu0 %409  ;;  %vm434_vm14 = vcmask 990208  }
  0xc9   : > { %v414_v41 = vrot.slane %v412_v37, 4  ;;  %v413_v43 = vrot.slane %v410_v40, 4  ;;  %v7418_v45 = vcombine.high %v1220_v21, %v1244_v34  ;;  %v7417_v46 = vcombine.low %v1220_v21, %v1244_v34 }
  0xca   : > { %1575 = vrot.lane.b32.xlu1 %v8553_v30, %s11569_s22  ;;  %1573 = vrot.lane.b32.xlu0 %v8556_v31, %s11569_s22  ;;  %s11572_s22 = smov 76  }
  0xcb   : > { %v418_v47 = vsel %vm416_vm15, %v412_v37, %v414_v41  ;;  %v415_v49 = vsel %vm310_vm1, %v413_v43, %v414_v41  ;;  %3428 = vmatprep.subr.bf16.mxu1 %v7418_v45 }
  0xcc   : > { %422 = vst.msk [vmem:[#allocation2 + $0x68] sm:$0xff] %vm8490_vm2, %v418_v47  ;;  %v417_v51 = vsel %vm416_vm15, %v410_v40, %v415_v49  ;;  %v430_v52 = vpop.permute.xlu1 %429  ;;  %v428_v53 = vpop.permute.xlu0 %427  ;;  %3429 = vmatpush1.bf16.msra.mxu1 %v7417_v46  ;;  %vm11571_vm15 = vcmask 244736  }
  0xcd   : > { %v432_v54 = vrot.slane %v430_v52, 4  ;;  %v431_v55 = vrot.slane %v428_v53, 4 }
  0xce   : > { %1599 = vrot.lane.b32.xlu1 %v8553_v30, %s11570_s21  ;;  %1597 = vrot.lane.b32.xlu0 %v8556_v31, %s11570_s21  ;;  %s11575_s21 = smov 75  }
  0xcf   : > { %v436_v59 = vsel %vm434_vm14, %v430_v52, %v432_v54  ;;  %v433_v61 = vsel %vm310_vm1, %v431_v55, %v432_v54 }
  0xd0   : > { %440 = vst.msk [vmem:[#allocation2 + $0x78] sm:$0xff] %vm8490_vm2, %v436_v59  ;;  %v435_v63 = vsel %vm434_vm14, %v428_v53, %v433_v61  ;;  %v8705_v5 = vpop.permute.xlu1 %1163  ;;  %v1162_v7 = vpop.permute.xlu0 %1161  ;;  %vm11574_vm14 = vcmask 236544  }
  0xd1   : > { %v11617_v13 = vrot.slane %v8705_v5, 4  ;;  %v1167_v15 = vrot.slane %v1162_v7, 4  ;;  %v7350_v18 = vcombine.high %v417_v51, %v435_v63  ;;  %v7349_v20 = vcombine.low %v417_v51, %v435_v63 }
  0xd2   : > { %779 = vrot.lane.b32.xlu1 %v8392_v1, %s11572_s22  ;;  %777 = vrot.lane.b32.xlu0 %v8385_v0, %s11572_s22  ;;  %s11577_s22 = smov 112  }
  0xd3   : > { %v1170_v21 = vsel %vm310_vm1, %v1167_v15, %v11617_v13  ;;  %3357 = vmatprep.subr.bf16.mxu0 %v7350_v18 }
  0xd4   : > { %v1172_v26 = vsel %vm11571_vm15, %v1162_v7, %v1170_v21  ;;  %v8716_v29 = vpop.permute.xlu1 %1187  ;;  %v1186_v32 = vpop.permute.xlu0 %1185  ;;  %3358 = vmatpush1.bf16.msra.mxu0 %v7349_v20  ;;  %vm11576_vm15 = vcmask 1014784  }
  0xd5   : > { %v11616_v34 = vrot.slane %v8716_v29, 4  ;;  %v1191_v37 = vrot.slane %v1186_v32, 4 }
  0xd6   : > { %803 = vrot.lane.b32.xlu1 %v8392_v1, %s11575_s21  ;;  %801 = vrot.lane.b32.xlu0 %v8385_v0, %s11575_s21  ;;  %s11578_s21 = smov 111  }
  0xd7   : > { %v1194_v40 = vsel %vm310_vm1, %v1191_v37, %v11616_v34 }
  0xd8   : > { %v1196_v41 = vsel %vm11574_vm14, %v1186_v32, %v1194_v40  ;;  %v376_v43 = vpop.permute.xlu1 %375  ;;  %v374_v45 = vpop.permute.xlu0 %373  ;;  %vm398_vm14 = vcmask 1006592  }
  0xd9   : > { %v378_v46 = vrot.slane %v376_v43, 4  ;;  %v377_v47 = vrot.slane %v374_v45, 4  ;;  %v7414_v49 = vcombine.high %v1172_v26, %v1196_v41  ;;  %v7413_v51 = vcombine.low %v1172_v26, %v1196_v41 }
  0xda   : > { %1527 = vrot.lane.b32.xlu1 %v8553_v30, %s11577_s22  ;;  %1525 = vrot.lane.b32.xlu0 %v8556_v31, %s11577_s22  ;;  %s11580_s22 = smov 78  }
  0xdb   : > { %v382_v52 = vsel %vm11576_vm15, %v376_v43, %v378_v46  ;;  %v379_v53 = vsel %vm310_vm1, %v377_v47, %v378_v46  ;;  %3430 = vmatprep.subr.bf16.mxu1 %v7414_v49  ;;  %v8754_v43 = vld [vmem:[%s8382_s10 + $0x8] sm:$0xff] }
  0xdc   : > { %386 = vst.msk [vmem:[#allocation2 + $0x48] sm:$0xff] %vm8490_vm2, %v382_v52  ;;  %v381_v54 = vsel %vm11576_vm15, %v374_v45, %v379_v53  ;;  %v394_v55 = vpop.permute.xlu1 %393  ;;  %v392_v59 = vpop.permute.xlu0 %391  ;;  %3431 = vmatpush1.bf16.msra.mxu1 %v7413_v51  ;;  %vm11579_vm15 = vcmask 261120  }
  0xdd   : > { %v396_v61 = vrot.slane %v394_v55, 4  ;;  %v395_v63 = vrot.slane %v392_v59, 4 }
  0xde   : > { %1551 = vrot.lane.b32.xlu1 %v8553_v30, %s11578_s21  ;;  %1549 = vrot.lane.b32.xlu0 %v8556_v31, %s11578_s21  ;;  %s11583_s21 = smov 77  }
  0xdf   : > { %v400_v7 = vsel %vm398_vm14, %v394_v55, %v396_v61  ;;  %v397_v15 = vsel %vm310_vm1, %v395_v63, %v396_v61 }
  0xe0   : > { %404 = vst.msk [vmem:[#allocation2 + $0x58] sm:$0xff] %vm8490_vm2, %v400_v7  ;;  %v399_v18 = vsel %vm398_vm14, %v392_v59, %v397_v15  ;;  %v8743_v20 = vpop.permute.xlu1 %1115  ;;  %v1114_v21 = vpop.permute.xlu0 %1113  ;;  %vm11582_vm14 = vcmask 252928  }
  0xe1   : > { %v11613_v26 = vrot.slane %v8743_v20, 4  ;;  %v1119_v32 = vrot.slane %v1114_v21, 4  ;;  %v7346_v37 = vcombine.high %v381_v54, %v399_v18  ;;  %v7345_v40 = vcombine.low %v381_v54, %v399_v18 }
  0xe2   : > { %731 = vrot.lane.b32.xlu1 %v8392_v1, %s11580_s22  ;;  %729 = vrot.lane.b32.xlu0 %v8385_v0, %s11580_s22  ;;  %s11586_s22 = smov 1  }
  0xe3   : > { %v1122_v41 = vsel %vm310_vm1, %v1119_v32, %v11613_v26  ;;  %3359 = vmatprep.subr.bf16.mxu0 %v7346_v37 }
  0xe4   : > { %v1124_v45 = vsel %vm11579_vm15, %v1114_v21, %v1122_v41  ;;  %v8757_v46 = vpop.permute.xlu1 %1139  ;;  %v1138_v47 = vpop.permute.xlu0 %1137  ;;  %3360 = vmatpush1.bf16.msra.mxu0 %v7345_v40  ;;  %vm11585_vm15 = vcmask 1031168  }
  0xe5   : > { %v11611_v49 = vrot.slane %v8757_v46, 4  ;;  %v1143_v1 = vrot.slane %v1138_v47, 4 }
  0xe6   : > { %755 = vrot.lane.b32.xlu1 %v8754_v43, %s11583_s21  ;;  %753 = vrot.lane.b32.xlu0 %v8465_v2, %s11583_s21  ;;  %s11741_s21 = smov 80  }
  0xe7   : > { %v1146_v0 = vsel %vm310_vm1, %v1143_v1, %v11611_v49 }
  0xe8   : > { %v1148_v51 = vsel %vm11582_vm14, %v1138_v47, %v1146_v0  ;;  %v340_v52 = vpop.permute.xlu1 %339  ;;  %v338_v53 = vpop.permute.xlu0 %337  ;;  %vm11587_vm14 = vcmask 1022976  }
  0xe9   : > { %v342_v54 = vrot.slane %v340_v52, 4  ;;  %v341_v55 = vrot.slane %v338_v53, 4  ;;  %v7410_v59 = vcombine.high %v1124_v45, %v1148_v51  ;;  %v7409_v61 = vcombine.low %v1124_v45, %v1148_v51 }
  0xea   : > { %1499 = vrot.lane.b32.xlu1 %v8754_v43, %s11586_s22  ;;  %1497 = vrot.lane.b32.xlu0 %v8465_v2, %s11586_s22  ;;  %s11590_s22 = smov 79  }
  0xeb   : > { %v346_v63 = vsel %vm11585_vm15, %v340_v52, %v342_v54  ;;  %v343_v7 = vsel %vm310_vm1, %v341_v55, %v342_v54  ;;  %3432 = vmatprep.subr.bf16.mxu1 %v7410_v59 }
  0xec   : > { %350 = vst.msk [vmem:[#allocation2 + $0x28] sm:$0xff] %vm8490_vm2, %v346_v63  ;;  %v345_v15 = vsel %vm11585_vm15, %v338_v53, %v343_v7  ;;  %v358_v18 = vpop.permute.xlu1 %357  ;;  %v356_v21 = vpop.permute.xlu0 %355  ;;  %3433 = vmatpush1.bf16.msra.mxu1 %v7409_v61  ;;  %vm11589_vm15 = vcmask 400384  }
  0xed   : > { %v360_v32 = vrot.slane %v358_v18, 4  ;;  %v359_v37 = vrot.slane %v356_v21, 4 }
  0xee   : > { %683 = vrot.lane.b32.xlu1 %v8754_v43, %s11741_s21  ;;  %681 = vrot.lane.b32.xlu0 %v8465_v2, %s11741_s21 }
  0xef   : > { %v364_v40 = vsel %vm11587_vm14, %v358_v18, %v360_v32  ;;  %v361_v41 = vsel %vm310_vm1, %v359_v37, %v360_v32 }
  0xf0   : > { %368 = vst.msk [vmem:[#allocation2 + $0x38] sm:$0xff] %vm8490_vm2, %v364_v40  ;;  %v363_v45 = vsel %vm11587_vm14, %v356_v21, %v361_v41  ;;  %v8786_v47 = vpop.permute.xlu1 %1067  ;;  %v1066_v1 = vpop.permute.xlu0 %1065  ;;  %vm11592_vm14 = vcmask 392192  }
  0xf1   : > { %v11610_v0 = vrot.slane %v8786_v47, 4  ;;  %v1071_v51 = vrot.slane %v1066_v1, 4  ;;  %v7342_v52 = vcombine.high %v345_v15, %v363_v45  ;;  %v7341_v53 = vcombine.low %v345_v15, %v363_v45 }
  0xf2   : > { %707 = vrot.lane.b32.xlu1 %v8754_v43, %s11590_s22  ;;  %705 = vrot.lane.b32.xlu0 %v8465_v2, %s11590_s22  ;;  %s11595_s22 = smov 2  }
  0xf3   : > { %v1074_v54 = vsel %vm310_vm1, %v1071_v51, %v11610_v0  ;;  %3361 = vmatprep.subr.bf16.mxu0 %v7342_v52 }
  0xf4   : > { %v1076_v55 = vsel %vm11589_vm15, %v1066_v1, %v1074_v54  ;;  %v8797_v59 = vpop.permute.xlu1 %1091  ;;  %v1090_v61 = vpop.permute.xlu0 %1089  ;;  %3362 = vmatpush1.bf16.msra.mxu0 %v7341_v53  ;;  %vm11594_vm15 = vcmask 1039360  }
  0xf5   : > { %v11604_v63 = vrot.slane %v8797_v59, 4  ;;  %v1095_v7 = vrot.slane %v1090_v61, 4 }
  0xf6   : > { %1451 = vrot.lane.b32.xlu1 %v8754_v43, %s11593_s18  ;;  %1449 = vrot.lane.b32.xlu0 %v8465_v2, %s11593_s18  ;;  %s11597_s18 = smov 97  }
  0xf7   : > { %v1098_v15 = vsel %vm310_vm1, %v1095_v7, %v11604_v63 }
  0xf8   : > { %v1100_v18 = vsel %vm11592_vm14, %v1090_v61, %v1098_v15  ;;  %v321_v21 = vpop.permute.xlu1 %320  ;;  %v319_v32 = vpop.permute.xlu0 %318  ;;  %vm11596_vm14 = vcmask 416768  }
  0xf9   : > { %v323_v37 = vrot.slane %v321_v21, 4  ;;  %v322_v40 = vrot.slane %v319_v32, 4  ;;  %v7406_v41 = vcombine.high %v1076_v55, %v1100_v18  ;;  %v7405_v45 = vcombine.low %v1076_v55, %v1100_v18 }
  0xfa   : > { %1475 = vrot.lane.b32.xlu1 %v8754_v43, %s11595_s22  ;;  %1473 = vrot.lane.b32.xlu0 %v8465_v2, %s11595_s22  ;;  %s11599_s22 = smov 96  }
  0xfb   : > { %v328_v1 = vsel %vm11594_vm15, %v321_v21, %v323_v37  ;;  %v325_v51 = vsel %vm310_vm1, %v322_v40, %v323_v37  ;;  %3434 = vmatprep.subr.bf16.mxu1 %v7406_v41 }
  0xfc   : > { %332 = vst.msk [vmem:[#allocation2 + $0x18] sm:$0xff] %vm8490_vm2, %v328_v1  ;;  %v327_v52 = vsel %vm11594_vm15, %v319_v32, %v325_v51  ;;  %v8817_v53 = vpop.permute.xlu1 %1019  ;;  %v1018_v54 = vpop.permute.xlu0 %1017  ;;  %3435 = vmatpush1.bf16.msra.mxu1 %v7405_v45  ;;  %vm11598_vm15 = vcmask 408576  }
  0xfd   : > { %v11603_v55 = vrot.slane %v8817_v53, 4  ;;  %v1023_v61 = vrot.slane %v1018_v54, 4  ;;  %v7338_v7 = vcombine.high %v8465_v2, %v327_v52  ;;  %v7337_v15 = vcombine.low %v8465_v2, %v327_v52 }
  0xfe   : > { %635 = vrot.lane.b32.xlu1 %v8754_v43, %s11597_s18  ;;  %633 = vrot.lane.b32.xlu0 %v8465_v2, %s11597_s18  ;;  %s11600_s18 = smov 5  }
  0xff   : > { %v1026_v18 = vsel %vm310_vm1, %v1023_v61, %v11603_v55  ;;  %3363 = vmatprep.subr.bf16.mxu0 %v7338_v7 }
 0x100   : > { %v1028_v21 = vsel %vm11596_vm14, %v1018_v54, %v1026_v18  ;;  %v8830_v32 = vpop.permute.xlu1 %1043  ;;  %v1042_v37 = vpop.permute.xlu0 %1041  ;;  %3364 = vmatpush1.bf16.msra.mxu0 %v7337_v15  ;;  %vm11786_vm14 = vcmask 433152  }
 0x101   : > { %v11602_v40 = vrot.slane %v8830_v32, 4  ;;  %v1047_v41 = vrot.slane %v1042_v37, 4 }
 0x102   : > { %659 = vrot.lane.b32.xlu1 %v8754_v43, %s11599_s22  ;;  %657 = vrot.lane.b32.xlu0 %v8465_v2, %s11599_s22  ;;  %s11605_s22 = smov 4  }
 0x103   : > { %v1050_v45 = vsel %vm310_vm1, %v1047_v41, %v11602_v40 }
 0x104   : > { %v1052_v1 = vsel %vm11598_vm15, %v1042_v37, %v1050_v45  ;;  %v8841_v51 = vpop.permute.xlu1 %971  ;;  %v970_v52 = vpop.permute.xlu0 %969  ;;  %vm11684_vm15 = vcmask 424960  }
 0x105   : > { %v11668_v54 = vrot.slane %v8841_v51, 4  ;;  %v975_v61 = vrot.slane %v970_v52, 4  ;;  %v7402_v7 = vcombine.high %v1028_v21, %v1052_v1  ;;  %v7401_v15 = vcombine.low %v1028_v21, %v1052_v1 }
 0x106   : > { %1403 = vrot.lane.b32.xlu1 %v8754_v43, %s11600_s18  ;;  %1401 = vrot.lane.b32.xlu0 %v8465_v2, %s11600_s18  ;;  %s8304_s18 = smov 57  }
 0x107   : > { %v978_v18 = vsel %vm310_vm1, %v975_v61, %v11668_v54  ;;  %3436 = vmatprep.subr.bf16.mxu1 %v7402_v7  ;;  %v8034_v61 = vld [vmem:[%s11822_s2 + $0x4] ss:$24 sps:$4 sm:$0xff]  }
 0x108   : > { %v980_v37 = vsel %vm11786_vm14, %v970_v52, %v978_v18  ;;  %v8852_v41 = vpop.permute.xlu1 %995  ;;  %v994_v45 = vpop.permute.xlu0 %993  ;;  %3437 = vmatpush1.bf16.msra.mxu1 %v7401_v15  ;;  %3381 = vmatprep.mubr.bf16.mxu0 %v8034_v61 }
 0x109   : > { %v11660_v21 = vrot.slane %v8852_v41, 4  ;;  %v999_v1 = vrot.slane %v994_v45, 4 }
 0x10a   : > { %1427 = vrot.lane.b32.xlu1 %v8754_v43, %s11605_s22  ;;  %1425 = vrot.lane.b32.xlu0 %v8465_v2, %s11605_s22  ;;  %s11608_s22 = smov 58  }
 0x10b   : > { %v1002_v52 = vsel %vm310_vm1, %v999_v1, %v11660_v21 }
 0x10c   : > { %v1004_v7 = vsel %vm11684_vm15, %v994_v45, %v1002_v52  ;;  %v8866_v15 = vpop.permute.xlu1 %1719  ;;  %v1718_v18 = vpop.permute.xlu0 %1717  ;;  %vm11691_vm15 = vcmask 23552  }
 0x10d   : > { %v11609_v40 = vrot.slane %v8866_v15, 4  ;;  %v1723_v43 = vrot.slane %v1718_v18, 4  ;;  %v7398_v55 = vcombine.high %v980_v37, %v1004_v7  ;;  %v7397_v63 = vcombine.low %v980_v37, %v1004_v7  ;;  %v605_v7 = vld [vmem:[%s8382_s10 + $0x10] sm:$0xf] }
 0x10e   : > { %2101 = vrot.lane.b32.xlu1 %v8553_v30, %s11608_s22  ;;  %2099 = vrot.lane.b32.xlu0 %v8556_v31, %s11608_s22  ;;  %s11747_s22 = smov 62  }
 0x10f   : > { %v1726_v2 = vsel %vm310_vm1, %v1723_v43, %v11609_v40  ;;  %3365 = vmatprep.subr.bf16.mxu0 %v7398_v55 }
 0x110   : > { %v1727_v45 = vsel %vm475_vm0, %v1718_v18, %v1726_v2  ;;  %v8877_v1 = vpop.permute.xlu1 %1742  ;;  %v1741_v61 = vpop.permute.xlu0 %1740  ;;  %3366 = vmatpush2.bf16.msra.mxu0 %v7397_v63  ;;  %v581_v18 = vld [vmem:[%s8382_s10 + $0x10] sm:$0xf] }
 0x111   : > { %v11612_v37 = vrot.slane %v8877_v1, 4  ;;  %v1746_v52 = vrot.slane %v1741_v61, 4 }
 0x112   : > { %2125 = vrot.lane.b32.xlu1 %v8553_v30, %s8304_s18  ;;  %2123 = vrot.lane.b32.xlu0 %v8556_v31, %s8304_s18  ;;  %v8037_v30 = vld [vmem:[%s11822_s2 + $0xc] ss:$24 sps:$4 sm:$0xff]  }
 0x113   : > { %v1749_v55 = vsel %vm310_vm1, %v1746_v52, %v11612_v37  ;;  %v8902_v52 = vld [vmem:[%s8382_s10 + $0xc] sm:$0xff]  ;;  %3454 = vmatprep.mubr.bf16.mxu1 %v8037_v30 }
 0x114   : > { %v1751_v63 = vsel %vm11614_vm13, %v1741_v61, %v1749_v55  ;;  %v8890_v43 = vpop.permute.xlu1 %923  ;;  %v922_v2 = vpop.permute.xlu0 %921  ;;  %vm11619_vm13 = vcmask 441344  }
 0x115   : > { %v11653_v40 = vrot.slane %v8890_v43, 4  ;;  %v927_v31 = vrot.slane %v922_v2, 4  ;;  %v7462_v0 = vcombine.high %v1727_v45, %v1751_v63  ;;  %v7461_v49 = vcombine.low %v1727_v45, %v1751_v63 }
 0x116   : > { %613 = vrot.lane.b32.xlu1 %v605_v7, %s8242_s11  ;;  %589 = vrot.lane.b32.xlu0 %v581_v18, %s8243_s12  ;;  %s8305_s11 = smov 60   ;;  %s8306_s12 = smov 59  }
 0x117   : > { %v930_v61 = vsel %vm310_vm1, %v927_v31, %v11653_v40  ;;  %3438 = vmatprep.subr.bf16.mxu1 %v7462_v0 }
 0x118   : > { %v932_v55 = vsel %vm11631_vm9, %v922_v2, %v930_v61  ;;  %v8905_v37 = vpop.permute.xlu1 %947  ;;  %v946_v26 = vpop.permute.xlu0 %945  ;;  %3439 = vmatpush2.bf16.msra.mxu1 %v7461_v49  ;;  %vm11640_vm9 = vcmask 875520  }
 0x119   : > { %v11632_v45 = vrot.slane %v8905_v37, 4  ;;  %v951_v7 = vrot.slane %v946_v26, 4 }
 0x11a   : > { %2053 = vrot.lane.b32.xlu1 %v8902_v52, %s8305_s11  ;;  %2051 = vrot.lane.b32.xlu0 %v8563_v39, %s8305_s11 }
 0x11b   : > { %v954_v0 = vsel %vm310_vm1, %v951_v7, %v11632_v45  ;;  %v557_v7 = vld [vmem:[%s8382_s10 + $0x10] sm:$0xf] }
 0x11c   : > { %v956_v18 = vsel %vm11619_vm13, %v946_v26, %v954_v0  ;;  %v8916_v49 = vpop.permute.xlu1 %1671  ;;  %v1670_v63 = vpop.permute.xlu0 %1669  ;;  %v533_v0 = vld [vmem:[%s8382_s10 + $0x10] sm:$0xf]  ;;  %vm11624_vm13 = vcmask 859136  }
 0x11d   : > { %v11620_v2 = vrot.slane %v8916_v49, 4  ;;  %v1675_v30 = vrot.slane %v1670_v63, 4  ;;  %v7394_v31 = vcombine.high %v932_v55, %v956_v18  ;;  %v7393_v61 = vcombine.low %v932_v55, %v956_v18 }
 0x11e   : > { %2077 = vrot.lane.b32.xlu1 %v8902_v52, %s8306_s12  ;;  %2075 = vrot.lane.b32.xlu0 %v8563_v39, %s8306_s12 }
 0x11f   : > { %v1678_v26 = vsel %vm310_vm1, %v1675_v30, %v11620_v2  ;;  %3367 = vmatprep.subr.bf16.mxu0 %v7394_v31 }
 0x120   : > { %v1680_v34 = vsel %vm11621_vm6, %v1670_v63, %v1678_v26  ;;  %v8929_v13 = vpop.permute.xlu1 %1695  ;;  %v1694_v28 = vpop.permute.xlu0 %1693  ;;  %3368 = vmatpush2.bf16.msra.mxu0 %v7393_v61  ;;  %vm11625_vm6 = vcmask 588800  }
 0x121   : > { %11823 = vst [vmem:[#allocation5_spill] sm:$0xff] %v8929_v13  ;;  %v11626_v55 = vrot.slane %v8929_v13, 4  ;;  %v1699_v18 = vrot.slane %v1694_v28, 4  ;;  %v1133_v13 = vld [vmem:[%s8382_s10 + $0x10] sm:$0xf] }
 0x122   : > { %565 = vrot.lane.b32.xlu1 %v557_v7, %s11633_s16  ;;  %541 = vrot.lane.b32.xlu0 %v533_v0, %s11636_s15  ;;  %s11740_s16 = smov 64   ;;  %s11657_s15 = smov 63  }
 0x123   : > { %v1702_v30 = vsel %vm310_vm1, %v1699_v18, %v11626_v55 }
 0x124   : > { %v1704_v31 = vsel %vm11624_vm13, %v1694_v28, %v1702_v30  ;;  %v8938_v2 = vpop.permute.xlu1 %875  ;;  %v874_v63 = vpop.permute.xlu0 %873  ;;  %vm907_vm13 = vcmask 457728  }
 0x125   : > { %v11629_v61 = vrot.slane %v8938_v2, 4  ;;  %v879_v26 = vrot.slane %v874_v63, 4  ;;  %v7458_v10 = vcombine.high %v1680_v34, %v1704_v31  ;;  %v7457_v38 = vcombine.low %v1680_v34, %v1704_v31  ;;  %v509_v31 = vld [vmem:[%s8382_s10 + $0x10] sm:$0xf] }
 0x126   : > { %2005 = vrot.lane.b32.xlu1 %v8902_v52, %s11747_s22  ;;  %2003 = vrot.lane.b32.xlu0 %v8563_v39, %s11747_s22  ;;  %s11861_s22 = smov 51  }
 0x127   : > { %v882_v28 = vsel %vm310_vm1, %v879_v26, %v11629_v61  ;;  %3440 = vmatprep.subr.bf16.mxu1 %v7458_v10 }
 0x128   : > { %v884_v7 = vsel %vm11625_vm6, %v874_v63, %v882_v28  ;;  %v8949_v0 = vpop.permute.xlu1 %899  ;;  %v898_v18 = vpop.permute.xlu0 %897  ;;  %3441 = vmatpush2.bf16.msra.mxu1 %v7457_v38  ;;  %v485_v63 = vld [vmem:[%s8382_s10 + $0x10] sm:$0xf]  ;;  %vm11635_vm6 = vcmask 883712  }
 0x129   : > { %v11630_v34 = vrot.slane %v8949_v0, 4  ;;  %v903_v30 = vrot.slane %v898_v18, 4 }
 0x12a   : > { %2029 = vrot.lane.b32.xlu1 %v8902_v52, %s11743_s26  ;;  %2027 = vrot.lane.b32.xlu0 %v8563_v39, %s11743_s26  ;;  %s11855_s26 = smov 79  }
 0x12b   : > { %v906_v10 = vsel %vm310_vm1, %v903_v30, %v11630_v34 }
 0x12c   : > { %v908_v26 = vsel %vm907_vm13, %v898_v18, %v906_v10  ;;  %v8962_v38 = vpop.permute.xlu1 %1623  ;;  %v1622_v28 = vpop.permute.xlu0 %1621 }
 0x12d   : > { %11824 = vst [vmem:[#allocation6_spill] sm:$0xff] %v8962_v38  ;;  %v11639_v55 = vrot.slane %v8962_v38, 4  ;;  %v1627_v24 = vrot.slane %v1622_v28, 4  ;;  %v7390_v58 = vcombine.high %v884_v7, %v908_v26  ;;  %v7389_v61 = vcombine.low %v884_v7, %v908_v26  ;;  %v8976_v7 = vld [vmem:[#allocation2 + $0x350] sm:$0xff] }
 0x12e   : > { %517 = vrot.lane.b32.xlu1 %v509_v31, %s11641_s20  ;;  %493 = vrot.lane.b32.xlu0 %v485_v63, %s11649_s19  ;;  %s11654_s20 = smov 81   ;;  %s11662_s19 = smov 83   ;;  %v677_v38 = vld [vmem:[%s8382_s10 + $0x10] sm:$0xf] }
 0x12f   : > { %v1630_v39 = vsel %vm310_vm1, %v1627_v24, %v11639_v55  ;;  %3369 = vmatprep.subr.bf16.mxu0 %v7390_v58 }
 0x130   : > { %v1632_v18 = vsel %vm11635_vm6, %v1622_v28, %v1630_v39  ;;  %v8971_v30 = vpop.permute.xlu1 %1647  ;;  %v1646_v10 = vpop.permute.xlu0 %1645  ;;  %3370 = vmatpush2.bf16.msra.mxu0 %v7389_v61  ;;  %vm11643_vm6 = vcmask 605184  }
 0x131   : > { %11825 = vst [vmem:[#allocation7_spill] sm:$0xff] %v8971_v30  ;;  %v11638_v34 = vrot.slane %v8971_v30, 4  ;;  %v1651_v45 = vrot.slane %v1646_v10, 4 }
 0x132   : > { %1957 = vrot.lane.b32.xlu1 %v8902_v52, %s11740_s16  ;;  %1955 = vrot.lane.b32.xlu0 %v8976_v7, %s11740_s16  ;;  %s11853_s16 = smov 31  }
 0x133   : > { %v1654_v58 = vsel %vm310_vm1, %v1651_v45, %v11638_v34 }
 0x134   : > { %v1656_v24 = vsel %vm11640_vm9, %v1646_v10, %v1654_v58  ;;  %v8984_v61 = vpop.permute.xlu1 %827  ;;  %v826_v31 = vpop.permute.xlu0 %825  ;;  %v461_v10 = vld [vmem:[%s8382_s10 + $0x10] sm:$0xf]  ;;  %vm11648_vm9 = vcmask 596992  }
 0x135   : > { %v11644_v63 = vrot.slane %v8984_v61, 4  ;;  %v831_v26 = vrot.slane %v826_v31, 4  ;;  %v7454_v28 = vcombine.high %v1632_v18, %v1656_v24  ;;  %v7453_v39 = vcombine.low %v1632_v18, %v1656_v24 }
 0x136   : > { %1981 = vrot.lane.b32.xlu1 %v8902_v52, %s11657_s15  ;;  %1979 = vrot.lane.b32.xlu0 %v8976_v7, %s11657_s15  ;;  %s11670_s15 = smov 85  }
 0x137   : > { %v834_v45 = vsel %vm310_vm1, %v831_v26, %v11644_v63  ;;  %3442 = vmatprep.subr.bf16.mxu1 %v7454_v28 }
 0x138   : > { %v836_v58 = vsel %vm11643_vm6, %v826_v31, %v834_v45  ;;  %v8996_v34 = vpop.permute.xlu1 %851  ;;  %v850_v55 = vpop.permute.xlu0 %849  ;;  %3443 = vmatpush2.bf16.msra.mxu1 %v7453_v39  ;;  %vm11651_vm6 = vcmask 900096  }
 0x139   : > { %v11647_v18 = vrot.slane %v8996_v34, 4  ;;  %v855_v24 = vrot.slane %v850_v55, 4 }
 0x13a   : > { %1908 = vrot.lane.b32.xlu1 %v8976_v7, %s11654_s20  ;;  %469 = vrot.lane.b32.xlu0 %v461_v10, %s11787_s24 }
 0x13b   : > { %v858_v26 = vsel %vm310_vm1, %v855_v24, %v11647_v18 }
 0x13c   : > { %v860_v31 = vsel %vm11648_vm9, %v850_v55, %v858_v26  ;;  %v9006_v28 = vpop.permute.xlu1 %1575  ;;  %v1574_v39 = vpop.permute.xlu0 %1573  ;;  %vm11656_vm9 = vcmask 891904  }
 0x13d   : > { %11826 = vst [vmem:[#allocation8_spill] sm:$0xff] %v9006_v28  ;;  %v11652_v45 = vrot.slane %v9006_v28, 4  ;;  %v1579_v63 = vrot.slane %v1574_v39, 4  ;;  %v7386_v50 = vcombine.high %v836_v58, %v860_v31  ;;  %v7385_v27 = vcombine.low %v836_v58, %v860_v31 }
 0x13e   : > { %1932 = vrot.lane.b32.xlu1 %v8976_v7, %s11741_s21  ;;  %1910 = vrot.lane.b32.xlu0 %v8902_v52, %s11654_s20  ;;  %s11665_s20 = smov 82  }
 0x13f   : > { %v1582_v10 = vsel %vm310_vm1, %v1579_v63, %v11652_v45  ;;  %3371 = vmatprep.subr.bf16.mxu0 %v7386_v50 }
 0x140   : > { %v1584_v55 = vsel %vm11651_vm6, %v1574_v39, %v1582_v10  ;;  %v9017_v24 = vpop.permute.xlu1 %1599  ;;  %v1598_v26 = vpop.permute.xlu0 %1597  ;;  %3372 = vmatpush2.bf16.msra.mxu0 %v7385_v27  ;;  %vm11658_vm6 = vcmask 621568  }
 0x141   : > { %11827 = vst [vmem:[#allocation9_spill] sm:$0xff] %v9017_v24  ;;  %v11655_v18 = vrot.slane %v9017_v24, 4  ;;  %v1603_v58 = vrot.slane %v1598_v26, 4 }
 0x142   : > { %1860 = vrot.lane.b32.xlu1 %v8976_v7, %s11662_s19  ;;  %1934 = vrot.lane.b32.xlu0 %v8902_v52, %s11741_s21 }
 0x143   : > { %v1606_v50 = vsel %vm310_vm1, %v1603_v58, %v11655_v18 }
 0x144   : > { %v1608_v63 = vsel %vm11656_vm9, %v1598_v26, %v1606_v50  ;;  %v9028_v31 = vpop.permute.xlu1 %779  ;;  %v778_v27 = vpop.permute.xlu0 %777  ;;  %vm11664_vm9 = vcmask 613376  }
 0x145   : > { %v11659_v39 = vrot.slane %v9028_v31, 4  ;;  %v783_v10 = vrot.slane %v778_v27, 4  ;;  %v7450_v45 = vcombine.high %v1584_v55, %v1608_v63  ;;  %v7449_v40 = vcombine.low %v1584_v55, %v1608_v63 }
 0x146   : > { %1884 = vrot.lane.b32.xlu1 %v8976_v7, %s11665_s20  ;;  %1862 = vrot.lane.b32.xlu0 %v8902_v52, %s11662_s19  ;;  %s11725_s19 = smov 84  }
 0x147   : > { %v786_v26 = vsel %vm310_vm1, %v783_v10, %v11659_v39  ;;  %3444 = vmatprep.subr.bf16.mxu1 %v7450_v45 }
 0x148   : > { %v788_v58 = vsel %vm11658_vm6, %v778_v27, %v786_v26  ;;  %v9039_v50 = vpop.permute.xlu1 %803  ;;  %v802_v18 = vpop.permute.xlu0 %801  ;;  %3445 = vmatpush2.bf16.msra.mxu1 %v7449_v40  ;;  %vm11666_vm6 = vcmask 916480  }
 0x149   : > { %v11663_v55 = vrot.slane %v9039_v50, 4  ;;  %v807_v63 = vrot.slane %v802_v18, 4 }
 0x14a   : > { %1812 = vrot.lane.b32.xlu1 %v8976_v7, %s11670_s15  ;;  %1886 = vrot.lane.b32.xlu0 %v8902_v52, %s11665_s20  ;;  %s11723_s20 = smov 87  }
 0x14b   : > { %v810_v45 = vsel %vm310_vm1, %v807_v63, %v11663_v55 }
 0x14c   : > { %v812_v27 = vsel %vm11664_vm9, %v802_v18, %v810_v45  ;;  %v9050_v10 = vpop.permute.xlu1 %1527  ;;  %v1526_v40 = vpop.permute.xlu0 %1525  ;;  %vm11672_vm9 = vcmask 908288  }
 0x14d   : > { %11828 = vst [vmem:[#allocation10_spill] sm:$0xff] %v9050_v10  ;;  %v11667_v26 = vrot.slane %v9050_v10, 4  ;;  %v1531_v39 = vrot.slane %v1526_v40, 4  ;;  %v7382_v21 = vcombine.high %v788_v58, %v812_v27  ;;  %v7381_v19 = vcombine.low %v788_v58, %v812_v27 }
 0x14e   : > { %1836 = vrot.lane.b32.xlu1 %v8976_v7, %s11725_s19  ;;  %1814 = vrot.lane.b32.xlu0 %v8902_v52, %s11670_s15  ;;  %s11724_s15 = smov 86  }
 0x14f   : > { %v1534_v18 = vsel %vm310_vm1, %v1531_v39, %v11667_v26  ;;  %3373 = vmatprep.subr.bf16.mxu0 %v7382_v21 }
 0x150   : > { %v1536_v63 = vsel %vm11666_vm6, %v1526_v40, %v1534_v18  ;;  %v9061_v45 = vpop.permute.xlu1 %1551  ;;  %v1550_v55 = vpop.permute.xlu0 %1549  ;;  %3374 = vmatpush2.bf16.msra.mxu0 %v7381_v19  ;;  %vm11673_vm6 = vcmask 637952  }
 0x151   : > { %11829 = vst [vmem:[#allocation11_spill] sm:$0xff] %v9061_v45  ;;  %v11671_v58 = vrot.slane %v9061_v45, 4  ;;  %v1555_v27 = vrot.slane %v1550_v55, 4 }
 0x152   : > { %1764 = vrot.lane.b32.xlu1 %v8976_v7, %s11723_s20  ;;  %1838 = vrot.lane.b32.xlu0 %v8902_v52, %s11725_s19  ;;  %s11868_s19 = smov 88  }
 0x153   : > { %v1558_v21 = vsel %vm310_vm1, %v1555_v27, %v11671_v58 }
 0x154   : > { %v1560_v39 = vsel %vm11672_vm9, %v1550_v55, %v1558_v21  ;;  %v9072_v40 = vpop.permute.xlu1 %731  ;;  %v730_v19 = vpop.permute.xlu0 %729  ;;  %vm11680_vm9 = vcmask 629760  }
 0x155   : > { %v11674_v18 = vrot.slane %v9072_v40, 4  ;;  %v735_v26 = vrot.slane %v730_v19, 4  ;;  %v7446_v54 = vcombine.high %v1536_v63, %v1560_v39  ;;  %v7445_v60 = vcombine.low %v1536_v63, %v1560_v39 }
 0x156   : > { %1788 = vrot.lane.b32.xlu1 %v8976_v7, %s11724_s15  ;;  %1766 = vrot.lane.b32.xlu0 %v8902_v52, %s11723_s20  ;;  %s11874_s20 = smov 108  }
 0x157   : > { %v738_v55 = vsel %vm310_vm1, %v735_v26, %v11674_v18  ;;  %3446 = vmatprep.subr.bf16.mxu1 %v7446_v54  ;;  %v965_v26 = vld [vmem:[%s8382_s10 + $0x10] sm:$0xf] }
 0x158   : > { %v740_v27 = vsel %vm11673_vm6, %v730_v19, %v738_v55  ;;  %v9083_v21 = vpop.permute.xlu1 %755  ;;  %v754_v58 = vpop.permute.xlu0 %753  ;;  %3447 = vmatpush2.bf16.msra.mxu1 %v7445_v60  ;;  %vm11683_vm6 = vcmask 7168  }
 0x159   : > { %v11678_v63 = vrot.slane %v9083_v21, 4  ;;  %v759_v39 = vrot.slane %v754_v58, 4 }
 0x15a   : > { %2147 = vrot.lane.b32.xlu1 %v8976_v7, %s11721_s25  ;;  %1790 = vrot.lane.b32.xlu0 %v8902_v52, %s11724_s15  ;;  %s11858_s15 = smov 48  }
 0x15b   : > { %v762_v54 = vsel %vm310_vm1, %v759_v39, %v11678_v63 }
 0x15c   : > { %v764_v19 = vsel %vm11680_vm9, %v754_v58, %v762_v54  ;;  %v9095_v60 = vpop.permute.xlu1 %1499  ;;  %v1498_v55 = vpop.permute.xlu0 %1497  ;;  %v1349_v58 = vld [vmem:[%s8382_s10 + $0x10] sm:$0xf]  ;;  %vm691_vm9 = vcmask 654336  }
 0x15d   : > { %11830 = vst [vmem:[#allocation12_spill] sm:$0xff] %v9095_v60  ;;  %v11682_v18 = vrot.slane %v9095_v60, 4  ;;  %v1503_v4 = vrot.slane %v1498_v55, 4  ;;  %v7378_v16 = vcombine.high %v740_v27, %v764_v19  ;;  %v7377_v35 = vcombine.low %v740_v27, %v764_v19  ;;  %v989_v54 = vld [vmem:[%s8382_s10 + $0x10] sm:$0xf] }
 0x15e   : > { %973 = vrot.lane.b32.xlu1 %v965_v26, %s11706_s9  ;;  %2149 = vrot.lane.b32.xlu0 %v8902_v52, %s11721_s25  ;;  %s11847_s9 = smov 29  }
 0x15f   : > { %v1506_v39 = vsel %vm310_vm1, %v1503_v4, %v11682_v18  ;;  %3375 = vmatprep.subr.bf16.mxu0 %v7378_v16  ;;  %v917_v16 = vld [vmem:[%s8382_s10 + $0x10] sm:$0xf] }
 0x160   : > { %v1508_v63 = vsel %vm11683_vm6, %v1498_v55, %v1506_v39  ;;  %v9107_v44 = vpop.permute.xlu1 %683  ;;  %v682_v27 = vpop.permute.xlu0 %681  ;;  %3376 = vmatpush2.bf16.msra.mxu0 %v7377_v35  ;;  %v1373_v55 = vld [vmem:[%s8382_s10 + $0x10] sm:$0xf]  ;;  %vm11690_vm6 = vcmask 646144  }
 0x161   : > { %v11685_v26 = vrot.slane %v9107_v44, 4  ;;  %v687_v19 = vrot.slane %v682_v27, 4  ;;  %v7442_v52 = vcombine.high %v1508_v63, %v8976_v7  ;;  %v7441_v12 = vcombine.low %v1508_v63, %v8976_v7 }
 0x162   : > { %1357 = vrot.lane.b32.xlu1 %v1349_v58, %s8244_s13  ;;  %997 = vrot.lane.b32.xlu0 %v989_v54, %s11703_s29  ;;  %v1301_v54 = vld [vmem:[%s8382_s10 + $0x10] sm:$0xf]  ;;  %s11833_s13 = smov 72   ;;  %s11844_s29 = smov 30  }
 0x163   : > { %v690_v4 = vsel %vm310_vm1, %v687_v19, %v11685_v26  ;;  %3448 = vmatprep.subr.bf16.mxu1 %v7442_v52 }
 0x164   : > { %v692_v35 = vsel %vm691_vm9, %v682_v27, %v690_v4  ;;  %v9120_v39 = vpop.permute.xlu1 %707  ;;  %v706_v18 = vpop.permute.xlu0 %705  ;;  %3449 = vmatpush2.bf16.msra.mxu1 %v7441_v12  ;;  %v941_v27 = vld [vmem:[%s8382_s10 + $0x10] sm:$0xf] }
 0x165   : > { %v11687_v7 = vrot.slane %v9120_v39, 4  ;;  %v711_v63 = vrot.slane %v706_v18, 4 }
 0x166   : > { %925 = vrot.lane.b32.xlu1 %v917_v16, %s11711_s23  ;;  %1381 = vrot.lane.b32.xlu0 %v1373_v55, %s8245_s14  ;;  %s11834_s14 = smov 8   ;;  %s11843_s23 = smov 27  }
 0x167   : > { %v714_v58 = vsel %vm310_vm1, %v711_v63, %v11687_v7  ;;  %v1325_v63 = vld [vmem:[%s8382_s10 + $0x10] sm:$0xf] }
 0x168   : > { %v716_v19 = vsel %vm11690_vm6, %v706_v18, %v714_v58  ;;  %v9131_v52 = vpop.permute.xlu1 %1451  ;;  %v1450_v12 = vpop.permute.xlu0 %1449  ;;  %v869_v18 = vld [vmem:[%s8382_s10 + $0x10] sm:$0xf]  ;;  %vm11698_vm6 = vcmask 15360  }
 0x169   : > { %11831 = vst [vmem:[#allocation13_spill] sm:$0xff] %v9131_v52  ;;  %v11692_v4 = vrot.slane %v9131_v52, 4  ;;  %v1455_v26 = vrot.slane %v1450_v12, 4  ;;  %v7374_v16 = vcombine.high %v692_v35, %v716_v19  ;;  %v7373_v11 = vcombine.low %v692_v35, %v716_v19  ;;  %v893_v19 = vld [vmem:[%s8382_s10 + $0x10] sm:$0xf] }
 0x16a   : > { %1309 = vrot.lane.b32.xlu1 %v1301_v54, %s8248_s17  ;;  %949 = vrot.lane.b32.xlu0 %v941_v27, %s11709_s30  ;;  %v1253_v27 = vld [vmem:[%s8382_s10 + $0x10] sm:$0xf]  ;;  %s11835_s17 = smov 26   ;;  %s11842_s30 = smov 76  }
 0x16b   : > { %v1458_v55 = vsel %vm310_vm1, %v1455_v26, %v11692_v4  ;;  %3377 = vmatprep.subr.bf16.mxu0 %v7374_v16 }
 0x16c   : > { %v1460_v58 = vsel %vm11691_vm15, %v1450_v12, %v1458_v55  ;;  %v9142_v7 = vpop.permute.xlu1 %1475  ;;  %v1474_v60 = vpop.permute.xlu0 %1473  ;;  %3378 = vmatpush2.bf16.msra.mxu0 %v7373_v11  ;;  %vm11699_vm15 = vcmask 793600  }
 0x16d   : > { %11832 = vst [vmem:[#allocation14_spill] sm:$0xff] %v9142_v7  ;;  %v11695_v35 = vrot.slane %v9142_v7, 4  ;;  %v1479_v54 = vrot.slane %v1474_v60, 4 }
 0x16e   : > { %877 = vrot.lane.b32.xlu1 %v869_v18, %s11833_s13  ;;  %1333 = vrot.lane.b32.xlu0 %v1325_v63, %s11834_s14  ;;  %s11836_s13 = smov 74   ;;  %s11837_s14 = smov 25  }
 0x16f   : > { %v1482_v26 = vsel %vm310_vm1, %v1479_v54, %v11695_v35  ;;  %v1277_v54 = vld [vmem:[%s8382_s10 + $0x10] sm:$0xf] }
 0x170   : > { %v1484_v12 = vsel %vm11698_vm6, %v1474_v60, %v1482_v26  ;;  %v9153_v16 = vpop.permute.xlu1 %635  ;;  %v634_v11 = vpop.permute.xlu0 %633  ;;  %v821_v60 = vld [vmem:[%s8382_s10 + $0x10] sm:$0xf]  ;;  %vm11708_vm6 = vcmask 785408  }
 0x171   : > { %v11700_v55 = vrot.slane %v9153_v16, 4  ;;  %v639_v4 = vrot.slane %v634_v11, 4  ;;  %v7438_v18 = vcombine.high %v1460_v58, %v1484_v12  ;;  %v7437_v52 = vcombine.low %v1460_v58, %v1484_v12  ;;  %v845_v12 = vld [vmem:[%s8382_s10 + $0x10] sm:$0xf] }
 0x172   : > { %1261 = vrot.lane.b32.xlu1 %v1253_v27, %s11835_s17  ;;  %901 = vrot.lane.b32.xlu0 %v893_v19, %s11721_s25  ;;  %v1205_v19 = vld [vmem:[%s8382_s10 + $0x10] sm:$0xf]  ;;  %s11839_s17 = smov 28   ;;  %s11846_s25 = smov 78  }
 0x173   : > { %v642_v63 = vsel %vm310_vm1, %v639_v4, %v11700_v55  ;;  %3450 = vmatprep.subr.bf16.mxu1 %v7438_v18 }
 0x174   : > { %v644_v26 = vsel %vm11699_vm15, %v634_v11, %v642_v63  ;;  %v9164_v35 = vpop.permute.xlu1 %659  ;;  %v658_v7 = vpop.permute.xlu0 %657  ;;  %3451 = vmatpush2.bf16.msra.mxu1 %v7437_v52  ;;  %vm11714_vm15 = vcmask 39936  }
 0x175   : > { %v11705_v58 = vrot.slane %v9164_v35, 4  ;;  %v663_v27 = vrot.slane %v658_v7, 4 }
 0x176   : > { %829 = vrot.lane.b32.xlu1 %v821_v60, %s11836_s13  ;;  %1285 = vrot.lane.b32.xlu0 %v1277_v54, %s11837_s14  ;;  %s11840_s13 = smov 73   ;;  %s11857_s14 = smov 97  }
 0x177   : > { %v666_v4 = vsel %vm310_vm1, %v663_v27, %v11705_v58  ;;  %v773_v27 = vld [vmem:[%s8382_s10 + $0x10] sm:$0xf] }
 0x178   : > { %v668_v11 = vsel %vm11708_vm6, %v658_v7, %v666_v4  ;;  %v9175_v18 = vpop.permute.xlu1 %1403  ;;  %v1402_v52 = vpop.permute.xlu0 %1401  ;;  %v1229_v7 = vld [vmem:[%s8382_s10 + $0x10] sm:$0xf]  ;;  %v8032_v4 = vld [vmem:[%s11822_s2] ss:$24 sps:$4 sm:$0xff]   ;;  %vm11726_vm6 = vcmask 31744  }
 0x179   : > { %11838 = vst [vmem:[#allocation15_spill] sm:$0xff] %v9175_v18  ;;  %v11713_v63 = vrot.slane %v9175_v18, 4  ;;  %v1407_v55 = vrot.slane %v1402_v52, 4  ;;  %v7370_v60 = vcombine.high %v644_v26, %v668_v11  ;;  %v7369_v45 = vcombine.low %v644_v26, %v668_v11 }
 0x17a   : > { %1213 = vrot.lane.b32.xlu1 %v1205_v19, %s11839_s17  ;;  %853 = vrot.lane.b32.xlu0 %v845_v12, %s11840_s13  ;;  %v8062_v12 = vld [vmem:[%s11822_s2 + $0x34] ss:$24 sps:$4 sm:$0xff]   ;;  %s11848_s13 = smov 32  }
 0x17b   : > { %v1410_v54 = vsel %vm310_vm1, %v1407_v55, %v11713_v63  ;;  %3379 = vmatprep.subr.bf16.mxu0 %v7370_v60  ;;  %v1157_v60 = vld [vmem:[%s8382_s10 + $0x10] sm:$0xf] }
 0x17c   : > { %v1412_v58 = vsel %vm11714_vm15, %v1402_v52, %v1410_v54  ;;  %v9189_v26 = vpop.permute.xlu1 %1427  ;;  %v1426_v19 = vpop.permute.xlu0 %1425  ;;  %3380 = vmatpush2.bf16.msra.mxu0 %v7369_v45  ;;  %v797_v45 = vld [vmem:[%s8382_s10 + $0x10] sm:$0xf]  ;;  %vm2109_vm15 = vcmask 474112  }
 0x17d   : > { %11841 = vst [vmem:[#allocation16_spill] sm:$0xff] %v9189_v26  ;;  %v11727_v55 = vrot.slane %v9189_v26, 4  ;;  %v1431_v11 = vrot.slane %v1426_v19, 4 }
 0x17e   : > { %781 = vrot.lane.b32.xlu1 %v773_v27, %s11842_s30  ;;  %1237 = vrot.lane.b32.xlu0 %v1229_v7, %s11843_s23  ;;  %s11845_s23 = smov 75  }
 0x17f   : > { %v1434_v52 = vsel %vm310_vm1, %v1431_v11, %v11727_v55  ;;  %3382 = vmatmul.mubr.bf16.vlgmr.msra.gmra.mxu0 %v8032_v4  ;;  %v725_v11 = vld [vmem:[%s8382_s10 + $0x10] sm:$0xf] }
 0x180   : > { %v1436_v54 = vsel %vm11726_vm6, %v1426_v19, %v1434_v52  ;;  %v9203_v63 = vpop.permute.xlu1 %2101  ;;  %v2100_v18 = vpop.permute.xlu0 %2099  ;;  %3391 = vmatprep.mubr.bf16.mxu0 %v8062_v12  ;;  %v1181_v19 = vld [vmem:[%s8382_s10 + $0x10] sm:$0xf]  ;;  %v8035_v12 = vld [vmem:[%s11822_s2 + $0x8] ss:$24 sps:$4 sm:$0xff]   ;;  %vm2133_vm6 = vcmask 465920  }
 0x181   : > { %v11728_v27 = vrot.slane %v9203_v63, 4  ;;  %v2105_v10 = vrot.slane %v2100_v18, 4  ;;  %v7434_v7 = vcombine.high %v1412_v58, %v1436_v54  ;;  %v7433_v24 = vcombine.low %v1412_v58, %v1436_v54  ;;  %v8064_v58 = vld [vmem:[%s11822_s2 + $0x30] ss:$24 sps:$4 sm:$0xff]   ;;  %v8080_v54 = vld [vmem:[%s11822_s2 + $0x3c] ss:$24 sps:$4 sm:$0xff]  }
 0x182   : > { %1165 = vrot.lane.b32.xlu1 %v1157_v60, %s11844_s29  ;;  %805 = vrot.lane.b32.xlu0 %v797_v45, %s11845_s23  ;;  %s11849_s23 = smov 77  }
 0x183   : > { %v2108_v4 = vsel %vm310_vm1, %v2105_v10, %v11728_v27  ;;  %3452 = vmatprep.subr.bf16.mxu1 %v7434_v7  ;;  %v8065_v10 = vld [vmem:[%s11822_s2 + $0x64] ss:$24 sps:$4 sm:$0xff]  }
 0x184   : > { %v2110_v52 = vsel %vm2109_vm15, %v2100_v18, %v2108_v4  ;;  %v9220_v60 = vpop.permute.xlu1 %2125  ;;  %v2124_v45 = vpop.permute.xlu0 %2123  ;;  %3453 = vmatpush2.bf16.msra.mxu1 %v7433_v24  ;;  %v1109_v18 = vld [vmem:[%s8382_s10 + $0x10] sm:$0xf] }
 0x185   : > { %v11733_v7 = vrot.slane %v9220_v60, 4  ;;  %v2129_v55 = vrot.slane %v2124_v45, 4  ;;  %v749_v4 = vld [vmem:[%s8382_s10 + $0x10] sm:$0xf] }
 0x186   : > { %733 = vrot.lane.b32.xlu1 %v725_v11, %s11846_s25  ;;  %1189 = vrot.lane.b32.xlu0 %v1181_v19, %s11847_s9  ;;  %v2171_v11 = vld [vmem:[%s11822_s2 + $0x38] sm:$0xff]  ;;  %v2174_v19 = vld [vmem:[%s11822_s2 + $0x50] sm:$0xff] }
 0x187   : > { %v2132_v24 = vsel %vm310_vm1, %v2129_v55, %v11733_v7  ;;  %3455 = vmatmul.mubr.bf16.vlgmr.msra.gmra.mxu1 %v8035_v12  ;;  %3392 = vmatmul.mubr.bf16.gmra.mxu0 %v8064_v58 }
 0x188   : > { %v2134_v27 = vsel %vm2133_vm6, %v2124_v45, %v2132_v24  ;;  %v614_v26 = vpop.permute.xlu1 %613  ;;  %v590_v28 = vpop.permute.xlu0 %589  ;;  %3401 = vmatprep.mubr.bf16.mxu0 %v8065_v10  ;;  %3464 = vmatprep.mubr.bf16.mxu1 %v8080_v54  ;;  %v11850_v45 = vrot.slane %v8513_v8, 4  ;;  %v11851_v24 = vrot.slane %v8515_v9, 4 }
 0x189   : > { %v617_v55 = vrot.slane %v614_v26, 4  ;;  %v593_v7 = vrot.slane %v590_v28, 4  ;;  %v7493_v12 = vcombine.low %v2110_v52, %v2134_v27  ;;  %v7494_v58 = vcombine.high %v2110_v52, %v2134_v27  ;;  %v8067_v28 = vld [vmem:[%s11822_s2 + $0x60] ss:$24 sps:$4 sm:$0xff]  }
 0x18a   : > { %1117 = vrot.lane.b32.xlu1 %v1109_v18, %s11848_s13  ;;  %757 = vrot.lane.b32.xlu0 %v749_v4, %s11849_s23  ;;  %v9256_v26 = vcombine.low %v2171_v11, %v2174_v19  ;;  %v8068_v18 = vld [vmem:[%s11822_s2 + $0x94] ss:$24 sps:$4 sm:$0xff]   ;;  %v1061_v11 = vld [vmem:[%s8382_s10 + $0x10] sm:$0xf] }
 0x18b   : > { %v621_v10 = vsel %vm310_vm1, %v11850_v45, %v617_v55  ;;  %v597_v30 = vsel %vm310_vm1, %v11851_v24, %v593_v7  ;;  %3495 = vmatprep.subr.bf16.mxu0 %v7494_v58  ;;  %v8091_v4 = vld [vmem:[%s11822_s2 + $0x6c] ss:$24 sps:$4 sm:$0xff]   ;;  %v701_v19 = vld [vmem:[%s8382_s10 + $0x10] sm:$0xf] }
 0x18c   : > { %11852 = vst [vmem:[#allocation17_spill] sm:$0xff] %v9256_v26  ;;  %v622_v27 = vsel %vm619_vm3, %v8513_v8, %v621_v10  ;;  %v598_v52 = vsel %vm595_vm4, %v8515_v9, %v597_v30  ;;  %v9262_v54 = vpop.permute.xlu1 %2053  ;;  %v2052_v7 = vpop.permute.xlu0 %2051  ;;  %3496 = vmatpush1.bf16.msra.mxu0 %v7493_v12  ;;  %vm2061_vm3 = vcmask 490496   ;;  %vm11748_vm4 = vcmask 482304   ;;  %v2177_v45 = vld [vmem:[%s11822_s2 + $0x68] sm:$0xff]  ;;  %v2180_v10 = vld [vmem:[%s11822_s2 + $0x80] sm:$0xff] }
 0x18d   : > { %626 = vst.msk [vmem:[#allocation2 + $0xf8] sm:$0xff] %vm8490_vm2, %v622_v27  ;;  %602 = vst.msk [vmem:[#allocation2 + $0xe8] sm:$0xff] %vm8490_vm2, %v598_v52  ;;  %v11744_v8 = vrot.slane %v9262_v54, 4  ;;  %v2057_v9 = vrot.slane %v2052_v7, 4  ;;  %v1085_v27 = vld [vmem:[%s8382_s10 + $0x10] sm:$0xf] }
 0x18e   : > { %685 = vrot.lane.b32.xlu1 %v677_v38, %s11741_s21  ;;  %1141 = vrot.lane.b32.xlu0 %v1133_v13, %s11853_s16  ;;  %s11854_s21 = smov 49  }
 0x18f   : > { %v2060_v30 = vsel %vm310_vm1, %v2057_v9, %v11744_v8  ;;  %3402 = vmatmul.mubr.bf16.gmra.mxu0 %v8067_v28  ;;  %3465 = vmatmul.mubr.bf16.gmra.mxu1 %v9256_v26  ;;  %v629_v28 = vld [vmem:[%s8382_s10 + $0x10] sm:$0xf]  ;;  %v9301_v9 = vcombine.low %v2177_v45, %v2180_v10  ;;  %v11860_v45 = vrot.slane %v8559_v33, 4 }
 0x190   : > { %v2062_v55 = vsel %vm2061_vm3, %v2052_v7, %v2060_v30  ;;  %v9284_v12 = vpop.permute.xlu1 %2077  ;;  %v2076_v58 = vpop.permute.xlu0 %2075  ;;  %3411 = vmatprep.mubr.bf16.mxu0 %v8068_v18  ;;  %3474 = vmatprep.mubr.bf16.mxu1 %v8091_v4 }
 0x191   : > { %v11746_v13 = vrot.slane %v9284_v12, 4  ;;  %v2081_v38 = vrot.slane %v2076_v58, 4  ;;  %11856 = vst [vmem:[#allocation18_spill] sm:$0xff] %v9301_v9 }
 0x192   : > { %1069 = vrot.lane.b32.xlu1 %v1061_v11, %s11854_s21  ;;  %709 = vrot.lane.b32.xlu0 %v701_v19, %s11855_s26  ;;  %s11869_s21 = smov 106  }
 0x193   : > { %v2084_v24 = vsel %vm310_vm1, %v2081_v38, %v11746_v13  ;;  %v8070_v38 = vld [vmem:[%s11822_s2 + $0x90] ss:$24 sps:$4 sm:$0xff]  }
 0x194   : > { %v2086_v52 = vsel %vm11748_vm4, %v2076_v58, %v2084_v24  ;;  %v566_v7 = vpop.permute.xlu1 %565  ;;  %v542_v18 = vpop.permute.xlu0 %541  ;;  %v8038_v4 = vld [vmem:[#allocation2 + $0xe8] ss:$16 sps:$4 sm:$0xff]   ;;  %v8040_v11 = vld [vmem:[#allocation2 + $0xec] ss:$16 sps:$4 sm:$0xff]   ;;  %v1013_v58 = vld [vmem:[%s8382_s10 + $0x10] sm:$0xf] }
 0x195   : > { %v569_v30 = vrot.slane %v566_v7, 4  ;;  %v545_v8 = vrot.slane %v542_v18, 4  ;;  %v7489_v26 = vcombine.low %v2062_v55, %v2086_v52  ;;  %v7490_v19 = vcombine.high %v2062_v55, %v2086_v52  ;;  %3568 = vmatprep.subr.bf16.mxu1 %v8040_v11  ;;  %v653_v7 = vld [vmem:[%s8382_s10 + $0x10] sm:$0xf]  ;;  %v8073_v55 = vld [vmem:[%s11822_s2 + $0x14] ss:$24 sps:$4 sm:$0xff]  }
 0x196   : > { %637 = vrot.lane.b32.xlu1 %v629_v28, %s11857_s14  ;;  %1093 = vrot.lane.b32.xlu0 %v1085_v27, %s11858_s15  ;;  %v11859_v24 = vrot.slane %v8574_v42, 4  ;;  %v8102_v28 = vld [vmem:[%s11822_s2 + $0x9c] ss:$24 sps:$4 sm:$0xff]   ;;  %vm2013_vm4 = vcmask 506880   ;;  %s11862_s14 = smov 96   ;;  %s11879_s15 = smov 110  }
 0x197   : > { %v549_v10 = vsel %vm310_vm1, %v11860_v45, %v545_v8  ;;  %3497 = vmatprep.subr.bf16.mxu0 %v7490_v19  ;;  %3569 = vmatpush1.bf16.msra.mxu1 %v8038_v4  ;;  %v2095_v4 = vld [vmem:[%s8382_s10 + $0x14] sm:$0xf]  ;;  %v1037_v11 = vld [vmem:[%s8382_s10 + $0x10] sm:$0xf] }
 0x198   : > { %v573_v13 = vsel %vm310_vm1, %v11859_v24, %v569_v30  ;;  %v550_v52 = vsel %vm11751_vm7, %v8559_v33, %v549_v10  ;;  %v9326_v18 = vpop.permute.xlu1 %2005  ;;  %v2004_v8 = vpop.permute.xlu0 %2003  ;;  %3498 = vmatpush1.bf16.msra.mxu0 %v7489_v26  ;;  %3475 = vmatmul.mubr.bf16.gmra.mxu1 %v9301_v9  ;;  %v2183_v33 = vld [vmem:[%s11822_s2 + $0x98] sm:$0xff]  ;;  %v2186_v26 = vld [vmem:[%s11822_s2 + $0xb0] sm:$0xff]  ;;  %vm1965_vm7 = vcmask 523264  }
 0x199   : > { %v574_v27 = vsel %vm11749_vm8, %v8574_v42, %v573_v13  ;;  %554 = vst.msk [vmem:[#allocation2 + $0xc8] sm:$0xff] %vm8490_vm2, %v550_v52  ;;  %v11750_v30 = vrot.slane %v9326_v18, 4  ;;  %v2009_v42 = vrot.slane %v2004_v8, 4  ;;  %3412 = vmatmul.mubr.bf16.gmra.mxu0 %v8070_v38  ;;  %3484 = vmatprep.mubr.bf16.mxu1 %v8102_v28  ;;  %vm2037_vm8 = vcmask 498688   ;;  %v2119_v28 = vld [vmem:[%s8382_s10 + $0x14] sm:$0xf] }
 0x19a   : > { %578 = vst.msk [vmem:[#allocation2 + $0xd8] sm:$0xff] %vm8490_vm2, %v574_v27  ;;  %1021 = vrot.lane.b32.xlu1 %v1013_v58, %s11861_s22  ;;  %661 = vrot.lane.b32.xlu0 %v653_v7, %s11862_s14  ;;  %v9352_v10 = vcombine.low %v2183_v33, %v2186_v26  ;;  %s11864_s22 = smov 58   ;;  %s11865_s14 = smov 50   ;;  %v1593_v9 = vld [vmem:[%s8382_s10 + $0x14] sm:$0xf] }
 0x19b   : > { %v2012_v13 = vsel %vm310_vm1, %v2009_v42, %v11750_v30  ;;  %7502 = vmatprep.mubr.msk.bf16.mxu0 %vm1339_vm10, %v8073_v55  ;;  %v1713_v55 = vld [vmem:[%s8382_s10 + $0x14] sm:$0xf] }
 0x19c   : > { %v2014_v19 = vsel %vm2013_vm4, %v2004_v8, %v2012_v13  ;;  %v9349_v38 = vpop.permute.xlu1 %2029  ;;  %v2028_v58 = vpop.permute.xlu0 %2027  ;;  %11863 = vst [vmem:[#allocation19_spill] sm:$0xff] %v9352_v10 }
 0x19d   : > { %v11754_v24 = vrot.slane %v9349_v38, 4  ;;  %v2033_v45 = vrot.slane %v2028_v58, 4 }
 0x19e   : > { %2103 = vrot.lane.b32.xlu1 %v2095_v4, %s11864_s22  ;;  %1045 = vrot.lane.b32.xlu0 %v1037_v11, %s11865_s14  ;;  %v11866_v11 = vrot.slane %v8618_v14, 4  ;;  %s11875_s22 = smov 61   ;;  %s11877_s14 = smov 64  }
 0x19f   : > { %v2036_v7 = vsel %vm310_vm1, %v2033_v45, %v11754_v24 }
 0x1a0   : > { %v2038_v27 = vsel %vm2037_vm8, %v2028_v58, %v2036_v7  ;;  %v518_v52 = vpop.permute.xlu1 %517  ;;  %v494_v8 = vpop.permute.xlu0 %493  ;;  %3485 = vmatmul.mubr.bf16.gmra.mxu1 %v9352_v10  ;;  %v11867_v58 = vrot.slane %v8607_v62, 4 }
 0x1a1   : > { %v8041_v42 = vld [vmem:[#allocation2 + $0xc8] ss:$16 sps:$4 sm:$0xff]   ;;  %v521_v13 = vrot.slane %v518_v52, 4  ;;  %v497_v33 = vrot.slane %v494_v8, 4  ;;  %v8043_v26 = vld [vmem:[#allocation2 + $0xcc] ss:$16 sps:$4 sm:$0xff]   ;;  %v7485_v30 = vcombine.low %v2014_v19, %v2038_v27  ;;  %v7486_v4 = vcombine.high %v2014_v19, %v2038_v27 }
 0x1a2   : > { %1721 = vrot.lane.b32.xlu1 %v1713_v55, %s11787_s24  ;;  %2127 = vrot.lane.b32.xlu0 %v2119_v28, %s8304_s18  ;;  %v2047_v52 = vld [vmem:[%s8382_s10 + $0x14] sm:$0xf]  ;;  %s11878_s18 = smov 107  }
 0x1a3   : > { %v525_v45 = vsel %vm310_vm1, %v11866_v11, %v521_v13  ;;  %v501_v7 = vsel %vm310_vm1, %v11867_v58, %v497_v33  ;;  %3570 = vmatprep.subr.bf16.mxu1 %v8043_v26  ;;  %v1736_v8 = vld [vmem:[%s8382_s10 + $0x14] sm:$0xf]  ;;  %3499 = vmatprep.subr.bf16.mxu0 %v7486_v4 }
 0x1a4   : > { %v526_v19 = vsel %vm11752_vm12, %v8618_v14, %v525_v45  ;;  %v502_v55 = vsel %vm11756_vm11, %v8607_v62, %v501_v7  ;;  %v9377_v28 = vpop.permute.xlu1 %1957  ;;  %3571 = vmatpush1.bf16.msra.mxu1 %v8041_v42  ;;  %v1956_v27 = vpop.permute.xlu0 %1955  ;;  %3500 = vmatpush1.bf16.msra.mxu0 %v7485_v30  ;;  %v8204_v62 = vld [vmem:[%s11822_s2 + $0x4] ss:$24 sps:$4 sm:$0xff]   ;;  %v1665_v42 = vld [vmem:[%s8382_s10 + $0x14] sm:$0xf]  ;;  %vm11768_vm12 = vcmask 515072   ;;  %vm11760_vm11 = vcmask 662528  }
 0x1a5   : > { %530 = vst.msk [vmem:[#allocation2 + $0xb8] sm:$0xff] %vm8490_vm2, %v526_v19  ;;  %506 = vst.msk [vmem:[#allocation2 + $0xa8] sm:$0xff] %vm8490_vm2, %v502_v55  ;;  %v11753_v13 = vrot.slane %v9377_v28, 4  ;;  %v1961_v14 = vrot.slane %v1956_v27, 4  ;;  %3600 = vmatprep.mubr.bf16.mxu1 %v8204_v62  ;;  %v2071_v33 = vld [vmem:[%s8382_s10 + $0x14] sm:$0xf] }
 0x1a6   : > { %2055 = vrot.lane.b32.xlu1 %v2047_v52, %s8305_s11  ;;  %1744 = vrot.lane.b32.xlu0 %v1736_v8, %s11868_s19  ;;  %v1999_v52 = vld [vmem:[%s8382_s10 + $0x14] sm:$0xf]  ;;  %s11870_s11 = smov 62   ;;  %s11880_s19 = smov 63  }
 0x1a7   : > { %v1964_v30 = vsel %vm310_vm1, %v1961_v14, %v11753_v13  ;;  %v1689_v8 = vld [vmem:[%s8382_s10 + $0x14] sm:$0xf] }
 0x1a8   : > { %v1966_v26 = vsel %vm1965_vm7, %v1956_v27, %v1964_v30  ;;  %v9395_v4 = vpop.permute.xlu1 %1981  ;;  %v1980_v11 = vpop.permute.xlu0 %1979 }
 0x1a9   : > { %v11755_v45 = vrot.slane %v9395_v4, 4  ;;  %v1985_v58 = vrot.slane %v1980_v11, 4 }
 0x1aa   : > { %1673 = vrot.lane.b32.xlu1 %v1665_v42, %s11869_s21  ;;  %2079 = vrot.lane.b32.xlu0 %v2071_v33, %s8306_s12  ;;  %s11871_s12 = smov 105   ;;  %v11872_v33 = vrot.slane %v8658_v57, 4  ;;  %s11882_s21 = smov 81  }
 0x1ab   : > { %v1988_v7 = vsel %vm310_vm1, %v1985_v58, %v11755_v45  ;;  %v1617_v45 = vld [vmem:[%s8382_s10 + $0x14] sm:$0xf] }
 0x1ac   : > { %v1990_v19 = vsel %vm11768_vm12, %v1980_v11, %v1988_v7  ;;  %v1909_v55 = vpop.permute.xlu1 %1908  ;;  %v470_v27 = vpop.permute.xlu0 %469  ;;  %v8044_v14 = vld [vmem:[#allocation2 + $0xa8] ss:$16 sps:$4 sm:$0xff]   ;;  %v8046_v30 = vld [vmem:[#allocation2 + $0xac] ss:$16 sps:$4 sm:$0xff]   ;;  %v2023_v11 = vld [vmem:[%s8382_s10 + $0x14] sm:$0xf] }
 0x1ad   : > { %v473_v62 = vrot.slane %v470_v27, 4  ;;  %v7481_v13 = vcombine.low %v1966_v26, %v1990_v19  ;;  %v7482_v24 = vcombine.high %v1966_v26, %v1990_v19  ;;  %v1914_v42 = vrot.slane %v1909_v55, 4  ;;  %3572 = vmatprep.subr.bf16.mxu1 %v8046_v30  ;;  %v1641_v19 = vld [vmem:[%s8382_s10 + $0x14] sm:$0xf] }
 0x1ae   : > { %2007 = vrot.lane.b32.xlu1 %v1999_v52, %s11870_s11  ;;  %1697 = vrot.lane.b32.xlu0 %v1689_v8, %s11871_s12  ;;  %v1951_v8 = vld [vmem:[%s8382_s10 + $0x14] sm:$0xf]  ;;  %vm11774_vm12 = vcmask 670720   ;;  %s11883_s11 = smov 109   ;;  %s11885_s12 = smov 112  }
 0x1af   : > { %v477_v58 = vsel %vm310_vm1, %v11872_v33, %v473_v62  ;;  %3501 = vmatprep.subr.bf16.mxu0 %v7482_v24  ;;  %3573 = vmatpush1.bf16.msra.mxu1 %v8044_v14 }
 0x1b0   : > { %v478_v7 = vsel %vm475_vm0, %v8658_v57, %v477_v58  ;;  %v1933_v27 = vpop.permute.xlu1 %1932  ;;  %v9415_v26 = vpop.permute.xlu0 %1910  ;;  %3502 = vmatpush1.bf16.msra.mxu0 %v7481_v13  ;;  %v11757_v13 = vmov 0   ;;  %v1569_v58 = vld [vmem:[%s8382_s10 + $0x14] sm:$0xf] }
 0x1b1   : > { %11873 = vst [vmem:[#allocation20_spill] sm:$0xff] %v9415_v26  ;;  %482 = vst.msk [vmem:[#allocation2 + $0x98] sm:$0xff] %vm8490_vm2, %v478_v7  ;;  %v11759_v52 = vrot.slane %v9415_v26, 4  ;;  %v1938_v24 = vrot.slane %v1933_v27, 4  ;;  %8030 = vset.pattern.permute.xlu1 %v11757_v13  ;;  %8031 = vset.pattern.permute.xlu0 %v11757_v13 }
 0x1b2   : > { %1625 = vrot.lane.b32.xlu1 %v1617_v45, %s11874_s20  ;;  %2031 = vrot.lane.b32.xlu0 %v2023_v11, %s11875_s22  ;;  %v1975_v11 = vld [vmem:[%s8382_s10 + $0x14] sm:$0xf]  ;;  %s11886_s20 = smov 80   ;;  %s11888_s22 = smov 83  }
 0x1b3   : > { %v1917_v57 = vsel %vm310_vm1, %v1914_v42, %v11759_v52 }
 0x1b4   : > { %v1919_v14 = vsel %vm11760_vm11, %v1909_v55, %v1917_v57  ;;  %v1861_v62 = vpop.permute.xlu1 %1860  ;;  %v9430_v45 = vpop.permute.xlu0 %1934  ;;  %vm11769_vm11 = vcmask 678912  }
 0x1b5   : > { %11876 = vst [vmem:[#allocation21_spill] sm:$0xff] %v9430_v45  ;;  %v11762_v30 = vrot.slane %v9430_v45, 4  ;;  %v1866_v33 = vrot.slane %v1861_v62, 4 }
 0x1b6   : > { %1959 = vrot.lane.b32.xlu1 %v1951_v8, %s11877_s14  ;;  %1649 = vrot.lane.b32.xlu0 %v1641_v19, %s11878_s18  ;;  %s11889_s14 = smov 111   ;;  %s11890_s18 = smov 1  }
 0x1b7   : > { %v1941_v42 = vsel %vm310_vm1, %v1938_v24, %v11762_v30  ;;  %v8052_v24 = vld [vmem:[#allocation2 + $0x6c] ss:$16 sps:$4 sm:$0xff]  }
 0x1b8   : > { %v1942_v7 = vsel %vm691_vm9, %v1933_v27, %v1941_v42  ;;  %v1885_v55 = vpop.permute.xlu1 %1884  ;;  %v9441_v57 = vpop.permute.xlu0 %1862  ;;  %v8047_v13 = vld [vmem:[#allocation2 + $0x88] ss:$16 sps:$4 sm:$0xff]   ;;  %v8049_v52 = vld [vmem:[#allocation2 + $0x8c] ss:$16 sps:$4 sm:$0xff]   ;;  %v1904_v42 = vld [vmem:[%s8382_s10 + $0x14] sm:$0xf] }
 0x1b9   : > { %v11770_v8 = vrot.slane %v9441_v57, 4  ;;  %v7477_v19 = vcombine.low %v1919_v14, %v1942_v7  ;;  %v7478_v10 = vcombine.high %v1919_v14, %v1942_v7  ;;  %v1890_v30 = vrot.slane %v1885_v55, 4  ;;  %3574 = vmatprep.subr.bf16.mxu1 %v8049_v52  ;;  %v8055_v52 = vld [vmem:[#allocation2 + $0x4c] ss:$16 sps:$4 sm:$0xff]  }
 0x1ba   : > { %1577 = vrot.lane.b32.xlu1 %v1569_v58, %s11879_s15  ;;  %1983 = vrot.lane.b32.xlu0 %v1975_v11, %s11880_s19  ;;  %v8050_v11 = vld [vmem:[#allocation2 + $0x68] ss:$16 sps:$4 sm:$0xff]   ;;  %s11891_s15 = smov 82   ;;  %s11892_s19 = smov 84  }
 0x1bb   : > { %v1869_v27 = vsel %vm310_vm1, %v1866_v33, %v11770_v8  ;;  %3503 = vmatprep.subr.bf16.mxu0 %v7478_v10  ;;  %3575 = vmatpush1.bf16.msra.mxu1 %v8047_v13  ;;  %v1521_v13 = vld [vmem:[%s8382_s10 + $0x14] sm:$0xf]  ;;  %v1516_v8 = vld [vmem:[%s8382_s10 + $0xc] sm:$0xff] }
 0x1bc   : > { %v1871_v45 = vsel %vm11769_vm11, %v1861_v62, %v1869_v27  ;;  %v1813_v26 = vpop.permute.xlu1 %1812  ;;  %v9452_v14 = vpop.permute.xlu0 %1886  ;;  %3504 = vmatpush1.bf16.msra.mxu0 %v7477_v19  ;;  %3576 = vmatprep.subr.bf16.mxu1 %v8052_v24  ;;  %v1928_v33 = vld [vmem:[%s8382_s10 + $0x14] sm:$0xf]  ;;  %vm11775_vm11 = vcmask 695296   ;;  %1518 = vst.msk [vmem:[#allocation2 + $0x358] sm:$0xff] %vm8490_vm2, %v1516_v8 }
 0x1bd   : > { %11881 = vst [vmem:[#allocation22_spill] sm:$0xff] %v9452_v14  ;;  %v11773_v58 = vrot.slane %v9452_v14, 4  ;;  %v1818_v10 = vrot.slane %v1813_v26, 4  ;;  %v8053_v14 = vld [vmem:[#allocation2 + $0x48] ss:$16 sps:$4 sm:$0xff]  }
 0x1be   : > { %1912 = vrot.lane.b32.xlu1 %v1904_v42, %s11882_s21  ;;  %1601 = vrot.lane.b32.xlu0 %v1593_v9, %s11883_s11  ;;  %s11893_s21 = smov 85   ;;  %s11894_s11 = smov 2  }
 0x1bf   : > { %v1893_v62 = vsel %vm310_vm1, %v1890_v30, %v11773_v58  ;;  %3577 = vmatpush1.bf16.msra.mxu1 %v8050_v11  ;;  %v8058_v30 = vld [vmem:[#allocation2 + $0x2c] ss:$16 sps:$4 sm:$0xff]   ;;  %v1545_v58 = vld [vmem:[%s8382_s10 + $0x14] sm:$0xf] }
 0x1c0   : > { %v1895_v7 = vsel %vm11774_vm12, %v1885_v55, %v1893_v62  ;;  %v1837_v19 = vpop.permute.xlu1 %1836  ;;  %v9463_v24 = vpop.permute.xlu0 %1814  ;;  %3578 = vmatprep.subr.bf16.mxu1 %v8055_v52  ;;  %v1856_v62 = vld [vmem:[%s8382_s10 + $0x14] sm:$0xf]  ;;  %vm11782_vm12 = vcmask 687104  }
 0x1c1   : > { %11884 = vst [vmem:[#allocation23_spill] sm:$0xff] %v9463_v24  ;;  %v11776_v27 = vrot.slane %v9463_v24, 4  ;;  %v7473_v9 = vcombine.low %v1871_v45, %v1895_v7  ;;  %v7474_v42 = vcombine.high %v1871_v45, %v1895_v7  ;;  %v1842_v55 = vrot.slane %v1837_v19, 4  ;;  %v8059_v24 = vld [vmem:[#allocation2 + $0x8] ss:$16 sps:$4 sm:$0xff]  }
 0x1c2   : > { %1529 = vrot.lane.b32.xlu1 %v1521_v13, %s11885_s12  ;;  %1936 = vrot.lane.b32.xlu0 %v1928_v33, %s11886_s20  ;;  %v8056_v33 = vld [vmem:[#allocation2 + $0x28] ss:$16 sps:$4 sm:$0xff]   ;;  %s11895_s12 = smov 3  }
 0x1c3   : > { %v1821_v11 = vsel %vm310_vm1, %v1818_v10, %v11776_v27  ;;  %3505 = vmatprep.subr.bf16.mxu0 %v7474_v42  ;;  %3579 = vmatpush1.bf16.msra.mxu1 %v8053_v14  ;;  %v8061_v10 = vld [vmem:[#allocation2 + $0xc] ss:$16 sps:$4 sm:$0xff]   ;;  %v1493_v42 = vld [vmem:[%s8382_s10 + $0x10] sm:$0xf]  ;;  %v1880_v14 = vld [vmem:[%s8382_s10 + $0x14] sm:$0xf] }
 0x1c4   : > { %v1823_v45 = vsel %vm11775_vm11, %v1813_v26, %v1821_v11  ;;  %v1765_v52 = vpop.permute.xlu1 %1764  ;;  %v9477_v13 = vpop.permute.xlu0 %1838  ;;  %3506 = vmatpush1.bf16.msra.mxu0 %v7473_v9  ;;  %3580 = vmatprep.subr.bf16.mxu1 %v8058_v30  ;;  %vm1774_vm11 = vcmask 711680  }
 0x1c5   : > { %11887 = vst [vmem:[#allocation24_spill] sm:$0xff] %v9477_v13  ;;  %v11779_v8 = vrot.slane %v9477_v13, 4  ;;  %v1770_v7 = vrot.slane %v1765_v52, 4 }
 0x1c6   : > { %1864 = vrot.lane.b32.xlu1 %v1856_v62, %s11888_s22  ;;  %1553 = vrot.lane.b32.xlu0 %v1545_v58, %s11889_s14  ;;  %s11897_s22 = smov 86   ;;  %s11898_s14 = smov 87  }
 0x1c7   : > { %v1845_v26 = vsel %vm310_vm1, %v1842_v55, %v11779_v8  ;;  %3581 = vmatpush1.bf16.msra.mxu1 %v8056_v33  ;;  %v1832_v33 = vld [vmem:[%s8382_s10 + $0x14] sm:$0xf] }
 0x1c8   : > { %v1847_v9 = vsel %vm11782_vm12, %v1837_v19, %v1845_v26  ;;  %v1789_v11 = vpop.permute.xlu1 %1788  ;;  %v9488_v30 = vpop.permute.xlu0 %1766  ;;  %3582 = vmatprep.subr.bf16.mxu1 %v8061_v10  ;;  %v1808_v26 = vld [vmem:[%s8382_s10 + $0x14] sm:$0xf]  ;;  %vm1798_vm12 = vcmask 703488  }
 0x1c9   : > { %v11783_v62 = vrot.slane %v9488_v30, 4  ;;  %v7469_v58 = vcombine.low %v1823_v45, %v1847_v9  ;;  %v7470_v27 = vcombine.high %v1823_v45, %v1847_v9  ;;  %v1794_v55 = vrot.slane %v1789_v11, 4 }
 0x1ca   : > { %1501 = vrot.lane.b32.xlu1 %v1493_v42, %s11890_s18  ;;  %1888 = vrot.lane.b32.xlu0 %v1880_v14, %s11891_s15  ;;  %v1445_v42 = vld [vmem:[%s8382_s10 + $0x10] sm:$0xf]  ;;  %s12035_s18 = smov 127   ;;  %s12036_s15 = smov 126  }
 0x1cb   : > { %v1773_v19 = vsel %vm310_vm1, %v1770_v7, %v11783_v62  ;;  %3507 = vmatprep.subr.bf16.mxu0 %v7470_v27  ;;  %3583 = vmatpush1.bf16.msra.mxu1 %v8059_v24 }
 0x1cc   : > { %v1775_v8 = vsel %vm1774_vm11, %v1765_v52, %v1773_v19  ;;  %v2148_v10 = vpop.permute.xlu1 %2147  ;;  %v9499_v13 = vpop.permute.xlu0 %1790  ;;  %3508 = vmatpush1.bf16.msra.mxu0 %v7469_v58  ;;  %v1469_v52 = vld [vmem:[%s8382_s10 + $0x10] sm:$0xf] }
 0x1cd   : > { %v11784_v45 = vrot.slane %v9499_v13, 4  ;;  %v2153_v7 = vrot.slane %v2148_v10, 4 }
 0x1ce   : > { %1840 = vrot.lane.b32.xlu1 %v1832_v33, %s11892_s19  ;;  %1816 = vrot.lane.b32.xlu0 %v1808_v26, %s11893_s21  ;;  %v11896_v26 = vrot.slane %v8841_v51, 4  ;;  %s12037_s19 = smov 125   ;;  %s12038_s21 = smov 124  }
 0x1cf   : > { %v1797_v27 = vsel %vm310_vm1, %v1794_v55, %v11784_v45  ;;  %v1760_v45 = vld [vmem:[%s8382_s10 + $0x14] sm:$0xf] }
 0x1d0   : > { %v1799_v14 = vsel %vm1798_vm12, %v1789_v11, %v1797_v27  ;;  %v974_v24 = vpop.permute.xlu1 %973  ;;  %v9510_v9 = vpop.permute.xlu0 %2149  ;;  %v1784_v27 = vld [vmem:[%s8382_s10 + $0x14] sm:$0xf] }
 0x1d1   : > { %v977_v58 = vrot.slane %v974_v24, 4  ;;  %v11785_v19 = vrot.slane %v9510_v9, 4  ;;  %v7465_v33 = vcombine.low %v1775_v8, %v1799_v14  ;;  %v7466_v62 = vcombine.high %v1775_v8, %v1799_v14 }
 0x1d2   : > { %1477 = vrot.lane.b32.xlu1 %v1469_v52, %s11894_s11  ;;  %1453 = vrot.lane.b32.xlu0 %v1445_v42, %s11895_s12  ;;  %s11902_s11 = smov 4   ;;  %s11903_s12 = smov 5  }
 0x1d3   : > { %v981_v55 = vsel %vm310_vm1, %v11896_v26, %v977_v58  ;;  %v2156_v11 = vsel %vm310_vm1, %v2153_v7, %v11785_v19  ;;  %3509 = vmatprep.subr.bf16.mxu0 %v7466_v62  ;;  %v1421_v62 = vld [vmem:[%s8382_s10 + $0x10] sm:$0xf]  ;;  %v11899_v19 = vrot.slane %v8531_v17, 4 }
 0x1d4   : > { %v982_v8 = vsel %vm11786_vm14, %v8841_v51, %v981_v55  ;;  %v2157_v52 = vsel %vm907_vm13, %v2148_v10, %v2156_v11  ;;  %v1358_v14 = vpop.permute.xlu1 %1357  ;;  %v998_v42 = vpop.permute.xlu0 %997  ;;  %3510 = vmatpush1.bf16.msra.mxu0 %v7465_v33  ;;  %v11900_v10 = vrot.slane %v8852_v41, 4  ;;  %v1397_v55 = vld [vmem:[%s8382_s10 + $0x10] sm:$0xf]  ;;  %vm11901_vm14 = vcmask 424960  }
 0x1d5   : > { %986 = vst.msk [vmem:[#allocation2 + $0x1e8] sm:$0xff] %vm8490_vm2, %v982_v8  ;;  %v1361_v24 = vrot.slane %v1358_v14, 4  ;;  %v1001_v58 = vrot.slane %v998_v42, 4  ;;  %v7498_v26 = vcombine.high %v2157_v52, %v2157_v52  ;;  %v7497_v7 = vcombine.low %v2157_v52, %v2157_v52  ;;  %v8082_v14 = vld [vmem:[%s11822_s2 + $0x44] ss:$24 sps:$4 sm:$0xff]  }
 0x1d6   : > { %1792 = vrot.lane.b32.xlu1 %v1784_v27, %s11897_s22  ;;  %1768 = vrot.lane.b32.xlu0 %v1760_v45, %s11898_s14  ;;  %v8071_v27 = vld [vmem:[%s11822_s2 + $0x10] ss:$24 sps:$4 sm:$0xff]   ;;  %s12041_s22 = smov 101   ;;  %s12042_s14 = smov 100  }
 0x1d7   : > { %v1365_v51 = vsel %vm310_vm1, %v11899_v19, %v1361_v24  ;;  %v1005_v33 = vsel %vm310_vm1, %v11900_v10, %v1001_v58  ;;  %7501 = vmatprep.subr.msk.bf16.mxu0 %vm310_vm1, %v7498_v26  ;;  %v3338_v11 = vsel %vm310_vm1, %v7497_v7, 0  ;;  %v11905_v58 = vrot.slane %v8542_v25, 4  ;;  %v2143_v7 = vld [vmem:[%s8382_s10 + $0x14] sm:$0xf]  ;;  %s11908_s10 = smov 56  }
 0x1d8   : > { %v1366_v45 = vsel %vm1363_vm5, %v8531_v17, %v1365_v51  ;;  %v1006_v19 = vsel %vm11901_vm14, %v8852_v41, %v1005_v33  ;;  %v926_v8 = vpop.permute.xlu1 %925  ;;  %v1382_v52 = vpop.permute.xlu0 %1381  ;;  %3526 = vmatpush2.bf16.msra.mxu0 %v3338_v11  ;;  %v11904_v17 = vrot.slane %v8890_v43, 4  ;;  %v2356_v51 = vld [vmem:[%s11527_s3 + $0x30] sm:$0xff]  ;;  %vm11906_vm5 = vcmask 449536  }
 0x1d9   : > { %1370 = vst.msk [vmem:[#allocation2 + $0x2e8] sm:$0xff] %vm8490_vm2, %v1366_v45  ;;  %1010 = vst.msk [vmem:[#allocation2 + $0x1f8] sm:$0xff] %vm8490_vm2, %v1006_v19  ;;  %v929_v42 = vrot.slane %v926_v8, 4  ;;  %v1385_v24 = vrot.slane %v1382_v52, 4  ;;  %vm11907_vm14 = vcmask 48128  }
 0x1da   : > { %1429 = vrot.lane.b32.xlu1 %v1421_v62, %s11902_s11  ;;  %1405 = vrot.lane.b32.xlu0 %v1397_v55, %s11903_s12  ;;  %v8084_v8 = vld [vmem:[%s11822_s2 + $0x40] ss:$24 sps:$4 sm:$0xff]   ;;  %v8093_v52 = vld [vmem:[%s11822_s2 + $0x74] ss:$24 sps:$4 sm:$0xff]   ;;  %s12039_s11 = smov 103   ;;  %s12040_s12 = smov 102  }
 0x1db   : > { %v933_v41 = vsel %vm310_vm1, %v11904_v17, %v929_v42  ;;  %v1389_v26 = vsel %vm310_vm1, %v11905_v58, %v1385_v24  ;;  %3528 = vmatmul.mubr.bf16.vlgmr.msra.gmra.mxu0 %v8071_v27 }
 0x1dc   : > { %v934_v10 = vsel %vm11906_vm5, %v8890_v43, %v933_v41  ;;  %v1390_v62 = vsel %vm11907_vm14, %v8542_v25, %v1389_v26  ;;  %v1310_v33 = vpop.permute.xlu1 %1309  ;;  %v950_v55 = vpop.permute.xlu0 %949  ;;  %7503 = vmatprep.mubr.msk.bf16.mxu0 %vm1339_vm10, %v8082_v14  ;;  %v11909_v43 = vrot.slane %v8585_v48, 4  ;;  %v11910_v25 = vrot.slane %v8905_v37, 4  ;;  %v2354_v14 = vld [vmem:[%s11527_s3 + $0x20] sm:$0xff] }
 0x1dd   : > { %938 = vst.msk [vmem:[#allocation2 + $0x1c8] sm:$0xff] %vm8490_vm2, %v934_v10  ;;  %1394 = vst.msk [vmem:[#allocation2 + $0x2f8] sm:$0xff] %vm8490_vm2, %v1390_v62  ;;  %v1313_v11 = vrot.slane %v1310_v33, 4  ;;  %v953_v27 = vrot.slane %v950_v55, 4  ;;  %vm11911_vm5 = vcmask 195584   ;;  %vm11912_vm14 = vcmask 441344  }
 0x1de   : > { %2151 = vrot.lane.b32.xlu0 %v2143_v7, %s11908_s10  ;;  %2390 = vperm.xlu1 %8030, %v2356_v51   ;;  %v2357_v10 = vld [vmem:[%s11527_s3 + $0x38] sm:$0xff]  ;;  %v11914_v62 = vrot.slane %v8596_v56, 4  ;;  %v2355_v55 = vld [vmem:[%s11527_s3 + $0x28] sm:$0xff] }
 0x1df   : > { %v1317_v45 = vsel %vm310_vm1, %v11909_v43, %v1313_v11  ;;  %v957_v19 = vsel %vm310_vm1, %v11910_v25, %v953_v27 }
 0x1e0   : > { %v1318_v42 = vsel %vm11911_vm5, %v8585_v48, %v1317_v45  ;;  %v958_v24 = vsel %vm11912_vm14, %v8905_v37, %v957_v19  ;;  %v878_v17 = vpop.permute.xlu1 %877  ;;  %v1334_v41 = vpop.permute.xlu0 %1333  ;;  %v8074_v58 = vld [vmem:[#allocation2 + $0x1e8] ss:$16 sps:$4 sm:$0xff]   ;;  %v8076_v26 = vld [vmem:[#allocation2 + $0x1ec] ss:$16 sps:$4 sm:$0xff]   ;;  %v11913_v48 = vrot.slane %v8938_v2, 4  ;;  %vm11915_vm5 = vcmask 588800  }
 0x1e1   : > { %1322 = vst.msk [vmem:[#allocation2 + $0x2c8] sm:$0xff] %vm8490_vm2, %v1318_v42  ;;  %962 = vst.msk [vmem:[#allocation2 + $0x1d8] sm:$0xff] %vm8490_vm2, %v958_v24  ;;  %v881_v7 = vrot.slane %v878_v17, 4  ;;  %v1337_v51 = vrot.slane %v1334_v41, 4  ;;  %3584 = vmatprep.subr.bf16.mxu1 %v8076_v26  ;;  %v9632_v17 = vld [vmem:[%s11822_s2 + $0x70] ss:$24 sps:$4 sm:$0xff]  }
 0x1e2   : > { %2380 = vperm.xlu1 %8030, %v2354_v14   ;;  %3585 = vmatpush2.bf16.msra.mxu1 %v8074_v58  ;;  %v9637_v41 = vld [vmem:[%s11822_s2 + $0xa4] ss:$24 sps:$4 sm:$0xff]   ;;  %vm11918_vm14 = vcmask 211968  }
 0x1e3   : > { %v885_v37 = vsel %vm310_vm1, %v11913_v48, %v881_v7  ;;  %v1341_v33 = vsel %vm310_vm1, %v11914_v62, %v1337_v51  ;;  %3538 = vmatmul.mubr.bf16.gmra.mxu0 %v8084_v8  ;;  %2395 = vperm.xlu0 %8031, %v2357_v10   ;;  %v2353_v58 = vld [vmem:[%s11527_s3 + $0x18] sm:$0xff] }
 0x1e4   : > { %v886_v11 = vsel %vm11915_vm5, %v8938_v2, %v885_v37  ;;  %v1342_v27 = vsel %vm1339_vm10, %v8596_v56, %v1341_v33  ;;  %v1262_v43 = vpop.permute.xlu1 %1261  ;;  %v902_v45 = vpop.permute.xlu0 %901  ;;  %v8077_v25 = vld [vmem:[#allocation2 + $0x2e8] ss:$16 sps:$4 sm:$0xff]   ;;  %v8079_v19 = vld [vmem:[#allocation2 + $0x2ec] ss:$16 sps:$4 sm:$0xff]   ;;  %7504 = vmatprep.mubr.msk.bf16.mxu0 %vm1339_vm10, %v8093_v52  ;;  %v2352_v2 = vld [vmem:[%s11527_s3 + $0x10] sm:$0xff]  ;;  %v11916_v56 = vrot.slane %v8629_v22, 4 }
 0x1e5   : > { %890 = vst.msk [vmem:[#allocation2 + $0x1a8] sm:$0xff] %vm8490_vm2, %v886_v11  ;;  %1346 = vst.msk [vmem:[#allocation2 + $0x2d8] sm:$0xff] %vm8490_vm2, %v1342_v27  ;;  %v1265_v8 = vrot.slane %v1262_v43, 4  ;;  %v905_v14 = vrot.slane %v902_v45, 4  ;;  %3641 = vmatprep.subr.bf16.mxu0 %v8079_v19  ;;  %v11917_v52 = vrot.slane %v8949_v0, 4  ;;  %v11920_v11 = vrot.slane %v8640_v36, 4 }
 0x1e6   : > { %2385 = vperm.xlu1 %8030, %v2355_v55   ;;  %3642 = vmatpush1.bf16.msra.mxu0 %v8077_v25  ;;  %v2351_v43 = vld [vmem:[%s11527_s3 + $0x8] sm:$0xff]  ;;  %vm11921_vm5 = vcmask 605184  }
 0x1e7   : > { %v1269_v42 = vsel %vm310_vm1, %v11916_v56, %v1265_v8  ;;  %v909_v24 = vsel %vm310_vm1, %v11917_v52, %v905_v14  ;;  %2370 = vperm.xlu0 %8031, %v2352_v2   ;;  %v11924_v52 = vrot.slane %v8996_v34, 4 }
 0x1e8   : > { %v1270_v26 = vsel %vm11918_vm14, %v8629_v22, %v1269_v42  ;;  %v910_v7 = vsel %vm907_vm13, %v8949_v0, %v909_v24  ;;  %v830_v51 = vpop.permute.xlu1 %829  ;;  %v1286_v10 = vpop.permute.xlu0 %1285  ;;  %v8085_v48 = vld [vmem:[#allocation2 + $0x1c8] ss:$16 sps:$4 sm:$0xff]   ;;  %v8087_v37 = vld [vmem:[#allocation2 + $0x1cc] ss:$16 sps:$4 sm:$0xff]   ;;  %v2350_v22 = vld [vmem:[%s11527_s3] sm:$0xff]  ;;  %v11919_v0 = vrot.slane %v8984_v61, 4 }
 0x1e9   : > { %1274 = vst.msk [vmem:[#allocation2 + $0x2a8] sm:$0xff] %vm8490_vm2, %v1270_v26  ;;  %914 = vst.msk [vmem:[#allocation2 + $0x1b8] sm:$0xff] %vm8490_vm2, %v910_v7  ;;  %v833_v62 = vrot.slane %v830_v51, 4  ;;  %v1289_v33 = vrot.slane %v1286_v10, 4  ;;  %3586 = vmatprep.subr.bf16.mxu1 %v8087_v37  ;;  %vm11922_vm14 = vcmask 203776  }
 0x1ea   : > { %2375 = vperm.xlu1 %8030, %v2353_v58   ;;  %3587 = vmatpush2.bf16.msra.mxu1 %v8085_v48  ;;  %v9682_v58 = vld [vmem:[%s11822_s2 + $0xa0] ss:$24 sps:$4 sm:$0xff]  }
 0x1eb   : > { %v837_v55 = vsel %vm310_vm1, %v11919_v0, %v833_v62  ;;  %v1293_v27 = vsel %vm310_vm1, %v11920_v11, %v1289_v33  ;;  %3548 = vmatmul.mubr.bf16.gmra.mxu0 %v9632_v17  ;;  %2360 = vperm.xlu0 %8031, %v2350_v22   ;;  %v11927_v22 = vrot.slane %v9028_v31, 4  ;;  %v11928_v0 = vrot.slane %v8680_v23, 4 }
 0x1ec   : > { %v838_v45 = vsel %vm11921_vm5, %v8984_v61, %v837_v55  ;;  %v1294_v25 = vsel %vm11922_vm14, %v8640_v36, %v1293_v27  ;;  %v1214_v19 = vpop.permute.xlu1 %1213  ;;  %v854_v8 = vpop.permute.xlu0 %853  ;;  %v8088_v14 = vld [vmem:[#allocation2 + $0x2c8] ss:$16 sps:$4 sm:$0xff]   ;;  %v8090_v2 = vld [vmem:[#allocation2 + $0x2cc] ss:$16 sps:$4 sm:$0xff]   ;;  %7505 = vmatprep.mubr.msk.bf16.mxu0 %vm1339_vm10, %v9637_v41  ;;  %v11923_v36 = vrot.slane %v8669_v6, 4  ;;  %vm11925_vm5 = vcmask 228352  }
 0x1ed   : > { %842 = vst.msk [vmem:[#allocation2 + $0x188] sm:$0xff] %vm8490_vm2, %v838_v45  ;;  %1298 = vst.msk [vmem:[#allocation2 + $0x2b8] sm:$0xff] %vm8490_vm2, %v1294_v25  ;;  %v1217_v56 = vrot.slane %v1214_v19, 4  ;;  %v857_v42 = vrot.slane %v854_v8, 4  ;;  %3643 = vmatprep.subr.bf16.mxu0 %v8090_v2  ;;  %vm11926_vm14 = vcmask 596992   ;;  %v11932_v2 = vrot.slane %v9039_v50, 4 }
 0x1ee   : > { %2365 = vperm.xlu1 %8030, %v2351_v43   ;;  %3644 = vmatpush1.bf16.msra.mxu0 %v8088_v14  ;;  %v8205_v19 = vld [vmem:[%s11822_s2 + $0xc] ss:$24 sps:$4 sm:$0xff]  }
 0x1ef   : > { %v1221_v61 = vsel %vm310_vm1, %v11923_v36, %v1217_v56  ;;  %v861_v24 = vsel %vm310_vm1, %v11924_v52, %v857_v42 }
 0x1f0   : > { %v1222_v26 = vsel %vm11925_vm5, %v8669_v6, %v1221_v61  ;;  %v862_v7 = vsel %vm11926_vm14, %v8996_v34, %v861_v24  ;;  %v782_v51 = vpop.permute.xlu1 %781  ;;  %v1238_v10 = vpop.permute.xlu0 %1237  ;;  %v8096_v48 = vld [vmem:[#allocation2 + $0x1a8] ss:$16 sps:$4 sm:$0xff]   ;;  %v8098_v37 = vld [vmem:[#allocation2 + $0x1ac] ss:$16 sps:$4 sm:$0xff]   ;;  %vm11929_vm5 = vcmask 621568   ;;  %vm11930_vm14 = vcmask 220160  }
 0x1f1   : > { %1226 = vst.msk [vmem:[#allocation2 + $0x288] sm:$0xff] %vm8490_vm2, %v1222_v26  ;;  %866 = vst.msk [vmem:[#allocation2 + $0x198] sm:$0xff] %vm8490_vm2, %v862_v7  ;;  %v785_v62 = vrot.slane %v782_v51, 4  ;;  %v1241_v33 = vrot.slane %v1238_v10, 4  ;;  %3588 = vmatprep.subr.bf16.mxu1 %v8098_v37  ;;  %v11935_v10 = vrot.slane %v9072_v40, 4 }
 0x1f2   : > { %3589 = vmatpush2.bf16.msra.mxu1 %v8096_v48  ;;  %v11936_v48 = vrot.slane %v8716_v29, 4 }
 0x1f3   : > { %v789_v6 = vsel %vm310_vm1, %v11927_v22, %v785_v62  ;;  %v1245_v34 = vsel %vm310_vm1, %v11928_v0, %v1241_v33  ;;  %3558 = vmatmul.mubr.bf16.gmra.mxu0 %v9682_v58 }
 0x1f4   : > { %v790_v55 = vsel %vm11929_vm5, %v9028_v31, %v789_v6  ;;  %v1246_v11 = vsel %vm11930_vm14, %v8680_v23, %v1245_v34  ;;  %v1166_v27 = vpop.permute.xlu1 %1165  ;;  %v806_v43 = vpop.permute.xlu0 %805  ;;  %v8099_v45 = vld [vmem:[#allocation2 + $0x2a8] ss:$16 sps:$4 sm:$0xff]   ;;  %v8101_v25 = vld [vmem:[#allocation2 + $0x2ac] ss:$16 sps:$4 sm:$0xff]   ;;  %3673 = vmatprep.mubr.bf16.mxu0 %v8205_v19  ;;  %v11931_v23 = vrot.slane %v8705_v5, 4  ;;  %vm11933_vm5 = vcmask 244736  }
 0x1f5   : > { %794 = vst.msk [vmem:[#allocation2 + $0x168] sm:$0xff] %vm8490_vm2, %v790_v55  ;;  %1250 = vst.msk [vmem:[#allocation2 + $0x298] sm:$0xff] %vm8490_vm2, %v1246_v11  ;;  %v1169_v8 = vrot.slane %v1166_v27, 4  ;;  %v809_v31 = vrot.slane %v806_v43, 4  ;;  %3645 = vmatprep.subr.bf16.mxu0 %v8101_v25  ;;  %vm11934_vm14 = vcmask 613376   ;;  %v11939_v11 = vrot.slane %v8743_v20, 4 }
 0x1f6   : > { %3646 = vmatpush1.bf16.msra.mxu0 %v8099_v45  ;;  %v11940_v27 = vrot.slane %v9083_v21, 4 }
 0x1f7   : > { %v1173_v14 = vsel %vm310_vm1, %v11931_v23, %v1169_v8  ;;  %v813_v56 = vsel %vm310_vm1, %v11932_v2, %v809_v31  ;;  %v11943_v2 = vrot.slane %v9107_v44, 4 }
 0x1f8   : > { %v1174_v42 = vsel %vm11933_vm5, %v8705_v5, %v1173_v14  ;;  %v814_v36 = vsel %vm11934_vm14, %v9039_v50, %v813_v56  ;;  %v734_v61 = vpop.permute.xlu1 %733  ;;  %v1190_v52 = vpop.permute.xlu0 %1189  ;;  %v8107_v24 = vld [vmem:[#allocation2 + $0x188] ss:$16 sps:$4 sm:$0xff]   ;;  %v8109_v26 = vld [vmem:[#allocation2 + $0x18c] ss:$16 sps:$4 sm:$0xff]   ;;  %vm11937_vm5 = vcmask 637952   ;;  %vm11938_vm14 = vcmask 236544  }
 0x1f9   : > { %1178 = vst.msk [vmem:[#allocation2 + $0x268] sm:$0xff] %vm8490_vm2, %v1174_v42  ;;  %818 = vst.msk [vmem:[#allocation2 + $0x178] sm:$0xff] %vm8490_vm2, %v814_v36  ;;  %v737_v7 = vrot.slane %v734_v61, 4  ;;  %v1193_v51 = vrot.slane %v1190_v52, 4  ;;  %3590 = vmatprep.subr.bf16.mxu1 %v8109_v26  ;;  %v11944_v56 = vrot.slane %v8757_v46, 4 }
 0x1fa   : > { %3591 = vmatpush2.bf16.msra.mxu1 %v8107_v24 }
 0x1fb   : > { %v741_v5 = vsel %vm310_vm1, %v11935_v10, %v737_v7  ;;  %v1197_v50 = vsel %vm310_vm1, %v11936_v48, %v1193_v51  ;;  %v11946_v10 = vrot.slane %v8786_v47, 4 }
 0x1fc   : > { %v742_v37 = vsel %vm11937_vm5, %v9072_v40, %v741_v5  ;;  %v1198_v62 = vsel %vm11938_vm14, %v8716_v29, %v1197_v50  ;;  %v1118_v33 = vpop.permute.xlu1 %1117  ;;  %v758_v22 = vpop.permute.xlu0 %757  ;;  %v8110_v6 = vld [vmem:[#allocation2 + $0x288] ss:$16 sps:$4 sm:$0xff]   ;;  %v8112_v0 = vld [vmem:[#allocation2 + $0x28c] ss:$16 sps:$4 sm:$0xff]   ;;  %vm11941_vm5 = vcmask 261120   ;;  %vm11942_vm14 = vcmask 629760  }
 0x1fd   : > { %746 = vst.msk [vmem:[#allocation2 + $0x148] sm:$0xff] %vm8490_vm2, %v742_v37  ;;  %1202 = vst.msk [vmem:[#allocation2 + $0x278] sm:$0xff] %vm8490_vm2, %v1198_v62  ;;  %v1121_v34 = vrot.slane %v1118_v33, 4  ;;  %v761_v55 = vrot.slane %v758_v22, 4  ;;  %3647 = vmatprep.subr.bf16.mxu0 %v8112_v0  ;;  %v11947_v5 = vrot.slane %v9120_v39, 4 }
 0x1fe   : > { %3648 = vmatpush1.bf16.msra.mxu0 %v8110_v6 }
 0x1ff   : > { %v1125_v40 = vsel %vm310_vm1, %v11939_v11, %v1121_v34  ;;  %v765_v29 = vsel %vm310_vm1, %v11940_v27, %v761_v55  ;;  %v11950_v34 = vrot.slane %v9153_v16, 4  ;;  %v11951_v55 = vrot.slane %v8797_v59, 4 }
 0x200   : > { %v1126_v43 = vsel %vm11941_vm5, %v8743_v20, %v1125_v40  ;;  %v766_v45 = vsel %vm11942_vm14, %v9083_v21, %v765_v29  ;;  %v686_v25 = vpop.permute.xlu1 %685  ;;  %v1142_v19 = vpop.permute.xlu0 %1141  ;;  %v8113_v8 = vld [vmem:[#allocation2 + $0x168] ss:$16 sps:$4 sm:$0xff]   ;;  %v8115_v31 = vld [vmem:[#allocation2 + $0x16c] ss:$16 sps:$4 sm:$0xff]   ;;  %vm11945_vm5 = vcmask 252928   ;;  %vm11948_vm14 = vcmask 400384  }
 0x201   : > { %1130 = vst.msk [vmem:[#allocation2 + $0x248] sm:$0xff] %vm8490_vm2, %v1126_v43  ;;  %770 = vst.msk [vmem:[#allocation2 + $0x158] sm:$0xff] %vm8490_vm2, %v766_v45  ;;  %v689_v23 = vrot.slane %v686_v25, 4  ;;  %v1145_v14 = vrot.slane %v1142_v19, 4  ;;  %3592 = vmatprep.subr.bf16.mxu1 %v8115_v31  ;;  %v11955_v31 = vrot.slane %v9164_v35, 4 }
 0x202   : > { %3593 = vmatpush2.bf16.msra.mxu1 %v8113_v8  ;;  %v11954_v8 = vrot.slane %v8817_v53, 4 }
 0x203   : > { %v693_v20 = vsel %vm310_vm1, %v11943_v2, %v689_v23  ;;  %v1149_v21 = vsel %vm310_vm1, %v11944_v56, %v1145_v14 }
 0x204   : > { %v694_v42 = vsel %vm691_vm9, %v9107_v44, %v693_v20  ;;  %v1150_v36 = vsel %vm11945_vm5, %v8757_v46, %v1149_v21  ;;  %v1070_v61 = vpop.permute.xlu1 %1069  ;;  %v710_v52 = vpop.permute.xlu0 %709  ;;  %v8116_v24 = vld [vmem:[#allocation2 + $0x268] ss:$16 sps:$4 sm:$0xff]   ;;  %v8118_v26 = vld [vmem:[#allocation2 + $0x26c] ss:$16 sps:$4 sm:$0xff]   ;;  %vm11949_vm5 = vcmask 646144  }
 0x205   : > { %698 = vst.msk [vmem:[#allocation2 + $0x128] sm:$0xff] %vm8490_vm2, %v694_v42  ;;  %1154 = vst.msk [vmem:[#allocation2 + $0x258] sm:$0xff] %vm8490_vm2, %v1150_v36  ;;  %v1073_v7 = vrot.slane %v1070_v61, 4  ;;  %v713_v51 = vrot.slane %v710_v52, 4  ;;  %3649 = vmatprep.subr.bf16.mxu0 %v8118_v26  ;;  %v11958_v61 = vrot.slane %v9203_v63, 4  ;;  %v11959_v52 = vrot.slane %v8830_v32, 4 }
 0x206   : > { %3650 = vmatpush1.bf16.msra.mxu0 %v8116_v24 }
 0x207   : > { %v1077_v44 = vsel %vm310_vm1, %v11946_v10, %v1073_v7  ;;  %v717_v46 = vsel %vm310_vm1, %v11947_v5, %v713_v51 }
 0x208   : > { %v1078_v48 = vsel %vm11948_vm14, %v8786_v47, %v1077_v44  ;;  %v718_v50 = vsel %vm11949_vm5, %v9120_v39, %v717_v46  ;;  %v638_v37 = vpop.permute.xlu1 %637  ;;  %v1094_v62 = vpop.permute.xlu0 %1093  ;;  %v8119_v33 = vld [vmem:[#allocation2 + $0x148] ss:$16 sps:$4 sm:$0xff]   ;;  %v8121_v22 = vld [vmem:[#allocation2 + $0x14c] ss:$16 sps:$4 sm:$0xff]   ;;  %vm11952_vm14 = vcmask 793600   ;;  %vm11953_vm5 = vcmask 392192  }
 0x209   : > { %1082 = vst.msk [vmem:[#allocation2 + $0x228] sm:$0xff] %vm8490_vm2, %v1078_v48  ;;  %722 = vst.msk [vmem:[#allocation2 + $0x138] sm:$0xff] %vm8490_vm2, %v718_v50  ;;  %v641_v6 = vrot.slane %v638_v37, 4  ;;  %v1097_v0 = vrot.slane %v1094_v62, 4  ;;  %3594 = vmatprep.subr.bf16.mxu1 %v8121_v22  ;;  %v11961_v48 = vrot.slane %v8866_v15, 4  ;;  %v11962_v50 = vrot.slane %v9220_v60, 4 }
 0x20a   : > { %3595 = vmatpush2.bf16.msra.mxu1 %v8119_v33 }
 0x20b   : > { %v645_v47 = vsel %vm310_vm1, %v11950_v34, %v641_v6  ;;  %v1101_v39 = vsel %vm310_vm1, %v11951_v55, %v1097_v0  ;;  %v11963_v55 = vrot.slane %v9262_v54, 4 }
 0x20c   : > { %v646_v11 = vsel %vm11952_vm14, %v9153_v16, %v645_v47  ;;  %v1102_v40 = vsel %vm11953_vm5, %v8797_v59, %v1101_v39  ;;  %v1022_v27 = vpop.permute.xlu1 %1021  ;;  %v662_v29 = vpop.permute.xlu0 %661  ;;  %v8122_v43 = vld [vmem:[#allocation2 + $0x248] ss:$16 sps:$4 sm:$0xff]   ;;  %v8124_v45 = vld [vmem:[#allocation2 + $0x24c] ss:$16 sps:$4 sm:$0xff]   ;;  %vm11956_vm14 = vcmask 416768   ;;  %vm11957_vm5 = vcmask 785408  }
 0x20d   : > { %650 = vst.msk [vmem:[#allocation2 + $0x108] sm:$0xff] %vm8490_vm2, %v646_v11  ;;  %1106 = vst.msk [vmem:[#allocation2 + $0x238] sm:$0xff] %vm8490_vm2, %v1102_v40  ;;  %v1025_v25 = vrot.slane %v1022_v27, 4  ;;  %v665_v19 = vrot.slane %v662_v29, 4  ;;  %3651 = vmatprep.subr.bf16.mxu0 %v8124_v45  ;;  %v11964_v39 = vrot.slane %v8877_v1, 4 }
 0x20e   : > { %3652 = vmatpush1.bf16.msra.mxu0 %v8122_v43 }
 0x20f   : > { %v1029_v16 = vsel %vm310_vm1, %v11954_v8, %v1025_v25  ;;  %v669_v59 = vsel %vm310_vm1, %v11955_v31, %v665_v19 }
 0x210   : > { %v1030_v23 = vsel %vm11956_vm14, %v8817_v53, %v1029_v16  ;;  %v670_v14 = vsel %vm11957_vm5, %v9164_v35, %v669_v59  ;;  %v2104_v2 = vpop.permute.xlu1 %2103  ;;  %v1046_v20 = vpop.permute.xlu0 %1045  ;;  %v8125_v56 = vld [vmem:[#allocation2 + $0x128] ss:$16 sps:$4 sm:$0xff]   ;;  %v8127_v21 = vld [vmem:[#allocation2 + $0x12c] ss:$16 sps:$4 sm:$0xff]   ;;  %vm11960_vm14 = vcmask 408576   ;;  %v11967_v16 = vrot.slane %v9284_v12, 4 }
 0x211   : > { %1034 = vst.msk [vmem:[#allocation2 + $0x208] sm:$0xff] %vm8490_vm2, %v1030_v23  ;;  %674 = vst.msk [vmem:[#allocation2 + $0x118] sm:$0xff] %vm8490_vm2, %v670_v14  ;;  %v2107_v42 = vrot.slane %v2104_v2, 4  ;;  %v1049_v36 = vrot.slane %v1046_v20, 4  ;;  %3596 = vmatprep.subr.bf16.mxu1 %v8127_v21  ;;  %v8207_v59 = vld [vmem:[%s11822_s2 + $0x34] ss:$24 sps:$4 sm:$0xff]  }
 0x212   : > { %3597 = vmatpush2.bf16.msra.mxu1 %v8125_v56  ;;  %vm11973_vm5 = vcmask 859136  }
 0x213   : > { %v2111_v53 = vsel %vm310_vm1, %v11958_v61, %v2107_v42  ;;  %v1053_v35 = vsel %vm310_vm1, %v11959_v52, %v1049_v36  ;;  %v11970_v61 = vrot.slane %v9326_v18, 4 }
 0x214   : > { %v2112_v24 = vsel %vm2109_vm15, %v9203_v63, %v2111_v53  ;;  %v1054_v26 = vsel %vm11960_vm14, %v8830_v32, %v1053_v35  ;;  %v1722_v7 = vpop.permute.xlu1 %1721  ;;  %v2128_v51 = vpop.permute.xlu0 %2127  ;;  %v8128_v10 = vld [vmem:[#allocation2 + $0x228] ss:$16 sps:$4 sm:$0xff]   ;;  %v8130_v44 = vld [vmem:[#allocation2 + $0x22c] ss:$16 sps:$4 sm:$0xff]   ;;  %vm11968_vm15 = vcmask 867328   ;;  %v11971_v53 = vld [vmem:[#allocation5_spill] sm:$0xff] }
 0x215   : > { %2116 = vst.msk [vmem:[#allocation2 + $0x4e8] sm:$0xff] %vm8490_vm2, %v2112_v24  ;;  %1058 = vst.msk [vmem:[#allocation2 + $0x218] sm:$0xff] %vm8490_vm2, %v1054_v26  ;;  %v1725_v5 = vrot.slane %v1722_v7, 4  ;;  %v2131_v46 = vrot.slane %v2128_v51, 4  ;;  %3653 = vmatprep.subr.bf16.mxu0 %v8130_v44  ;;  %v11972_v52 = vrot.slane %v11971_v53, 4  ;;  %vm11985_vm14 = vcmask 900096  }
 0x216   : > { %3654 = vmatpush1.bf16.msra.mxu0 %v8128_v10 }
 0x217   : > { %v1728_v63 = vsel %vm310_vm1, %v11961_v48, %v1725_v5  ;;  %v2135_v32 = vsel %vm310_vm1, %v11962_v50, %v2131_v46  ;;  %v11974_v46 = vld [vmem:[#allocation6_spill] sm:$0xff]  ;;  %v11976_v50 = vrot.slane %v9349_v38, 4 }
 0x218   : > { %v1729_v37 = vsel %vm475_vm0, %v8866_v15, %v1728_v63  ;;  %v2136_v62 = vsel %vm2133_vm6, %v9220_v60, %v2135_v32  ;;  %v2056_v33 = vpop.permute.xlu1 %2055  ;;  %v1745_v22 = vpop.permute.xlu0 %1744  ;;  %v8131_v6 = vld [vmem:[#allocation2 + $0x108] ss:$16 sps:$4 sm:$0xff]   ;;  %v8133_v0 = vld [vmem:[#allocation2 + $0x10c] ss:$16 sps:$4 sm:$0xff]   ;;  %vm11965_vm6 = vcmask 719872   ;;  %v11975_v48 = vrot.slane %v11974_v46, 4 }
 0x219   : > { %1733 = vst.msk [vmem:[#allocation2 + $0x3e8] sm:$0xff] %vm8490_vm2, %v1729_v37  ;;  %2140 = vst.msk [vmem:[#allocation2 + $0x4f8] sm:$0xff] %vm8490_vm2, %v2136_v62  ;;  %v2059_v34 = vrot.slane %v2056_v33, 4  ;;  %v1748_v47 = vrot.slane %v1745_v22, 4  ;;  %3598 = vmatprep.subr.bf16.mxu1 %v8133_v0  ;;  %v8209_v37 = vld [vmem:[%s11822_s2 + $0x64] ss:$24 sps:$4 sm:$0xff]  }
 0x21a   : > { %3599 = vmatpush2.bf16.msra.mxu1 %v8131_v6 }
 0x21b   : > { %v2063_v15 = vsel %vm310_vm1, %v11963_v55, %v2059_v34  ;;  %v1752_v60 = vsel %vm310_vm1, %v11964_v39, %v1748_v47 }
 0x21c   : > { %v2064_v11 = vsel %vm2061_vm3, %v9262_v54, %v2063_v15  ;;  %v1753_v40 = vsel %vm11965_vm6, %v8877_v1, %v1752_v60  ;;  %v1674_v27 = vpop.permute.xlu1 %1673  ;;  %v2080_v29 = vpop.permute.xlu0 %2079  ;;  %v8134_v43 = vld [vmem:[#allocation2 + $0x208] ss:$16 sps:$4 sm:$0xff]   ;;  %v8136_v45 = vld [vmem:[#allocation2 + $0x20c] ss:$16 sps:$4 sm:$0xff]   ;;  %v11966_v1 = vrot.slane %v8916_v49, 4  ;;  %vm11969_vm3 = vcmask 482304  }
 0x21d   : > { %2068 = vst.msk [vmem:[#allocation2 + $0x4c8] sm:$0xff] %vm8490_vm2, %v2064_v11  ;;  %1757 = vst.msk [vmem:[#allocation2 + $0x3f8] sm:$0xff] %vm8490_vm2, %v1753_v40  ;;  %v1677_v25 = vrot.slane %v1674_v27, 4  ;;  %v2083_v19 = vrot.slane %v2080_v29, 4  ;;  %3655 = vmatprep.subr.bf16.mxu0 %v8136_v45  ;;  %v8206_v54 = vld [vmem:[%s11822_s2] ss:$24 sps:$4 sm:$0xff]  }
 0x21e   : > { %3601 = vmatmul.mubr.bf16.vlgmr.msra.gmra.mxu1 %v8206_v54  ;;  %3656 = vmatpush1.bf16.msra.mxu0 %v8134_v43  ;;  %v11978_v15 = vrot.slane %v9377_v28, 4  ;;  %v11979_v60 = vld [vmem:[#allocation7_spill] sm:$0xff]  ;;  %vm11986_vm6 = vcmask 515072  }
 0x21f   : > { %v1681_v8 = vsel %vm310_vm1, %v11966_v1, %v1677_v25  ;;  %v2087_v31 = vsel %vm310_vm1, %v11967_v16, %v2083_v19  ;;  %3610 = vmatprep.mubr.bf16.mxu1 %v8207_v59  ;;  %v11980_v11 = vrot.slane %v11979_v60, 4  ;;  %v11982_v1 = vld [vmem:[#allocation8_spill] sm:$0xff] }
 0x220   : > { %v1682_v23 = vsel %vm11968_vm15, %v8916_v49, %v1681_v8  ;;  %v2088_v14 = vsel %vm11969_vm3, %v9284_v12, %v2087_v31  ;;  %v2008_v2 = vpop.permute.xlu1 %2007  ;;  %v1698_v20 = vpop.permute.xlu0 %1697  ;;  %v8137_v56 = vld [vmem:[#allocation2 + $0x4e8] ss:$16 sps:$4 sm:$0xff]   ;;  %v8139_v21 = vld [vmem:[#allocation2 + $0x4ec] ss:$16 sps:$4 sm:$0xff]   ;;  %v11983_v8 = vrot.slane %v11982_v1, 4  ;;  %v11984_v31 = vrot.slane %v9395_v4, 4 }
 0x221   : > { %1686 = vst.msk [vmem:[#allocation2 + $0x3c8] sm:$0xff] %vm8490_vm2, %v1682_v23  ;;  %2092 = vst.msk [vmem:[#allocation2 + $0x4d8] sm:$0xff] %vm8490_vm2, %v2088_v14  ;;  %v2011_v42 = vrot.slane %v2008_v2, 4  ;;  %v1701_v36 = vrot.slane %v1698_v20, 4  ;;  %3714 = vmatprep.subr.bf16.mxu1 %v8139_v21  ;;  %v8211_v23 = vld [vmem:[%s11822_s2 + $0x94] ss:$24 sps:$4 sm:$0xff]  }
 0x222   : > { %3715 = vmatpush1.bf16.msra.mxu1 %v8137_v56  ;;  %vm11991_vm15 = vcmask 662528   ;;  %vm11992_vm3 = vcmask 891904  }
 0x223   : > { %v2015_v49 = vsel %vm310_vm1, %v11970_v61, %v2011_v42  ;;  %v1705_v12 = vsel %vm310_vm1, %v11972_v52, %v1701_v36 }
 0x224   : > { %v2016_v35 = vsel %vm2013_vm4, %v9326_v18, %v2015_v49  ;;  %v1706_v24 = vsel %vm11973_vm5, %v11971_v53, %v1705_v12  ;;  %v1626_v26 = vpop.permute.xlu1 %1625  ;;  %v2032_v7 = vpop.permute.xlu0 %2031  ;;  %v8140_v51 = vld [vmem:[#allocation2 + $0x3e8] ss:$16 sps:$4 sm:$0xff]   ;;  %v8142_v10 = vld [vmem:[#allocation2 + $0x3ec] ss:$16 sps:$4 sm:$0xff]   ;;  %vm11977_vm4 = vcmask 883712   ;;  %v11989_v12 = vld [vmem:[#allocation9_spill] sm:$0xff] }
 0x225   : > { %2020 = vst.msk [vmem:[#allocation2 + $0x4a8] sm:$0xff] %vm8490_vm2, %v2016_v35  ;;  %1710 = vst.msk [vmem:[#allocation2 + $0x3d8] sm:$0xff] %vm8490_vm2, %v1706_v24  ;;  %v1629_v44 = vrot.slane %v1626_v26, 4  ;;  %v2035_v5 = vrot.slane %v2032_v7, 4  ;;  %3657 = vmatprep.subr.bf16.mxu0 %v8142_v10  ;;  %v8208_v18 = vld [vmem:[%s11822_s2 + $0x30] ss:$24 sps:$4 sm:$0xff]  }
 0x226   : > { %3611 = vmatmul.mubr.bf16.gmra.mxu1 %v8208_v18  ;;  %3658 = vmatpush2.bf16.msra.mxu0 %v8140_v51  ;;  %v11987_v49 = vld [vmem:[#allocation20_spill] sm:$0xff]  ;;  %v11990_v35 = vrot.slane %v11989_v12, 4  ;;  %vm11997_vm5 = vcmask 916480  }
 0x227   : > { %v1633_v63 = vsel %vm310_vm1, %v11975_v48, %v1629_v44  ;;  %v2039_v32 = vsel %vm310_vm1, %v11976_v50, %v2035_v5  ;;  %3620 = vmatprep.mubr.bf16.mxu1 %v8209_v37  ;;  %v11988_v53 = vrot.slane %v11987_v49, 4  ;;  %v11993_v48 = vld [vmem:[#allocation10_spill] sm:$0xff] }
 0x228   : > { %v1634_v62 = vsel %vm11977_vm4, %v11974_v46, %v1633_v63  ;;  %v2040_v33 = vsel %vm2037_vm8, %v9349_v38, %v2039_v32  ;;  %v1960_v22 = vpop.permute.xlu1 %1959  ;;  %v1650_v6 = vpop.permute.xlu0 %1649  ;;  %v8143_v0 = vld [vmem:[#allocation2 + $0x4c8] ss:$16 sps:$4 sm:$0xff]   ;;  %v8145_v34 = vld [vmem:[#allocation2 + $0x4cc] ss:$16 sps:$4 sm:$0xff]   ;;  %vm11981_vm8 = vcmask 875520   ;;  %v11994_v63 = vrot.slane %v11993_v48, 4 }
 0x229   : > { %1638 = vst.msk [vmem:[#allocation2 + $0x3a8] sm:$0xff] %vm8490_vm2, %v1634_v62  ;;  %2044 = vst.msk [vmem:[#allocation2 + $0x4b8] sm:$0xff] %vm8490_vm2, %v2040_v33  ;;  %v1963_v47 = vrot.slane %v1960_v22, 4  ;;  %v1653_v55 = vrot.slane %v1650_v6, 4  ;;  %3716 = vmatprep.subr.bf16.mxu1 %v8145_v34  ;;  %v8212_v46 = vld [vmem:[%s11822_s2 + $0x90] ss:$24 sps:$4 sm:$0xff]  }
 0x22a   : > { %3717 = vmatpush1.bf16.msra.mxu1 %v8143_v0  ;;  %v11995_v32 = vld [vmem:[#allocation21_spill] sm:$0xff]  ;;  %vm12001_vm4 = vcmask 678912  }
 0x22b   : > { %v1967_v39 = vsel %vm310_vm1, %v11978_v15, %v1963_v47  ;;  %v1657_v38 = vsel %vm310_vm1, %v11980_v11, %v1653_v55  ;;  %v11996_v37 = vrot.slane %v11995_v32, 4  ;;  %v8213_v33 = vld [vmem:[%s11822_s2 + $0x14] ss:$24 sps:$4 sm:$0xff]  }
 0x22c   : > { %v1968_v40 = vsel %vm1965_vm7, %v9377_v28, %v1967_v39  ;;  %v1658_v27 = vsel %vm11981_vm8, %v11979_v60, %v1657_v38  ;;  %v1578_v29 = vpop.permute.xlu1 %1577  ;;  %v1984_v43 = vpop.permute.xlu0 %1983  ;;  %v8146_v45 = vld [vmem:[#allocation2 + $0x3c8] ss:$16 sps:$4 sm:$0xff]   ;;  %v8148_v25 = vld [vmem:[#allocation2 + $0x3cc] ss:$16 sps:$4 sm:$0xff]   ;;  %v3953_v11 = vld [vmem:[%s11529_s5 + $0x10] sm:$0xff]  ;;  %v11998_v38 = vrot.slane %v9441_v57, 4 }
 0x22d   : > { %1972 = vst.msk [vmem:[#allocation2 + $0x488] sm:$0xff] %vm8490_vm2, %v1968_v40  ;;  %1662 = vst.msk [vmem:[#allocation2 + $0x3b8] sm:$0xff] %vm8490_vm2, %v1658_v27  ;;  %v1581_v19 = vrot.slane %v1578_v29, 4  ;;  %v1987_v54 = vrot.slane %v1984_v43, 4  ;;  %3659 = vmatprep.subr.bf16.mxu0 %v8148_v25  ;;  %v8210_v28 = vld [vmem:[%s11822_s2 + $0x60] ss:$24 sps:$4 sm:$0xff]   ;;  %3967 = vperm.xlu0 %8031, %v3953_v11  }
 0x22e   : > { %3621 = vmatmul.mubr.bf16.gmra.mxu1 %v8210_v28  ;;  %3660 = vmatpush2.bf16.msra.mxu0 %v8146_v45  ;;  %v3954_v60 = vld [vmem:[%s11529_s5 + $0x18] sm:$0xff]  ;;  %v11999_v27 = vld [vmem:[#allocation11_spill] sm:$0xff]  ;;  %vm12002_vm8 = vcmask 908288  }
 0x22f   : > { %v1585_v16 = vsel %vm310_vm1, %v11983_v8, %v1581_v19  ;;  %v1991_v59 = vsel %vm310_vm1, %v11984_v31, %v1987_v54  ;;  %3630 = vmatprep.mubr.bf16.mxu1 %v8211_v23  ;;  %3972 = vperm.xlu1 %8030, %v3954_v60   ;;  %v12000_v29 = vrot.slane %v11999_v27, 4  ;;  %v3952_v31 = vld [vmem:[%s11529_s5 + $0x8] sm:$0xff] }
 0x230   : > { %v1586_v14 = vsel %vm11985_vm14, %v11982_v1, %v1585_v16  ;;  %v1992_v2 = vsel %vm11986_vm6, %v9395_v4, %v1991_v59  ;;  %v1913_v20 = vpop.permute.xlu1 %1912  ;;  %v1602_v56 = vpop.permute.xlu0 %1601  ;;  %v8149_v21 = vld [vmem:[#allocation2 + $0x4a8] ss:$16 sps:$4 sm:$0xff]   ;;  %v8151_v42 = vld [vmem:[#allocation2 + $0x4ac] ss:$16 sps:$4 sm:$0xff]   ;;  %vm12007_vm14 = vcmask 7168   ;;  %vm12008_vm6 = vcmask 670720  }
 0x231   : > { %1590 = vst.msk [vmem:[#allocation2 + $0x388] sm:$0xff] %vm8490_vm2, %v1586_v14  ;;  %1996 = vst.msk [vmem:[#allocation2 + $0x498] sm:$0xff] %vm8490_vm2, %v1992_v2  ;;  %v1916_v36 = vrot.slane %v1913_v20, 4  ;;  %v1605_v61 = vrot.slane %v1602_v56, 4  ;;  %3718 = vmatprep.subr.bf16.mxu1 %v8151_v42  ;;  %v12003_v59 = vld [vmem:[#allocation12_spill] sm:$0xff]  ;;  %v12005_v2 = vld [vmem:[#allocation22_spill] sm:$0xff] }
 0x232   : > { %3719 = vmatpush1.bf16.msra.mxu1 %v8149_v21  ;;  %v12004_v23 = vrot.slane %v12003_v59, 4  ;;  %v12006_v20 = vrot.slane %v12005_v2, 4 }
 0x233   : > { %v1920_v52 = vsel %vm310_vm1, %v11988_v53, %v1916_v36  ;;  %v1609_v4 = vsel %vm310_vm1, %v11990_v35, %v1605_v61  ;;  %3962 = vperm.xlu1 %8030, %v3952_v31   ;;  %v12009_v35 = vld [vmem:[#allocation24_spill] sm:$0xff] }
 0x234   : > { %v1921_v24 = vsel %vm11991_vm15, %v11987_v49, %v1920_v52  ;;  %v1610_v26 = vsel %vm11992_vm3, %v11989_v12, %v1609_v4  ;;  %v1530_v7 = vpop.permute.xlu1 %1529  ;;  %v1937_v51 = vpop.permute.xlu0 %1936  ;;  %v8152_v10 = vld [vmem:[#allocation2 + $0x3a8] ss:$16 sps:$4 sm:$0xff]   ;;  %v8154_v44 = vld [vmem:[#allocation2 + $0x3ac] ss:$16 sps:$4 sm:$0xff]   ;;  %v12010_v4 = vrot.slane %v12009_v35, 4  ;;  %vm12013_vm15 = vcmask 687104  }
 0x235   : > { %1925 = vst.msk [vmem:[#allocation2 + $0x468] sm:$0xff] %vm8490_vm2, %v1921_v24  ;;  %1614 = vst.msk [vmem:[#allocation2 + $0x398] sm:$0xff] %vm8490_vm2, %v1610_v26  ;;  %v1533_v5 = vrot.slane %v1530_v7, 4  ;;  %v1940_v18 = vrot.slane %v1937_v51, 4  ;;  %3661 = vmatprep.subr.bf16.mxu0 %v8154_v44  ;;  %v12011_v26 = vld [vmem:[#allocation23_spill] sm:$0xff]  ;;  %vm12014_vm3 = vcmask 695296  }
 0x236   : > { %3631 = vmatmul.mubr.bf16.gmra.mxu1 %v8212_v46  ;;  %3662 = vmatpush2.bf16.msra.mxu0 %v8152_v10  ;;  %v12012_v7 = vrot.slane %v12011_v26, 4 }
 0x237   : > { %v1537_v50 = vsel %vm310_vm1, %v11994_v63, %v1533_v5  ;;  %v1943_v62 = vsel %vm310_vm1, %v11996_v37, %v1940_v18  ;;  %7507 = vmatprep.mubr.msk.bf16.mxu1 %vm1339_vm10, %v8213_v33  ;;  %v12017_v33 = vld [vmem:[#allocation13_spill] sm:$0xff] }
 0x238   : > { %v1538_v22 = vsel %vm11997_vm5, %v11993_v48, %v1537_v50  ;;  %v1944_v6 = vsel %vm691_vm9, %v11995_v32, %v1943_v62  ;;  %v1865_v0 = vpop.permute.xlu1 %1864  ;;  %v1554_v34 = vpop.permute.xlu0 %1553  ;;  %v8155_v47 = vld [vmem:[#allocation2 + $0x488] ss:$16 sps:$4 sm:$0xff]   ;;  %v8157_v55 = vld [vmem:[#allocation2 + $0x48c] ss:$16 sps:$4 sm:$0xff]   ;;  %vm12019_vm5 = vcmask 15360  }
 0x239   : > { %1542 = vst.msk [vmem:[#allocation2 + $0x368] sm:$0xff] %vm8490_vm2, %v1538_v22  ;;  %1948 = vst.msk [vmem:[#allocation2 + $0x478] sm:$0xff] %vm8490_vm2, %v1944_v6  ;;  %v1868_v15 = vrot.slane %v1865_v0, 4  ;;  %v1557_v39 = vrot.slane %v1554_v34, 4  ;;  %3720 = vmatprep.subr.bf16.mxu1 %v8157_v55  ;;  %v12015_v32 = vld [vmem:[#allocation14_spill] sm:$0xff]  ;;  %v12018_v22 = vrot.slane %v12017_v33, 4 }
 0x23a   : > { %3721 = vmatpush1.bf16.msra.mxu1 %v8155_v47  ;;  %v12016_v37 = vrot.slane %v12015_v32, 4 }
 0x23b   : > { %v1872_v40 = vsel %vm310_vm1, %v11998_v38, %v1868_v15  ;;  %v1561_v43 = vsel %vm310_vm1, %v12000_v29, %v1557_v39 }
 0x23c   : > { %v1873_v45 = vsel %vm12001_vm4, %v9441_v57, %v1872_v40  ;;  %v1562_v25 = vsel %vm12002_vm8, %v11999_v27, %v1561_v43  ;;  %v1502_v19 = vpop.permute.xlu1 %1501  ;;  %v1889_v54 = vpop.permute.xlu0 %1888  ;;  %v8158_v28 = vld [vmem:[#allocation2 + $0x388] ss:$16 sps:$4 sm:$0xff]   ;;  %v8160_v1 = vld [vmem:[#allocation2 + $0x38c] ss:$16 sps:$4 sm:$0xff]   ;;  %v3951_v57 = vld [vmem:[%s11529_s5] sm:$0xff]  ;;  %vm12020_vm4 = vcmask 23552  }
 0x23d   : > { %1877 = vst.msk [vmem:[#allocation2 + $0x448] sm:$0xff] %vm8490_vm2, %v1873_v45  ;;  %1566 = vst.msk [vmem:[#allocation2 + $0x378] sm:$0xff] %vm8490_vm2, %v1562_v25  ;;  %v1505_v8 = vrot.slane %v1502_v19, 4  ;;  %v1892_v16 = vrot.slane %v1889_v54, 4  ;;  %3663 = vmatprep.subr.bf16.mxu0 %v8160_v1  ;;  %3957 = vperm.xlu0 %8031, %v3951_v57   ;;  %v12021_v27 = vrot.slane %v9499_v13, 4  ;;  %v12022_v43 = vrot.slane %v9488_v30, 4 }
 0x23e   : > { %3664 = vmatpush2.bf16.msra.mxu0 %v8158_v28  ;;  %v12023_v57 = vld [vmem:[#allocation16_spill] sm:$0xff] }
 0x23f   : > { %v1509_v14 = vsel %vm310_vm1, %v12004_v23, %v1505_v8  ;;  %v1896_v56 = vsel %vm310_vm1, %v12006_v20, %v1892_v16  ;;  %v12025_v23 = vld [vmem:[#allocation15_spill] sm:$0xff] }
 0x240   : > { %v1510_v21 = vsel %vm12007_vm14, %v12003_v59, %v1509_v14  ;;  %v1897_v42 = vsel %vm12008_vm6, %v12005_v2, %v1896_v56  ;;  %v1841_v36 = vpop.permute.xlu1 %1840  ;;  %v1817_v61 = vpop.permute.xlu0 %1816  ;;  %v8161_v49 = vld [vmem:[#allocation2 + $0x468] ss:$16 sps:$4 sm:$0xff]   ;;  %v8163_v53 = vld [vmem:[#allocation2 + $0x46c] ss:$16 sps:$4 sm:$0xff]   ;;  %v12024_v59 = vrot.slane %v12023_v57, 4 }
 0x241   : > { %1514 = vst.msk [vmem:[#allocation2 + $0x348] sm:$0xff] %vm8490_vm2, %v1510_v21  ;;  %1901 = vst.msk [vmem:[#allocation2 + $0x458] sm:$0xff] %vm8490_vm2, %v1897_v42  ;;  %v1844_v52 = vrot.slane %v1841_v36, 4  ;;  %v1820_v12 = vrot.slane %v1817_v61, 4  ;;  %3722 = vmatprep.subr.bf16.mxu1 %v8163_v53  ;;  %v12029_v61 = vrot.slane %v9510_v9, 4 }
 0x242   : > { %3723 = vmatpush1.bf16.msra.mxu1 %v8161_v49 }
 0x243   : > { %v1848_v24 = vsel %vm310_vm1, %v12010_v4, %v1844_v52  ;;  %v1824_v51 = vsel %vm310_vm1, %v12012_v7, %v1820_v12 }
 0x244   : > { %v1849_v10 = vsel %vm12013_vm15, %v12009_v35, %v1848_v24  ;;  %v1825_v44 = vsel %vm12014_vm3, %v12011_v26, %v1824_v51  ;;  %v1478_v5 = vpop.permute.xlu1 %1477  ;;  %v1454_v18 = vpop.permute.xlu0 %1453  ;;  %v8164_v46 = vld [vmem:[#allocation2 + $0x368] ss:$16 sps:$4 sm:$0xff]   ;;  %v8166_v48 = vld [vmem:[#allocation2 + $0x36c] ss:$16 sps:$4 sm:$0xff]   ;;  %vm12103_vm15 = vcmask 261120  }
 0x245   : > { %1853 = vst.msk [vmem:[#allocation2 + $0x438] sm:$0xff] %vm8490_vm2, %v1849_v10  ;;  %1829 = vst.msk [vmem:[#allocation2 + $0x428] sm:$0xff] %vm8490_vm2, %v1825_v44  ;;  %v1481_v63 = vrot.slane %v1478_v5, 4  ;;  %v1457_v50 = vrot.slane %v1454_v18, 4  ;;  %3665 = vmatprep.subr.bf16.mxu0 %v8166_v48  ;;  %v3383_v24 = vpop.f32.mrf.mxu0  ;;  %v8215_v5 = vld [vmem:[%s11822_s2 + $0x3c] ss:$24 sps:$4 sm:$0xff]  }
 0x246   : > { %3666 = vmatpush2.bf16.msra.mxu0 %v8164_v46  ;;  %v8216_v18 = vld [vmem:[%s11822_s2 + $0x10] ss:$24 sps:$4 sm:$0xff]   ;;  %v8217_v48 = vld [vmem:[%s11822_s2 + $0x44] ss:$24 sps:$4 sm:$0xff]   ;;  %vm12104_vm3 = vmmov %vm12103_vm15 }
 0x247   : > { %v1485_v62 = vsel %vm310_vm1, %v12016_v37, %v1481_v63  ;;  %v1461_v6 = vsel %vm310_vm1, %v12018_v22, %v1457_v50  ;;  %v3385_v44 = vpop.f32.mrf.mxu0  ;;  %v12030_v63 = vld [vmem:[#allocation17_spill] sm:$0xff]  ;;  %v8219_v37 = vld [vmem:[%s11822_s2 + $0x40] ss:$24 sps:$4 sm:$0xff]  }
 0x248   : > { %v1486_v0 = vsel %vm12019_vm5, %v12015_v32, %v1485_v62  ;;  %v1462_v34 = vsel %vm12020_vm4, %v12017_v33, %v1461_v6  ;;  %v1793_v47 = vpop.permute.xlu1 %1792  ;;  %v1769_v55 = vpop.permute.xlu0 %1768  ;;  %v8167_v15 = vld [vmem:[#allocation2 + $0x348] ss:$16 sps:$4 sm:$0xff]   ;;  %v8169_v39 = vld [vmem:[#allocation2 + $0x34c] ss:$16 sps:$4 sm:$0xff]   ;;  %vm12105_vm5 = vcmask 1031168  }
 0x249   : > { %1490 = vst.msk [vmem:[#allocation2 + $0x338] sm:$0xff] %vm8490_vm2, %v1486_v0  ;;  %1466 = vst.msk [vmem:[#allocation2 + $0x328] sm:$0xff] %vm8490_vm2, %v1462_v34  ;;  %v1796_v60 = vrot.slane %v1793_v47, 4  ;;  %v1772_v11 = vrot.slane %v1769_v55, 4  ;;  %v8170_v38 = vld [vmem:[#allocation2 + $0x448] ss:$16 sps:$4 sm:$0xff]   ;;  %3667 = vmatprep.subr.bf16.mxu0 %v8169_v39  ;;  %v3387_v46 = vpop.f32.mrf.mxu0  ;;  %v3456_v47 = vpop.f32.mrf.mxu1 }
 0x24a   : > { %v8172_v40 = vld [vmem:[#allocation2 + $0x44c] ss:$16 sps:$4 sm:$0xff]   ;;  %3668 = vmatpush2.bf16.msra.mxu0 %v8167_v15  ;;  %v12032_v55 = vld [vmem:[#allocation19_spill] sm:$0xff]  ;;  %v12033_v39 = vmov 0   ;;  %vm12106_vm4 = vmmov %vm12105_vm5 }
 0x24b   : > { %v1800_v29 = vsel %vm310_vm1, %v12021_v27, %v1796_v60  ;;  %v1776_v45 = vsel %vm310_vm1, %v12022_v43, %v1772_v11  ;;  %3724 = vmatprep.subr.bf16.mxu1 %v8172_v40  ;;  %v3389_v50 = vpop.f32.mrf.mxu0  ;;  %v8218_v32 = vld [vmem:[%s11822_s2 + $0x6c] ss:$24 sps:$4 sm:$0xff]   ;;  %v12031_v22 = vld [vmem:[#allocation18_spill] sm:$0xff]  ;;  %v3458_v60 = vpop.f32.mrf.mxu1 }
 0x24c   : > { %v1801_v25 = vsel %vm1798_vm12, %v9499_v13, %v1800_v29  ;;  %v1777_v19 = vsel %vm1774_vm11, %v9488_v30, %v1776_v45  ;;  %v1430_v54 = vpop.permute.xlu1 %1429  ;;  %v1406_v28 = vpop.permute.xlu0 %1405  ;;  %3725 = vmatpush1.bf16.msra.mxu1 %v8170_v38  ;;  %v8173_v16 = vld [vmem:[#allocation2 + $0x428] ss:$16 sps:$4 sm:$0xff]   ;;  %v8175_v31 = vld [vmem:[#allocation2 + $0x42c] ss:$16 sps:$4 sm:$0xff]   ;;  %v12026_v30 = vrot.slane %v12025_v23, 4  ;;  %vm12027_vm11 = vcmask 31744  }
 0x24d   : > { %1805 = vst.msk [vmem:[#allocation2 + $0x418] sm:$0xff] %vm8490_vm2, %v1801_v25  ;;  %1781 = vst.msk [vmem:[#allocation2 + $0x408] sm:$0xff] %vm8490_vm2, %v1777_v19  ;;  %v1433_v1 = vrot.slane %v1430_v54, 4  ;;  %v1409_v8 = vrot.slane %v1406_v28, 4  ;;  %3726 = vmatprep.subr.bf16.mxu1 %v8175_v31  ;;  %vm12028_vm12 = vcmask 39936   ;;  %v3393_v62 = vpop.f32.mrf.mxu0  ;;  %v3460_v40 = vpop.f32.mrf.mxu1 }
 0x24e   : > { %v8220_v33 = vld [vmem:[%s11822_s2 + $0x74] ss:$24 sps:$4 sm:$0xff]  }
 0x24f   : > { %v1437_v13 = vsel %vm310_vm1, %v12024_v59, %v1433_v1  ;;  %v1413_v14 = vsel %vm310_vm1, %v12026_v30, %v1409_v8  ;;  %v3395_v6 = vpop.f32.mrf.mxu0  ;;  %v8221_v0 = vld [vmem:[%s11822_s2 + $0x9c] ss:$24 sps:$4 sm:$0xff]   ;;  %v3462_v27 = vpop.f32.mrf.mxu1 }
 0x250   : > { %v1438_v2 = vsel %vm12027_vm11, %v12023_v57, %v1437_v13  ;;  %v1414_v20 = vsel %vm12028_vm12, %v12025_v23, %v1413_v14  ;;  %v2152_v56 = vpop.permute.xlu0 %2151  ;;  %v8176_v21 = vld [vmem:[#allocation2 + $0x328] ss:$16 sps:$4 sm:$0xff]   ;;  %3727 = vmatpush1.bf16.msra.mxu1 %v8173_v16  ;;  %v8178_v36 = vld [vmem:[#allocation2 + $0x32c] ss:$16 sps:$4 sm:$0xff]   ;;  %vm12107_vm11 = vmmov %vm12104_vm3 }
 0x251   : > { %1442 = vst.msk [vmem:[#allocation2 + $0x318] sm:$0xff] %vm8490_vm2, %v1438_v2  ;;  %1418 = vst.msk [vmem:[#allocation2 + $0x308] sm:$0xff] %vm8490_vm2, %v1414_v20  ;;  %v2155_v42 = vrot.slane %v2152_v56, 4  ;;  %3669 = vmatprep.subr.bf16.mxu0 %v8178_v36  ;;  %v3397_v34 = vpop.f32.mrf.mxu0  ;;  %v3466_v45 = vpop.f32.mrf.mxu1 }
 0x252   : > { %3670 = vmatpush2.bf16.msra.mxu0 %v8176_v21  ;;  %vm12108_vm12 = vmmov %vm12106_vm4 }
 0x253   : > { %v2158_v49 = vsel %vm310_vm1, %v12029_v61, %v2155_v42  ;;  %v3399_v15 = vpop.f32.mrf.mxu0  ;;  %v3468_v54 = vpop.f32.mrf.mxu1 }
 0x254   : > { %v2159_v53 = vsel %vm907_vm13, %v9510_v9, %v2158_v49  ;;  %v8179_v52 = vld [vmem:[#allocation2 + $0x408] ss:$16 sps:$4 sm:$0xff]   ;;  %v8181_v12 = vld [vmem:[#allocation2 + $0x40c] ss:$16 sps:$4 sm:$0xff]  }
 0x255   : > { %2163 = vst.msk [vmem:[#allocation2 + $0x508] sm:$0xff] %vm8490_vm2, %v2159_v53  ;;  %3728 = vmatprep.subr.bf16.mxu1 %v8181_v12  ;;  %v8214_v9 = vld [vmem:[%s11822_s2 + $0x8] ss:$24 sps:$4 sm:$0xff]   ;;  %v3403_v11 = vpop.f32.mrf.mxu0  ;;  %v3470_v1 = vpop.f32.mrf.mxu1  ;;  %s12059_s2 = smov 52  }
 0x256   : > { %3729 = vmatpush1.bf16.msra.mxu1 %v8179_v52 }
 0x257   : > { %v3472_v59 = vpop.f32.mrf.mxu1 }
 0x258   : > { %v8182_v35 = vld [vmem:[#allocation2 + $0x308] ss:$16 sps:$4 sm:$0xff]   ;;  %v8184_v4 = vld [vmem:[#allocation2 + $0x30c] ss:$16 sps:$4 sm:$0xff]  }
 0x259   : > { %3671 = vmatprep.subr.bf16.mxu0 %v8184_v4  ;;  %v10113_v38 = vpop.permute.xlu1 %2390  ;;  %v3476_v2 = vpop.f32.mrf.mxu1 }
 0x25a   : > { %3672 = vmatpush2.bf16.msra.mxu0 %v8182_v35 }
 0x25b   : > { %v3478_v61 = vpop.f32.mrf.mxu1 }
 0x25c   : > { %v2349_v26 = vld [vmem:[#allocation2 + $0x508] sm:$0xff] }
 0x25d   : > { %v7500_v7 = vcombine.high %v2349_v26, %v2349_v26  ;;  %v7499_v51 = vcombine.low %v2349_v26, %v2349_v26  ;;  %3674 = vmatmul.mubr.bf16.vlgmr.msra.gmra.mxu0 %v8214_v9  ;;  %v10115_v43 = vpop.permute.xlu1 %2380 }
 0x25e   : > { %3683 = vmatprep.mubr.bf16.mxu0 %v8215_v5 }
 0x25f   : > { %7506 = vmatprep.subr.msk.bf16.mxu1 %vm310_vm1, %v7500_v7  ;;  %v3344_v10 = vsel %vm310_vm1, %v7499_v51, 0  ;;  %v3480_v51 = vpop.f32.mrf.mxu1  ;;  %vm8320_vm1 = vmmov 0  }
 0x260   : > { %3745 = vmatpush2.bf16.msra.mxu1 %v3344_v10 }
 0x261   : > { %v10119_v19 = vpop.permute.xlu1 %2385 }
 0x263   : > { %3747 = vmatmul.mubr.bf16.vlgmr.msra.gmra.mxu1 %v8216_v18 }
 0x264   : > { %7508 = vmatprep.mubr.msk.bf16.mxu1 %vm1339_vm10, %v8217_v48 }
 0x265   : > { %3684 = vmatmul.mubr.bf16.gmra.mxu0 %v12030_v63  ;;  %v10127_v16 = vpop.permute.xlu1 %2375 }
 0x266   : > { %3693 = vmatprep.mubr.bf16.mxu0 %v8218_v32  ;;  %v3398_v9 = vadd.f32 %v3397_v34, %v10127_v16 }
 0x269   : > { %v10134_v23 = vpop.permute.xlu1 %2365 }
 0x26a   : > { %v3388_v20 = vadd.f32 %v3387_v46, %v10134_v23  ;;  %v3390_v21 = vadd.f32 %v3389_v50, %v10134_v23  ;;  %v3400_v46 = vadd.f32 %v3399_v15, %v10127_v16 }
 0x26b   : > { %3757 = vmatmul.mubr.bf16.gmra.mxu1 %v8219_v37  ;;  %v3482_v37 = vpop.f32.mrf.mxu1 }
 0x26c   : > { %7509 = vmatprep.mubr.msk.bf16.mxu1 %vm1339_vm10, %v8220_v33  ;;  %v3461_v53 = vadd.f32 %v3460_v40, %v3388_v20  ;;  %v3463_v4 = vadd.f32 %v3462_v27, %v3390_v21  ;;  %v3471_v33 = vadd.f32 %v3470_v1, %v3398_v9 }
 0x26d   : > { %3694 = vmatmul.mubr.bf16.gmra.mxu0 %v12031_v22  ;;  %v3486_v40 = vpop.f32.mrf.mxu1 }
 0x26e   : > { %3703 = vmatprep.mubr.bf16.mxu0 %v8221_v0 }
 0x273   : > { %3767 = vmatmul.mubr.bf16.gmra.mxu1 %v9632_v17  ;;  %v3405_v17 = vpop.f32.mrf.mxu0 }
 0x274   : > { %7510 = vmatprep.mubr.msk.bf16.mxu1 %vm1339_vm10, %v9637_v41  ;;  %v10117_v41 = vpop.permute.xlu0 %2395  ;;  %v3406_v34 = vadd.f32 %v3405_v17, %v10115_v43 }
 0x275   : > { %3704 = vmatmul.mubr.bf16.gmra.mxu0 %v12032_v55  ;;  %v3407_v29 = vpop.f32.mrf.mxu0 }
 0x276   : > { %4104 = vmatprep.mubr.bf16.mxu0 %v12033_v39  ;;  %v3479_v1 = vadd.f32 %v3478_v61, %v3406_v34 }
 0x277   : > { %v3409_v25 = vpop.f32.mrf.mxu0 }
 0x279   : > { %v10121_v28 = vpop.f32.mrf.mxu0 }
 0x27b   : > { %3777 = vmatmul.mubr.bf16.gmra.mxu1 %v9682_v58  ;;  %v10123_v58 = vpop.permute.xlu0 %2370  ;;  %v10125_v8 = vpop.f32.mrf.mxu0 }
 0x27c   : > { %4157 = vmatprep.mubr.bf16.mxu1 %v12033_v39  ;;  %v3394_v49 = vadd.f32 %v3393_v62, %v10123_v58  ;;  %v3396_v35 = vadd.f32 %v3395_v6, %v10123_v58  ;;  %v3404_v62 = vadd.f32 %v3403_v11, %v10115_v43 }
 0x27d   : > { %v10131_v57 = vpop.f32.mrf.mxu0 }
 0x27e   : > { %v3467_v10 = vadd.f32 %v3466_v45, %v3394_v49  ;;  %v3469_v48 = vadd.f32 %v3468_v54, %v3396_v35  ;;  %v3477_v27 = vadd.f32 %v3476_v2, %v3404_v62  ;;  %v3408_v45 = vadd.f32 %v3407_v29, %v10119_v19 }
 0x27f   : > { %v10129_v31 = vpop.permute.xlu0 %2360  ;;  %v10137_v14 = vpop.f32.mrf.mxu0  ;;  %v3416_v29 = vadd.f32 %v10125_v8, %v10113_v38 }
 0x280   : > { %v3384_v13 = vadd.f32 %v3383_v24, %v10129_v31  ;;  %v3386_v30 = vadd.f32 %v3385_v44, %v10129_v31 }
 0x282   : > { %v3457_v56 = vadd.f32 %v3456_v47, %v3384_v13  ;;  %v3459_v42 = vadd.f32 %v3458_v60, %v3386_v30  ;;  %v3473_v47 = vadd.f32 %v3472_v59, %v3400_v46  ;;  %v3410_v30 = vadd.f32 %v3409_v25, %v10119_v19 }
 0x283   : > { %v3481_v59 = vadd.f32 %v3480_v51, %v3408_v45 }
 0x284   : > { %v3483_v35 = vadd.f32 %v3482_v37, %v3410_v30 }
 0x29b   : > { %v3529_v36 = vpop.f32.mrf.mxu0 }
 0x29c   : > { %v10142_v52 = vadd.f32 %v3529_v36, %v3457_v56  ;;  %v3414_v36 = vadd.f32 %v10121_v28, %v10113_v38  ;;  %v3420_v28 = vadd.f32 %v10137_v14, %v10117_v41 }
 0x29d   : > { %v3531_v12 = vpop.f32.mrf.mxu0 }
 0x29e   : > { %v10145_v24 = vadd.f32 %v3531_v12, %v3459_v42  ;;  %v3787_v26 = vmax.f32 %v10142_v52, 0.0  ;;  %v3488_v42 = vpop.f32.mrf.mxu1  ;;  %v3487_v9 = vadd.f32 %v3486_v40, %v3414_v36 }
 0x29f   : > { %v3533_v7 = vpop.f32.mrf.mxu0 }
 0x2a0   : > { %v10149_v44 = vadd.f32 %v3533_v7, %v3461_v53  ;;  %v3788_v5 = vmax.f32 %v10145_v24, 0.0  ;;  %v10191_v24 = vld [vmem:[%s11528_s4 + $0x8] sm:$0xff]  }
 0x2a1   : > { %v3535_v18 = vpop.f32.mrf.mxu0 }
 0x2a2   : > { %v10153_v63 = vadd.f32 %v3535_v18, %v3463_v4  ;;  %v3791_v50 = vmax.f32 %v10149_v44, 0.0  ;;  %v3490_v4 = vpop.f32.mrf.mxu1 }
 0x2a3   : > { %v3539_v32 = vpop.f32.mrf.mxu0 }
 0x2a4   : > { %v10157_v22 = vadd.f32 %v3539_v32, %v3467_v10  ;;  %v3792_v6 = vmax.f32 %v10153_v63, 0.0  ;;  %v3418_v10 = vadd.f32 %v10131_v57, %v10117_v41  ;;  %v3492_v8 = vpop.f32.mrf.mxu1 }
 0x2a5   : > { %v3541_v0 = vpop.f32.mrf.mxu0 }
 0x2a6   : > { %v3542_v55 = vadd.f32 %v3541_v0, %v3469_v48  ;;  %v3795_v15 = vmax.f32 %v10157_v22, 0.0  ;;  %v3489_v48 = vadd.f32 %v3488_v42, %v3416_v29  ;;  %v3491_v37 = vadd.f32 %v3490_v4, %v3418_v10 }
 0x2a7   : > { %v3543_v60 = vpop.f32.mrf.mxu0  ;;  %v8228_v42 = vpack.c.bf16 %v3792_v6, %v3788_v5 }
 0x2a8   : > { %v3544_v54 = vadd.f32 %v3543_v60, %v3471_v33  ;;  %v3796_v13 = vmax.f32 %v3542_v55, 0.0 }
 0x2a9   : > { %v3545_v11 = vpop.f32.mrf.mxu0 }
 0x2aa   : > { %v3546_v20 = vadd.f32 %v3545_v11, %v3473_v47  ;;  %v3799_v56 = vmax.f32 %v3544_v54, 0.0  ;;  %v3493_v47 = vadd.f32 %v3492_v8, %v3420_v28 }
 0x2ab   : > { %v3549_v21 = vpop.f32.mrf.mxu0 }
 0x2ac   : > { %v3550_v17 = vadd.f32 %v3549_v21, %v3477_v27  ;;  %v3800_v49 = vmax.f32 %v3546_v20, 0.0  ;;  %v8227_v21 = vpack.c.bf16 %v3799_v56, %v3795_v15 }
 0x2ad   : > { %v3551_v53 = vpop.f32.mrf.mxu0 }
 0x2ae   : > { %v3803_v2 = vmax.f32 %v3550_v17, 0.0  ;;  %v3552_v12 = vadd.f32 %v3551_v53, %v3479_v1  ;;  %v8226_v20 = vpack.c.bf16 %v3800_v49, %v3796_v13  ;;  %v8229_v17 = vpack.c.bf16 %v3791_v50, %v3787_v26 }
 0x2af   : > { %v3553_v61 = vpop.f32.mrf.mxu0 }
 0x2b0   : > { %v3804_v25 = vmax.f32 %v3552_v12, 0.0  ;;  %v3554_v7 = vadd.f32 %v3553_v61, %v3481_v59  ;;  %v10183_v59 = vld [vmem:[%s11528_s4] sm:$0xff]  }
 0x2b1   : > { %v3555_v51 = vpop.f32.mrf.mxu0 }
 0x2b2   : > { %v3807_v18 = vmax.f32 %v3554_v7, 0.0  ;;  %v3556_v46 = vadd.f32 %v3555_v51, %v3483_v35 }
 0x2b3   : > { %v3559_v32 = vpop.f32.mrf.mxu0 }
 0x2b4   : > { %v3808_v62 = vmax.f32 %v3556_v46, 0.0  ;;  %v3560_v33 = vadd.f32 %v3559_v32, %v3487_v9  ;;  %v8225_v30 = vpack.c.bf16 %v3807_v18, %v3803_v2 }
 0x2b5   : > { %v3561_v22 = vpop.f32.mrf.mxu0 }
 0x2b6   : > { %v3811_v0 = vmax.f32 %v3560_v33, 0.0  ;;  %v3562_v34 = vadd.f32 %v3561_v22, %v3489_v48  ;;  %v8224_v1 = vpack.c.bf16 %v3808_v62, %v3804_v25 }
 0x2b7   : > { %v3563_v55 = vpop.f32.mrf.mxu0 }
 0x2b8   : > { %v3812_v60 = vmax.f32 %v3562_v34, 0.0  ;;  %v3564_v40 = vadd.f32 %v3563_v55, %v3491_v37 }
 0x2b9   : > { %v3565_v57 = vpop.f32.mrf.mxu0 }
 0x2ba   : > { %v3815_v27 = vmax.f32 %v3564_v40, 0.0  ;;  %v3566_v45 = vadd.f32 %v3565_v57, %v3493_v47 }
 0x2bc   : > { %v3816_v54 = vmax.f32 %v3566_v45, 0.0  ;;  %v8222_v14 = vpack.c.bf16 %v3815_v27, %v3811_v0 }
 0x2be   : > { %v8223_v11 = vpack.c.bf16 %v3816_v54, %v3812_v60 }
 0x2c0   : > { %4080 = vmatprep.subr.bf16.mxu0 %v8223_v11 }
 0x2c1   : > { %4081 = vmatpush1.bf16.msra.mxu0 %v8222_v14 }
 0x2c2   : > { %4082 = vmatprep.subr.bf16.mxu0 %v8224_v1 }
 0x2c5   : > { %4083 = vmatpush1.bf16.msra.mxu0 %v8225_v30 }
 0x2c6   : > { %4084 = vmatprep.subr.bf16.mxu0 %v8226_v20 }
 0x2c9   : > { %4085 = vmatpush1.bf16.msra.mxu0 %v8227_v21 }
 0x2ca   : > { %4086 = vmatprep.subr.bf16.mxu0 %v8228_v42 }
 0x2cd   : > { %4087 = vmatpush1.bf16.msra.mxu0 %v8229_v17 }
 0x2d0   : > { %7545 = vmatmul.mubr.msk.bf16.vlgmr.msra.gmra.mxu0 %vm1965_vm7, %v10183_v59 }
 0x2d1   : > { %4114 = vmatprep.mubr.bf16.mxu0 %v12033_v39 }
 0x2d8   : > { %7546 = vmatmul.mubr.msk.bf16.gmra.mxu0 %vm1965_vm7, %v10191_v24 }
 0x2d9   : > { %4399 = vmatprep.mubr.bf16.mxu0 %v12033_v39 }
 0x2de   : > { %v3602_v52 = vpop.f32.mrf.mxu1 }
 0x2df   : > { %v3603_v35 = vadd.f32 %v3602_v52, %v10129_v31 }
 0x2e0   : > { %v3604_v26 = vpop.f32.mrf.mxu1 }
 0x2e1   : > { %v3605_v25 = vadd.f32 %v3604_v26, %v10129_v31 }
 0x2e2   : > { %v3606_v44 = vpop.f32.mrf.mxu1 }
 0x2e3   : > { %v3607_v51 = vadd.f32 %v3606_v44, %v10134_v23 }
 0x2e4   : > { %v3608_v5 = vpop.f32.mrf.mxu1 }
 0x2e5   : > { %v3609_v32 = vadd.f32 %v3608_v5, %v10134_v23 }
 0x2e6   : > { %v3612_v63 = vpop.f32.mrf.mxu1 }
 0x2e7   : > { %v3613_v33 = vadd.f32 %v3612_v63, %v10123_v58 }
 0x2e8   : > { %v3614_v50 = vpop.f32.mrf.mxu1 }
 0x2e9   : > { %v3615_v40 = vadd.f32 %v3614_v50, %v10123_v58 }
 0x2ea   : > { %v3616_v6 = vpop.f32.mrf.mxu1 }
 0x2eb   : > { %v3617_v54 = vadd.f32 %v3616_v6, %v10127_v16 }
 0x2ec   : > { %v3618_v15 = vpop.f32.mrf.mxu1 }
 0x2ed   : > { %v3619_v17 = vadd.f32 %v3618_v15, %v10127_v16 }
 0x2ee   : > { %v3622_v13 = vpop.f32.mrf.mxu1 }
 0x2ef   : > { %v3623_v44 = vadd.f32 %v3622_v13, %v10115_v43 }
 0x2f0   : > { %v3624_v56 = vpop.f32.mrf.mxu1 }
 0x2f2   : > { %v3626_v36 = vpop.f32.mrf.mxu1 }
 0x2f4   : > { %v10196_v49 = vpop.f32.mrf.mxu1 }
 0x2f6   : > { %v10198_v53 = vpop.f32.mrf.mxu1 }
 0x2f8   : > { %v10200_v29 = vpop.f32.mrf.mxu1 }
 0x2fa   : > { %v10202_v2 = vpop.f32.mrf.mxu1 }
 0x2fc   : > { %v10205_v61 = vpop.f32.mrf.mxu1 }
 0x31d   : > { %v3675_v12 = vpop.f32.mrf.mxu0 }
 0x31e   : > { %v3676_v7 = vadd.f32 %v3675_v12, %v3603_v35 }
 0x31f   : > { %v3677_v4 = vpop.f32.mrf.mxu0 }
 0x320   : > { %v3678_v28 = vadd.f32 %v3677_v4, %v3605_v25 }
 0x321   : > { %v3679_v9 = vpop.f32.mrf.mxu0 }
 0x322   : > { %v3680_v8 = vadd.f32 %v3679_v9, %v3607_v51 }
 0x323   : > { %v3748_v10 = vpop.f32.mrf.mxu1  ;;  %v3681_v46 = vpop.f32.mrf.mxu0 }
 0x324   : > { %v3749_v18 = vadd.f32 %v3748_v10, %v3676_v7  ;;  %v3682_v34 = vadd.f32 %v3681_v46, %v3609_v32  ;;  %v3625_v7 = vadd.f32 %v3624_v56, %v10115_v43  ;;  %v3627_v10 = vadd.f32 %v3626_v36, %v10119_v19 }
 0x325   : > { %v3750_v48 = vpop.f32.mrf.mxu1  ;;  %v3685_v37 = vpop.f32.mrf.mxu0  ;;  %v3633_v36 = vadd.f32 %v10198_v53, %v10113_v38  ;;  %v3637_v53 = vadd.f32 %v10202_v2, %v10117_v41 }
 0x326   : > { %v3751_v62 = vadd.f32 %v3750_v48, %v3678_v28  ;;  %v3789_v0 = vmax.f32 %v3749_v18, 0.0  ;;  %v3686_v27 = vadd.f32 %v3685_v37, %v3613_v33 }
 0x327   : > { %v3752_v22 = vpop.f32.mrf.mxu1  ;;  %v3687_v55 = vpop.f32.mrf.mxu0 }
 0x328   : > { %v3790_v31 = vmax.f32 %v3751_v62, 0.0  ;;  %v3753_v47 = vadd.f32 %v3752_v22, %v3680_v8  ;;  %v3688_v1 = vadd.f32 %v3687_v55, %v3615_v40  ;;  %v3629_v62 = vadd.f32 %v10196_v49, %v10119_v19 }
 0x329   : > { %v3754_v60 = vpop.f32.mrf.mxu1  ;;  %v3689_v23 = vpop.f32.mrf.mxu0  ;;  %v3635_v19 = vadd.f32 %v10200_v29, %v10113_v38  ;;  %v3639_v38 = vadd.f32 %v10205_v61, %v10117_v41 }
 0x32a   : > { %v7644_v57 = vpack.c.bf16 %v3790_v31, %v3789_v0  ;;  %v3755_v45 = vadd.f32 %v3754_v60, %v3682_v34  ;;  %v3793_v11 = vmax.f32 %v3753_v47, 0.0  ;;  %v3690_v58 = vadd.f32 %v3689_v23, %v3617_v54 }
 0x32b   : > { %v3758_v14 = vpop.f32.mrf.mxu1  ;;  %v3691_v21 = vpop.f32.mrf.mxu0 }
 0x32c   : > { %3916 = vst.msk [vmem:[#allocation3 + $0x8] sm:$0xff] %vm8490_vm2, %v7644_v57  ;;  %v3794_v30 = vmax.f32 %v3755_v45, 0.0  ;;  %v3759_v20 = vadd.f32 %v3758_v14, %v3686_v27  ;;  %v3692_v6 = vadd.f32 %v3691_v21, %v3619_v17 }
 0x32d   : > { %v3760_v42 = vpop.f32.mrf.mxu1  ;;  %v3695_v5 = vpop.f32.mrf.mxu0 }
 0x32e   : > { %v7646_v52 = vpack.c.bf16 %v3794_v30, %v3793_v11  ;;  %v3761_v26 = vadd.f32 %v3760_v42, %v3688_v1  ;;  %v3797_v50 = vmax.f32 %v3759_v20, 0.0  ;;  %v3696_v16 = vadd.f32 %v3695_v5, %v3623_v44 }
 0x32f   : > { %v3762_v63 = vpop.f32.mrf.mxu1  ;;  %v3697_v4 = vpop.f32.mrf.mxu0 }
 0x330   : > { %3918 = vst.msk [vmem:[#allocation3 + $0x18] sm:$0xff] %vm8490_vm2, %v7646_v52  ;;  %v3798_v12 = vmax.f32 %v3761_v26, 0.0  ;;  %v3763_v35 = vadd.f32 %v3762_v63, %v3690_v58  ;;  %v3698_v18 = vadd.f32 %v3697_v4, %v3625_v7 }
 0x331   : > { %v3764_v25 = vpop.f32.mrf.mxu1  ;;  %v3699_v51 = vpop.f32.mrf.mxu0 }
 0x332   : > { %v7648_v9 = vpack.c.bf16 %v3798_v12, %v3797_v50  ;;  %v3765_v15 = vadd.f32 %v3764_v25, %v3692_v6  ;;  %v3801_v28 = vmax.f32 %v3763_v35, 0.0  ;;  %v3700_v56 = vadd.f32 %v3699_v51, %v3627_v10  ;;  %v10252_v51 = vpop.permute.xlu1 %3972 }
 0x333   : > { %v3768_v13 = vpop.f32.mrf.mxu1  ;;  %v3701_v32 = vpop.f32.mrf.mxu0 }
 0x334   : > { %3920 = vst.msk [vmem:[#allocation3 + $0x28] sm:$0xff] %vm8490_vm2, %v7648_v9  ;;  %v3802_v46 = vmax.f32 %v3765_v15, 0.0  ;;  %v3769_v48 = vadd.f32 %v3768_v13, %v3696_v16  ;;  %v3702_v34 = vadd.f32 %v3701_v32, %v3629_v62  ;;  %v4196_v16 = vlaneseq  ;;  %v10248_v15 = vpop.permute.xlu0 %3967 }
 0x335   : > { %v3770_v8 = vpop.f32.mrf.mxu1  ;;  %v3705_v37 = vpop.f32.mrf.mxu0 }
 0x336   : > { %v7650_v43 = vpack.c.bf16 %v3802_v46, %v3801_v28  ;;  %v3771_v33 = vadd.f32 %v3770_v8, %v3698_v18  ;;  %v3805_v0 = vmax.f32 %v3769_v48, 0.0  ;;  %v3706_v40 = vadd.f32 %v3705_v37, %v3633_v36 }
 0x337   : > { %v3772_v22 = vpop.f32.mrf.mxu1  ;;  %v3707_v55 = vpop.f32.mrf.mxu0  ;;  %v8200_v7 = vld [vmem:[#allocation3 + $0xc] ss:$16 sps:$4 sm:$0xff]   ;;  %v8198_v9 = vld [vmem:[#allocation3 + $0x8] ss:$16 sps:$4 sm:$0xff]   ;;  %v10250_v10 = vshrl.u32 %v4196_v16, 7 }
 0x338   : > { %3922 = vst.msk [vmem:[#allocation3 + $0x38] sm:$0xff] %vm8490_vm2, %v7650_v43  ;;  %v3806_v31 = vmax.f32 %v3771_v33, 0.0  ;;  %v3773_v47 = vadd.f32 %v3772_v22, %v3700_v56  ;;  %v3708_v23 = vadd.f32 %v3707_v55, %v3635_v19  ;;  %v10256_v18 = vpop.permute.xlu0 %3957  ;;  %v10267_v56 = vpop.permute.xlu1 %3962 }
 0x339   : > { %v3774_v60 = vpop.f32.mrf.mxu1  ;;  %v3709_v27 = vpop.f32.mrf.mxu0  ;;  %v4198_v13 = vsub.s32 0, %v10250_v10  ;;  %v4202_v28 = vsub.s32 1, %v10250_v10 }
 0x33a   : > { %v7652_v49 = vpack.c.bf16 %v3806_v31, %v3805_v0  ;;  %v3775_v57 = vadd.f32 %v3774_v60, %v3702_v34  ;;  %v3809_v54 = vmax.f32 %v3773_v47, 0.0  ;;  %v3710_v20 = vadd.f32 %v3709_v27, %v3637_v53 }
 0x33b   : > { %v3778_v45 = vpop.f32.mrf.mxu1  ;;  %v3711_v1 = vpop.f32.mrf.mxu0 }
 0x33c   : > { %3924 = vst.msk [vmem:[#allocation3 + $0x48] sm:$0xff] %vm8490_vm2, %v7652_v49  ;;  %v3810_v14 = vmax.f32 %v3775_v57, 0.0  ;;  %v3779_v11 = vadd.f32 %v3778_v45, %v3706_v40  ;;  %v3712_v17 = vadd.f32 %v3711_v1, %v3639_v38 }
 0x33d   : > { %v3780_v30 = vpop.f32.mrf.mxu1 }
 0x33e   : > { %v7654_v29 = vpack.c.bf16 %v3810_v14, %v3809_v54  ;;  %v3781_v21 = vadd.f32 %v3780_v30, %v3708_v23  ;;  %v3813_v2 = vmax.f32 %v3779_v11, 0.0 }
 0x33f   : > { %v3782_v42 = vpop.f32.mrf.mxu1  ;;  %v8197_v4 = vld [vmem:[#allocation3 + $0x2c] ss:$16 sps:$4 sm:$0xff]   ;;  %v8195_v25 = vld [vmem:[#allocation3 + $0x28] ss:$16 sps:$4 sm:$0xff]  }
 0x340   : > { %3926 = vst.msk [vmem:[#allocation3 + $0x58] sm:$0xff] %vm8490_vm2, %v7654_v29  ;;  %v3814_v52 = vmax.f32 %v3781_v21, 0.0  ;;  %v3783_v58 = vadd.f32 %v3782_v42, %v3710_v20 }
 0x341   : > { %v3784_v26 = vpop.f32.mrf.mxu1 }
 0x342   : > { %v7656_v44 = vpack.c.bf16 %v3814_v52, %v3813_v2  ;;  %v3785_v5 = vadd.f32 %v3784_v26, %v3712_v17  ;;  %v3817_v63 = vmax.f32 %v3783_v58, 0.0 }
 0x344   : > { %3928 = vst.msk [vmem:[#allocation3 + $0x68] sm:$0xff] %vm8490_vm2, %v7656_v44  ;;  %v3818_v50 = vmax.f32 %v3785_v5, 0.0  ;;  %v4206_v5 = vsub.s32 2, %v10250_v10 }
 0x346   : > { %v7658_v41 = vpack.c.bf16 %v3818_v50, %v3817_v63  ;;  %v4210_v63 = vsub.s32 3, %v10250_v10 }
 0x347   : > { %v8194_v12 = vld [vmem:[#allocation3 + $0x4c] ss:$16 sps:$4 sm:$0xff]   ;;  %v8192_v35 = vld [vmem:[#allocation3 + $0x48] ss:$16 sps:$4 sm:$0xff]  }
 0x348   : > { %3930 = vst.msk [vmem:[#allocation3 + $0x78] sm:$0xff] %vm8490_vm2, %v7658_v41 }
 0x34f   : > { %v8189_v61 = vld [vmem:[#allocation3 + $0x68] ss:$16 sps:$4 sm:$0xff]   ;;  %v8191_v6 = vld [vmem:[#allocation3 + $0x6c] ss:$16 sps:$4 sm:$0xff]  }
 0x350   : > { %4133 = vmatprep.subr.bf16.mxu1 %v8191_v6 }
 0x351   : > { %4134 = vmatpush1.bf16.msra.mxu1 %v8189_v61 }
 0x352   : > { %4135 = vmatprep.subr.bf16.mxu1 %v8194_v12 }
 0x355   : > { %4136 = vmatpush1.bf16.msra.mxu1 %v8192_v35 }
 0x356   : > { %4137 = vmatprep.subr.bf16.mxu1 %v8197_v4 }
 0x359   : > { %4138 = vmatpush1.bf16.msra.mxu1 %v8195_v25 }
 0x35a   : > { %4139 = vmatprep.subr.bf16.mxu1 %v8200_v7 }
 0x35d   : > { %4140 = vmatpush1.bf16.msra.mxu1 %v8198_v9 }
 0x360   : > { %7547 = vmatmul.mubr.msk.bf16.vlgmr.msra.gmra.mxu1 %vm1965_vm7, %v10183_v59  ;;  %v10261_v59 = vld [vmem:[%s12034_s1] sm:$0xf]  ;;  %s12058_s1 = smov 53  }
 0x361   : > { %4167 = vmatprep.mubr.bf16.mxu1 %v12033_v39  ;;  %v4199_v8 = vrot.slane %v10261_v59, %v4198_v13  ;;  %v4203_v43 = vrot.slane %v10261_v59, %v4202_v28  ;;  %v4207_v35 = vrot.slane %v10261_v59, %v4206_v5  ;;  %v4211_v25 = vrot.slane %v10261_v59, %v4210_v63 }
 0x368   : > { %7548 = vmatmul.mubr.msk.bf16.gmra.mxu1 %vm1965_vm7, %v10191_v24 }
 0x390   : > { %v4106_v46 = vpop.f32.mrf.mxu0 }
 0x391   : > { %v4107_v24 = vadd.f32 %v4106_v46, %v10256_v18 }
 0x392   : > { %v4108_v48 = vpop.f32.mrf.mxu0 }
 0x393   : > { %v4178_v32 = vmax.f32 %v4107_v24, 0.0  ;;  %v4109_v62 = vadd.f32 %v4108_v48, %v10256_v18 }
 0x394   : > { %v4110_v33 = vpop.f32.mrf.mxu0 }
 0x395   : > { %v4179_v36 = vmax.f32 %v4109_v62, 0.0  ;;  %v4111_v37 = vadd.f32 %v4110_v33, %v10267_v56  ;;  %v4216_v0 = vmul.f32 %v4199_v8, %v4178_v32 }
 0x396   : > { %v4112_v22 = vpop.f32.mrf.mxu0 }
 0x397   : > { %v4217_v34 = vmul.f32 %v4203_v43, %v4179_v36  ;;  %v4182_v31 = vmax.f32 %v4111_v37, 0.0  ;;  %v4113_v47 = vadd.f32 %v4112_v22, %v10267_v56 }
 0x398   : > { %v4116_v55 = vpop.f32.mrf.mxu0 }
 0x399   : > { %v4183_v60 = vmax.f32 %v4113_v47, 0.0  ;;  %v4117_v19 = vadd.f32 %v4116_v55, %v10248_v15  ;;  %v4220_v40 = vmul.f32 %v4199_v8, %v4182_v31 }
 0x39a   : > { %v4118_v49 = vpop.f32.mrf.mxu0 }
 0x39b   : > { %v4221_v57 = vmul.f32 %v4203_v43, %v4183_v60  ;;  %v4186_v53 = vmax.f32 %v4117_v19, 0.0  ;;  %v4119_v27 = vadd.f32 %v4118_v49, %v10248_v15  ;;  %v10279_v21 = vpack.c.bf16 %v4220_v40, %v4216_v0 }
 0x39c   : > { %v4120_v45 = vpop.f32.mrf.mxu0 }
 0x39d   : > { %v4187_v54 = vmax.f32 %v4119_v27, 0.0  ;;  %v4121_v23 = vadd.f32 %v4120_v45, %v10252_v51  ;;  %v10274_v11 = vpack.c.bf16 %v4221_v57, %v4217_v34  ;;  %v4224_v1 = vmul.f32 %v4199_v8, %v4186_v53 }
 0x39e   : > { %v4122_v14 = vpop.f32.mrf.mxu0 }
 0x39f   : > { %v4225_v30 = vmul.f32 %v4203_v43, %v4187_v54  ;;  %v4190_v38 = vmax.f32 %v4121_v23, 0.0  ;;  %v4123_v29 = vadd.f32 %v4122_v14, %v10252_v51  ;;  %4337 = vrot.lane.b32.xlu0 %v10274_v11, %s12035_s18 }
 0x3a1   : > { %v4191_v20 = vmax.f32 %v4123_v29, 0.0  ;;  %v4228_v42 = vmul.f32 %v4199_v8, %v4190_v38 }
 0x3a3   : > { %v4229_v2 = vmul.f32 %v4203_v43, %v4191_v20  ;;  %4335 = vrot.lane.b32.xlu0 %v10279_v21, %s12035_s18  ;;  %v10283_v17 = vpack.c.bf16 %v4228_v42, %v4224_v1 }
 0x3a5   : > { %v10285_v52 = vpack.c.bf16 %v4229_v2, %v4225_v30 }
 0x3a7   : > { %4552 = vrot.lane.b32.xlu0 %v10274_v11, %s12036_s15 }
 0x3ab   : > { %4550 = vrot.lane.b32.xlu0 %v10279_v21, %s12036_s15 }
 0x3af   : > { %4669 = vrot.lane.b32.xlu0 %v10274_v11, %s12037_s19 }
 0x3b3   : > { %4667 = vrot.lane.b32.xlu0 %v10279_v21, %s12037_s19 }
 0x3b7   : > { %4786 = vrot.lane.b32.xlu0 %v10274_v11, %s12038_s21 }
 0x3bb   : > { %4784 = vrot.lane.b32.xlu0 %v10279_v21, %s12038_s21 }
 0x3bf   : > { %4903 = vrot.lane.b32.xlu0 %v10274_v11, %s11787_s24 }
 0x3c3   : > { %4901 = vrot.lane.b32.xlu0 %v10279_v21, %s11787_s24 }
 0x3c7   : > { %5020 = vrot.lane.b32.xlu0 %v10274_v11, %s12039_s11 }
 0x3cb   : > { %5018 = vrot.lane.b32.xlu0 %v10279_v21, %s12039_s11 }
 0x3cf   : > { %5137 = vrot.lane.b32.xlu0 %v10274_v11, %s12040_s12 }
 0x3d3   : > { %5135 = vrot.lane.b32.xlu0 %v10279_v21, %s12040_s12 }
 0x3d7   : > { %5254 = vrot.lane.b32.xlu0 %v10274_v11, %s12041_s22 }
 0x3db   : > { %5252 = vrot.lane.b32.xlu0 %v10279_v21, %s12041_s22 }
 0x3df   : > { %5371 = vrot.lane.b32.xlu0 %v10274_v11, %s12042_s14 }
 0x3e3   : > { %5369 = vrot.lane.b32.xlu0 %v10279_v21, %s12042_s14 }
 0x3e7   : > { %5488 = vrot.lane.b32.xlu0 %v10274_v11, %s11886_s20 }
 0x3eb   : > { %5486 = vrot.lane.b32.xlu0 %v10279_v21, %s11886_s20 }
 0x3ef   : > { %5605 = vrot.lane.b32.xlu0 %v10274_v11, %s11855_s26 }
 0x3f3   : > { %5603 = vrot.lane.b32.xlu0 %v10279_v21, %s11855_s26 }
 0x3f7   : > { %5722 = vrot.lane.b32.xlu0 %v10274_v11, %s11846_s25 }
 0x3fb   : > { %5720 = vrot.lane.b32.xlu0 %v10279_v21, %s11846_s25 }
 0x3ff   : > { %5839 = vrot.lane.b32.xlu0 %v10274_v11, %s11849_s23 }
 0x403   : > { %5837 = vrot.lane.b32.xlu0 %v10279_v21, %s11849_s23 }
 0x407   : > { %5956 = vrot.lane.b32.xlu0 %v10274_v11, %s11842_s30 }
 0x40b   : > { %5954 = vrot.lane.b32.xlu0 %v10279_v21, %s11842_s30 }
 0x40f   : > { %6073 = vrot.lane.b32.xlu0 %v10274_v11, %s11908_s10 }
 0x411   : > { %v10341_v58 = vpop.permute.xlu0 %4337 }
 0x413   : > { %4345 = vrot.lane.b32.xlu0 %v10285_v52, %s12035_s18 }
 0x415   : > { %v10345_v26 = vpop.permute.xlu0 %4335 }
 0x417   : > { %4343 = vrot.lane.b32.xlu0 %v10283_v17, %s12035_s18 }
 0x419   : > { %v10349_v44 = vpop.permute.xlu0 %4552 }
 0x41b   : > { %4560 = vrot.lane.b32.xlu0 %v10285_v52, %s12036_s15 }
 0x41d   : > { %v10355_v41 = vpop.permute.xlu0 %4550 }
 0x41f   : > { %4558 = vrot.lane.b32.xlu0 %v10283_v17, %s12036_s15 }
 0x420   : > { %v4159_v50 = vpop.f32.mrf.mxu1 }
 0x421   : > { %v4160_v61 = vadd.f32 %v4159_v50, %v10256_v18  ;;  %v10363_v9 = vpop.permute.xlu0 %4669 }
 0x422   : > { %v4161_v6 = vpop.f32.mrf.mxu1 }
 0x423   : > { %v4180_v12 = vmax.f32 %v4160_v61, 0.0  ;;  %v4162_v4 = vadd.f32 %v4161_v6, %v10256_v18  ;;  %4677 = vrot.lane.b32.xlu0 %v10285_v52, %s12037_s19 }
 0x424   : > { %v4163_v7 = vpop.f32.mrf.mxu1 }
 0x425   : > { %v4181_v16 = vmax.f32 %v4162_v4, 0.0  ;;  %v4164_v10 = vadd.f32 %v4163_v7, %v10267_v56  ;;  %v4218_v28 = vmul.f32 %v4207_v35, %v4180_v12  ;;  %v10369_v8 = vpop.permute.xlu0 %4667 }
 0x426   : > { %v4165_v13 = vpop.f32.mrf.mxu1 }
 0x427   : > { %v4219_v46 = vmul.f32 %v4211_v25, %v4181_v16  ;;  %v4184_v24 = vmax.f32 %v4164_v10, 0.0  ;;  %v4166_v48 = vadd.f32 %v4165_v13, %v10267_v56  ;;  %4675 = vrot.lane.b32.xlu0 %v10283_v17, %s12037_s19 }
 0x428   : > { %v4169_v32 = vpop.f32.mrf.mxu1 }
 0x429   : > { %v7660_v18 = vpack.c.bf16 %v4219_v46, %v4218_v28  ;;  %v4185_v59 = vmax.f32 %v4166_v48, 0.0  ;;  %v4170_v62 = vadd.f32 %v4169_v32, %v10248_v15  ;;  %v4222_v33 = vmul.f32 %v4207_v35, %v4184_v24  ;;  %v10377_v0 = vpop.permute.xlu0 %4786 }
 0x42a   : > { %v4171_v43 = vpop.f32.mrf.mxu1 }
 0x42b   : > { %4281 = vst.msk [vmem:[#allocation4 + $0x8] sm:$0xff] %vm8490_vm2, %v7660_v18  ;;  %v4223_v36 = vmul.f32 %v4211_v25, %v4185_v59  ;;  %v4188_v37 = vmax.f32 %v4170_v62, 0.0  ;;  %v4172_v22 = vadd.f32 %v4171_v43, %v10248_v15  ;;  %4794 = vrot.lane.b32.xlu0 %v10285_v52, %s12038_s21 }
 0x42c   : > { %v4173_v56 = vpop.f32.mrf.mxu1 }
 0x42d   : > { %v7662_v34 = vpack.c.bf16 %v4223_v36, %v4222_v33  ;;  %v4189_v31 = vmax.f32 %v4172_v22, 0.0  ;;  %v4174_v47 = vadd.f32 %v4173_v56, %v10252_v51  ;;  %v4226_v60 = vmul.f32 %v4207_v35, %v4188_v37  ;;  %v10385_v15 = vpop.permute.xlu0 %4784 }
 0x42e   : > { %v4175_v55 = vpop.f32.mrf.mxu1 }
 0x42f   : > { %4283 = vst.msk [vmem:[#allocation4 + $0x18] sm:$0xff] %vm8490_vm2, %v7662_v34  ;;  %v4227_v19 = vmul.f32 %v4211_v25, %v4189_v31  ;;  %v4192_v49 = vmax.f32 %v4174_v47, 0.0  ;;  %v4176_v40 = vadd.f32 %v4175_v55, %v10252_v51  ;;  %4792 = vrot.lane.b32.xlu0 %v10283_v17, %s12038_s21  ;;  %v11789_v47 = vmov 0.0  }
 0x430   : > { %7742 = vmatprep.subr.bf16.mxu1 %v11789_v47  ;;  %7746 = vmatprep.mubr.msk.bf16.mxu1 %vm8320_vm1, %v11789_v47 }
 0x431   : > { %v7664_v57 = vpack.c.bf16 %v4227_v19, %v4226_v60  ;;  %v4193_v53 = vmax.f32 %v4176_v40, 0.0  ;;  %v4230_v27 = vmul.f32 %v4207_v35, %v4192_v49  ;;  %v10391_v54 = vpop.permute.xlu0 %4903 }
 0x432   : > { %v4299_v14 = vld [vmem:[#allocation4 + $0x8] sm:$0xff] }
 0x433   : > { %4285 = vst.msk [vmem:[#allocation4 + $0x28] sm:$0xff] %vm8490_vm2, %v7664_v57  ;;  %v4231_v45 = vmul.f32 %v4211_v25, %v4193_v53  ;;  %4911 = vrot.lane.b32.xlu0 %v10285_v52, %s11787_s24 }
 0x435   : > { %v7666_v23 = vpack.c.bf16 %v4231_v45, %v4230_v27  ;;  %v10399_v30 = vpop.permute.xlu0 %4901 }
 0x436   : > { %v4300_v1 = vld [vmem:[#allocation4 + $0x18] sm:$0xff] }
 0x437   : > { %v10395_v51 = vcombine.low %v4299_v14, %v4300_v1  ;;  %4287 = vst.msk [vmem:[#allocation4 + $0x38] sm:$0xff] %vm8490_vm2, %v7666_v23  ;;  %4909 = vrot.lane.b32.xlu0 %v10283_v17, %s11787_s24  ;;  %v10405_v38 = vcombine.high %v4299_v14, %v4300_v1  ;;  %vm12096_vm2 = vcmask 1039360  }
 0x438   : > { %vm12097_vm7 = vmmov %vm12096_vm2 }
 0x439   : > { %4339 = vrot.lane.b32.xlu1 %v10395_v51, %s12035_s18  ;;  %v10407_v29 = vpop.permute.xlu0 %5020  ;;  %vm12098_vm10 = vmmov %vm12096_vm2 }
 0x43a   : > { %v4301_v49 = vld [vmem:[#allocation4 + $0x28] sm:$0xff]  ;;  %vm12099_vm8 = vmmov %vm12096_vm2 }
 0x43b   : > { %5028 = vrot.lane.b32.xlu0 %v10285_v52, %s12039_s11  ;;  %vm12100_vm14 = vmmov %vm12096_vm2 }
 0x43c   : > { %vm12102_vm6 = vmmov %vm12096_vm2 }
 0x43d   : > { %4341 = vrot.lane.b32.xlu1 %v10405_v38, %s12035_s18  ;;  %v10413_v3 = vpop.permute.xlu0 %5018 }
 0x43e   : > { %v4302_v19 = vld [vmem:[#allocation4 + $0x38] sm:$0xff] }
 0x43f   : > { %5026 = vrot.lane.b32.xlu0 %v10283_v17, %s12039_s11  ;;  %v10624_v40 = vcombine.low %v4301_v49, %v4302_v19  ;;  %v10636_v27 = vcombine.high %v4301_v49, %v4302_v19 }
 0x441   : > { %4554 = vrot.lane.b32.xlu1 %v10395_v51, %s12036_s15  ;;  %v10419_v20 = vpop.permute.xlu0 %5137 }
 0x443   : > { %5145 = vrot.lane.b32.xlu0 %v10285_v52, %s12040_s12 }
 0x445   : > { %4556 = vrot.lane.b32.xlu1 %v10405_v38, %s12036_s15  ;;  %v10425_v42 = vpop.permute.xlu0 %5135 }
 0x447   : > { %5143 = vrot.lane.b32.xlu0 %v10283_v17, %s12040_s12 }
 0x449   : > { %4671 = vrot.lane.b32.xlu1 %v10395_v51, %s12037_s19  ;;  %v10431_v2 = vpop.permute.xlu0 %5254 }
 0x44b   : > { %5262 = vrot.lane.b32.xlu0 %v10285_v52, %s12041_s22 }
 0x44d   : > { %4673 = vrot.lane.b32.xlu1 %v10405_v38, %s12037_s19  ;;  %v10437_v5 = vpop.permute.xlu0 %5252 }
 0x44f   : > { %5260 = vrot.lane.b32.xlu0 %v10283_v17, %s12041_s22 }
 0x451   : > { %4788 = vrot.lane.b32.xlu1 %v10395_v51, %s12038_s21  ;;  %v10443_v63 = vpop.permute.xlu0 %5371 }
 0x452   : > { %12043 = vst [vmem:[#allocation5_spill] sm:$0xff] %v10443_v63 }
 0x453   : > { %5379 = vrot.lane.b32.xlu0 %v10285_v52, %s12042_s14 }
 0x455   : > { %4790 = vrot.lane.b32.xlu1 %v10405_v38, %s12038_s21  ;;  %v10449_v50 = vpop.permute.xlu0 %5369 }
 0x456   : > { %12044 = vst [vmem:[#allocation6_spill] sm:$0xff] %v10449_v50 }
 0x457   : > { %5377 = vrot.lane.b32.xlu0 %v10283_v17, %s12042_s14 }
 0x459   : > { %4905 = vrot.lane.b32.xlu1 %v10395_v51, %s11787_s24  ;;  %v10455_v61 = vpop.permute.xlu0 %5488 }
 0x45a   : > { %12045 = vst [vmem:[#allocation7_spill] sm:$0xff] %v10455_v61 }
 0x45b   : > { %5496 = vrot.lane.b32.xlu0 %v10285_v52, %s11886_s20 }
 0x45d   : > { %4907 = vrot.lane.b32.xlu1 %v10405_v38, %s11787_s24  ;;  %v10461_v6 = vpop.permute.xlu0 %5486  ;;  %s12056_s24 = smov 55  }
 0x45e   : > { %12046 = vst [vmem:[#allocation8_spill] sm:$0xff] %v10461_v6 }
 0x45f   : > { %5494 = vrot.lane.b32.xlu0 %v10283_v17, %s11886_s20 }
 0x461   : > { %5022 = vrot.lane.b32.xlu1 %v10395_v51, %s12039_s11  ;;  %v10467_v12 = vpop.permute.xlu0 %5605 }
 0x462   : > { %12047 = vst [vmem:[#allocation20_spill] sm:$0xff] %v10467_v12 }
 0x463   : > { %5613 = vrot.lane.b32.xlu0 %v10285_v52, %s11855_s26 }
 0x465   : > { %5024 = vrot.lane.b32.xlu1 %v10405_v38, %s12039_s11  ;;  %v10473_v35 = vpop.permute.xlu0 %5603 }
 0x466   : > { %12048 = vst [vmem:[#allocation9_spill] sm:$0xff] %v10473_v35 }
 0x467   : > { %5611 = vrot.lane.b32.xlu0 %v10283_v17, %s11855_s26 }
 0x469   : > { %5139 = vrot.lane.b32.xlu1 %v10395_v51, %s12040_s12  ;;  %v10479_v4 = vpop.permute.xlu0 %5722 }
 0x46a   : > { %12049 = vst [vmem:[#allocation10_spill] sm:$0xff] %v10479_v4 }
 0x46b   : > { %5730 = vrot.lane.b32.xlu0 %v10285_v52, %s11846_s25 }
 0x46d   : > { %5141 = vrot.lane.b32.xlu1 %v10405_v38, %s12040_s12  ;;  %v10487_v25 = vpop.permute.xlu0 %5720 }
 0x46e   : > { %12050 = vst [vmem:[#allocation21_spill] sm:$0xff] %v10487_v25 }
 0x46f   : > { %5728 = vrot.lane.b32.xlu0 %v10283_v17, %s11846_s25 }
 0x471   : > { %5256 = vrot.lane.b32.xlu1 %v10395_v51, %s12041_s22  ;;  %v10495_v7 = vpop.permute.xlu0 %5839 }
 0x472   : > { %12051 = vst [vmem:[#allocation11_spill] sm:$0xff] %v10495_v7 }
 0x473   : > { %5847 = vrot.lane.b32.xlu0 %v10285_v52, %s11849_s23 }
 0x475   : > { %5258 = vrot.lane.b32.xlu1 %v10405_v38, %s12041_s22  ;;  %v10503_v16 = vpop.permute.xlu0 %5837 }
 0x476   : > { %12052 = vst [vmem:[#allocation12_spill] sm:$0xff] %v10503_v16 }
 0x477   : > { %5845 = vrot.lane.b32.xlu0 %v10283_v17, %s11849_s23 }
 0x479   : > { %5373 = vrot.lane.b32.xlu1 %v10395_v51, %s12042_s14  ;;  %v10511_v10 = vpop.permute.xlu0 %5956 }
 0x47a   : > { %12053 = vst [vmem:[#allocation22_spill] sm:$0xff] %v10511_v10 }
 0x47b   : > { %5964 = vrot.lane.b32.xlu0 %v10285_v52, %s11842_s30 }
 0x47d   : > { %5375 = vrot.lane.b32.xlu1 %v10405_v38, %s12042_s14  ;;  %v10519_v13 = vpop.permute.xlu0 %5954 }
 0x47e   : > { %12054 = vst [vmem:[#allocation24_spill] sm:$0xff] %v10519_v13 }
 0x47f   : > { %5962 = vrot.lane.b32.xlu0 %v10283_v17, %s11842_s30 }
 0x481   : > { %5490 = vrot.lane.b32.xlu1 %v10395_v51, %s11886_s20  ;;  %v10527_v28 = vpop.permute.xlu0 %6073 }
 0x482   : > { %12055 = vst [vmem:[#allocation23_spill] sm:$0xff] %v10527_v28 }
 0x483   : > { %6081 = vrot.lane.b32.xlu0 %v10285_v52, %s11908_s10 }
 0x485   : > { %5492 = vrot.lane.b32.xlu1 %v10405_v38, %s11886_s20  ;;  %v10535_v46 = vpop.permute.xlu0 %4345 }
 0x487   : > { %6079 = vrot.lane.b32.xlu0 %v10283_v17, %s11908_s10 }
 0x489   : > { %5607 = vrot.lane.b32.xlu1 %v10395_v51, %s11855_s26  ;;  %v10543_v24 = vpop.permute.xlu0 %4343 }
 0x48b   : > { %6071 = vrot.lane.b32.xlu0 %v10279_v21, %s11908_s10 }
 0x48d   : > { %5609 = vrot.lane.b32.xlu1 %v10405_v38, %s11855_s26  ;;  %v10551_v48 = vpop.permute.xlu0 %4560 }
 0x48f   : > { %6198 = vrot.lane.b32.xlu0 %v10285_v52, %s12056_s24 }
 0x491   : > { %5724 = vrot.lane.b32.xlu1 %v10395_v51, %s11846_s25  ;;  %v10559_v32 = vpop.permute.xlu0 %4558 }
 0x493   : > { %6196 = vrot.lane.b32.xlu0 %v10283_v17, %s12056_s24 }
 0x495   : > { %5726 = vrot.lane.b32.xlu1 %v10405_v38, %s11846_s25  ;;  %v10569_v59 = vpop.permute.xlu0 %4677 }
 0x497   : > { %6190 = vrot.lane.b32.xlu0 %v10274_v11, %s12056_s24 }
 0x499   : > { %5841 = vrot.lane.b32.xlu1 %v10395_v51, %s11849_s23  ;;  %v10581_v33 = vpop.permute.xlu0 %4675 }
 0x49b   : > { %6188 = vrot.lane.b32.xlu0 %v10279_v21, %s12056_s24 }
 0x49d   : > { %5843 = vrot.lane.b32.xlu1 %v10405_v38, %s11849_s23  ;;  %v10591_v37 = vpop.permute.xlu0 %4794 }
 0x49f   : > { %6315 = vrot.lane.b32.xlu0 %v10285_v52, %s12057_s0 }
 0x4a1   : > { %5958 = vrot.lane.b32.xlu1 %v10395_v51, %s11842_s30  ;;  %v10603_v34 = vpop.permute.xlu0 %4792 }
 0x4a3   : > { %6313 = vrot.lane.b32.xlu0 %v10283_v17, %s12057_s0 }
 0x4a5   : > { %5960 = vrot.lane.b32.xlu1 %v10405_v38, %s11842_s30  ;;  %v10614_v55 = vpop.permute.xlu0 %4911 }
 0x4a7   : > { %6307 = vrot.lane.b32.xlu0 %v10274_v11, %s12057_s0 }
 0x4a9   : > { %6075 = vrot.lane.b32.xlu1 %v10395_v51, %s11908_s10  ;;  %v10630_v53 = vpop.permute.xlu0 %4909 }
 0x4ab   : > { %v10565_v18 = vpop.permute.xlu1 %4339  ;;  %6305 = vrot.lane.b32.xlu0 %v10279_v21, %s12057_s0 }
 0x4ad   : > { %6077 = vrot.lane.b32.xlu1 %v10405_v38, %s11908_s10  ;;  %v10642_v23 = vpop.permute.xlu0 %5028 }
 0x4af   : > { %v10573_v62 = vpop.permute.xlu1 %4341  ;;  %6432 = vrot.lane.b32.xlu0 %v10285_v52, %s12058_s1 }
 0x4b1   : > { %6192 = vrot.lane.b32.xlu1 %v10395_v51, %s12056_s24  ;;  %v10654_v19 = vpop.permute.xlu0 %5026 }
 0x4b3   : > { %v10579_v43 = vpop.permute.xlu1 %4554  ;;  %6430 = vrot.lane.b32.xlu0 %v10283_v17, %s12058_s1 }
 0x4b5   : > { %6194 = vrot.lane.b32.xlu1 %v10405_v38, %s12056_s24  ;;  %v10664_v47 = vpop.permute.xlu0 %5145 }
 0x4b7   : > { %v10587_v36 = vpop.permute.xlu1 %4556  ;;  %6424 = vrot.lane.b32.xlu0 %v10274_v11, %s12058_s1 }
 0x4b9   : > { %6309 = vrot.lane.b32.xlu1 %v10395_v51, %s12057_s0  ;;  %v10676_v10 = vpop.permute.xlu0 %5143 }
 0x4bb   : > { %v10595_v22 = vpop.permute.xlu1 %4671  ;;  %6422 = vrot.lane.b32.xlu0 %v10279_v21, %s12058_s1 }
 0x4bd   : > { %6311 = vrot.lane.b32.xlu1 %v10405_v38, %s12057_s0  ;;  %v10686_v7 = vpop.permute.xlu0 %5262 }
 0x4bf   : > { %v10601_v56 = vpop.permute.xlu1 %4673  ;;  %6549 = vrot.lane.b32.xlu0 %v10285_v52, %s12059_s2 }
 0x4c1   : > { %6426 = vrot.lane.b32.xlu1 %v10395_v51, %s12058_s1  ;;  %v10698_v35 = vpop.permute.xlu0 %5260 }
 0x4c3   : > { %v10609_v31 = vpop.permute.xlu1 %4788  ;;  %6547 = vrot.lane.b32.xlu0 %v10283_v17, %s12059_s2 }
 0x4c5   : > { %6428 = vrot.lane.b32.xlu1 %v10405_v38, %s12058_s1  ;;  %v10708_v6 = vpop.permute.xlu0 %5379 }
 0x4c6   : > { %12065 = vst [vmem:[#allocation17_spill] sm:$0xff] %v10708_v6  ;;  %v4351_v6 = vsel %vm12100_vm14, %v10345_v26, %v10341_v58 }
 0x4c7   : > { %v10618_v60 = vpop.permute.xlu1 %4790  ;;  %6541 = vrot.lane.b32.xlu0 %v10274_v11, %s12059_s2 }
 0x4c9   : > { %6543 = vrot.lane.b32.xlu1 %v10395_v51, %s12059_s2  ;;  %v10720_v50 = vpop.permute.xlu0 %5377 }
 0x4ca   : > { %12068 = vst [vmem:[#allocation25_spill] sm:$0xff] %v10720_v50 }
 0x4cb   : > { %v10626_v57 = vpop.permute.xlu1 %4905  ;;  %6539 = vrot.lane.b32.xlu0 %v10279_v21, %s12059_s2 }
 0x4cd   : > { %4347 = vrot.lane.b32.xlu1 %v10624_v40, %s12035_s18 }
 0x4cf   : > { %v10638_v45 = vpop.permute.xlu1 %4907  ;;  %6666 = vrot.lane.b32.xlu0 %v10285_v52, %s11848_s13 }
 0x4d1   : > { %4349 = vrot.lane.b32.xlu1 %v10636_v27, %s12035_s18  ;;  %s12062_s18 = smov 104  }
 0x4d3   : > { %v10646_v14 = vpop.permute.xlu1 %5022  ;;  %6664 = vrot.lane.b32.xlu0 %v10283_v17, %s11848_s13 }
 0x4d5   : > { %4562 = vrot.lane.b32.xlu1 %v10624_v40, %s12036_s15 }
 0x4d7   : > { %v10652_v1 = vpop.permute.xlu1 %5024  ;;  %6658 = vrot.lane.b32.xlu0 %v10274_v11, %s11848_s13 }
 0x4d9   : > { %4564 = vrot.lane.b32.xlu1 %v10636_v27, %s12036_s15 }
 0x4db   : > { %v10660_v49 = vpop.permute.xlu1 %5139  ;;  %6656 = vrot.lane.b32.xlu0 %v10279_v21, %s11848_s13 }
 0x4dd   : > { %4679 = vrot.lane.b32.xlu1 %v10624_v40, %s12037_s19 }
 0x4df   : > { %v10668_v28 = vpop.permute.xlu1 %5141  ;;  %6783 = vrot.lane.b32.xlu0 %v10285_v52, %s11853_s16 }
 0x4e1   : > { %4681 = vrot.lane.b32.xlu1 %v10636_v27, %s12037_s19 }
 0x4e3   : > { %v10674_v13 = vpop.permute.xlu1 %5256  ;;  %6781 = vrot.lane.b32.xlu0 %v10283_v17, %s11853_s16 }
 0x4e5   : > { %4796 = vrot.lane.b32.xlu1 %v10624_v40, %s12038_s21 }
 0x4e7   : > { %v10682_v16 = vpop.permute.xlu1 %5258  ;;  %6775 = vrot.lane.b32.xlu0 %v10274_v11, %s11853_s16 }
 0x4e8   : > { %12060 = vst [vmem:[#allocation14_spill] sm:$0xff] %v10682_v16 }
 0x4e9   : > { %4798 = vrot.lane.b32.xlu1 %v10636_v27, %s12038_s21 }
 0x4eb   : > { %v10690_v25 = vpop.permute.xlu1 %5373  ;;  %6773 = vrot.lane.b32.xlu0 %v10279_v21, %s11853_s16 }
 0x4ec   : > { %12061 = vst [vmem:[#allocation13_spill] sm:$0xff] %v10690_v25 }
 0x4ed   : > { %4913 = vrot.lane.b32.xlu1 %v10624_v40, %s12062_s18 }
 0x4ef   : > { %v10696_v4 = vpop.permute.xlu1 %5375  ;;  %6900 = vrot.lane.b32.xlu0 %v10285_v52, %s11844_s29 }
 0x4f0   : > { %12063 = vst [vmem:[#allocation16_spill] sm:$0xff] %v10696_v4 }
 0x4f1   : > { %4915 = vrot.lane.b32.xlu1 %v10636_v27, %s12062_s18 }
 0x4f3   : > { %v10704_v12 = vpop.permute.xlu1 %5490  ;;  %6898 = vrot.lane.b32.xlu0 %v10283_v17, %s11844_s29 }
 0x4f4   : > { %12064 = vst [vmem:[#allocation15_spill] sm:$0xff] %v10704_v12 }
 0x4f5   : > { %5030 = vrot.lane.b32.xlu1 %v10624_v40, %s12039_s11 }
 0x4f7   : > { %v10712_v61 = vpop.permute.xlu1 %5492  ;;  %6892 = vrot.lane.b32.xlu0 %v10274_v11, %s11844_s29 }
 0x4f8   : > { %12066 = vst [vmem:[#allocation18_spill] sm:$0xff] %v10712_v61  ;;  %v10730_v61 = vpop.permute.xlu0 %5496 }
 0x4f9   : > { %5032 = vrot.lane.b32.xlu1 %v10636_v27, %s12039_s11  ;;  %12070 = vst [vmem:[#allocation27_spill] sm:$0xff] %v10730_v61 }
 0x4fb   : > { %v10718_v4 = vpop.permute.xlu1 %5607  ;;  %6890 = vrot.lane.b32.xlu0 %v10279_v21, %s11844_s29 }
 0x4fc   : > { %12067 = vst [vmem:[#allocation19_spill] sm:$0xff] %v10718_v4  ;;  %v10742_v25 = vpop.permute.xlu0 %5494 }
 0x4fd   : > { %5147 = vrot.lane.b32.xlu1 %v10624_v40, %s12040_s12  ;;  %12073 = vst [vmem:[#allocation30_spill] sm:$0xff] %v10742_v25 }
 0x4ff   : > { %v10726_v12 = vpop.permute.xlu1 %5609  ;;  %7017 = vrot.lane.b32.xlu0 %v10285_v52, %s11847_s9 }
 0x500   : > { %12069 = vst [vmem:[#allocation26_spill] sm:$0xff] %v10726_v12 }
 0x501   : > { %5149 = vrot.lane.b32.xlu1 %v10636_v27, %s12040_s12 }
 0x503   : > { %v10734_v63 = vpop.permute.xlu1 %5724  ;;  %7015 = vrot.lane.b32.xlu0 %v10283_v17, %s11847_s9 }
 0x504   : > { %12071 = vst [vmem:[#allocation28_spill] sm:$0xff] %v10734_v63  ;;  %v10752_v63 = vpop.permute.xlu0 %5613 }
 0x505   : > { %5264 = vrot.lane.b32.xlu1 %v10624_v40, %s12041_s22  ;;  %12075 = vst [vmem:[#allocation32_spill] sm:$0xff] %v10752_v63 }
 0x507   : > { %v10740_v4 = vpop.permute.xlu1 %5726  ;;  %7009 = vrot.lane.b32.xlu0 %v10274_v11, %s11847_s9 }
 0x508   : > { %12072 = vst [vmem:[#allocation29_spill] sm:$0xff] %v10740_v4  ;;  %v10764_v25 = vpop.permute.xlu0 %5611 }
 0x509   : > { %5266 = vrot.lane.b32.xlu1 %v10636_v27, %s12041_s22  ;;  %12078 = vst [vmem:[#allocation35_spill] sm:$0xff] %v10764_v25 }
 0x50b   : > { %v10748_v12 = vpop.permute.xlu1 %5841  ;;  %7007 = vrot.lane.b32.xlu0 %v10279_v21, %s11847_s9 }
 0x50c   : > { %12074 = vst [vmem:[#allocation31_spill] sm:$0xff] %v10748_v12 }
 0x50d   : > { %5381 = vrot.lane.b32.xlu1 %v10624_v40, %s12042_s14 }
 0x50f   : > { %v10756_v61 = vpop.permute.xlu1 %5843  ;;  %7134 = vrot.lane.b32.xlu0 %v10285_v52, %s11839_s17 }
 0x510   : > { %12076 = vst [vmem:[#allocation33_spill] sm:$0xff] %v10756_v61  ;;  %v10774_v61 = vpop.permute.xlu0 %5730 }
 0x511   : > { %5383 = vrot.lane.b32.xlu1 %v10636_v27, %s12042_s14  ;;  %12080 = vst [vmem:[#allocation37_spill] sm:$0xff] %v10774_v61 }
 0x513   : > { %v10762_v4 = vpop.permute.xlu1 %5958  ;;  %7132 = vrot.lane.b32.xlu0 %v10283_v17, %s11839_s17 }
 0x514   : > { %12077 = vst [vmem:[#allocation34_spill] sm:$0xff] %v10762_v4  ;;  %v10789_v25 = vpop.permute.xlu0 %5728 }
 0x515   : > { %5498 = vrot.lane.b32.xlu1 %v10624_v40, %s11886_s20  ;;  %12083 = vst [vmem:[#allocation40_spill] sm:$0xff] %v10789_v25 }
 0x517   : > { %v10770_v12 = vpop.permute.xlu1 %5960  ;;  %7126 = vrot.lane.b32.xlu0 %v10274_v11, %s11839_s17 }
 0x518   : > { %12079 = vst [vmem:[#allocation36_spill] sm:$0xff] %v10770_v12  ;;  %v7239_v12 = vld [vmem:[%s11531_s7] sm:$0xff] }
 0x519   : > { %5500 = vrot.lane.b32.xlu1 %v10636_v27, %s11886_s20 }
 0x51b   : > { %v10778_v63 = vpop.permute.xlu1 %6075  ;;  %7124 = vrot.lane.b32.xlu0 %v10279_v21, %s11839_s17 }
 0x51c   : > { %12081 = vst [vmem:[#allocation38_spill] sm:$0xff] %v10778_v63  ;;  %v10797_v63 = vpop.permute.xlu0 %5847 }
 0x51d   : > { %5615 = vrot.lane.b32.xlu1 %v10624_v40, %s11855_s26  ;;  %12085 = vst [vmem:[#allocation42_spill] sm:$0xff] %v10797_v63 }
 0x51f   : > { %v10784_v4 = vpop.permute.xlu1 %6077  ;;  %7242 = vperm.xlu0 %8031, %v7239_v12  }
 0x520   : > { %12082 = vst [vmem:[#allocation39_spill] sm:$0xff] %v10784_v4  ;;  %v10805_v50 = vpop.permute.xlu0 %5845 }
 0x521   : > { %5617 = vrot.lane.b32.xlu1 %v10636_v27, %s11855_s26  ;;  %12088 = vst [vmem:[#allocation45_spill] sm:$0xff] %v10805_v50 }
 0x523   : > { %v10793_v61 = vpop.permute.xlu1 %6192 }
 0x524   : > { %12084 = vst [vmem:[#allocation41_spill] sm:$0xff] %v10793_v61  ;;  %v10813_v61 = vpop.permute.xlu0 %5964 }
 0x525   : > { %5732 = vrot.lane.b32.xlu1 %v10624_v40, %s11846_s25  ;;  %12090 = vst [vmem:[#allocation47_spill] sm:$0xff] %v10813_v61 }
 0x527   : > { %v10799_v16 = vpop.permute.xlu1 %6194 }
 0x528   : > { %12086 = vst [vmem:[#allocation43_spill] sm:$0xff] %v10799_v16 }
 0x529   : > { %5734 = vrot.lane.b32.xlu1 %v10636_v27, %s11846_s25 }
 0x52b   : > { %v10803_v4 = vpop.permute.xlu1 %6309 }
 0x52c   : > { %12087 = vst [vmem:[#allocation44_spill] sm:$0xff] %v10803_v4  ;;  %v10821_v4 = vpop.permute.xlu0 %5962 }
 0x52d   : > { %5849 = vrot.lane.b32.xlu1 %v10624_v40, %s11849_s23  ;;  %12093 = vst [vmem:[#allocation50_spill] sm:$0xff] %v10821_v4 }
 0x52f   : > { %v10809_v12 = vpop.permute.xlu1 %6311 }
 0x530   : > { %12089 = vst [vmem:[#allocation46_spill] sm:$0xff] %v10809_v12  ;;  %v10829_v12 = vpop.permute.xlu0 %6081 }
 0x531   : > { %5851 = vrot.lane.b32.xlu1 %v10636_v27, %s11849_s23  ;;  %12095 = vst [vmem:[#allocation52_spill] sm:$0xff] %v10829_v12  ;;  %s12318_s23 = smul.u32 24, %s12320_s28 }
 0x533   : > { %v10815_v63 = vpop.permute.xlu1 %6426 }
 0x534   : > { %12091 = vst [vmem:[#allocation48_spill] sm:$0xff] %v10815_v63  ;;  %v10841_v12 = vpop.permute.xlu0 %6079 }
 0x535   : > { %5966 = vrot.lane.b32.xlu1 %v10624_v40, %s11842_s30 }
 0x537   : > { %v10819_v16 = vpop.permute.xlu1 %6428 }
 0x538   : > { %12092 = vst [vmem:[#allocation49_spill] sm:$0xff] %v10819_v16  ;;  %v4354_v16 = vsel %vm12097_vm7, %v10543_v24, %v10535_v46 }
 0x539   : > { %5968 = vrot.lane.b32.xlu1 %v10636_v27, %s11842_s30 }
 0x53b   : > { %v10825_v50 = vpop.permute.xlu1 %6543 }
 0x53c   : > { %12094 = vst [vmem:[#allocation51_spill] sm:$0xff] %v10825_v50  ;;  %v4352_v50 = vsel %vm12098_vm10, %v10341_v58, %v10565_v18  ;;  %v10860_v58 = vpop.permute.xlu0 %6071  ;;  %vm12111_vm10 = vmmov %vm12104_vm3 }
 0x53d   : > { %6083 = vrot.lane.b32.xlu1 %v10624_v40, %s11908_s10 }
 0x53f   : > { %v4348_v61 = vpop.permute.xlu1 %4347 }
 0x540   : > { %v4355_v63 = vsel %vm12096_vm2, %v10535_v46, %v4348_v61  ;;  %v4567_v46 = vsel %vm12108_vm12, %v10349_v44, %v10579_v43  ;;  %vm12109_vm2 = vmmov %vm12106_vm4  ;;  %vm12120_vm12 = vcmask 1014784  }
 0x541   : > { %6085 = vrot.lane.b32.xlu1 %v10636_v27, %s11908_s10  ;;  %4379 = vmatprep.subr.bf16.mxu0 %v4355_v63  ;;  %v12101_v63 = vmov 0.0   ;;  %vm12110_vm7 = vmmov %vm12109_vm2 }
 0x542   : > { %4380 = vmatpush1.bf16.msra.mxu0 %v4354_v16  ;;  %v7557_v16 = vld [vmem:[%s11530_s6 + $0x4] sm:$0xf] }
 0x543   : > { %v4350_v4 = vpop.permute.xlu1 %4349  ;;  %4381 = vmatprep.subr.bf16.mxu0 %v4352_v50 }
 0x544   : > { %v4356_v25 = vsel %vm12099_vm8, %v4348_v61, %v4350_v4  ;;  %v4353_v61 = vsel %vm12102_vm6, %v10565_v18, %v10573_v62  ;;  %v10876_v4 = vpop.permute.xlu0 %6198  ;;  %vm12112_vm8 = vcmask 1022976   ;;  %vm12114_vm6 = vmmov %vm12109_vm2 }
 0x545   : > { %6200 = vrot.lane.b32.xlu1 %v10624_v40, %s12056_s24  ;;  %7743 = vmatpush3.bf16.msra.mxu1 %v4356_v25  ;;  %v8202_v25 = vld [vmem:[#allocation4 + $0x8] ss:$16 sps:$4 sm:$0xff]   ;;  %vm12113_vm14 = vmmov %vm12112_vm8 }
 0x546   : > { %4382 = vmatpush1.bf16.msra.mxu0 %v4351_v6  ;;  %7744 = vmatprep.subr.bf16.mxu1 %v12101_v63 }
 0x547   : > { %v4563_v50 = vpop.permute.xlu1 %4562  ;;  %4479 = vmatprep.subr.bf16.mxu0 %v10285_v52  ;;  %v8201_v52 = vld [vmem:[#allocation4 + $0x28] ss:$16 sps:$4 sm:$0xff]  }
 0x548   : > { %v4570_v6 = vsel %vm12105_vm5, %v10551_v48, %v4563_v50  ;;  %v10898_v18 = vpop.permute.xlu0 %6196 }
 0x549   : > { %6202 = vrot.lane.b32.xlu1 %v10636_v27, %s12056_s24  ;;  %7566 = vmatmul.mubr.msk.bf16.vlgmr.msra.gmra.mxu0 %vm12103_vm15, %v7557_v16  ;;  %vm12115_vm15 = vmmov %vm12104_vm3 }
 0x54a   : > { %7745 = vmatpush3.bf16.msra.mxu1 %v4353_v61  ;;  %4480 = vmatpush1.bf16.msra.mxu0 %v10283_v17 }
 0x54b   : > { %v4565_v26 = vpop.permute.xlu1 %4564  ;;  %4481 = vmatprep.subr.bf16.mxu0 %v10274_v11  ;;  %7750 = vmatprep.subr.bf16.mxu1 %v12101_v63  ;;  %v4288_v11 = vld [vmem:[%s11530_s6] sm:$0xf] }
 0x54c   : > { %4499 = vmatprep.mubr.bf16.mxu0 %v12033_v39 }
 0x54d   : > { %7747 = vmatmul.mubr.msk.bf16.vlgmr.msra.gmra.mxu1 %vm12104_vm3, %v7557_v16  ;;  %6317 = vrot.lane.b32.xlu1 %v10624_v40, %s12057_s0  ;;  %v7572_v16 = vld [vmem:[%s11530_s6 + $0x8] sm:$0xf]  ;;  %vm12116_vm3 = vmmov %vm12112_vm8 }
 0x54e   : > { %7751 = vmatpush3.bf16.msra.mxu1 %v8201_v52  ;;  %4482 = vmatpush1.bf16.msra.mxu0 %v10279_v21  ;;  %v4569_v21 = vsel %vm12106_vm4, %v10559_v32, %v10551_v48  ;;  %v4566_v48 = vsel %vm12109_vm2, %v10355_v41, %v10349_v44  ;;  %v4571_v32 = vsel %vm12110_vm7, %v4563_v50, %v4565_v26  ;;  %vm12117_vm5 = vmmov %vm12116_vm3  ;;  %v7575_v52 = vld [vmem:[%s11530_s6 + $0xc] sm:$0xf] }
 0x54f   : > { %v4680_v17 = vpop.permute.xlu1 %4679  ;;  %4593 = vmatprep.subr.bf16.mxu0 %v4570_v6  ;;  %7752 = vmatprep.subr.bf16.mxu1 %v12101_v63  ;;  %v4686_v44 = vsel %vm12113_vm14, %v10581_v33, %v10569_v59  ;;  %v4568_v41 = vsel %vm12114_vm6, %v10579_v43, %v10587_v36  ;;  %v4684_v50 = vsel %vm12116_vm3, %v10363_v9, %v10595_v22  ;;  %vm12118_vm4 = vmmov %vm12116_vm3 }
 0x550   : > { %7754 = vmatprep.mubr.msk.bf16.mxu1 %vm8320_vm1, %v12101_v63  ;;  %v4687_v62 = vsel %vm12112_vm8, %v10569_v59, %v4680_v17  ;;  %v10921_v59 = vpop.permute.xlu0 %6190  ;;  %v4683_v43 = vsel %vm12117_vm5, %v10369_v8, %v10363_v9  ;;  %vm12121_vm2 = vmmov %vm12120_vm12 }
 0x551   : > { %6319 = vrot.lane.b32.xlu1 %v10636_v27, %s12057_s0  ;;  %7570 = vmatmul.mubr.msk.bf16.vlgmr.msra.gmra.mxu0 %vm12107_vm11, %v4288_v11  ;;  %vm12119_vm11 = vmmov %vm12111_vm10  ;;  %v4803_v9 = vsel %vm12121_vm2, %v10603_v34, %v10591_v37  ;;  %v7578_v34 = vld [vmem:[%s11530_s6 + $0x10] sm:$0xf] }
 0x552   : > { %7753 = vmatpush3.bf16.msra.mxu1 %v8202_v25  ;;  %4594 = vmatpush1.bf16.msra.mxu0 %v4569_v21  ;;  %vm12122_vm7 = vmmov %vm12116_vm3 }
 0x553   : > { %v4682_v24 = vpop.permute.xlu1 %4681  ;;  %4595 = vmatprep.subr.bf16.mxu0 %v4567_v46  ;;  %7758 = vmatprep.subr.bf16.mxu1 %v12101_v63  ;;  %v4685_v8 = vsel %vm12122_vm7, %v10595_v22, %v10601_v56  ;;  %vm12123_vm8 = vmmov %vm12121_vm2 }
 0x554   : > { %4613 = vmatprep.mubr.bf16.mxu0 %v12033_v39  ;;  %v4688_v33 = vsel %vm12118_vm4, %v4680_v17, %v4682_v24  ;;  %v4801_v17 = vsel %vm12123_vm8, %v10377_v0, %v10609_v31  ;;  %vm12124_vm14 = vmmov %vm12121_vm2  ;;  %v4918_v24 = vsel %vm475_vm0, %v10391_v54, %v10626_v57 }
 0x555   : > { %7755 = vmatmul.mubr.msk.bf16.vlgmr.msra.gmra.mxu1 %vm12111_vm10, %v4288_v11  ;;  %6434 = vrot.lane.b32.xlu1 %v10624_v40, %s12058_s1  ;;  %v10948_v11 = vpop.permute.xlu0 %6188  ;;  %vm12125_vm6 = vmmov %vm12121_vm2 }
 0x556   : > { %7759 = vmatpush3.bf16.msra.mxu1 %v4571_v32  ;;  %4596 = vmatpush1.bf16.msra.mxu0 %v4566_v48  ;;  %vm12127_vm3 = vmmov %vm12121_vm2  ;;  %v7581_v32 = vld [vmem:[%s11530_s6 + $0x14] sm:$0xf] }
 0x557   : > { %v4797_v61 = vpop.permute.xlu1 %4796  ;;  %4710 = vmatprep.subr.bf16.mxu0 %v4687_v62  ;;  %7760 = vmatprep.subr.bf16.mxu1 %v12101_v63  ;;  %v4802_v46 = vsel %vm12127_vm3, %v10609_v31, %v10618_v60  ;;  %vm12128_vm5 = vmmov %vm12111_vm10  ;;  %v4917_v31 = vsel %vm475_vm0, %v10399_v30, %v10391_v54  ;;  %v4919_v30 = vsel %vm475_vm0, %v10626_v57, %v10638_v45 }
 0x558   : > { %7762 = vmatprep.mubr.msk.bf16.mxu1 %vm8320_vm1, %v12101_v63  ;;  %v4804_v36 = vsel %vm12120_vm12, %v10591_v37, %v4797_v61  ;;  %v4800_v37 = vsel %vm12124_vm14, %v10385_v15, %v10377_v0  ;;  %v4920_v15 = vsel %vm475_vm0, %v10630_v53, %v10614_v55  ;;  %vm12129_vm4 = vmmov %vm12128_vm5  ;;  %vm12137_vm14 = vcmask 834560  }
 0x559   : > { %6436 = vrot.lane.b32.xlu1 %v10636_v27, %s12058_s1  ;;  %7573 = vmatmul.mubr.msk.bf16.vlgmr.msra.gmra.mxu0 %vm12115_vm15, %v7572_v16  ;;  %vm12126_vm15 = vmmov %vm12111_vm10  ;;  %v10968_v0 = vpop.permute.xlu0 %6315 }
 0x55a   : > { %7761 = vmatpush3.bf16.msra.mxu1 %v4568_v41  ;;  %4711 = vmatpush1.bf16.msra.mxu0 %v4686_v44  ;;  %vm12132_vm2 = vmmov %vm12129_vm4  ;;  %v7584_v44 = vld [vmem:[%s11530_s6 + $0x18] sm:$0xf] }
 0x55b   : > { %v4799_v26 = vpop.permute.xlu1 %4798  ;;  %4712 = vmatprep.subr.bf16.mxu0 %v4684_v50  ;;  %7766 = vmatprep.subr.bf16.mxu1 %v12101_v63  ;;  %vm12136_vm8 = vmmov %vm12132_vm2 }
 0x55c   : > { %4730 = vmatprep.mubr.bf16.mxu0 %v12033_v39  ;;  %v4805_v22 = vsel %vm12125_vm6, %v4797_v61, %v4799_v26  ;;  %vm12138_vm6 = vmmov %vm12137_vm14 }
 0x55d   : > { %7763 = vmatmul.mubr.msk.bf16.vlgmr.msra.gmra.mxu1 %vm12119_vm11, %v7572_v16  ;;  %6551 = vrot.lane.b32.xlu1 %v10624_v40, %s12059_s2  ;;  %v10993_v60 = vpop.permute.xlu0 %6313  ;;  %vm12130_vm11 = vcmask 842752   ;;  %vm12140_vm3 = vmmov %vm12132_vm2 }
 0x55e   : > { %7767 = vmatpush3.bf16.msra.mxu1 %v4688_v33  ;;  %4713 = vmatpush1.bf16.msra.mxu0 %v4683_v43  ;;  %vm12131_vm12 = vmmov %vm12130_vm11 }
 0x55f   : > { %v4914_v6 = vpop.permute.xlu1 %4913  ;;  %4827 = vmatprep.subr.bf16.mxu0 %v4804_v36  ;;  %7768 = vmatprep.subr.bf16.mxu1 %v12101_v63  ;;  %v5037_v54 = vsel %vm12131_vm12, %v10654_v19, %v10642_v23  ;;  %vm12133_vm7 = vmmov %vm12130_vm11 }
 0x560   : > { %7770 = vmatprep.mubr.msk.bf16.mxu1 %vm8320_vm1, %v12101_v63  ;;  %v4921_v56 = vsel %vm475_vm0, %v10614_v55, %v4914_v6  ;;  %v5035_v16 = vsel %vm12133_vm7, %v10407_v29, %v10646_v14  ;;  %vm12144_vm12 = vmmov %vm12132_vm2 }
 0x561   : > { %6553 = vrot.lane.b32.xlu1 %v10636_v27, %s12059_s2  ;;  %7576 = vmatmul.mubr.msk.bf16.vlgmr.msra.gmra.mxu0 %vm12111_vm10, %v7575_v52 }
 0x562   : > { %7769 = vmatpush3.bf16.msra.mxu1 %v4685_v8  ;;  %4828 = vmatpush1.bf16.msra.mxu0 %v4803_v9  ;;  %v7590_v8 = vld [vmem:[%s11530_s6 + $0x20] sm:$0xf] }
 0x563   : > { %v4916_v25 = vpop.permute.xlu1 %4915  ;;  %4829 = vmatprep.subr.bf16.mxu0 %v4801_v17  ;;  %7774 = vmatprep.subr.bf16.mxu1 %v12101_v63 }
 0x564   : > { %4847 = vmatprep.mubr.bf16.mxu0 %v12033_v39  ;;  %v4922_v55 = vsel %vm475_vm0, %v4914_v6, %v4916_v25  ;;  %vm12134_vm0 = vmmov %vm12133_vm7  ;;  %v12157_v25 = vld [vmem:[#allocation14_spill] sm:$0xff] }
 0x565   : > { %7771 = vmatmul.mubr.msk.bf16.vlgmr.msra.gmra.mxu1 %vm12126_vm15, %v7575_v52  ;;  %6545 = vrot.lane.b32.xlu1 %v10405_v38, %s12059_s2  ;;  %v5034_v57 = vsel %vm12134_vm0, %v10413_v3, %v10407_v29  ;;  %vm12135_vm10 = vmmov %vm12134_vm0  ;;  %v5154_v29 = vsel %vm12138_vm6, %v10676_v10, %v10664_v47 }
 0x566   : > { %7775 = vmatpush3.bf16.msra.mxu1 %v4805_v22  ;;  %4830 = vmatpush1.bf16.msra.mxu0 %v4800_v37  ;;  %vm12139_vm15 = vmmov %vm12134_vm0  ;;  %v12160_v22 = vld [vmem:[#allocation13_spill] sm:$0xff] }
 0x567   : > { %v5031_v21 = vpop.permute.xlu1 %5030  ;;  %4944 = vmatprep.subr.bf16.mxu0 %v4921_v56  ;;  %7776 = vmatprep.subr.bf16.mxu1 %v12101_v63  ;;  %v5036_v3 = vsel %vm12139_vm15, %v10646_v14, %v10652_v1  ;;  %v7587_v1 = vld [vmem:[%s11530_s6 + $0x1c] sm:$0xf]  ;;  %vm12152_vm15 = vmmov %vm12140_vm3  ;;  %v12161_v56 = vld [vmem:[#allocation5_spill] sm:$0xff] }
 0x568   : > { %7778 = vmatprep.mubr.msk.bf16.mxu1 %vm8320_vm1, %v12101_v63  ;;  %v5038_v53 = vsel %vm12130_vm11, %v10642_v23, %v5031_v21  ;;  %v11016_v23 = vpop.permute.xlu0 %6307 }
 0x569   : > { %6668 = vrot.lane.b32.xlu1 %v10624_v40, %s11848_s13  ;;  %7579 = vmatmul.mubr.msk.bf16.vlgmr.msra.gmra.mxu0 %vm12128_vm5, %v7578_v34  ;;  %vm12141_vm5 = vmmov %vm12138_vm6 }
 0x56a   : > { %7777 = vmatpush3.bf16.msra.mxu1 %v4802_v46  ;;  %4945 = vmatpush1.bf16.msra.mxu0 %v4920_v15  ;;  %v5152_v26 = vsel %vm12141_vm5, %v10419_v20, %v10660_v49 }
 0x56b   : > { %v5033_v48 = vpop.permute.xlu1 %5032  ;;  %4946 = vmatprep.subr.bf16.mxu0 %v4918_v24  ;;  %7782 = vmatprep.subr.bf16.mxu1 %v12101_v63 }
 0x56c   : > { %4964 = vmatprep.mubr.bf16.mxu0 %v12033_v39  ;;  %v5039_v45 = vsel %vm12135_vm10, %v5031_v21, %v5033_v48  ;;  %v11043_v50 = vpop.permute.xlu0 %6305  ;;  %vm12148_vm10 = vmmov %vm12140_vm3  ;;  %v12167_v48 = vld [vmem:[#allocation27_spill] sm:$0xff] }
 0x56d   : > { %7779 = vmatmul.mubr.msk.bf16.vlgmr.msra.gmra.mxu1 %vm12129_vm4, %v7578_v34  ;;  %6670 = vrot.lane.b32.xlu1 %v10636_v27, %s11848_s13  ;;  %vm12142_vm4 = vmmov %vm12141_vm5 }
 0x56e   : > { %7783 = vmatpush3.bf16.msra.mxu1 %v4922_v55  ;;  %4947 = vmatpush1.bf16.msra.mxu0 %v4917_v31  ;;  %v5151_v10 = vsel %vm12142_vm4, %v10425_v42, %v10419_v20  ;;  %vm12143_vm11 = vmmov %vm12142_vm4  ;;  %v7593_v55 = vld [vmem:[%s11530_s6 + $0x24] sm:$0xf] }
 0x56f   : > { %v5148_v62 = vpop.permute.xlu1 %5147  ;;  %5061 = vmatprep.subr.bf16.mxu0 %v5038_v53  ;;  %7784 = vmatprep.subr.bf16.mxu1 %v12101_v63  ;;  %vm12147_vm0 = vmmov %vm12142_vm4 }
 0x570   : > { %7786 = vmatprep.mubr.msk.bf16.mxu1 %vm8320_vm1, %v12101_v63  ;;  %v5155_v19 = vsel %vm12137_vm14, %v10664_v47, %v5148_v62  ;;  %v11063_v20 = vpop.permute.xlu0 %6432  ;;  %v5153_v36 = vsel %vm12147_vm0, %v10660_v49, %v10668_v28  ;;  %v12153_v49 = vld [vmem:[#allocation17_spill] sm:$0xff]  ;;  %vm12166_vm0 = vmmov %vm12148_vm10 }
 0x571   : > { %6660 = vrot.lane.b32.xlu1 %v10395_v51, %s11848_s13  ;;  %7582 = vmatmul.mubr.msk.bf16.vlgmr.msra.gmra.mxu0 %vm12132_vm2, %v7581_v32  ;;  %vm12145_vm2 = vcmask 826368  }
 0x572   : > { %7785 = vmatpush3.bf16.msra.mxu1 %v4919_v30  ;;  %5062 = vmatpush1.bf16.msra.mxu0 %v5037_v54  ;;  %vm12146_vm7 = vmmov %vm12145_vm2  ;;  %v12169_v54 = vld [vmem:[#allocation16_spill] sm:$0xff] }
 0x573   : > { %v5150_v61 = vpop.permute.xlu1 %5149  ;;  %5063 = vmatprep.subr.bf16.mxu0 %v5035_v16  ;;  %7790 = vmatprep.subr.bf16.mxu1 %v12101_v63  ;;  %v5271_v42 = vsel %vm12146_vm7, %v10698_v35, %v10686_v7  ;;  %vm12150_vm14 = vmmov %vm12145_vm2 }
 0x574   : > { %5081 = vmatprep.mubr.bf16.mxu0 %v12033_v39  ;;  %v5156_v47 = vsel %vm12143_vm11, %v5148_v62, %v5150_v61  ;;  %v5268_v35 = vsel %vm12150_vm14, %v10437_v5, %v10431_v2  ;;  %vm12151_vm6 = vmmov %vm12145_vm2  ;;  %v11088_v28 = vpop.permute.xlu0 %6430  ;;  %v12172_v61 = vld [vmem:[#allocation15_spill] sm:$0xff] }
 0x575   : > { %7787 = vmatmul.mubr.msk.bf16.vlgmr.msra.gmra.mxu1 %vm12136_vm8, %v7581_v32  ;;  %6662 = vrot.lane.b32.xlu1 %v10405_v38, %s11848_s13  ;;  %vm12149_vm8 = vmmov %vm12145_vm2  ;;  %v12168_v32 = vld [vmem:[#allocation30_spill] sm:$0xff] }
 0x576   : > { %7791 = vmatpush3.bf16.msra.mxu1 %v5039_v45  ;;  %5064 = vmatpush1.bf16.msra.mxu0 %v5034_v57  ;;  %v5269_v52 = vsel %vm12149_vm8, %v10431_v2, %v10674_v13  ;;  %v12155_v2 = vld [vmem:[#allocation25_spill] sm:$0xff]  ;;  %vm12158_vm4 = vmmov %vm12145_vm2  ;;  %v5505_v62 = vsel %vm691_vm9, %v12168_v32, %v12167_v48  ;;  %v12173_v57 = vld [vmem:[#allocation7_spill] sm:$0xff] }
 0x577   : > { %v5265_v41 = vpop.permute.xlu1 %5264  ;;  %5178 = vmatprep.subr.bf16.mxu0 %v5155_v19  ;;  %7792 = vmatprep.subr.bf16.mxu1 %v12101_v63  ;;  %v5270_v37 = vsel %vm12158_vm4, %v10674_v13, %v12157_v25  ;;  %vm12159_vm11 = vmmov %vm12148_vm10  ;;  %v12163_v13 = vld [vmem:[#allocation6_spill] sm:$0xff]  ;;  %v5503_v45 = vsel %vm691_vm9, %v12173_v57, %v12172_v61 }
 0x578   : > { %7794 = vmatprep.mubr.msk.bf16.mxu1 %vm8320_vm1, %v12101_v63  ;;  %v5272_v14 = vsel %vm12145_vm2, %v10686_v7, %v5265_v41  ;;  %v11111_v15 = vpop.permute.xlu0 %6424  ;;  %vm12171_vm8 = vmmov %vm12166_vm0  ;;  %v12202_v32 = vld [vmem:[#allocation42_spill] sm:$0xff] }
 0x579   : > { %6785 = vrot.lane.b32.xlu1 %v10624_v40, %s11853_s16  ;;  %7585 = vmatmul.mubr.msk.bf16.vlgmr.msra.gmra.mxu0 %vm12140_vm3, %v7584_v44  ;;  %vm12154_vm3 = vcmask 818176   ;;  %vm12175_vm14 = vmmov %vm12166_vm0 }
 0x57a   : > { %7793 = vmatpush3.bf16.msra.mxu1 %v5036_v3  ;;  %5179 = vmatpush1.bf16.msra.mxu0 %v5154_v29  ;;  %vm12156_vm5 = vmmov %vm12154_vm3  ;;  %v12176_v3 = vld [vmem:[#allocation32_spill] sm:$0xff] }
 0x57b   : > { %v5267_v43 = vpop.permute.xlu1 %5266  ;;  %5180 = vmatprep.subr.bf16.mxu0 %v5152_v26  ;;  %7798 = vmatprep.subr.bf16.mxu1 %v12101_v63  ;;  %v5388_v5 = vsel %vm12156_vm5, %v12155_v2, %v12153_v49  ;;  %vm12164_vm2 = vmmov %vm12154_vm3 }
 0x57c   : > { %5198 = vmatprep.mubr.bf16.mxu0 %v12033_v39  ;;  %v5273_v7 = vsel %vm12151_vm6, %v5265_v41, %v5267_v43  ;;  %v5385_v46 = vsel %vm12164_vm2, %v12163_v13, %v12161_v56  ;;  %vm12165_vm7 = vmmov %vm12164_vm2  ;;  %v11138_v16 = vpop.permute.xlu0 %6422  ;;  %vm12177_vm6 = vcmask 646144   ;;  %v7596_v43 = vld [vmem:[%s11530_s6 + $0x28] sm:$0xf]  ;;  %v12196_v13 = vld [vmem:[#allocation10_spill] sm:$0xff] }
 0x57d   : > { %7795 = vmatmul.mubr.msk.bf16.vlgmr.msra.gmra.mxu1 %vm12144_vm12, %v7584_v44  ;;  %6787 = vrot.lane.b32.xlu1 %v10636_v27, %s11853_s16  ;;  %vm12162_vm12 = vmmov %vm12154_vm3  ;;  %v12174_v44 = vld [vmem:[#allocation8_spill] sm:$0xff] }
 0x57e   : > { %7799 = vmatpush3.bf16.msra.mxu1 %v5156_v47  ;;  %5181 = vmatpush1.bf16.msra.mxu0 %v5151_v10  ;;  %v5386_v34 = vsel %vm12162_vm12, %v12161_v56, %v12160_v22  ;;  %v5502_v41 = vsel %vm691_vm9, %v12174_v44, %v12173_v57  ;;  %vm12184_vm5 = vmmov %vm12177_vm6  ;;  %vm12190_vm12 = vcmask 637952   ;;  %v12193_v56 = vld [vmem:[#allocation26_spill] sm:$0xff] }
 0x57f   : > { %v5382_v33 = vpop.permute.xlu1 %5381  ;;  %5295 = vmatprep.subr.bf16.mxu0 %v5272_v14  ;;  %7800 = vmatprep.subr.bf16.mxu1 %v12101_v63  ;;  %v12178_v14 = vld [vmem:[#allocation35_spill] sm:$0xff]  ;;  %vm12187_vm4 = vmmov %vm12184_vm5 }
 0x580   : > { %7802 = vmatprep.mubr.msk.bf16.mxu1 %vm8320_vm1, %v12101_v63  ;;  %v5389_v9 = vsel %vm12154_vm3, %v12153_v49, %v5382_v33  ;;  %v11158_v47 = vpop.permute.xlu0 %6549  ;;  %vm12181_vm3 = vmmov %vm12166_vm0 }
 0x581   : > { %6777 = vrot.lane.b32.xlu1 %v10395_v51, %s11853_s16  ;;  %7588 = vmatmul.mubr.msk.bf16.vlgmr.msra.gmra.mxu0 %vm12148_vm10, %v7587_v1  ;;  %vm12170_vm10 = vmmov %vm12164_vm2 }
 0x582   : > { %7801 = vmatpush3.bf16.msra.mxu1 %v5153_v36  ;;  %5296 = vmatpush1.bf16.msra.mxu0 %v5271_v42  ;;  %v5387_v30 = vsel %vm12170_vm10, %v12160_v22, %v12169_v54  ;;  %v12182_v36 = vld [vmem:[#allocation19_spill] sm:$0xff]  ;;  %vm12192_vm2 = vmmov %vm12190_vm12  ;;  %v7602_v54 = vld [vmem:[%s11530_s6 + $0x30] sm:$0xf] }
 0x583   : > { %v5384_v6 = vpop.permute.xlu1 %5383  ;;  %5297 = vmatprep.subr.bf16.mxu0 %v5269_v52  ;;  %7806 = vmatprep.subr.bf16.mxu1 %v12101_v63  ;;  %v12183_v52 = vld [vmem:[#allocation20_spill] sm:$0xff]  ;;  %vm12197_vm10 = vmmov %vm12192_vm2 }
 0x584   : > { %5315 = vmatprep.mubr.bf16.mxu0 %v12033_v39  ;;  %v5390_v24 = vsel %vm12165_vm7, %v5382_v33, %v5384_v6  ;;  %v12180_v33 = vld [vmem:[#allocation18_spill] sm:$0xff]  ;;  %v5620_v6 = vsel %vm12184_vm5, %v12183_v52, %v12182_v36  ;;  %vm12194_vm7 = vmmov %vm12187_vm4 }
 0x585   : > { %7803 = vmatmul.mubr.msk.bf16.vlgmr.msra.gmra.mxu1 %vm12152_vm15, %v7587_v1  ;;  %6779 = vrot.lane.b32.xlu1 %v10405_v38, %s11853_s16  ;;  %vm12179_vm15 = vmmov %vm12177_vm6  ;;  %v5504_v42 = vsel %vm691_vm9, %v12172_v61, %v12180_v33  ;;  %v12204_v61 = vld [vmem:[#allocation45_spill] sm:$0xff] }
 0x586   : > { %7807 = vmatpush3.bf16.msra.mxu1 %v5273_v7  ;;  %5298 = vmatpush1.bf16.msra.mxu0 %v5268_v35  ;;  %v5622_v1 = vsel %vm12179_vm15, %v12178_v14, %v12176_v3  ;;  %v12185_v7 = vld [vmem:[#allocation9_spill] sm:$0xff]  ;;  %vm12203_vm15 = vcmask 629760   ;;  %v12216_v14 = vld [vmem:[#allocation47_spill] sm:$0xff] }
 0x587   : > { %v5499_v17 = vpop.permute.xlu1 %5498  ;;  %5412 = vmatprep.subr.bf16.mxu0 %v5389_v9  ;;  %7808 = vmatprep.subr.bf16.mxu1 %v12101_v63  ;;  %v7605_v33 = vld [vmem:[%s11530_s6 + $0x34] sm:$0xf] }
 0x588   : > { %7810 = vmatprep.mubr.msk.bf16.mxu1 %vm8320_vm1, %v12101_v63  ;;  %v5506_v31 = vsel %vm691_vm9, %v12167_v48, %v5499_v17 }
 0x589   : > { %6902 = vrot.lane.b32.xlu1 %v10624_v40, %s11844_s29  ;;  %7591 = vmatmul.mubr.msk.bf16.vlgmr.msra.gmra.mxu0 %vm12159_vm11, %v7590_v8  ;;  %vm12188_vm11 = vmmov %vm12166_vm0 }
 0x58a   : > { %7809 = vmatpush3.bf16.msra.mxu1 %v5270_v37  ;;  %5413 = vmatpush1.bf16.msra.mxu0 %v5388_v5  ;;  %v7599_v5 = vld [vmem:[%s11530_s6 + $0x2c] sm:$0xf] }
 0x58b   : > { %v5501_v21 = vpop.permute.xlu1 %5500  ;;  %5414 = vmatprep.subr.bf16.mxu0 %v5386_v34  ;;  %7814 = vmatprep.subr.bf16.mxu1 %v12101_v63  ;;  %v12191_v37 = vld [vmem:[#allocation40_spill] sm:$0xff]  ;;  %v5621_v34 = vsel %vm12194_vm7, %v12182_v36, %v12193_v56  ;;  %vm12217_vm7 = vcmask 621568   ;;  %v7608_v56 = vld [vmem:[%s11530_s6 + $0x38] sm:$0xf] }
 0x58c   : > { %5432 = vmatprep.mubr.bf16.mxu0 %v12033_v39  ;;  %v5507_v29 = vsel %vm691_vm9, %v5499_v17, %v5501_v21  ;;  %vm12186_vm9 = vmmov %vm12184_vm5  ;;  %v12189_v17 = vld [vmem:[#allocation37_spill] sm:$0xff]  ;;  %v12195_v21 = vld [vmem:[#allocation28_spill] sm:$0xff] }
 0x58d   : > { %7811 = vmatmul.mubr.msk.bf16.vlgmr.msra.gmra.mxu1 %vm12166_vm0, %v7590_v8  ;;  %6904 = vrot.lane.b32.xlu1 %v10636_v27, %s11844_s29  ;;  %v5619_v49 = vsel %vm12186_vm9, %v12185_v7, %v12183_v52  ;;  %v11183_v8 = vpop.permute.xlu0 %6547  ;;  %v5739_v22 = vsel %vm12192_vm2, %v12191_v37, %v12189_v17  ;;  %vm12207_vm5 = vmmov %vm12192_vm2  ;;  %v12223_v7 = vld [vmem:[#allocation34_spill] sm:$0xff]  ;;  %v12230_v37 = vld [vmem:[#allocation52_spill] sm:$0xff] }
 0x58e   : > { %7815 = vmatpush3.bf16.msra.mxu1 %v5390_v24  ;;  %5415 = vmatpush1.bf16.msra.mxu0 %v5385_v46  ;;  %v5737_v46 = vsel %vm12197_vm10, %v12196_v13, %v12195_v21  ;;  %vm12208_vm9 = vmmov %vm12166_vm0 }
 0x58f   : > { %v5616_v53 = vpop.permute.xlu1 %5615  ;;  %5529 = vmatprep.subr.bf16.mxu0 %v5506_v31  ;;  %7816 = vmatprep.subr.bf16.mxu1 %v12101_v63  ;;  %v12198_v31 = vld [vmem:[#allocation21_spill] sm:$0xff] }
 0x590   : > { %7818 = vmatprep.mubr.msk.bf16.mxu1 %vm8320_vm1, %v12101_v63  ;;  %v5623_v26 = vsel %vm12177_vm6, %v12176_v3, %v5616_v53  ;;  %vm12201_vm6 = vmmov %vm12166_vm0 }
 0x591   : > { %6894 = vrot.lane.b32.xlu1 %v10395_v51, %s11844_s29  ;;  %7594 = vmatmul.mubr.msk.bf16.vlgmr.msra.gmra.mxu0 %vm12171_vm8, %v7593_v55  ;;  %v11206_v48 = vpop.permute.xlu0 %6541  ;;  %vm12199_vm8 = vmmov %vm12192_vm2 }
 0x592   : > { %7817 = vmatpush3.bf16.msra.mxu1 %v5387_v30  ;;  %5530 = vmatpush1.bf16.msra.mxu0 %v5505_v62 }
 0x593   : > { %v5618_v19 = vpop.permute.xlu1 %5617  ;;  %5531 = vmatprep.subr.bf16.mxu0 %v5503_v45  ;;  %7822 = vmatprep.subr.bf16.mxu1 %v12101_v63  ;;  %v12206_v45 = vld [vmem:[#allocation29_spill] sm:$0xff] }
 0x594   : > { %5549 = vmatprep.mubr.bf16.mxu0 %v12033_v39  ;;  %v5624_v9 = vsel %vm12187_vm4, %v5616_v53, %v5618_v19  ;;  %v5738_v19 = vsel %vm12207_vm5, %v12195_v21, %v12206_v45  ;;  %v12231_v21 = vld [vmem:[#allocation36_spill] sm:$0xff] }
 0x595   : > { %7819 = vmatmul.mubr.msk.bf16.vlgmr.msra.gmra.mxu1 %vm12175_vm14, %v7593_v55  ;;  %6896 = vrot.lane.b32.xlu1 %v10405_v38, %s11844_s29  ;;  %v5736_v55 = vsel %vm12199_vm8, %v12198_v31, %v12196_v13  ;;  %vm12200_vm14 = vmmov %vm12192_vm2  ;;  %v11233_v44 = vpop.permute.xlu0 %6539 }
 0x596   : > { %7823 = vmatpush3.bf16.msra.mxu1 %v5507_v29  ;;  %5532 = vmatpush1.bf16.msra.mxu0 %v5502_v41  ;;  %v12209_v41 = vld [vmem:[#allocation31_spill] sm:$0xff]  ;;  %vm12215_vm2 = vmmov %vm12166_vm0 }
 0x597   : > { %v5733_v10 = vpop.permute.xlu1 %5732  ;;  %5646 = vmatprep.subr.bf16.mxu0 %v5623_v26  ;;  %7824 = vmatprep.subr.bf16.mxu1 %v12101_v63  ;;  %v12210_v29 = vld [vmem:[#allocation11_spill] sm:$0xff]  ;;  %vm12222_vm8 = vmmov %vm12215_vm2 }
 0x598   : > { %7826 = vmatprep.mubr.msk.bf16.mxu1 %vm8320_vm1, %v12101_v63  ;;  %v5740_v2 = vsel %vm12190_vm12, %v12189_v17, %v5733_v10 }
 0x599   : > { %7019 = vrot.lane.b32.xlu1 %v10624_v40, %s11847_s9  ;;  %7597 = vmatmul.mubr.msk.bf16.vlgmr.msra.gmra.mxu0 %vm12181_vm3, %v7596_v43  ;;  %vm12205_vm3 = vmmov %vm12203_vm15  ;;  %v11253_v36 = vpop.permute.xlu0 %6666 }
 0x59a   : > { %7825 = vmatpush3.bf16.msra.mxu1 %v5504_v42  ;;  %5647 = vmatpush1.bf16.msra.mxu0 %v5622_v1  ;;  %v5856_v57 = vsel %vm12205_vm3, %v12204_v61, %v12202_v32  ;;  %vm12211_vm4 = vmmov %vm12205_vm3 }
 0x59b   : > { %v5735_v35 = vpop.permute.xlu1 %5734  ;;  %5648 = vmatprep.subr.bf16.mxu0 %v5620_v6  ;;  %7830 = vmatprep.subr.bf16.mxu1 %v12101_v63  ;;  %v5854_v3 = vsel %vm12211_vm4, %v12210_v29, %v12209_v41  ;;  %vm12214_vm12 = vmmov %vm12205_vm3  ;;  %v12220_v6 = vld [vmem:[#allocation33_spill] sm:$0xff] }
 0x59c   : > { %5666 = vmatprep.mubr.bf16.mxu0 %v12033_v39  ;;  %v5741_v53 = vsel %vm12200_vm14, %v5733_v10, %v5735_v35  ;;  %vm12221_vm10 = vmmov %vm12205_vm3 }
 0x59d   : > { %7827 = vmatmul.mubr.msk.bf16.vlgmr.msra.gmra.mxu1 %vm12188_vm11, %v7596_v43  ;;  %7021 = vrot.lane.b32.xlu1 %v10636_v27, %s11847_s9  ;;  %v12212_v43 = vld [vmem:[#allocation12_spill] sm:$0xff]  ;;  %vm12213_vm11 = vmmov %vm12205_vm3  ;;  %v5855_v35 = vsel %vm12221_vm10, %v12209_v41, %v12220_v6 }
 0x59e   : > { %7831 = vmatpush3.bf16.msra.mxu1 %v5624_v9  ;;  %5649 = vmatpush1.bf16.msra.mxu0 %v5619_v49  ;;  %v12224_v49 = vld [vmem:[#allocation22_spill] sm:$0xff]  ;;  %vm12229_vm3 = vmmov %vm12215_vm2 }
 0x59f   : > { %v5850_v25 = vpop.permute.xlu1 %5849  ;;  %5763 = vmatprep.subr.bf16.mxu0 %v5740_v2  ;;  %7832 = vmatprep.subr.bf16.mxu1 %v12101_v63  ;;  %v12226_v2 = vld [vmem:[#allocation24_spill] sm:$0xff]  ;;  %vm12236_vm4 = vmmov %vm12215_vm2 }
 0x5a0   : > { %7834 = vmatprep.mubr.msk.bf16.mxu1 %vm8320_vm1, %v12101_v63  ;;  %v5857_v62 = vsel %vm12203_vm15, %v12202_v32, %v5850_v25  ;;  %vm12244_vm10 = vmmov %vm12215_vm2 }
 0x5a1   : > { %7011 = vrot.lane.b32.xlu1 %v10395_v51, %s11847_s9  ;;  %7600 = vmatmul.mubr.msk.bf16.vlgmr.msra.gmra.mxu0 %vm12166_vm0, %v7599_v5  ;;  %vm12219_vm0 = vmmov %vm12217_vm7 }
 0x5a2   : > { %7833 = vmatpush3.bf16.msra.mxu1 %v5621_v34  ;;  %5764 = vmatpush1.bf16.msra.mxu0 %v5739_v22  ;;  %vm12225_vm14 = vmmov %vm12219_vm0 }
 0x5a3   : > { %v5852_v24 = vpop.permute.xlu1 %5851  ;;  %5765 = vmatprep.subr.bf16.mxu0 %v5737_v46  ;;  %7838 = vmatprep.subr.bf16.mxu1 %v12101_v63  ;;  %v5971_v9 = vsel %vm12225_vm14, %v12224_v49, %v12223_v7  ;;  %vm12228_vm15 = vmmov %vm12219_vm0  ;;  %v12234_v46 = vld [vmem:[#allocation38_spill] sm:$0xff] }
 0x5a4   : > { %5783 = vmatprep.mubr.bf16.mxu0 %v12033_v39  ;;  %v5858_v10 = vsel %vm12214_vm12, %v5850_v25, %v5852_v24  ;;  %v11278_v25 = vpop.permute.xlu0 %6664  ;;  %vm12232_vm5 = vmmov %vm12219_vm0  ;;  %v12235_v24 = vld [vmem:[#allocation23_spill] sm:$0xff] }
 0x5a5   : > { %7835 = vmatmul.mubr.msk.bf16.vlgmr.msra.gmra.mxu1 %vm12201_vm6, %v7599_v5  ;;  %7013 = vrot.lane.b32.xlu1 %v10405_v38, %s11847_s9  ;;  %vm12227_vm6 = vmmov %vm12219_vm0  ;;  %v5972_v13 = vsel %vm12232_vm5, %v12223_v7, %v12231_v21  ;;  %v6088_v31 = vsel %vm907_vm13, %v12235_v24, %v12234_v46  ;;  %v12260_v7 = vld [vmem:[#allocation48_spill] sm:$0xff] }
 0x5a6   : > { %7839 = vmatpush3.bf16.msra.mxu1 %v5741_v53  ;;  %5766 = vmatpush1.bf16.msra.mxu0 %v5736_v55  ;;  %v5970_v5 = vsel %vm12227_vm6, %v12226_v2, %v12224_v49 }
 0x5a7   : > { %v5967_v30 = vpop.permute.xlu1 %5966  ;;  %5880 = vmatprep.subr.bf16.mxu0 %v5857_v62  ;;  %7840 = vmatprep.subr.bf16.mxu1 %v12101_v63 }
 0x5a8   : > { %7842 = vmatprep.mubr.msk.bf16.mxu1 %vm8320_vm1, %v12101_v63  ;;  %v5974_v1 = vsel %vm12217_vm7, %v12216_v14, %v5967_v30  ;;  %v11299_v53 = vpop.permute.xlu0 %6658 }
 0x5a9   : > { %7136 = vrot.lane.b32.xlu1 %v10624_v40, %s11839_s17  ;;  %7603 = vmatmul.mubr.msk.bf16.vlgmr.msra.gmra.mxu0 %vm12208_vm9, %v7602_v54  ;;  %v5853_v40 = vsel %vm12213_vm11, %v12212_v43, %v12210_v29  ;;  %vm12233_vm9 = vmmov %vm12215_vm2  ;;  %vm12237_vm11 = vcmask 449536  }
 0x5aa   : > { %7841 = vmatpush3.bf16.msra.mxu1 %v5738_v19  ;;  %5881 = vmatpush1.bf16.msra.mxu0 %v5856_v57  ;;  %vm12239_vm12 = vmmov %vm12237_vm11  ;;  %v12240_v19 = vld [vmem:[#allocation41_spill] sm:$0xff] }
 0x5ab   : > { %v5969_v26 = vpop.permute.xlu1 %5968  ;;  %5882 = vmatprep.subr.bf16.mxu0 %v5854_v3  ;;  %7846 = vmatprep.subr.bf16.mxu1 %v12101_v63  ;;  %v6207_v57 = vsel %vm12239_vm12, %v10898_v18, %v10876_v4  ;;  %vm12241_vm7 = vmmov %vm12237_vm11 }
 0x5ac   : > { %5900 = vmatprep.mubr.bf16.mxu0 %v12033_v39  ;;  %v11322_v45 = vpop.permute.xlu0 %6656  ;;  %v6205_v41 = vsel %vm12241_vm7, %v10921_v59, %v12240_v19 }
 0x5ad   : > { %7843 = vmatmul.mubr.msk.bf16.vlgmr.msra.gmra.mxu1 %vm12215_vm2, %v7602_v54  ;;  %7138 = vrot.lane.b32.xlu1 %v10636_v27, %s11839_s17  ;;  %v12218_v27 = vld [vmem:[#allocation50_spill] sm:$0xff] }
 0x5ae   : > { %7847 = vmatpush3.bf16.msra.mxu1 %v5858_v10  ;;  %5883 = vmatpush1.bf16.msra.mxu0 %v5853_v40  ;;  %v5973_v52 = vsel %vm12219_vm0, %v12218_v27, %v12216_v14  ;;  %v7611_v54 = vld [vmem:[%s11530_s6 + $0x3c] sm:$0xf]  ;;  %vm12243_vm0 = vmmov %vm12241_vm7  ;;  %v12250_v14 = vld [vmem:[#allocation44_spill] sm:$0xff] }
 0x5af   : > { %v6084_v42 = vpop.permute.xlu1 %6083  ;;  %5997 = vmatprep.subr.bf16.mxu0 %v5974_v1  ;;  %7848 = vmatprep.subr.bf16.mxu1 %v12101_v63  ;;  %vm12247_vm14 = vmmov %vm12243_vm0 }
 0x5b0   : > { %7850 = vmatprep.mubr.msk.bf16.mxu1 %vm8320_vm1, %v12101_v63  ;;  %v6091_v22 = vsel %vm907_vm13, %v12230_v37, %v6084_v42  ;;  %v11340_v40 = vpop.permute.xlu0 %6783 }
 0x5b1   : > { %7128 = vrot.lane.b32.xlu1 %v10395_v51, %s11839_s17  ;;  %7606 = vmatmul.mubr.msk.bf16.vlgmr.msra.gmra.mxu0 %vm12222_vm8, %v7605_v33  ;;  %v5975_v51 = vsel %vm12228_vm15, %v5967_v30, %v5969_v26  ;;  %vm12245_vm8 = vcmask 441344   ;;  %v7614_v26 = vld [vmem:[%s11530_s6 + $0x40] sm:$0xf]  ;;  %vm12249_vm15 = vmmov %vm12215_vm2 }
 0x5b2   : > { %7849 = vmatpush3.bf16.msra.mxu1 %v5855_v35  ;;  %5998 = vmatpush1.bf16.msra.mxu0 %v5973_v52  ;;  %vm12248_vm6 = vmmov %vm12245_vm8  ;;  %v7617_v52 = vld [vmem:[%s11530_s6 + $0x44] sm:$0xf] }
 0x5b3   : > { %v6086_v17 = vpop.permute.xlu1 %6085  ;;  %5999 = vmatprep.subr.bf16.mxu0 %v5971_v9  ;;  %7854 = vmatprep.subr.bf16.mxu1 %v12101_v63  ;;  %v6324_v10 = vsel %vm12248_vm6, %v10993_v60, %v10968_v0 }
 0x5b4   : > { %6017 = vmatprep.mubr.bf16.mxu0 %v12033_v39  ;;  %v6092_v32 = vsel %vm907_vm13, %v6084_v42, %v6086_v17  ;;  %v11361_v60 = vpop.permute.xlu0 %6781 }
 0x5b5   : > { %7851 = vmatmul.mubr.msk.bf16.vlgmr.msra.gmra.mxu1 %vm12229_vm3, %v7605_v33  ;;  %7130 = vrot.lane.b32.xlu1 %v10405_v38, %s11839_s17  ;;  %v6090_v38 = vsel %vm907_vm13, %v10841_v12, %v12230_v37  ;;  %v6087_v12 = vsel %vm907_vm13, %v10860_v58, %v12235_v24  ;;  %v12238_v58 = vld [vmem:[#allocation39_spill] sm:$0xff]  ;;  %vm12251_vm3 = vmmov %vm12248_vm6  ;;  %s305_s17 = scalar_lea.vmem %s11532_s8, %s12318_s23 }
 0x5b6   : > { %7855 = vmatpush3.bf16.msra.mxu1 %v5975_v51  ;;  %6000 = vmatpush1.bf16.msra.mxu0 %v5970_v5  ;;  %v6089_v61 = vsel %vm907_vm13, %v12234_v46, %v12238_v58  ;;  %vm12242_vm13 = vmmov %vm12241_vm7  ;;  %v6322_v1 = vsel %vm12251_vm3, %v11016_v23, %v12250_v14  ;;  %v7620_v5 = vld [vmem:[%s11530_s6 + $0x48] sm:$0xf] }
 0x5b7   : > { %v6201_v34 = vpop.permute.xlu1 %6200  ;;  %6114 = vmatprep.subr.bf16.mxu0 %v6091_v22  ;;  %7856 = vmatprep.subr.bf16.mxu1 %v12101_v63  ;;  %vm12252_vm5 = vmmov %vm12251_vm3 }
 0x5b8   : > { %7858 = vmatprep.mubr.msk.bf16.mxu1 %vm8320_vm1, %v12101_v63  ;;  %v6208_v62 = vsel %vm12237_vm11, %v10876_v4, %v6201_v34  ;;  %v6204_v4 = vsel %vm12242_vm13, %v10948_v11, %v10921_v59  ;;  %v12246_v59 = vld [vmem:[#allocation43_spill] sm:$0xff]  ;;  %v6321_v42 = vsel %vm12252_vm5, %v11043_v50, %v11016_v23  ;;  %vm12255_vm11 = vcmask 433152   ;;  %v12256_v23 = vld [vmem:[#allocation46_spill] sm:$0xff]  ;;  %vm12257_vm12 = vmmov %vm12251_vm3  ;;  %v11382_v17 = vpop.permute.xlu0 %6775 }
 0x5b9   : > { %7609 = vmatmul.mubr.msk.bf16.vlgmr.msra.gmra.mxu0 %vm12233_vm9, %v7608_v56  ;;  %v6206_v11 = vsel %vm12247_vm14, %v12240_v19, %v12246_v59  ;;  %vm12253_vm9 = vmmov %vm12251_vm3  ;;  %v6323_v50 = vsel %vm12257_vm12, %v12250_v14, %v12256_v23  ;;  %vm12265_vm14 = vcmask 424960  }
 0x5ba   : > { %7857 = vmatpush3.bf16.msra.mxu1 %v5972_v13  ;;  %6115 = vmatpush1.bf16.msra.mxu0 %v6090_v38  ;;  %vm12271_vm5 = vmmov %vm12265_vm14  ;;  %v7623_v13 = vld [vmem:[%s11530_s6 + $0x4c] sm:$0xf] }
 0x5bb   : > { %v6203_v55 = vpop.permute.xlu1 %6202  ;;  %6116 = vmatprep.subr.bf16.mxu0 %v6088_v31  ;;  %7862 = vmatprep.subr.bf16.mxu1 %v12101_v63 }
 0x5bc   : > { %6134 = vmatprep.mubr.bf16.mxu0 %v12033_v39  ;;  %v6209_v18 = vsel %vm12243_vm0, %v6201_v34, %v6203_v55  ;;  %v6774_v22 = vpop.permute.xlu0 %6773 }
 0x5bd   : > { %7859 = vmatmul.mubr.msk.bf16.vlgmr.msra.gmra.mxu1 %vm12236_vm4, %v7608_v56  ;;  %vm12254_vm4 = vmmov %vm12215_vm2  ;;  %v12270_v56 = vld [vmem:[#allocation51_spill] sm:$0xff] }
 0x5be   : > { %7863 = vmatpush3.bf16.msra.mxu1 %v6092_v32  ;;  %6117 = vmatpush1.bf16.msra.mxu0 %v6087_v12  ;;  %vm12259_vm7 = vmmov %vm12254_vm4  ;;  %v6556_v34 = vsel %vm12271_vm5, %v11206_v48, %v12270_v56  ;;  %v7626_v32 = vld [vmem:[%s11530_s6 + $0x50] sm:$0xf] }
 0x5bf   : > { %v6318_v30 = vpop.permute.xlu1 %6317  ;;  %6231 = vmatprep.subr.bf16.mxu0 %v6208_v62  ;;  %7864 = vmatprep.subr.bf16.mxu1 %v12101_v63  ;;  %vm12269_vm3 = vmmov %vm12254_vm4 }
 0x5c0   : > { %7866 = vmatprep.mubr.msk.bf16.mxu1 %vm8320_vm1, %v12101_v63  ;;  %v6325_v3 = vsel %vm12245_vm8, %v10968_v0, %v6318_v30  ;;  %vm12264_vm8 = vmmov %vm12254_vm4  ;;  %v6901_v24 = vpop.permute.xlu0 %6900 }
 0x5c1   : > { %7612 = vmatmul.mubr.msk.bf16.vlgmr.msra.gmra.mxu0 %vm12215_vm2, %v7611_v54  ;;  %vm12258_vm2 = vmmov %vm12255_vm11 }
 0x5c2   : > { %7865 = vmatpush3.bf16.msra.mxu1 %v6089_v61  ;;  %6232 = vmatpush1.bf16.msra.mxu0 %v6207_v57  ;;  %v6441_v35 = vsel %vm12258_vm2, %v11088_v28, %v11063_v20  ;;  %vm12261_vm13 = vmmov %vm12258_vm2 }
 0x5c3   : > { %v6320_v29 = vpop.permute.xlu1 %6319  ;;  %6233 = vmatprep.subr.bf16.mxu0 %v6205_v41  ;;  %7870 = vmatprep.subr.bf16.mxu1 %v12101_v63  ;;  %v6439_v49 = vsel %vm12261_vm13, %v11111_v15, %v12260_v7  ;;  %vm12262_vm0 = vmmov %vm12258_vm2 }
 0x5c4   : > { %6251 = vmatprep.mubr.bf16.mxu0 %v12033_v39  ;;  %v6326_v0 = vsel %vm12253_vm9, %v6318_v30, %v6320_v29  ;;  %vm12267_vm6 = vmmov %vm12262_vm0 }
 0x5c5   : > { %7867 = vmatmul.mubr.msk.bf16.vlgmr.msra.gmra.mxu1 %vm12244_vm10, %v7611_v54  ;;  %vm12263_vm10 = vmmov %vm12262_vm0 }
 0x5c6   : > { %7871 = vmatpush3.bf16.msra.mxu1 %v6209_v18  ;;  %6234 = vmatpush1.bf16.msra.mxu0 %v6204_v4  ;;  %vm12272_vm9 = vmmov %vm12271_vm5  ;;  %v7629_v18 = vld [vmem:[%s11530_s6 + $0x54] sm:$0xf] }
 0x5c7   : > { %v6435_v43 = vpop.permute.xlu1 %6434  ;;  %6348 = vmatprep.subr.bf16.mxu0 %v6325_v3  ;;  %7872 = vmatprep.subr.bf16.mxu1 %v12101_v63  ;;  %v6555_v21 = vsel %vm12272_vm9, %v11233_v44, %v11206_v48  ;;  %vm12275_vm12 = vmmov %vm12269_vm3 }
 0x5c8   : > { %7874 = vmatprep.mubr.msk.bf16.mxu1 %vm8320_vm1, %v12101_v63  ;;  %v6442_v27 = vsel %vm12255_vm11, %v11063_v20, %v6435_v43  ;;  %v6438_v20 = vsel %vm12262_vm0, %v11138_v16, %v11111_v15  ;;  %v12266_v15 = vld [vmem:[#allocation49_spill] sm:$0xff]  ;;  %vm12274_vm11 = vmmov %vm12269_vm3 }
 0x5c9   : > { %7615 = vmatmul.mubr.msk.bf16.vlgmr.msra.gmra.mxu0 %vm12249_vm15, %v7614_v26  ;;  %v6440_v16 = vsel %vm12267_vm6, %v12260_v7, %v12266_v15  ;;  %vm12268_vm15 = vmmov %vm12265_vm14 }
 0x5ca   : > { %7873 = vmatpush3.bf16.msra.mxu1 %v6206_v11  ;;  %6349 = vmatpush1.bf16.msra.mxu0 %v6324_v10  ;;  %v6558_v37 = vsel %vm12268_vm15, %v11183_v8, %v11158_v47  ;;  %vm12276_vm2 = vmmov %vm12269_vm3 }
 0x5cb   : > { %v6437_v33 = vpop.permute.xlu1 %6436  ;;  %6350 = vmatprep.subr.bf16.mxu0 %v6322_v1  ;;  %7878 = vmatprep.subr.bf16.mxu1 %v12101_v63  ;;  %v6675_v48 = vsel %vm12276_vm2, %v11278_v25, %v11253_v36  ;;  %vm12278_vm13 = vmmov %vm12276_vm2  ;;  %v6899_v25 = vpop.permute.xlu0 %6898 }
 0x5cc   : > { %6368 = vmatprep.mubr.bf16.mxu0 %v12033_v39  ;;  %v6443_v28 = vsel %vm12263_vm10, %v6435_v43, %v6437_v33  ;;  %vm12279_vm0 = vmmov %vm12276_vm2 }
 0x5cd   : > { %7875 = vmatmul.mubr.msk.bf16.vlgmr.msra.gmra.mxu1 %vm12254_vm4, %v7614_v26  ;;  %vm12273_vm4 = vmmov %vm12271_vm5 }
 0x5ce   : > { %7879 = vmatpush3.bf16.msra.mxu1 %v6326_v0  ;;  %6351 = vmatpush1.bf16.msra.mxu0 %v6321_v42  ;;  %vm12280_vm10 = vmmov %vm12279_vm0 }
 0x5cf   : > { %v6552_v6 = vpop.permute.xlu1 %6551  ;;  %6465 = vmatprep.subr.bf16.mxu0 %v6442_v27  ;;  %7880 = vmatprep.subr.bf16.mxu1 %v12101_v63  ;;  %v6672_v12 = vsel %vm12280_vm10, %v11322_v45, %v11299_v53  ;;  %vm12283_vm6 = vmmov %vm12279_vm0  ;;  %v6893_v30 = vpop.permute.xlu0 %6892  ;;  %v7632_v27 = vld [vmem:[%s11530_s6 + $0x58] sm:$0xf] }
 0x5d0   : > { %7882 = vmatprep.mubr.msk.bf16.mxu1 %vm8320_vm1, %v12101_v63  ;;  %v6559_v2 = vsel %vm12265_vm14, %v11158_v47, %v6552_v6  ;;  %vm12282_vm14 = vmmov %vm12279_vm0 }
 0x5d1   : > { %7618 = vmatmul.mubr.msk.bf16.vlgmr.msra.gmra.mxu0 %vm12259_vm7, %v7617_v52  ;;  %vm12277_vm7 = vmmov %vm12273_vm4 }
 0x5d2   : > { %7881 = vmatpush3.bf16.msra.mxu1 %v6323_v50  ;;  %6466 = vmatpush1.bf16.msra.mxu0 %v6441_v35  ;;  %vm12284_vm15 = vmmov %vm12279_vm0 }
 0x5d3   : > { %v6554_v9 = vpop.permute.xlu1 %6553  ;;  %6467 = vmatprep.subr.bf16.mxu0 %v6439_v49  ;;  %7886 = vmatprep.subr.bf16.mxu1 %v12101_v63  ;;  %vm12287_vm9 = vmmov %vm12279_vm0  ;;  %v6891_v19 = vpop.permute.xlu0 %6890 }
 0x5d4   : > { %6485 = vmatprep.mubr.bf16.mxu0 %v12033_v39  ;;  %v6560_v47 = vsel %vm12273_vm4, %v6552_v6, %v6554_v9 }
 0x5d5   : > { %7883 = vmatmul.mubr.msk.bf16.vlgmr.msra.gmra.mxu1 %vm12264_vm8, %v7617_v52  ;;  %vm12281_vm8 = vmmov %vm12279_vm0 }
 0x5d6   : > { %7887 = vmatpush3.bf16.msra.mxu1 %v6443_v28  ;;  %6468 = vmatpush1.bf16.msra.mxu0 %v6438_v20 }
 0x5d7   : > { %v6546_v51 = vpop.permute.xlu1 %6545  ;;  %6582 = vmatprep.subr.bf16.mxu0 %v6559_v2  ;;  %7888 = vmatprep.subr.bf16.mxu1 %v12101_v63  ;;  %v7018_v26 = vpop.permute.xlu0 %7017 }
 0x5d8   : > { %7890 = vmatprep.mubr.msk.bf16.mxu1 %vm8320_vm1, %v12101_v63  ;;  %v6557_v44 = vsel %vm12277_vm7, %v12270_v56, %v6546_v51  ;;  %vm12292_vm7 = vmmov %vm12279_vm0 }
 0x5d9   : > { %7621 = vmatmul.mubr.msk.bf16.vlgmr.msra.gmra.mxu0 %vm12269_vm3, %v7620_v5  ;;  %vm12285_vm3 = vcmask 252928  }
 0x5da   : > { %7889 = vmatpush3.bf16.msra.mxu1 %v6440_v16  ;;  %6583 = vmatpush1.bf16.msra.mxu0 %v6558_v37  ;;  %vm12286_vm5 = vmmov %vm12285_vm3 }
 0x5db   : > { %v6669_v38 = vpop.permute.xlu1 %6668  ;;  %6584 = vmatprep.subr.bf16.mxu0 %v6556_v34  ;;  %7894 = vmatprep.subr.bf16.mxu1 %v12101_v63  ;;  %v6792_v61 = vsel %vm12286_vm5, %v11361_v60, %v11340_v40  ;;  %vm12288_vm4 = vmmov %vm12285_vm3  ;;  %v7016_v10 = vpop.permute.xlu0 %7015 }
 0x5dc   : > { %6602 = vmatprep.mubr.bf16.mxu0 %v12033_v39  ;;  %v6676_v8 = vsel %vm12275_vm12, %v11253_v36, %v6669_v38  ;;  %vm12290_vm12 = vmmov %vm12285_vm3 }
 0x5dd   : > { %7891 = vmatmul.mubr.msk.bf16.vlgmr.msra.gmra.mxu1 %vm12274_vm11, %v7620_v5  ;;  %vm12289_vm11 = vmmov %vm12285_vm3  ;;  %v6789_v4 = vsel %vm12290_vm12, %v6774_v22, %v11382_v17 }
 0x5de   : > { %7895 = vmatpush3.bf16.msra.mxu1 %v6560_v47  ;;  %6585 = vmatpush1.bf16.msra.mxu0 %v6555_v21  ;;  %vm12291_vm2 = vmmov %vm12285_vm3 }
 0x5df   : > { %v6671_v46 = vpop.permute.xlu1 %6670  ;;  %6699 = vmatprep.subr.bf16.mxu0 %v6676_v8  ;;  %7896 = vmatprep.subr.bf16.mxu1 %v12101_v63  ;;  %v7010_v42 = vpop.permute.xlu0 %7009 }
 0x5e0   : > { %7898 = vmatprep.mubr.msk.bf16.mxu1 %vm8320_vm1, %v12101_v63  ;;  %v6677_v36 = vsel %vm12281_vm8, %v6669_v38, %v6671_v46 }
 0x5e1   : > { %7624 = vmatmul.mubr.msk.bf16.vlgmr.msra.gmra.mxu0 %vm12278_vm13, %v7623_v13  ;;  %vm12293_vm13 = vmmov %vm12279_vm0 }
 0x5e2   : > { %7897 = vmatpush3.bf16.msra.mxu1 %v6557_v44  ;;  %6700 = vmatpush1.bf16.msra.mxu0 %v6675_v48  ;;  %v7635_v44 = vld [vmem:[%s11530_s6 + $0x5c] sm:$0xf] }
 0x5e3   : > { %v6661_v31 = vpop.permute.xlu1 %6660  ;;  %7902 = vmatprep.subr.bf16.mxu1 %v12101_v63  ;;  %6719 = vmatprep.mubr.bf16.mxu0 %v12033_v39  ;;  %v7008_v50 = vpop.permute.xlu0 %7007 }
 0x5e4   : > { %v6673_v55 = vsel %vm12279_vm0, %v11299_v53, %v6661_v31  ;;  %vm12294_vm0 = vcmask 244736  }
 0x5e5   : > { %7899 = vmatmul.mubr.msk.bf16.vlgmr.msra.gmra.mxu1 %vm12282_vm14, %v7623_v13  ;;  %6701 = vmatprep.subr.bf16.mxu0 %v6673_v55  ;;  %vm12295_vm10 = vmmov %vm12294_vm0 }
 0x5e6   : > { %7903 = vmatpush3.bf16.msra.mxu1 %v6677_v36  ;;  %6702 = vmatpush1.bf16.msra.mxu0 %v6672_v12  ;;  %v6909_v11 = vsel %vm12295_vm10, %v6899_v25, %v6901_v24  ;;  %vm12296_vm8 = vmmov %vm12294_vm0  ;;  %vm12310_vm10 = vcmask 228352  }
 0x5e7   : > { %v6663_v62 = vpop.permute.xlu1 %6662  ;;  %7904 = vmatprep.subr.bf16.mxu1 %v12101_v63  ;;  %7906 = vmatprep.mubr.msk.bf16.mxu1 %vm8320_vm1, %v12101_v63  ;;  %vm12297_vm14 = vmmov %vm12294_vm0  ;;  %v7135_v5 = vpop.permute.xlu0 %7134 }
 0x5e8   : > { %v6674_v53 = vsel %vm12283_vm6, %v6661_v31, %v6663_v62  ;;  %vm12298_vm6 = vmmov %vm12294_vm0 }
 0x5e9   : > { %7627 = vmatmul.mubr.msk.bf16.vlgmr.msra.gmra.mxu0 %vm12284_vm15, %v7626_v32  ;;  %v6906_v60 = vsel %vm12298_vm6, %v6891_v19, %v6893_v30  ;;  %vm12299_vm15 = vmmov %vm12294_vm0 }
 0x5ea   : > { %7905 = vmatpush3.bf16.msra.mxu1 %v6674_v53  ;;  %6836 = vmatprep.mubr.bf16.mxu0 %v12033_v39 }
 0x5eb   : > { %v6786_v54 = vpop.permute.xlu1 %6785  ;;  %7910 = vmatprep.subr.bf16.mxu1 %v12101_v63  ;;  %v7133_v46 = vpop.permute.xlu0 %7132 }
 0x5ec   : > { %v6793_v58 = vsel %vm12285_vm3, %v11340_v40, %v6786_v54  ;;  %vm12300_vm3 = vmmov %vm12292_vm7 }
 0x5ed   : > { %7907 = vmatmul.mubr.msk.bf16.vlgmr.msra.gmra.mxu1 %vm12287_vm9, %v7626_v32  ;;  %6816 = vmatprep.subr.bf16.mxu0 %v6793_v58  ;;  %vm12301_vm5 = vmmov %vm12300_vm3  ;;  %vm12302_vm9 = vcmask 236544  }
 0x5ee   : > { %6817 = vmatpush1.bf16.msra.mxu0 %v6792_v61  ;;  %7914 = vmatprep.mubr.msk.bf16.mxu1 %vm8320_vm1, %v12101_v63 }
 0x5ef   : > { %v6788_v57 = vpop.permute.xlu1 %6787 }
 0x5f0   : > { %v6794_v45 = vsel %vm12288_vm4, %v6786_v54, %v6788_v57  ;;  %vm12303_vm4 = vmmov %vm12302_vm9 }
 0x5f1   : > { %7911 = vmatpush3.bf16.msra.mxu1 %v6794_v45  ;;  %v7026_v9 = vsel %vm12303_vm4, %v7016_v10, %v7018_v26  ;;  %vm12305_vm12 = vmmov %vm12303_vm4 }
 0x5f2   : > { %7912 = vmatprep.subr.bf16.mxu1 %v12101_v63 }
 0x5f3   : > { %v6778_v41 = vpop.permute.xlu1 %6777 }
 0x5f4   : > { %v6790_v29 = vsel %vm12289_vm11, %v11382_v17, %v6778_v41  ;;  %vm12304_vm11 = vmmov %vm12303_vm4 }
 0x5f5   : > { %6818 = vmatprep.subr.bf16.mxu0 %v6790_v29 }
 0x5f6   : > { %6819 = vmatpush1.bf16.msra.mxu0 %v6789_v4 }
 0x5f7   : > { %v6780_v3 = vpop.permute.xlu1 %6779 }
 0x5f8   : > { %v6791_v43 = vsel %vm12291_vm2, %v6778_v41, %v6780_v3  ;;  %vm12306_vm2 = vmmov %vm12303_vm4 }
 0x5f9   : > { %7630 = vmatmul.mubr.msk.bf16.vlgmr.msra.gmra.mxu0 %vm12292_vm7, %v7629_v18  ;;  %7913 = vmatpush3.bf16.msra.mxu1 %v6791_v43  ;;  %v7023_v47 = vsel %vm12306_vm2, %v7008_v50, %v7010_v42  ;;  %vm12307_vm7 = vmmov %vm12306_vm2 }
 0x5fa   : > { %7918 = vmatprep.subr.bf16.mxu1 %v12101_v63  ;;  %6953 = vmatprep.mubr.bf16.mxu0 %v12033_v39 }
 0x5fb   : > { %v6903_v40 = vpop.permute.xlu1 %6902 }
 0x5fc   : > { %7915 = vmatmul.mubr.msk.bf16.vlgmr.msra.gmra.mxu1 %vm12293_vm13, %v7629_v18  ;;  %v6910_v59 = vsel %vm12294_vm0, %v6901_v24, %v6903_v40  ;;  %vm12308_vm13 = vmmov %vm12300_vm3 }
 0x5fd   : > { %6933 = vmatprep.subr.bf16.mxu0 %v6910_v59  ;;  %7922 = vmatprep.mubr.msk.bf16.mxu1 %vm8320_vm1, %v12101_v63  ;;  %vm12309_vm0 = vmmov %vm12300_vm3 }
 0x5fe   : > { %6934 = vmatpush1.bf16.msra.mxu0 %v6909_v11 }
 0x5ff   : > { %v6905_v14 = vpop.permute.xlu1 %6904 }
 0x600   : > { %v6911_v1 = vsel %vm12296_vm8, %v6903_v40, %v6905_v14  ;;  %vm12311_vm8 = vmmov %vm12310_vm10 }
 0x601   : > { %7919 = vmatpush3.bf16.msra.mxu1 %v6911_v1  ;;  %v7143_v57 = vsel %vm12311_vm8, %v7133_v46, %v7135_v5  ;;  %vm12313_vm6 = vmmov %vm12311_vm8 }
 0x602   : > { %7920 = vmatprep.subr.bf16.mxu1 %v12101_v63 }
 0x603   : > { %v6895_v33 = vpop.permute.xlu1 %6894 }
 0x604   : > { %v6907_v0 = vsel %vm12297_vm14, %v6893_v30, %v6895_v33  ;;  %v7127_v30 = vpop.permute.xlu0 %7126  ;;  %vm12312_vm14 = vmmov %vm12311_vm8 }
 0x605   : > { %6935 = vmatprep.subr.bf16.mxu0 %v6907_v0 }
 0x606   : > { %6936 = vmatpush1.bf16.msra.mxu0 %v6906_v60 }
 0x607   : > { %v6897_v52 = vpop.permute.xlu1 %6896 }
 0x608   : > { %v6908_v6 = vsel %vm12299_vm15, %v6895_v33, %v6897_v52  ;;  %v7125_v43 = vpop.permute.xlu0 %7124  ;;  %v7638_v52 = vld [vmem:[%s11530_s6 + $0x60] sm:$0xf] }
 0x609   : > { %v4401_v23 = vpop.f32.mrf.mxu0  ;;  %7633 = vmatmul.mubr.msk.bf16.vlgmr.msra.gmra.mxu0 %vm12300_vm3, %v7632_v27  ;;  %7921 = vmatpush3.bf16.msra.mxu1 %v6908_v6  ;;  %vm12316_vm3 = vmmov %vm12309_vm0 }
 0x60a   : > { %7926 = vmatprep.subr.bf16.mxu1 %v12101_v63  ;;  %7070 = vmatprep.mubr.bf16.mxu0 %v12033_v39 }
 0x60b   : > { %v7020_v35 = vpop.permute.xlu1 %7019  ;;  %v4403_v7 = vpop.f32.mrf.mxu0 }
 0x60c   : > { %7923 = vmatmul.mubr.msk.bf16.vlgmr.msra.gmra.mxu1 %vm12301_vm5, %v7632_v27  ;;  %v7027_v49 = vsel %vm12302_vm9, %v7018_v26, %v7020_v35  ;;  %vm12317_vm5 = vmmov %vm12309_vm0 }
 0x60d   : > { %v4442_v17 = vpop.f32.mrf.mxu1  ;;  %v4405_v20 = vpop.f32.mrf.mxu0  ;;  %7050 = vmatprep.subr.bf16.mxu0 %v7027_v49  ;;  %7930 = vmatprep.mubr.msk.bf16.mxu1 %vm8320_vm1, %v12101_v63 }
 0x60e   : > { %7051 = vmatpush1.bf16.msra.mxu0 %v7026_v9 }
 0x60f   : > { %v7748_v28 = vpop.f32.mrf.mxu1  ;;  %v7022_v2 = vpop.permute.xlu1 %7021 }
 0x610   : > { %v7028_v51 = vsel %vm12304_vm11, %v7020_v35, %v7022_v2  ;;  %v4406_v15 = vpop.f32.mrf.mxu0 }
 0x611   : > { %v4445_v16 = vpop.f32.mrf.mxu1  ;;  %7927 = vmatpush3.bf16.msra.mxu1 %v7028_v51 }
 0x612   : > { %v4501_v37 = vpop.f32.mrf.mxu0  ;;  %7928 = vmatprep.subr.bf16.mxu1 %v12101_v63 }
 0x613   : > { %v4502_v22 = vadd.f32 %v4501_v37, %v4401_v23  ;;  %v7749_v56 = vpop.f32.mrf.mxu1  ;;  %v7012_v34 = vpop.permute.xlu1 %7011 }
 0x614   : > { %v4503_v38 = vpop.f32.mrf.mxu0  ;;  %v7024_v21 = vsel %vm12305_vm12, %v7010_v42, %v7012_v34 }
 0x615   : > { %v4504_v8 = vadd.f32 %v4503_v38, %v4403_v7  ;;  %v4542_v13 = vpop.f32.mrf.mxu1  ;;  %7052 = vmatprep.subr.bf16.mxu0 %v7024_v21 }
 0x616   : > { %v4543_v24 = vadd.f32 %v4542_v13, %v4442_v17  ;;  %v4505_v48 = vpop.f32.mrf.mxu0  ;;  %7053 = vmatpush1.bf16.msra.mxu0 %v7023_v47 }
 0x617   : > { %v7756_v31 = vpop.f32.mrf.mxu1  ;;  %v7014_v55 = vpop.permute.xlu1 %7013 }
 0x618   : > { %v7025_v12 = vsel %vm12307_vm7, %v7012_v34, %v7014_v55  ;;  %v4506_v36 = vpop.f32.mrf.mxu0 }
 0x619   : > { %v4545_v25 = vpop.f32.mrf.mxu1  ;;  %7636 = vmatmul.mubr.msk.bf16.vlgmr.msra.gmra.mxu0 %vm12308_vm13, %v7635_v44  ;;  %7929 = vmatpush3.bf16.msra.mxu1 %v7025_v12 }
 0x61a   : > { %v4615_v32 = vpop.f32.mrf.mxu0  ;;  %7934 = vmatprep.subr.bf16.mxu1 %v12101_v63  ;;  %7187 = vmatprep.mubr.bf16.mxu0 %v12033_v39 }
 0x61b   : > { %v4662_v62 = vadd.f32 %v4615_v32, %v4502_v22  ;;  %v7757_v53 = vpop.f32.mrf.mxu1  ;;  %v7137_v54 = vpop.permute.xlu1 %7136 }
 0x61c   : > { %v4617_v58 = vpop.f32.mrf.mxu0  ;;  %7931 = vmatmul.mubr.msk.bf16.vlgmr.msra.gmra.mxu1 %vm12309_vm0, %v7635_v44  ;;  %v7144_v61 = vsel %vm12310_vm10, %v7135_v5, %v7137_v54 }
 0x61d   : > { %v4663_v45 = vadd.f32 %v4617_v58, %v4504_v8  ;;  %v4656_v19 = vpop.f32.mrf.mxu1  ;;  %7167 = vmatprep.subr.bf16.mxu0 %v7144_v61  ;;  %7938 = vmatprep.mubr.msk.bf16.mxu1 %vm8320_vm1, %v12101_v63  ;;  %vm12314_vm1 = vmmov %vm12313_vm6 }
 0x61e   : > { %v4664_v41 = vadd.f32 %v4656_v19, %v4543_v24  ;;  %v4619_v29 = vpop.f32.mrf.mxu0  ;;  %7168 = vmatpush1.bf16.msra.mxu0 %v7143_v57  ;;  %v7140_v33 = vsel %vm12314_vm1, %v7125_v43, %v7127_v30  ;;  %vm12315_vm15 = vmmov %vm12314_vm1 }
 0x61f   : > { %v7764_v39 = vpop.f32.mrf.mxu1  ;;  %v7139_v4 = vpop.permute.xlu1 %7138 }
 0x620   : > { %v7145_v18 = vsel %vm12312_vm14, %v7137_v54, %v7139_v4  ;;  %v4620_v3 = vpop.f32.mrf.mxu0 }
 0x621   : > { %v4659_v26 = vpop.f32.mrf.mxu1  ;;  %7935 = vmatpush3.bf16.msra.mxu1 %v7145_v18 }
 0x622   : > { %v4732_v40 = vpop.f32.mrf.mxu0  ;;  %7936 = vmatprep.subr.bf16.mxu1 %v12101_v63 }
 0x623   : > { %v4779_v59 = vadd.f32 %v4732_v40, %v4662_v62  ;;  %v7765_v11 = vpop.f32.mrf.mxu1  ;;  %v7129_v10 = vpop.permute.xlu1 %7128 }
 0x624   : > { %v4734_v14 = vpop.f32.mrf.mxu0  ;;  %v7141_v1 = vsel %vm12313_vm6, %v7127_v30, %v7129_v10 }
 0x625   : > { %v4780_v42 = vadd.f32 %v4734_v14, %v4663_v45  ;;  %v4773_v0 = vpop.f32.mrf.mxu1  ;;  %7169 = vmatprep.subr.bf16.mxu0 %v7141_v1 }
 0x626   : > { %v4781_v60 = vadd.f32 %v4773_v0, %v4664_v41  ;;  %v4736_v27 = vpop.f32.mrf.mxu0  ;;  %7170 = vmatpush1.bf16.msra.mxu0 %v7140_v33 }
 0x627   : > { %v7772_v6 = vpop.f32.mrf.mxu1  ;;  %v7131_v63 = vpop.permute.xlu1 %7130 }
 0x628   : > { %v7142_v23 = vsel %vm12315_vm15, %v7129_v10, %v7131_v63  ;;  %v4737_v50 = vpop.f32.mrf.mxu0 }
 0x629   : > { %v4776_v35 = vpop.f32.mrf.mxu1  ;;  %7639 = vmatmul.mubr.msk.bf16.vlgmr.msra.gmra.mxu0 %vm12316_vm3, %v7638_v52  ;;  %7937 = vmatpush3.bf16.msra.mxu1 %v7142_v23 }
 0x62a   : > { %v4849_v7 = vpop.f32.mrf.mxu0 }
 0x62b   : > { %v4896_v49 = vadd.f32 %v4849_v7, %v4779_v59  ;;  %v7773_v9 = vpop.f32.mrf.mxu1 }
 0x62c   : > { %v4851_v17 = vpop.f32.mrf.mxu0  ;;  %7939 = vmatmul.mubr.msk.bf16.vlgmr.msra.gmra.mxu1 %vm12317_vm5, %v7638_v52 }
 0x62d   : > { %v4897_v20 = vadd.f32 %v4851_v17, %v4780_v42  ;;  %v4890_v28 = vpop.f32.mrf.mxu1 }
 0x62e   : > { %v4898_v2 = vadd.f32 %v4890_v28, %v4781_v60  ;;  %v4853_v5 = vpop.f32.mrf.mxu0 }
 0x62f   : > { %v7780_v51 = vpop.f32.mrf.mxu1 }
 0x630   : > { %v4854_v15 = vpop.f32.mrf.mxu0 }
 0x631   : > { %v4893_v16 = vpop.f32.mrf.mxu1 }
 0x632   : > { %v4966_v37 = vpop.f32.mrf.mxu0 }
 0x633   : > { %v5013_v22 = vadd.f32 %v4966_v37, %v4896_v49  ;;  %v7781_v56 = vpop.f32.mrf.mxu1 }
 0x634   : > { %v4968_v34 = vpop.f32.mrf.mxu0 }
 0x635   : > { %v5014_v38 = vadd.f32 %v4968_v34, %v4897_v20  ;;  %v5007_v21 = vpop.f32.mrf.mxu1 }
 0x636   : > { %v5015_v47 = vadd.f32 %v5007_v21, %v4898_v2  ;;  %v4970_v8 = vpop.f32.mrf.mxu0 }
 0x637   : > { %v7788_v13 = vpop.f32.mrf.mxu1 }
 0x638   : > { %v4971_v46 = vpop.f32.mrf.mxu0 }
 0x639   : > { %v5010_v24 = vpop.f32.mrf.mxu1 }
 0x63a   : > { %v5083_v48 = vpop.f32.mrf.mxu0 }
 0x63b   : > { %v5130_v44 = vadd.f32 %v5083_v48, %v5013_v22  ;;  %v7789_v31 = vpop.f32.mrf.mxu1 }
 0x63c   : > { %v5085_v55 = vpop.f32.mrf.mxu0 }
 0x63d   : > { %v5131_v12 = vadd.f32 %v5085_v55, %v5014_v38  ;;  %v5124_v36 = vpop.f32.mrf.mxu1 }
 0x63e   : > { %v5132_v25 = vadd.f32 %v5124_v36, %v5015_v47  ;;  %v5087_v32 = vpop.f32.mrf.mxu0 }
 0x63f   : > { %v7796_v62 = vpop.f32.mrf.mxu1 }
 0x640   : > { %v5088_v53 = vpop.f32.mrf.mxu0 }
 0x641   : > { %v5127_v54 = vpop.f32.mrf.mxu1 }
 0x642   : > { %v5200_v30 = vpop.f32.mrf.mxu0 }
 0x643   : > { %v5247_v58 = vadd.f32 %v5200_v30, %v5130_v44  ;;  %v7797_v61 = vpop.f32.mrf.mxu1 }
 0x644   : > { %v5202_v57 = vpop.f32.mrf.mxu0 }
 0x645   : > { %v5248_v45 = vadd.f32 %v5202_v57, %v5131_v12  ;;  %v5241_v19 = vpop.f32.mrf.mxu1 }
 0x646   : > { %v5249_v41 = vadd.f32 %v5241_v19, %v5132_v25  ;;  %v5204_v29 = vpop.f32.mrf.mxu0 }
 0x647   : > { %v7804_v39 = vpop.f32.mrf.mxu1 }
 0x648   : > { %v5205_v4 = vpop.f32.mrf.mxu0 }
 0x649   : > { %v5244_v18 = vpop.f32.mrf.mxu1 }
 0x64a   : > { %v5317_v3 = vpop.f32.mrf.mxu0 }
 0x64b   : > { %v5364_v26 = vadd.f32 %v5317_v3, %v5247_v58  ;;  %v7805_v43 = vpop.f32.mrf.mxu1 }
 0x64c   : > { %v5319_v40 = vpop.f32.mrf.mxu0 }
 0x64d   : > { %v5365_v59 = vadd.f32 %v5319_v40, %v5248_v45  ;;  %v5358_v11 = vpop.f32.mrf.mxu1 }
 0x64e   : > { %v5366_v10 = vadd.f32 %v5358_v11, %v5249_v41  ;;  %v5321_v14 = vpop.f32.mrf.mxu0 }
 0x64f   : > { %v7812_v1 = vpop.f32.mrf.mxu1 }
 0x650   : > { %v5322_v33 = vpop.f32.mrf.mxu0 }
 0x651   : > { %v5361_v42 = vpop.f32.mrf.mxu1 }
 0x652   : > { %v5434_v0 = vpop.f32.mrf.mxu0 }
 0x653   : > { %v5481_v60 = vadd.f32 %v5434_v0, %v5364_v26  ;;  %v7813_v27 = vpop.f32.mrf.mxu1 }
 0x654   : > { %v5436_v52 = vpop.f32.mrf.mxu0 }
 0x655   : > { %v5482_v6 = vadd.f32 %v5436_v52, %v5365_v59  ;;  %v5475_v63 = vpop.f32.mrf.mxu1 }
 0x656   : > { %v5483_v23 = vadd.f32 %v5475_v63, %v5366_v10  ;;  %v5438_v50 = vpop.f32.mrf.mxu0 }
 0x657   : > { %v7820_v35 = vpop.f32.mrf.mxu1 }
 0x658   : > { %v5439_v7 = vpop.f32.mrf.mxu0 }
 0x659   : > { %v5478_v49 = vpop.f32.mrf.mxu1 }
 0x65a   : > { %v5551_v9 = vpop.f32.mrf.mxu0 }
 0x65b   : > { %v5598_v17 = vadd.f32 %v5551_v9, %v5481_v60  ;;  %v7821_v20 = vpop.f32.mrf.mxu1 }
 0x65c   : > { %v5553_v28 = vpop.f32.mrf.mxu0 }
 0x65d   : > { %v5599_v2 = vadd.f32 %v5553_v28, %v5482_v6  ;;  %v5592_v5 = vpop.f32.mrf.mxu1 }
 0x65e   : > { %v5600_v51 = vadd.f32 %v5592_v5, %v5483_v23  ;;  %v5555_v15 = vpop.f32.mrf.mxu0 }
 0x65f   : > { %v7828_v16 = vpop.f32.mrf.mxu1 }
 0x660   : > { %v5556_v37 = vpop.f32.mrf.mxu0 }
 0x661   : > { %v5595_v22 = vpop.f32.mrf.mxu1 }
 0x662   : > { %v5668_v56 = vpop.f32.mrf.mxu0 }
 0x663   : > { %v5715_v34 = vadd.f32 %v5668_v56, %v5598_v17  ;;  %v7829_v38 = vpop.f32.mrf.mxu1 }
 0x664   : > { %v5670_v21 = vpop.f32.mrf.mxu0 }
 0x665   : > { %v5716_v47 = vadd.f32 %v5670_v21, %v5599_v2  ;;  %v5709_v8 = vpop.f32.mrf.mxu1 }
 0x666   : > { %v5717_v13 = vadd.f32 %v5709_v8, %v5600_v51  ;;  %v5672_v46 = vpop.f32.mrf.mxu0 }
 0x667   : > { %v7836_v24 = vpop.f32.mrf.mxu1 }
 0x668   : > { %v5673_v48 = vpop.f32.mrf.mxu0 }
 0x669   : > { %v5712_v44 = vpop.f32.mrf.mxu1 }
 0x66a   : > { %v5785_v31 = vpop.f32.mrf.mxu0 }
 0x66b   : > { %v5832_v55 = vadd.f32 %v5785_v31, %v5715_v34  ;;  %v7837_v12 = vpop.f32.mrf.mxu1 }
 0x66c   : > { %v5787_v36 = vpop.f32.mrf.mxu0 }
 0x66d   : > { %v5833_v25 = vadd.f32 %v5787_v36, %v5716_v47  ;;  %v5826_v32 = vpop.f32.mrf.mxu1 }
 0x66e   : > { %v5834_v62 = vadd.f32 %v5826_v32, %v5717_v13  ;;  %v5789_v53 = vpop.f32.mrf.mxu0 }
 0x66f   : > { %v7844_v54 = vpop.f32.mrf.mxu1 }
 0x670   : > { %v5790_v30 = vpop.f32.mrf.mxu0 }
 0x671   : > { %v5829_v58 = vpop.f32.mrf.mxu1 }
 0x672   : > { %v5902_v61 = vpop.f32.mrf.mxu0 }
 0x673   : > { %v5949_v57 = vadd.f32 %v5902_v61, %v5832_v55  ;;  %v7845_v45 = vpop.f32.mrf.mxu1 }
 0x674   : > { %v5904_v19 = vpop.f32.mrf.mxu0 }
 0x675   : > { %v5950_v41 = vadd.f32 %v5904_v19, %v5833_v25  ;;  %v5943_v29 = vpop.f32.mrf.mxu1 }
 0x676   : > { %v5951_v39 = vadd.f32 %v5943_v29, %v5834_v62  ;;  %v5906_v4 = vpop.f32.mrf.mxu0 }
 0x677   : > { %v7852_v18 = vpop.f32.mrf.mxu1 }
 0x678   : > { %v5907_v3 = vpop.f32.mrf.mxu0 }
 0x679   : > { %v5946_v26 = vpop.f32.mrf.mxu1 }
 0x67a   : > { %v6019_v43 = vpop.f32.mrf.mxu0 }
 0x67b   : > { %v6066_v40 = vadd.f32 %v6019_v43, %v5949_v57  ;;  %v7853_v59 = vpop.f32.mrf.mxu1 }
 0x67c   : > { %v6021_v11 = vpop.f32.mrf.mxu0 }
 0x67d   : > { %v6067_v10 = vadd.f32 %v6021_v11, %v5950_v41  ;;  %v6060_v14 = vpop.f32.mrf.mxu1 }
 0x67e   : > { %v6068_v1 = vadd.f32 %v6060_v14, %v5951_v39  ;;  %v6023_v33 = vpop.f32.mrf.mxu0 }
 0x67f   : > { %v7860_v42 = vpop.f32.mrf.mxu1 }
 0x680   : > { %v6024_v0 = vpop.f32.mrf.mxu0 }
 0x681   : > { %v6063_v60 = vpop.f32.mrf.mxu1 }
 0x682   : > { %v6136_v27 = vpop.f32.mrf.mxu0 }
 0x683   : > { %v6183_v52 = vadd.f32 %v6136_v27, %v6066_v40  ;;  %v7861_v6 = vpop.f32.mrf.mxu1 }
 0x684   : > { %v6138_v63 = vpop.f32.mrf.mxu0 }
 0x685   : > { %v6184_v23 = vadd.f32 %v6138_v63, %v6067_v10  ;;  %v6177_v50 = vpop.f32.mrf.mxu1 }
 0x686   : > { %v6185_v35 = vadd.f32 %v6177_v50, %v6068_v1  ;;  %v6140_v7 = vpop.f32.mrf.mxu0 }
 0x687   : > { %v7868_v49 = vpop.f32.mrf.mxu1 }
 0x688   : > { %v6141_v9 = vpop.f32.mrf.mxu0 }
 0x689   : > { %v6180_v17 = vpop.f32.mrf.mxu1 }
 0x68a   : > { %v6253_v20 = vpop.f32.mrf.mxu0 }
 0x68b   : > { %v6300_v28 = vadd.f32 %v6253_v20, %v6183_v52  ;;  %v7869_v2 = vpop.f32.mrf.mxu1 }
 0x68c   : > { %v6255_v5 = vpop.f32.mrf.mxu0 }
 0x68d   : > { %v6301_v51 = vadd.f32 %v6255_v5, %v6184_v23  ;;  %v6294_v15 = vpop.f32.mrf.mxu1 }
 0x68e   : > { %v6302_v16 = vadd.f32 %v6294_v15, %v6185_v35  ;;  %v6257_v37 = vpop.f32.mrf.mxu0 }
 0x68f   : > { %v7876_v22 = vpop.f32.mrf.mxu1 }
 0x690   : > { %v6258_v56 = vpop.f32.mrf.mxu0 }
 0x691   : > { %v6297_v34 = vpop.f32.mrf.mxu1 }
 0x692   : > { %v6370_v38 = vpop.f32.mrf.mxu0 }
 0x693   : > { %v6417_v21 = vadd.f32 %v6370_v38, %v6300_v28  ;;  %v7877_v47 = vpop.f32.mrf.mxu1 }
 0x694   : > { %v6372_v8 = vpop.f32.mrf.mxu0 }
 0x695   : > { %v6418_v13 = vadd.f32 %v6372_v8, %v6301_v51  ;;  %v6411_v46 = vpop.f32.mrf.mxu1 }
 0x696   : > { %v6419_v24 = vadd.f32 %v6411_v46, %v6302_v16  ;;  %v6374_v48 = vpop.f32.mrf.mxu0 }
 0x697   : > { %v7884_v44 = vpop.f32.mrf.mxu1 }
 0x698   : > { %v6375_v31 = vpop.f32.mrf.mxu0 }
 0x699   : > { %v6414_v55 = vpop.f32.mrf.mxu1 }
 0x69a   : > { %v6487_v12 = vpop.f32.mrf.mxu0 }
 0x69b   : > { %v6534_v36 = vadd.f32 %v6487_v12, %v6417_v21  ;;  %v7885_v25 = vpop.f32.mrf.mxu1 }
 0x69c   : > { %v6489_v32 = vpop.f32.mrf.mxu0 }
 0x69d   : > { %v6535_v62 = vadd.f32 %v6489_v32, %v6418_v13  ;;  %v6528_v53 = vpop.f32.mrf.mxu1 }
 0x69e   : > { %v6536_v54 = vadd.f32 %v6528_v53, %v6419_v24  ;;  %v6491_v30 = vpop.f32.mrf.mxu0 }
 0x69f   : > { %v7892_v58 = vpop.f32.mrf.mxu1  ;;  %v7243_v30 = vpop.permute.xlu0 %7242 }
 0x6a0   : > { %v6492_v61 = vpop.f32.mrf.mxu0 }
 0x6a1   : > { %v6531_v57 = vpop.f32.mrf.mxu1 }
 0x6a2   : > { %v6604_v45 = vpop.f32.mrf.mxu0 }
 0x6a3   : > { %v7893_v19 = vpop.f32.mrf.mxu1  ;;  %v6651_v22 = vadd.f32 %v6604_v45, %v6534_v36 }
 0x6a4   : > { %v6606_v41 = vpop.f32.mrf.mxu0 }
 0x6a5   : > { %v6645_v29 = vpop.f32.mrf.mxu1  ;;  %v6652_v34 = vadd.f32 %v6606_v41, %v6535_v62 }
 0x6a6   : > { %v6608_v39 = vpop.f32.mrf.mxu0  ;;  %v6653_v47 = vadd.f32 %v6645_v29, %v6536_v54 }
 0x6a7   : > { %v7900_v4 = vpop.f32.mrf.mxu1 }
 0x6a8   : > { %v6609_v18 = vpop.f32.mrf.mxu0 }
 0x6a9   : > { %v6648_v3 = vpop.f32.mrf.mxu1 }
 0x6aa   : > { %v6721_v26 = vpop.f32.mrf.mxu0 }
 0x6ab   : > { %v7901_v43 = vpop.f32.mrf.mxu1  ;;  %v6768_v38 = vadd.f32 %v6721_v26, %v6651_v22 }
 0x6ac   : > { %v6723_v40 = vpop.f32.mrf.mxu0 }
 0x6ad   : > { %v6762_v59 = vpop.f32.mrf.mxu1  ;;  %v6769_v8 = vadd.f32 %v6723_v40, %v6652_v34 }
 0x6ae   : > { %v6725_v11 = vpop.f32.mrf.mxu0  ;;  %v6770_v46 = vadd.f32 %v6762_v59, %v6653_v47 }
 0x6af   : > { %v7908_v10 = vpop.f32.mrf.mxu1 }
 0x6b0   : > { %v6726_v14 = vpop.f32.mrf.mxu0 }
 0x6b1   : > { %v6765_v1 = vpop.f32.mrf.mxu1 }
 0x6b3   : > { %v7909_v33 = vpop.f32.mrf.mxu1 }
 0x6b9   : > { %v6838_v42 = vpop.f32.mrf.mxu0 }
 0x6ba   : > { %v6885_v13 = vadd.f32 %v6838_v42, %v6768_v38 }
 0x6bb   : > { %v6840_v0 = vpop.f32.mrf.mxu0 }
 0x6bc   : > { %v6879_v60 = vpop.f32.mrf.mxu1  ;;  %v6886_v24 = vadd.f32 %v6840_v0, %v6769_v8 }
 0x6bd   : > { %v6842_v27 = vpop.f32.mrf.mxu0  ;;  %v6887_v44 = vadd.f32 %v6879_v60, %v6770_v46 }
 0x6be   : > { %v7916_v52 = vpop.f32.mrf.mxu1 }
 0x6bf   : > { %v6843_v6 = vpop.f32.mrf.mxu0 }
 0x6c0   : > { %v6882_v63 = vpop.f32.mrf.mxu1 }
 0x6c2   : > { %v7917_v23 = vpop.f32.mrf.mxu1 }
 0x6c9   : > { %v6955_v50 = vpop.f32.mrf.mxu0 }
 0x6ca   : > { %v7002_v48 = vadd.f32 %v6955_v50, %v6885_v13 }
 0x6cb   : > { %v6957_v35 = vpop.f32.mrf.mxu0 }
 0x6cc   : > { %v6996_v7 = vpop.f32.mrf.mxu1  ;;  %v7003_v31 = vadd.f32 %v6957_v35, %v6886_v24 }
 0x6cd   : > { %v6959_v49 = vpop.f32.mrf.mxu0  ;;  %v7004_v12 = vadd.f32 %v6996_v7, %v6887_v44 }
 0x6ce   : > { %v7924_v9 = vpop.f32.mrf.mxu1 }
 0x6cf   : > { %v6960_v17 = vpop.f32.mrf.mxu0 }
 0x6d0   : > { %v6999_v20 = vpop.f32.mrf.mxu1 }
 0x6d2   : > { %v7925_v28 = vpop.f32.mrf.mxu1 }
 0x6d9   : > { %v7072_v2 = vpop.f32.mrf.mxu0 }
 0x6da   : > { %v7119_v55 = vadd.f32 %v7072_v2, %v7002_v48 }
 0x6db   : > { %v7074_v5 = vpop.f32.mrf.mxu0 }
 0x6dc   : > { %v7113_v51 = vpop.f32.mrf.mxu1  ;;  %v7120_v32 = vadd.f32 %v7074_v5, %v7003_v31 }
 0x6dd   : > { %v7076_v15 = vpop.f32.mrf.mxu0  ;;  %v7121_v36 = vadd.f32 %v7113_v51, %v7004_v12 }
 0x6de   : > { %v7932_v16 = vpop.f32.mrf.mxu1 }
 0x6df   : > { %v7077_v37 = vpop.f32.mrf.mxu0 }
 0x6e0   : > { %v7116_v56 = vpop.f32.mrf.mxu1 }
 0x6e2   : > { %v7933_v21 = vpop.f32.mrf.mxu1 }
 0x6e9   : > { %v7189_v25 = vpop.f32.mrf.mxu0 }
 0x6ea   : > { %v7236_v53 = vadd.f32 %v7189_v25, %v7119_v55 }
 0x6eb   : > { %v7191_v62 = vpop.f32.mrf.mxu0 }
 0x6ec   : > { %v7245_v54 = vadd.f32 %v7243_v30, %v7236_v53  ;;  %v7237_v58 = vadd.f32 %v7191_v62, %v7120_v32  ;;  %v7230_v61 = vpop.f32.mrf.mxu1 }
 0x6ed   : > { %v7238_v57 = vadd.f32 %v7230_v61, %v7121_v36  ;;  %v7193_v45 = vpop.f32.mrf.mxu0 }
 0x6ee   : > { %7248 = vst [vmem:[%s305_s17] sm:$0xff] %v7245_v54  ;;  %v7246_v19 = vadd.f32 %v7243_v30, %v7237_v58  ;;  %v7940_v41 = vpop.f32.mrf.mxu1 }
 0x6ef   : > { %v7247_v29 = vadd.f32 %v7243_v30, %v7238_v57  ;;  %v7194_v39 = vpop.f32.mrf.mxu0 }
 0x6f0   : > { %7249 = vst [vmem:[%s305_s17 + $0x8] sm:$0xff] %v7246_v19  ;;  %v7233_v4 = vpop.f32.mrf.mxu1 }
 0x6f1   : > { %7250 = vst [vmem:[%s305_s17 + $0x10] sm:$0xff] %v7247_v29 }
 0x6f2   : > { %v7941_v18 = vpop.f32.mrf.mxu1 }
 0x6f3 PF: > { %s18_s27 = sadd.s32 1, %s8240_s27  }
 0x6f4   : > { %p15_p4 = scmp.ge.s32.totalorder %s18_s27, 4  }
 0x6f6   :  { %17 = sbr.rel (!%p15_p4) target bundleno = 4 (0x4), region = 106 }

</bundles_post_ra>
